<compile_context>
chip_gen: v6e
topology: v6e:2x2x1
jax: 0.10.0
libtpu: 0.0.40
codegen_flags: <defaults>
</compile_context>

<pallas_src>
import jax
import jax.numpy as jnp
import numpy as np
from jax.experimental import pallas as pl
from jax.experimental.pallas import tpu as pltpu


_PADTOP = 8  # zero/garbage rows kept above the image rows inside each padded VMEM scratch


# ---------------- static per-layer geometry ----------------
def _layer_configs(H, W, Cin, num_filters):
    chans = [Cin, num_filters, 2 * num_filters, 4 * num_filters,
             8 * num_filters, 16 * num_filters, 32 * num_filters]
    cfgs = []
    h, w = H, W
    for l in range(6):
        cin, cout = chans[l], chans[l + 1]
        if l == 0:
            rep_stride, rep_cols = 1, w * cin            # dense input columns
        else:
            # input comes from a 2x2 maxpool whose W-decimation is deferred: valid
            # (pooled) values sit at the even column blocks of the previous layer.
            rep_stride, rep_cols = 2, (2 * w - 1) * cin
        cfgs.append(dict(H=h, W=w, Cin=cin, Cout=cout,
                         rep_stride=rep_stride, rep_cols=rep_cols,
                         bn=(l in (1, 3, 5)), pool=(l != 5)))
        if l != 5:
            h, w = h // 2, w // 2
    return cfgs


# ---------------- parameter init (deterministic, synthetic, torch layouts) ----------------
def init_params(key, num_classes=100, num_filters=8, input_shape=(64, 32, 3)):
    H, W, Cin = input_shape
    chans = [Cin, num_filters, 2 * num_filters, 4 * num_filters,
             8 * num_filters, 16 * num_filters, 32 * num_filters]
    keys = jax.random.split(key, 20)
    ki = 0
    params = {}
    for l in range(1, 7):
        cin, cout = chans[l - 1], chans[l]
        params[f"conv{l}_w"] = 0.1 * jax.random.normal(keys[ki], (cout, cin, 3, 3), jnp.float32); ki += 1
        params[f"conv{l}_b"] = 0.1 * jax.random.normal(keys[ki], (cout,), jnp.float32); ki += 1
    for l in (2, 4, 6):
        cout = chans[l]
        params[f"bn{l}_gamma"] = 1.0 + 0.1 * jax.random.normal(keys[ki], (cout,), jnp.float32); ki += 1
        params[f"bn{l}_beta"] = 0.1 * jax.random.normal(keys[ki], (cout,), jnp.float32); ki += 1
    feat = 32 * num_filters * (H // 2 ** 5) * (W // 2 ** 5)
    params["fc_w"] = 0.05 * jax.random.normal(keys[ki], (num_classes, feat), jnp.float32); ki += 1
    params["fc_b"] = 0.05 * jax.random.normal(keys[ki], (num_classes,), jnp.float32)
    return params


# ---------------- host-side (outside jit) parameter preparation ----------------
def prepare_params(params, *, num_classes, num_filters, input_shape):
    """Convert torch-layout params to kernel-ready layouts (banded conv weights,
    tiled biases / BN affine params, permuted+padded FC weight with the class mask
    folded into the bias)."""
    H, W, Cin0 = input_shape
    cfgs = _layer_configs(H, W, Cin0, num_filters)
    prep = {}
    for l, cfg in enumerate(cfgs):
        Wl, cin, cout = cfg["W"], cfg["Cin"], cfg["Cout"]
        w = np.asarray(params[f"conv{l + 1}_w"], np.float32)      # (Cout, Cin, 3, 3)
        b = np.asarray(params[f"conv{l + 1}_b"], np.float32)      # (Cout,)
        wk = np.transpose(w, (2, 3, 1, 0))                        # (dy, dx, Cin, Cout)
        band = np.zeros((3, cfg["rep_cols"], Wl * cout), np.float32)
        for dy in range(3):
            for dx in range(3):
                for xo in range(Wl):
                    xi = xo + dx - 1
                    if 0 <= xi < Wl:                              # W 'same' padding folded in
                        r0 = cfg["rep_stride"] * xi * cin
                        band[dy, r0:r0 + cin, xo * cout:(xo + 1) * cout] = wk[dy, dx]
        prep[f"band{l + 1}"] = jnp.asarray(band, jnp.bfloat16)
        prep[f"bias{l + 1}"] = jnp.asarray(np.tile(b, Wl)[None, :], jnp.float32)
        if cfg["bn"]:
            g = np.asarray(params[f"bn{l + 1}_gamma"], np.float32)
            be = np.asarray(params[f"bn{l + 1}_beta"], np.float32)
            prep[f"gamma{l + 1}"] = jnp.asarray(np.tile(g, Wl)[None, :], jnp.float32)
            prep[f"beta{l + 1}"] = jnp.asarray(np.tile(be, Wl)[None, :], jnp.float32)
            if Wl > 1:  # per-channel averaging matrix (skipped when it is the identity)
                nl = Wl * cout
                ii = np.arange(nl)[:, None] % cout
                jj = np.arange(nl)[None, :] % cout
                prep[f"bnT{l + 1}"] = jnp.asarray((ii == jj).astype(np.float32) / Wl, jnp.float32)
    # classifier: fold torch's NCHW flatten permutation + class padding into the weight,
    # and the padded-class -1e30 mask into the bias
    H6, W6, C6 = cfgs[-1]["H"], cfgs[-1]["W"], cfgs[-1]["Cout"]
    feat = C6 * H6 * W6
    cpad = ((num_classes + 127) // 128) * 128
    fw = np.asarray(params["fc_w"], np.float32)                   # (num_classes, feat)
    fb = np.asarray(params["fc_b"], np.float32)
    fwp = np.zeros((cpad, feat), np.float32); fwp[:num_classes] = fw
    fbp = np.where(np.arange(cpad) < num_classes, 0.0, -1e30).astype(np.float32)
    fbp[:num_classes] += fb
    chunks = np.transpose(fwp.reshape(cpad, C6, H6, W6), (2, 3, 1, 0))  # (H6, W6, C6, cpad)
    prep["fc_w"] = jnp.asarray(chunks.reshape(H6 * W6, C6, cpad), jnp.bfloat16)
    prep["fc_bm"] = jnp.asarray(fbp[None, :], jnp.float32)
    return prep


# ---------------- fused forward (single pallas_call) ----------------
def make_fused_forward(batch, num_classes, num_filters, input_shape):
    H, W, Cin0 = input_shape
    assert H % 32 == 0 and W % 32 == 0, "spatial dims must be divisible by 2**5"
    cfgs = _layer_configs(H, W, Cin0, num_filters)
    H6, W6, C6 = cfgs[-1]["H"], cfgs[-1]["W"], cfgs[-1]["Cout"]
    cpad = ((num_classes + 127) // 128) * 128
    N = batch
    bn_mm_layers = [l for l, c in enumerate(cfgs) if c["bn"] and c["W"] > 1]   # -> [1, 3]
    n_dma = 5 + len(bn_mm_layers) + 1     # band2..6, bnT (non-identity ones), fc_w

    def kernel(*refs):
        it = iter(refs)
        x_ref = next(it)
        band1_ref = next(it)
        band_hbm = [next(it) for _ in range(5)]                 # band2..band6 (HBM, pl.ANY)
        bias_refs = [next(it) for _ in range(6)]
        gb_refs = {l: (next(it), next(it)) for l in (1, 3, 5)}  # gamma, beta
        bnT_hbm = {l: next(it) for l in bn_mm_layers}           # (HBM, pl.ANY)
        fcw_hbm = next(it)                                      # (HBM, pl.ANY)
        fcbm_ref = next(it)
        o_ref = next(it)
        pad_refs = [next(it) for _ in range(6)]                 # bf16 padded activations
        band_vmem = [next(it) for _ in range(5)]
        bnT_vmem = {l: next(it) for l in bn_mm_layers}
        fcw_vmem = next(it)
        sem = next(it)

        # ---- kick off all large-weight DMAs; each is waited right before first use,
        #      so the transfers overlap the (largest) early-layer compute.
        si = 0
        band_cp = []
        for i in range(5):
            cp = pltpu.make_async_copy(band_hbm[i], band_vmem[i], sem.at[si]); si += 1
            cp.start(); band_cp.append(cp)
        bnT_cp = {}
        for l in bn_mm_layers:
            cp = pltpu.make_async_copy(bnT_hbm[l], bnT_vmem[l], sem.at[si]); si += 1
            cp.start(); bnT_cp[l] = cp
        fcw_cp = pltpu.make_async_copy(fcw_hbm, fcw_vmem, sem.at[si])
        fcw_cp.start()

        # ---- stage the bf16 (N, H, W*Cin) input; only the two halo rows are zeroed
        rc0 = cfgs[0]["rep_cols"]
        zrow0 = jnp.zeros((N, 1, rc0), jnp.bfloat16)
        pad_refs[0][:, _PADTOP - 1:_PADTOP, :] = zrow0
        pad_refs[0][:, _PADTOP + H:_PADTOP + H + 1, :] = zrow0
        pad_refs[0][:, _PADTOP:_PADTOP + H, :] = x_ref[...]

        final = None
        for l, cfg in enumerate(cfgs):
            Hl, Wl, Cout = cfg["H"], cfg["W"], cfg["Cout"]
            M, NL = N * Hl, Wl * Cout
            cur = pad_refs[l]
            if l == 0:
                band_ref = band1_ref
            else:
                band_cp[l - 1].wait()
                band_ref = band_vmem[l - 1]
            # ---- conv3x3 'same' as 3 banded, lane-dense MXU matmuls (bf16 x bf16 -> f32)
            acc = None
            for dy in range(3):
                a = cur[:, _PADTOP - 1 + dy:_PADTOP - 1 + dy + Hl, :]
                a = a.reshape(M, cfg["rep_cols"])
                d = jnp.dot(a, band_ref[dy], preferred_element_type=jnp.float32)
                acc = d if acc is None else acc + d
            acc = jnp.maximum(acc + bias_refs[l][...], 0.0)          # bias + ReLU
            # ---- BatchNorm2d (training mode: batch stats, eps=1e-3)
            if cfg["bn"]:
                g_ref, b_ref = gb_refs[l]
                rm = jnp.sum(acc, axis=0, keepdims=True) * (1.0 / M)
                rs = jnp.sum(acc * acc, axis=0, keepdims=True) * (1.0 / M)
                if Wl == 1:                      # averaging matrix would be the identity
                    mean, ex2 = rm, rs
                else:
                    bnT_cp[l].wait()
                    stats = jnp.dot(jnp.concatenate([rm, rs], axis=0), bnT_vmem[l][...],
                                    preferred_element_type=jnp.float32)
                    mean, ex2 = stats[0:1, :], stats[1:2, :]
                var = jnp.maximum(ex2 - mean * mean, 0.0)
                inv = jax.lax.rsqrt(var + 1e-3)
                acc = (acc - mean) * (inv * g_ref[...]) + b_ref[...]
            # ---- MaxPool 2x2 (stride 2, floor); W-decimation deferred to next layer
            if cfg["pool"]:
                Hn = Hl // 2
                pw = jnp.maximum(acc[:, :NL - Cout], acc[:, Cout:])          # max over W pairs
                pooled = jnp.max(pw.reshape(N, Hn, 2, NL - Cout), axis=2)    # max over H pairs
                nxt = pad_refs[l + 1]
                zr = jnp.zeros((N, 1, NL - Cout), jnp.bfloat16)
                nxt[:, _PADTOP - 1:_PADTOP, :] = zr
                nxt[:, _PADTOP + Hn:_PADTOP + Hn + 1, :] = zr
                nxt[:, _PADTOP:_PADTOP + Hn, :] = pooled.astype(jnp.bfloat16)
            else:
                final = acc                                          # (N*H6, W6*C6), f32

        # ---- classifier: flatten (NCHW order folded into fc weights) + linear + softmax
        fcw_cp.wait()
        a6 = final.reshape(N, H6, W6 * C6)
        logits = None
        for h6 in range(H6):
            row = a6[:, h6, :]
            for w6 in range(W6):
                chunk = row[:, w6 * C6:(w6 + 1) * C6] if W6 > 1 else row
                d = jnp.dot(chunk.astype(jnp.bfloat16), fcw_vmem[h6 * W6 + w6],
                            preferred_element_type=jnp.float32)
                logits = d if logits is None else logits + d
        logits = logits + fcbm_ref[...]                # bias with padded classes -> -1e30
        mx = jnp.max(logits, axis=-1, keepdims=True)
        ex = jnp.exp(logits - mx)
        o_ref[...] = (ex / jnp.sum(ex, axis=-1, keepdims=True)).astype(o_ref.dtype)

    def _full_spec(shape):
        nd = len(shape)
        return pl.BlockSpec(shape, lambda i, _nd=nd: (0,) * _nd)

    scratch_shapes = (
        [pltpu.VMEM((N, cfg["H"] + 2 * _PADTOP, cfg["rep_cols"]), jnp.bfloat16)
         for cfg in cfgs]
        + [pltpu.VMEM((3, cfgs[l]["rep_cols"], cfgs[l]["W"] * cfgs[l]["Cout"]), jnp.bfloat16)
           for l in range(1, 6)]
        + [pltpu.VMEM((cfgs[l]["W"] * cfgs[l]["Cout"], cfgs[l]["W"] * cfgs[l]["Cout"]),
                      jnp.float32) for l in bn_mm_layers]
        + [pltpu.VMEM((H6 * W6, C6, cpad), jnp.bfloat16),
           pltpu.SemaphoreType.DMA((n_dma,))]
    )

    def forward(prep, x_nchw):
        x = jnp.transpose(x_nchw, (0, 2, 3, 1)).reshape(N, H, W * Cin0).astype(jnp.bfloat16)
        args, specs = [], []

        def add(a, any_space=False):
            args.append(a)
            specs.append(pl.BlockSpec(memory_space=pl.ANY) if any_space
                         else _full_spec(a.shape))

        add(x)
        add(prep["band1"])
        for l in range(2, 7):
            add(prep[f"band{l}"], any_space=True)
        for l in range(1, 7):
            add(prep[f"bias{l}"])
        for l in (2, 4, 6):
            add(prep[f"gamma{l}"]); add(prep[f"beta{l}"])
        for l in bn_mm_layers:
            add(prep[f"bnT{l + 1}"], any_space=True)
        add(prep["fc_w"], any_space=True)
        add(prep["fc_bm"])

        out = pl.pallas_call(
            kernel,
            out_shape=jax.ShapeDtypeStruct((N, cpad), jnp.float32),
            grid=(1,),
            in_specs=specs,
            out_specs=_full_spec((N, cpad)),
            scratch_shapes=scratch_shapes,
            compiler_params=pltpu.CompilerParams(
                dimension_semantics=("arbitrary",),
                vmem_limit_bytes=32 * 1024 * 1024),
        )(*args)
        return out[:, :num_classes]

    return jax.jit(forward)


if __name__ == "__main__":
    key = jax.random.PRNGKey(0)
    pkey, xkey = jax.random.split(key)
    # small shapes: batch=2, input_shape=(H=64, W=32, C=3), num_filters=8, num_classes=100
    H, W, C = 64, 32, 3
    num_classes, num_filters, batch = 100, 8, 2
    params = init_params(pkey, num_classes=num_classes, num_filters=num_filters,
                         input_shape=(H, W, C))
    prep = prepare_params(params, num_classes=num_classes, num_filters=num_filters,
                          input_shape=(H, W, C))
    fwd = make_fused_forward(batch, num_classes, num_filters, (H, W, C))
    x = jax.random.normal(xkey, (batch, C, H, W), jnp.float32)  # NCHW, like PyTorch
    y = jax.block_until_ready(fwd(prep, x))
    assert y.shape == (batch, num_classes), y.shape
    assert bool(jnp.all(jnp.isfinite(y)))
    assert bool(jnp.allclose(jnp.sum(y, axis=-1), 1.0, atol=1e-4))
    print("KERNEL_OK")
</pallas_src>

<mosaic_0001>
module attributes {stable_mosaic.version = 11 : i64} {
  func.func @kernel(%arg0: i32, %arg1: memref<2x64x96xbf16, #tpu.memory_space<vmem>>, %arg2: memref<3x96x256xbf16, #tpu.memory_space<vmem>>, %arg3: memref<3x248x256xbf16, #tpu.memory_space<any>>, %arg4: memref<3x240x256xbf16, #tpu.memory_space<any>>, %arg5: memref<3x224x256xbf16, #tpu.memory_space<any>>, %arg6: memref<3x192x256xbf16, #tpu.memory_space<any>>, %arg7: memref<3x128x256xbf16, #tpu.memory_space<any>>, %arg8: memref<1x256xf32, #tpu.memory_space<vmem>>, %arg9: memref<1x256xf32, #tpu.memory_space<vmem>>, %arg10: memref<1x256xf32, #tpu.memory_space<vmem>>, %arg11: memref<1x256xf32, #tpu.memory_space<vmem>>, %arg12: memref<1x256xf32, #tpu.memory_space<vmem>>, %arg13: memref<1x256xf32, #tpu.memory_space<vmem>>, %arg14: memref<1x256xf32, #tpu.memory_space<vmem>>, %arg15: memref<1x256xf32, #tpu.memory_space<vmem>>, %arg16: memref<1x256xf32, #tpu.memory_space<vmem>>, %arg17: memref<1x256xf32, #tpu.memory_space<vmem>>, %arg18: memref<1x256xf32, #tpu.memory_space<vmem>>, %arg19: memref<1x256xf32, #tpu.memory_space<vmem>>, %arg20: memref<256x256xf32, #tpu.memory_space<any>>, %arg21: memref<256x256xf32, #tpu.memory_space<any>>, %arg22: memref<2x256x128xbf16, #tpu.memory_space<any>>, %arg23: memref<1x128xf32, #tpu.memory_space<vmem>>, %arg24: memref<2x128xf32, #tpu.memory_space<vmem>>, %arg25: memref<2x80x96xbf16, #tpu.memory_space<vmem>>, %arg26: memref<2x48x248xbf16, #tpu.memory_space<vmem>>, %arg27: memref<2x32x240xbf16, #tpu.memory_space<vmem>>, %arg28: memref<2x24x224xbf16, #tpu.memory_space<vmem>>, %arg29: memref<2x20x192xbf16, #tpu.memory_space<vmem>>, %arg30: memref<2x18x128xbf16, #tpu.memory_space<vmem>>, %arg31: memref<3x248x256xbf16, #tpu.memory_space<vmem>>, %arg32: memref<3x240x256xbf16, #tpu.memory_space<vmem>>, %arg33: memref<3x224x256xbf16, #tpu.memory_space<vmem>>, %arg34: memref<3x192x256xbf16, #tpu.memory_space<vmem>>, %arg35: memref<3x128x256xbf16, #tpu.memory_space<vmem>>, %arg36: memref<256x256xf32, #tpu.memory_space<vmem>>, %arg37: memref<256x256xf32, #tpu.memory_space<vmem>>, %arg38: memref<2x256x128xbf16, #tpu.memory_space<vmem>>, %arg39: memref<8x!tpu.dma_semaphore, #tpu.memory_space<semaphore_mem>>) attributes {dimension_semantics = [#tpu.dimension_semantics<arbitrary>], iteration_bounds = array<i64: 1>, scalar_prefetch = 0 : i64, scratch_operands = 15 : i64, tpu.core_type = #tpu.core_type<tc>, window_params = [{pipeline_mode = #tpu.pipeline_mode<synchronous>, transform_indices = @transform_0, window_bounds = array<i64: 2, 64, 96>}, {pipeline_mode = #tpu.pipeline_mode<synchronous>, transform_indices = @transform_1, window_bounds = array<i64: 3, 96, 256>}, {}, {}, {}, {}, {}, {pipeline_mode = #tpu.pipeline_mode<synchronous>, transform_indices = @transform_7, window_bounds = array<i64: 1, 256>}, {pipeline_mode = #tpu.pipeline_mode<synchronous>, transform_indices = @transform_8, window_bounds = array<i64: 1, 256>}, {pipeline_mode = #tpu.pipeline_mode<synchronous>, transform_indices = @transform_9, window_bounds = array<i64: 1, 256>}, {pipeline_mode = #tpu.pipeline_mode<synchronous>, transform_indices = @transform_10, window_bounds = array<i64: 1, 256>}, {pipeline_mode = #tpu.pipeline_mode<synchronous>, transform_indices = @transform_11, window_bounds = array<i64: 1, 256>}, {pipeline_mode = #tpu.pipeline_mode<synchronous>, transform_indices = @transform_12, window_bounds = array<i64: 1, 256>}, {pipeline_mode = #tpu.pipeline_mode<synchronous>, transform_indices = @transform_13, window_bounds = array<i64: 1, 256>}, {pipeline_mode = #tpu.pipeline_mode<synchronous>, transform_indices = @transform_14, window_bounds = array<i64: 1, 256>}, {pipeline_mode = #tpu.pipeline_mode<synchronous>, transform_indices = @transform_15, window_bounds = array<i64: 1, 256>}, {pipeline_mode = #tpu.pipeline_mode<synchronous>, transform_indices = @transform_16, window_bounds = array<i64: 1, 256>}, {pipeline_mode = #tpu.pipeline_mode<synchronous>, transform_indices = @transform_17, window_bounds = array<i64: 1, 256>}, {pipeline_mode = #tpu.pipeline_mode<synchronous>, transform_indices = @transform_18, window_bounds = array<i64: 1, 256>}, {}, {}, {}, {pipeline_mode = #tpu.pipeline_mode<synchronous>, transform_indices = @transform_22, window_bounds = array<i64: 1, 128>}, {pipeline_mode = #tpu.pipeline_mode<synchronous>, transform_indices = @transform_23, window_bounds = array<i64: 2, 128>}]} {
    %c0_i32 = arith.constant 0 : i32
    %0 = tpu.memref_slice %arg39[%c0_i32] : memref<8x!tpu.dma_semaphore, #tpu.memory_space<semaphore_mem>> -> memref<1x!tpu.dma_semaphore, #tpu.memory_space<semaphore_mem>>
    %1 = tpu.memref_squeeze %0 : memref<1x!tpu.dma_semaphore, #tpu.memory_space<semaphore_mem>> -> memref<!tpu.dma_semaphore, #tpu.memory_space<semaphore_mem>>
    tpu.enqueue_dma source(%arg3 : memref<3x248x256xbf16, #tpu.memory_space<any>>) target(%arg31 : memref<3x248x256xbf16, #tpu.memory_space<vmem>>) target_semaphore(%1 : memref<!tpu.dma_semaphore, #tpu.memory_space<semaphore_mem>>)
    %c1_i32 = arith.constant 1 : i32
    %2 = tpu.memref_slice %arg39[%c1_i32] : memref<8x!tpu.dma_semaphore, #tpu.memory_space<semaphore_mem>> -> memref<1x!tpu.dma_semaphore, #tpu.memory_space<semaphore_mem>>
    %3 = tpu.memref_squeeze %2 : memref<1x!tpu.dma_semaphore, #tpu.memory_space<semaphore_mem>> -> memref<!tpu.dma_semaphore, #tpu.memory_space<semaphore_mem>>
    tpu.enqueue_dma source(%arg4 : memref<3x240x256xbf16, #tpu.memory_space<any>>) target(%arg32 : memref<3x240x256xbf16, #tpu.memory_space<vmem>>) target_semaphore(%3 : memref<!tpu.dma_semaphore, #tpu.memory_space<semaphore_mem>>)
    %c2_i32 = arith.constant 2 : i32
    %4 = tpu.memref_slice %arg39[%c2_i32] : memref<8x!tpu.dma_semaphore, #tpu.memory_space<semaphore_mem>> -> memref<1x!tpu.dma_semaphore, #tpu.memory_space<semaphore_mem>>
    %5 = tpu.memref_squeeze %4 : memref<1x!tpu.dma_semaphore, #tpu.memory_space<semaphore_mem>> -> memref<!tpu.dma_semaphore, #tpu.memory_space<semaphore_mem>>
    tpu.enqueue_dma source(%arg5 : memref<3x224x256xbf16, #tpu.memory_space<any>>) target(%arg33 : memref<3x224x256xbf16, #tpu.memory_space<vmem>>) target_semaphore(%5 : memref<!tpu.dma_semaphore, #tpu.memory_space<semaphore_mem>>)
    %c3_i32 = arith.constant 3 : i32
    %6 = tpu.memref_slice %arg39[%c3_i32] : memref<8x!tpu.dma_semaphore, #tpu.memory_space<semaphore_mem>> -> memref<1x!tpu.dma_semaphore, #tpu.memory_space<semaphore_mem>>
    %7 = tpu.memref_squeeze %6 : memref<1x!tpu.dma_semaphore, #tpu.memory_space<semaphore_mem>> -> memref<!tpu.dma_semaphore, #tpu.memory_space<semaphore_mem>>
    tpu.enqueue_dma source(%arg6 : memref<3x192x256xbf16, #tpu.memory_space<any>>) target(%arg34 : memref<3x192x256xbf16, #tpu.memory_space<vmem>>) target_semaphore(%7 : memref<!tpu.dma_semaphore, #tpu.memory_space<semaphore_mem>>)
    %c4_i32 = arith.constant 4 : i32
    %8 = tpu.memref_slice %arg39[%c4_i32] : memref<8x!tpu.dma_semaphore, #tpu.memory_space<semaphore_mem>> -> memref<1x!tpu.dma_semaphore, #tpu.memory_space<semaphore_mem>>
    %9 = tpu.memref_squeeze %8 : memref<1x!tpu.dma_semaphore, #tpu.memory_space<semaphore_mem>> -> memref<!tpu.dma_semaphore, #tpu.memory_space<semaphore_mem>>
    tpu.enqueue_dma source(%arg7 : memref<3x128x256xbf16, #tpu.memory_space<any>>) target(%arg35 : memref<3x128x256xbf16, #tpu.memory_space<vmem>>) target_semaphore(%9 : memref<!tpu.dma_semaphore, #tpu.memory_space<semaphore_mem>>)
    %c5_i32 = arith.constant 5 : i32
    %10 = tpu.memref_slice %arg39[%c5_i32] : memref<8x!tpu.dma_semaphore, #tpu.memory_space<semaphore_mem>> -> memref<1x!tpu.dma_semaphore, #tpu.memory_space<semaphore_mem>>
    %11 = tpu.memref_squeeze %10 : memref<1x!tpu.dma_semaphore, #tpu.memory_space<semaphore_mem>> -> memref<!tpu.dma_semaphore, #tpu.memory_space<semaphore_mem>>
    tpu.enqueue_dma source(%arg20 : memref<256x256xf32, #tpu.memory_space<any>>) target(%arg36 : memref<256x256xf32, #tpu.memory_space<vmem>>) target_semaphore(%11 : memref<!tpu.dma_semaphore, #tpu.memory_space<semaphore_mem>>)
    %c6_i32 = arith.constant 6 : i32
    %12 = tpu.memref_slice %arg39[%c6_i32] : memref<8x!tpu.dma_semaphore, #tpu.memory_space<semaphore_mem>> -> memref<1x!tpu.dma_semaphore, #tpu.memory_space<semaphore_mem>>
    %13 = tpu.memref_squeeze %12 : memref<1x!tpu.dma_semaphore, #tpu.memory_space<semaphore_mem>> -> memref<!tpu.dma_semaphore, #tpu.memory_space<semaphore_mem>>
    tpu.enqueue_dma source(%arg21 : memref<256x256xf32, #tpu.memory_space<any>>) target(%arg37 : memref<256x256xf32, #tpu.memory_space<vmem>>) target_semaphore(%13 : memref<!tpu.dma_semaphore, #tpu.memory_space<semaphore_mem>>)
    %c7_i32 = arith.constant 7 : i32
    %14 = tpu.memref_slice %arg39[%c7_i32] : memref<8x!tpu.dma_semaphore, #tpu.memory_space<semaphore_mem>> -> memref<1x!tpu.dma_semaphore, #tpu.memory_space<semaphore_mem>>
    %15 = tpu.memref_squeeze %14 : memref<1x!tpu.dma_semaphore, #tpu.memory_space<semaphore_mem>> -> memref<!tpu.dma_semaphore, #tpu.memory_space<semaphore_mem>>
    tpu.enqueue_dma source(%arg22 : memref<2x256x128xbf16, #tpu.memory_space<any>>) target(%arg38 : memref<2x256x128xbf16, #tpu.memory_space<vmem>>) target_semaphore(%15 : memref<!tpu.dma_semaphore, #tpu.memory_space<semaphore_mem>>)
    %cst = arith.constant 0.000000e+00 : bf16
    %16 = vector.broadcast %cst : bf16 to vector<2x1x96xbf16>
    %c0 = arith.constant 0 : index
    %c7 = arith.constant 7 : index
    %c0_0 = arith.constant 0 : index
    %17 = vector.load %arg25[%c0, %c7, %c0_0] : memref<2x80x96xbf16, #tpu.memory_space<vmem>>, vector<2x1x96xbf16>
    tpu.vector_store %arg25[%c0, %c7, %c0_0], %16 {strides = array<i32>} : memref<2x80x96xbf16, #tpu.memory_space<vmem>>, vector<2x1x96xbf16>,
    %c0_1 = arith.constant 0 : index
    %c72 = arith.constant 72 : index
    %c0_2 = arith.constant 0 : index
    %18 = vector.load %arg25[%c0_1, %c72, %c0_2] : memref<2x80x96xbf16, #tpu.memory_space<vmem>>, vector<2x1x96xbf16>
    tpu.vector_store %arg25[%c0_1, %c72, %c0_2], %16 {strides = array<i32>} : memref<2x80x96xbf16, #tpu.memory_space<vmem>>, vector<2x1x96xbf16>,
    %c0_3 = arith.constant 0 : index
    %c0_4 = arith.constant 0 : index
    %c0_5 = arith.constant 0 : index
    %19 = vector.load %arg1[%c0_3, %c0_4, %c0_5] : memref<2x64x96xbf16, #tpu.memory_space<vmem>>, vector<2x64x96xbf16>
    %c0_6 = arith.constant 0 : index
    %c8 = arith.constant 8 : index
    %c0_7 = arith.constant 0 : index
    %20 = vector.load %arg25[%c0_6, %c8, %c0_7] : memref<2x80x96xbf16, #tpu.memory_space<vmem>>, vector<2x64x96xbf16>
    tpu.vector_store %arg25[%c0_6, %c8, %c0_7], %19 {strides = array<i32>} : memref<2x80x96xbf16, #tpu.memory_space<vmem>>, vector<2x64x96xbf16>,
    %c0_8 = arith.constant 0 : index
    %c7_9 = arith.constant 7 : index
    %c0_10 = arith.constant 0 : index
    %21 = vector.load %arg25[%c0_8, %c7_9, %c0_10] : memref<2x80x96xbf16, #tpu.memory_space<vmem>>, vector<2x64x96xbf16>
    %22 = vector.shape_cast %21 : vector<2x64x96xbf16> to vector<128x96xbf16>
    %c0_11 = arith.constant 0 : index
    %c0_12 = arith.constant 0 : index
    %c0_13 = arith.constant 0 : index
    %23 = vector.load %arg2[%c0_11, %c0_12, %c0_13] : memref<3x96x256xbf16, #tpu.memory_space<vmem>>, vector<1x96x256xbf16>
    %24 = vector.shape_cast %23 : vector<1x96x256xbf16> to vector<96x256xbf16>
    %cst_14 = arith.constant dense<0.000000e+00> : vector<128x256xf32>
    %25 = tpu.matmul %22, %24, %cst_14 {dimension_numbers = #tpu.dot_dimension_numbers<[1], [0], [0], [1], [0, 0, 1, 1], [], []>} : vector<128x96xbf16>, vector<96x256xbf16>, vector<128x256xf32> -> vector<128x256xf32>
    %c0_15 = arith.constant 0 : index
    %c8_16 = arith.constant 8 : index
    %c0_17 = arith.constant 0 : index
    %26 = vector.load %arg25[%c0_15, %c8_16, %c0_17] : memref<2x80x96xbf16, #tpu.memory_space<vmem>>, vector<2x64x96xbf16>
    %27 = vector.shape_cast %26 : vector<2x64x96xbf16> to vector<128x96xbf16>
    %c1 = arith.constant 1 : index
    %c0_18 = arith.constant 0 : index
    %c0_19 = arith.constant 0 : index
    %28 = vector.load %arg2[%c1, %c0_18, %c0_19] : memref<3x96x256xbf16, #tpu.memory_space<vmem>>, vector<1x96x256xbf16>
    %29 = vector.shape_cast %28 : vector<1x96x256xbf16> to vector<96x256xbf16>
    %cst_20 = arith.constant dense<0.000000e+00> : vector<128x256xf32>
    %30 = tpu.matmul %27, %29, %cst_20 {dimension_numbers = #tpu.dot_dimension_numbers<[1], [0], [0], [1], [0, 0, 1, 1], [], []>} : vector<128x96xbf16>, vector<96x256xbf16>, vector<128x256xf32> -> vector<128x256xf32>
    %31 = arith.addf %25, %30 : vector<128x256xf32>
    %c0_21 = arith.constant 0 : index
    %c9 = arith.constant 9 : index
    %c0_22 = arith.constant 0 : index
    %32 = vector.load %arg25[%c0_21, %c9, %c0_22] : memref<2x80x96xbf16, #tpu.memory_space<vmem>>, vector<2x64x96xbf16>
    %33 = vector.shape_cast %32 : vector<2x64x96xbf16> to vector<128x96xbf16>
    %c2 = arith.constant 2 : index
    %c0_23 = arith.constant 0 : index
    %c0_24 = arith.constant 0 : index
    %34 = vector.load %arg2[%c2, %c0_23, %c0_24] : memref<3x96x256xbf16, #tpu.memory_space<vmem>>, vector<1x96x256xbf16>
    %35 = vector.shape_cast %34 : vector<1x96x256xbf16> to vector<96x256xbf16>
    %cst_25 = arith.constant dense<0.000000e+00> : vector<128x256xf32>
    %36 = tpu.matmul %33, %35, %cst_25 {dimension_numbers = #tpu.dot_dimension_numbers<[1], [0], [0], [1], [0, 0, 1, 1], [], []>} : vector<128x96xbf16>, vector<96x256xbf16>, vector<128x256xf32> -> vector<128x256xf32>
    %37 = arith.addf %31, %36 : vector<128x256xf32>
    %c0_26 = arith.constant 0 : index
    %c0_27 = arith.constant 0 : index
    %38 = vector.load %arg8[%c0_26, %c0_27] : memref<1x256xf32, #tpu.memory_space<vmem>>, vector<1x256xf32>
    %39 = vector.broadcast %38 : vector<1x256xf32> to vector<128x256xf32>
    %40 = arith.addf %37, %39 : vector<128x256xf32>
    %cst_28 = arith.constant 0.000000e+00 : f32
    %41 = vector.broadcast %cst_28 : f32 to vector<128x256xf32>
    %42 = arith.maximumf %40, %41 : vector<128x256xf32>
    %43 = vector.extract_strided_slice %42 {offsets = [0, 0], sizes = [128, 248], strides = [1, 1]} : vector<128x256xf32> to vector<128x248xf32>
    %44 = vector.extract_strided_slice %42 {offsets = [0, 8], sizes = [128, 248], strides = [1, 1]} : vector<128x256xf32> to vector<128x248xf32>
    %45 = arith.maximumf %43, %44 : vector<128x248xf32>
    %46 = vector.shape_cast %45 : vector<128x248xf32> to vector<2x32x2x248xf32>
    %cst_29 = arith.constant dense<0xFF800000> : vector<2x32x248xf32>
    %47 = vector.multi_reduction <maximumf>, %46, %cst_29 [2] : vector<2x32x2x248xf32> to vector<2x32x248xf32>
    %cst_30 = arith.constant 0.000000e+00 : bf16
    %48 = vector.broadcast %cst_30 : bf16 to vector<2x1x248xbf16>
    %c0_31 = arith.constant 0 : index
    %c7_32 = arith.constant 7 : index
    %c0_33 = arith.constant 0 : index
    %49 = vector.load %arg26[%c0_31, %c7_32, %c0_33] : memref<2x48x248xbf16, #tpu.memory_space<vmem>>, vector<2x1x248xbf16>
    tpu.vector_store %arg26[%c0_31, %c7_32, %c0_33], %48 {strides = array<i32>} : memref<2x48x248xbf16, #tpu.memory_space<vmem>>, vector<2x1x248xbf16>,
    %c0_34 = arith.constant 0 : index
    %c40 = arith.constant 40 : index
    %c0_35 = arith.constant 0 : index
    %50 = vector.load %arg26[%c0_34, %c40, %c0_35] : memref<2x48x248xbf16, #tpu.memory_space<vmem>>, vector<2x1x248xbf16>
    tpu.vector_store %arg26[%c0_34, %c40, %c0_35], %48 {strides = array<i32>} : memref<2x48x248xbf16, #tpu.memory_space<vmem>>, vector<2x1x248xbf16>,
    %51 = arith.truncf %47 : vector<2x32x248xf32> to vector<2x32x248xbf16>
    %c0_36 = arith.constant 0 : index
    %c8_37 = arith.constant 8 : index
    %c0_38 = arith.constant 0 : index
    %52 = vector.load %arg26[%c0_36, %c8_37, %c0_38] : memref<2x48x248xbf16, #tpu.memory_space<vmem>>, vector<2x32x248xbf16>
    tpu.vector_store %arg26[%c0_36, %c8_37, %c0_38], %51 {strides = array<i32>} : memref<2x48x248xbf16, #tpu.memory_space<vmem>>, vector<2x32x248xbf16>,
    %c0_i32_39 = arith.constant 0 : i32
    %53 = tpu.memref_slice %arg39[%c0_i32_39] : memref<8x!tpu.dma_semaphore, #tpu.memory_space<semaphore_mem>> -> memref<1x!tpu.dma_semaphore, #tpu.memory_space<semaphore_mem>>
    %54 = tpu.memref_squeeze %53 : memref<1x!tpu.dma_semaphore, #tpu.memory_space<semaphore_mem>> -> memref<!tpu.dma_semaphore, #tpu.memory_space<semaphore_mem>>
    tpu.wait_dma2 semaphore(%54 : memref<!tpu.dma_semaphore, #tpu.memory_space<semaphore_mem>>) src(%arg3 : memref<3x248x256xbf16, #tpu.memory_space<any>>) dst(%arg31 : memref<3x248x256xbf16, #tpu.memory_space<vmem>>)
    %c0_40 = arith.constant 0 : index
    %c7_41 = arith.constant 7 : index
    %c0_42 = arith.constant 0 : index
    %55 = vector.load %arg26[%c0_40, %c7_41, %c0_42] : memref<2x48x248xbf16, #tpu.memory_space<vmem>>, vector<2x32x248xbf16>
    %56 = vector.shape_cast %55 : vector<2x32x248xbf16> to vector<64x248xbf16>
    %c0_43 = arith.constant 0 : index
    %c0_44 = arith.constant 0 : index
    %c0_45 = arith.constant 0 : index
    %57 = vector.load %arg31[%c0_43, %c0_44, %c0_45] : memref<3x248x256xbf16, #tpu.memory_space<vmem>>, vector<1x248x256xbf16>
    %58 = vector.shape_cast %57 : vector<1x248x256xbf16> to vector<248x256xbf16>
    %cst_46 = arith.constant dense<0.000000e+00> : vector<64x256xf32>
    %59 = tpu.matmul %56, %58, %cst_46 {dimension_numbers = #tpu.dot_dimension_numbers<[1], [0], [0], [1], [0, 0, 1, 1], [], []>} : vector<64x248xbf16>, vector<248x256xbf16>, vector<64x256xf32> -> vector<64x256xf32>
    %c0_47 = arith.constant 0 : index
    %c8_48 = arith.constant 8 : index
    %c0_49 = arith.constant 0 : index
    %60 = vector.load %arg26[%c0_47, %c8_48, %c0_49] : memref<2x48x248xbf16, #tpu.memory_space<vmem>>, vector<2x32x248xbf16>
    %61 = vector.shape_cast %60 : vector<2x32x248xbf16> to vector<64x248xbf16>
    %c1_50 = arith.constant 1 : index
    %c0_51 = arith.constant 0 : index
    %c0_52 = arith.constant 0 : index
    %62 = vector.load %arg31[%c1_50, %c0_51, %c0_52] : memref<3x248x256xbf16, #tpu.memory_space<vmem>>, vector<1x248x256xbf16>
    %63 = vector.shape_cast %62 : vector<1x248x256xbf16> to vector<248x256xbf16>
    %cst_53 = arith.constant dense<0.000000e+00> : vector<64x256xf32>
    %64 = tpu.matmul %61, %63, %cst_53 {dimension_numbers = #tpu.dot_dimension_numbers<[1], [0], [0], [1], [0, 0, 1, 1], [], []>} : vector<64x248xbf16>, vector<248x256xbf16>, vector<64x256xf32> -> vector<64x256xf32>
    %65 = arith.addf %59, %64 : vector<64x256xf32>
    %c0_54 = arith.constant 0 : index
    %c9_55 = arith.constant 9 : index
    %c0_56 = arith.constant 0 : index
    %66 = vector.load %arg26[%c0_54, %c9_55, %c0_56] : memref<2x48x248xbf16, #tpu.memory_space<vmem>>, vector<2x32x248xbf16>
    %67 = vector.shape_cast %66 : vector<2x32x248xbf16> to vector<64x248xbf16>
    %c2_57 = arith.constant 2 : index
    %c0_58 = arith.constant 0 : index
    %c0_59 = arith.constant 0 : index
    %68 = vector.load %arg31[%c2_57, %c0_58, %c0_59] : memref<3x248x256xbf16, #tpu.memory_space<vmem>>, vector<1x248x256xbf16>
    %69 = vector.shape_cast %68 : vector<1x248x256xbf16> to vector<248x256xbf16>
    %cst_60 = arith.constant dense<0.000000e+00> : vector<64x256xf32>
    %70 = tpu.matmul %67, %69, %cst_60 {dimension_numbers = #tpu.dot_dimension_numbers<[1], [0], [0], [1], [0, 0, 1, 1], [], []>} : vector<64x248xbf16>, vector<248x256xbf16>, vector<64x256xf32> -> vector<64x256xf32>
    %71 = arith.addf %65, %70 : vector<64x256xf32>
    %c0_61 = arith.constant 0 : index
    %c0_62 = arith.constant 0 : index
    %72 = vector.load %arg9[%c0_61, %c0_62] : memref<1x256xf32, #tpu.memory_space<vmem>>, vector<1x256xf32>
    %73 = vector.broadcast %72 : vector<1x256xf32> to vector<64x256xf32>
    %74 = arith.addf %71, %73 : vector<64x256xf32>
    %cst_63 = arith.constant 0.000000e+00 : f32
    %75 = vector.broadcast %cst_63 : f32 to vector<64x256xf32>
    %76 = arith.maximumf %74, %75 : vector<64x256xf32>
    %cst_64 = arith.constant dense<0.000000e+00> : vector<256xf32>
    %77 = vector.multi_reduction <add>, %76, %cst_64 [0] : vector<64x256xf32> to vector<256xf32>
    %78 = vector.shape_cast %77 : vector<256xf32> to vector<1x256xf32>
    %cst_65 = arith.constant 1.562500e-02 : f32
    %79 = vector.broadcast %cst_65 : f32 to vector<1x256xf32>
    %80 = arith.mulf %78, %79 : vector<1x256xf32>
    %81 = arith.mulf %76, %76 : vector<64x256xf32>
    %cst_66 = arith.constant dense<0.000000e+00> : vector<256xf32>
    %82 = vector.multi_reduction <add>, %81, %cst_66 [0] : vector<64x256xf32> to vector<256xf32>
    %83 = vector.shape_cast %82 : vector<256xf32> to vector<1x256xf32>
    %cst_67 = arith.constant 1.562500e-02 : f32
    %84 = vector.broadcast %cst_67 : f32 to vector<1x256xf32>
    %85 = arith.mulf %83, %84 : vector<1x256xf32>
    %c5_i32_68 = arith.constant 5 : i32
    %86 = tpu.memref_slice %arg39[%c5_i32_68] : memref<8x!tpu.dma_semaphore, #tpu.memory_space<semaphore_mem>> -> memref<1x!tpu.dma_semaphore, #tpu.memory_space<semaphore_mem>>
    %87 = tpu.memref_squeeze %86 : memref<1x!tpu.dma_semaphore, #tpu.memory_space<semaphore_mem>> -> memref<!tpu.dma_semaphore, #tpu.memory_space<semaphore_mem>>
    tpu.wait_dma2 semaphore(%87 : memref<!tpu.dma_semaphore, #tpu.memory_space<semaphore_mem>>) src(%arg20 : memref<256x256xf32, #tpu.memory_space<any>>) dst(%arg36 : memref<256x256xf32, #tpu.memory_space<vmem>>)
    %88 = tpu.concatenate %80, %85 in 0 : vector<1x256xf32>, vector<1x256xf32> -> vector<2x256xf32>
    %c0_69 = arith.constant 0 : index
    %c0_70 = arith.constant 0 : index
    %89 = vector.load %arg36[%c0_69, %c0_70] : memref<256x256xf32, #tpu.memory_space<vmem>>, vector<256x256xf32>
    %cst_71 = arith.constant dense<0.000000e+00> : vector<2x256xf32>
    %90 = tpu.matmul %88, %89, %cst_71 {dimension_numbers = #tpu.dot_dimension_numbers<[1], [0], [0], [1], [0, 0, 1, 1], [], []>} : vector<2x256xf32>, vector<256x256xf32>, vector<2x256xf32> -> vector<2x256xf32>
    %91 = vector.extract_strided_slice %90 {offsets = [0, 0], sizes = [1, 256], strides = [1, 1]} : vector<2x256xf32> to vector<1x256xf32>
    %92 = vector.extract_strided_slice %90 {offsets = [1, 0], sizes = [1, 256], strides = [1, 1]} : vector<2x256xf32> to vector<1x256xf32>
    %93 = arith.mulf %91, %91 : vector<1x256xf32>
    %94 = arith.subf %92, %93 : vector<1x256xf32>
    %cst_72 = arith.constant 0.000000e+00 : f32
    %95 = vector.broadcast %cst_72 : f32 to vector<1x256xf32>
    %96 = arith.maximumf %94, %95 : vector<1x256xf32>
    %cst_73 = arith.constant 1.000000e-03 : f32
    %97 = vector.broadcast %cst_73 : f32 to vector<1x256xf32>
    %98 = arith.addf %96, %97 : vector<1x256xf32>
    %99 = math.rsqrt %98 : vector<1x256xf32>
    %100 = vector.broadcast %91 : vector<1x256xf32> to vector<64x256xf32>
    %101 = arith.subf %76, %100 : vector<64x256xf32>
    %c0_74 = arith.constant 0 : index
    %c0_75 = arith.constant 0 : index
    %102 = vector.load %arg14[%c0_74, %c0_75] : memref<1x256xf32, #tpu.memory_space<vmem>>, vector<1x256xf32>
    %103 = arith.mulf %99, %102 : vector<1x256xf32>
    %104 = vector.broadcast %103 : vector<1x256xf32> to vector<64x256xf32>
    %105 = arith.mulf %101, %104 : vector<64x256xf32>
    %c0_76 = arith.constant 0 : index
    %c0_77 = arith.constant 0 : index
    %106 = vector.load %arg15[%c0_76, %c0_77] : memref<1x256xf32, #tpu.memory_space<vmem>>, vector<1x256xf32>
    %107 = vector.broadcast %106 : vector<1x256xf32> to vector<64x256xf32>
    %108 = arith.addf %105, %107 : vector<64x256xf32>
    %109 = vector.extract_strided_slice %108 {offsets = [0, 0], sizes = [64, 240], strides = [1, 1]} : vector<64x256xf32> to vector<64x240xf32>
    %110 = vector.extract_strided_slice %108 {offsets = [0, 16], sizes = [64, 240], strides = [1, 1]} : vector<64x256xf32> to vector<64x240xf32>
    %111 = arith.maximumf %109, %110 : vector<64x240xf32>
    %112 = vector.shape_cast %111 : vector<64x240xf32> to vector<2x16x2x240xf32>
    %cst_78 = arith.constant dense<0xFF800000> : vector<2x16x240xf32>
    %113 = vector.multi_reduction <maximumf>, %112, %cst_78 [2] : vector<2x16x2x240xf32> to vector<2x16x240xf32>
    %cst_79 = arith.constant 0.000000e+00 : bf16
    %114 = vector.broadcast %cst_79 : bf16 to vector<2x1x240xbf16>
    %c0_80 = arith.constant 0 : index
    %c7_81 = arith.constant 7 : index
    %c0_82 = arith.constant 0 : index
    %115 = vector.load %arg27[%c0_80, %c7_81, %c0_82] : memref<2x32x240xbf16, #tpu.memory_space<vmem>>, vector<2x1x240xbf16>
    tpu.vector_store %arg27[%c0_80, %c7_81, %c0_82], %114 {strides = array<i32>} : memref<2x32x240xbf16, #tpu.memory_space<vmem>>, vector<2x1x240xbf16>,
    %c0_83 = arith.constant 0 : index
    %c24 = arith.constant 24 : index
    %c0_84 = arith.constant 0 : index
    %116 = vector.load %arg27[%c0_83, %c24, %c0_84] : memref<2x32x240xbf16, #tpu.memory_space<vmem>>, vector<2x1x240xbf16>
    tpu.vector_store %arg27[%c0_83, %c24, %c0_84], %114 {strides = array<i32>} : memref<2x32x240xbf16, #tpu.memory_space<vmem>>, vector<2x1x240xbf16>,
    %117 = arith.truncf %113 : vector<2x16x240xf32> to vector<2x16x240xbf16>
    %c0_85 = arith.constant 0 : index
    %c8_86 = arith.constant 8 : index
    %c0_87 = arith.constant 0 : index
    %118 = vector.load %arg27[%c0_85, %c8_86, %c0_87] : memref<2x32x240xbf16, #tpu.memory_space<vmem>>, vector<2x16x240xbf16>
    tpu.vector_store %arg27[%c0_85, %c8_86, %c0_87], %117 {strides = array<i32>} : memref<2x32x240xbf16, #tpu.memory_space<vmem>>, vector<2x16x240xbf16>,
    %c1_i32_88 = arith.constant 1 : i32
    %119 = tpu.memref_slice %arg39[%c1_i32_88] : memref<8x!tpu.dma_semaphore, #tpu.memory_space<semaphore_mem>> -> memref<1x!tpu.dma_semaphore, #tpu.memory_space<semaphore_mem>>
    %120 = tpu.memref_squeeze %119 : memref<1x!tpu.dma_semaphore, #tpu.memory_space<semaphore_mem>> -> memref<!tpu.dma_semaphore, #tpu.memory_space<semaphore_mem>>
    tpu.wait_dma2 semaphore(%120 : memref<!tpu.dma_semaphore, #tpu.memory_space<semaphore_mem>>) src(%arg4 : memref<3x240x256xbf16, #tpu.memory_space<any>>) dst(%arg32 : memref<3x240x256xbf16, #tpu.memory_space<vmem>>)
    %c0_89 = arith.constant 0 : index
    %c7_90 = arith.constant 7 : index
    %c0_91 = arith.constant 0 : index
    %121 = vector.load %arg27[%c0_89, %c7_90, %c0_91] : memref<2x32x240xbf16, #tpu.memory_space<vmem>>, vector<2x16x240xbf16>
    %122 = vector.shape_cast %121 : vector<2x16x240xbf16> to vector<32x240xbf16>
    %c0_92 = arith.constant 0 : index
    %c0_93 = arith.constant 0 : index
    %c0_94 = arith.constant 0 : index
    %123 = vector.load %arg32[%c0_92, %c0_93, %c0_94] : memref<3x240x256xbf16, #tpu.memory_space<vmem>>, vector<1x240x256xbf16>
    %124 = vector.shape_cast %123 : vector<1x240x256xbf16> to vector<240x256xbf16>
    %cst_95 = arith.constant dense<0.000000e+00> : vector<32x256xf32>
    %125 = tpu.matmul %122, %124, %cst_95 {dimension_numbers = #tpu.dot_dimension_numbers<[1], [0], [0], [1], [0, 0, 1, 1], [], []>} : vector<32x240xbf16>, vector<240x256xbf16>, vector<32x256xf32> -> vector<32x256xf32>
    %c0_96 = arith.constant 0 : index
    %c8_97 = arith.constant 8 : index
    %c0_98 = arith.constant 0 : index
    %126 = vector.load %arg27[%c0_96, %c8_97, %c0_98] : memref<2x32x240xbf16, #tpu.memory_space<vmem>>, vector<2x16x240xbf16>
    %127 = vector.shape_cast %126 : vector<2x16x240xbf16> to vector<32x240xbf16>
    %c1_99 = arith.constant 1 : index
    %c0_100 = arith.constant 0 : index
    %c0_101 = arith.constant 0 : index
    %128 = vector.load %arg32[%c1_99, %c0_100, %c0_101] : memref<3x240x256xbf16, #tpu.memory_space<vmem>>, vector<1x240x256xbf16>
    %129 = vector.shape_cast %128 : vector<1x240x256xbf16> to vector<240x256xbf16>
    %cst_102 = arith.constant dense<0.000000e+00> : vector<32x256xf32>
    %130 = tpu.matmul %127, %129, %cst_102 {dimension_numbers = #tpu.dot_dimension_numbers<[1], [0], [0], [1], [0, 0, 1, 1], [], []>} : vector<32x240xbf16>, vector<240x256xbf16>, vector<32x256xf32> -> vector<32x256xf32>
    %131 = arith.addf %125, %130 : vector<32x256xf32>
    %c0_103 = arith.constant 0 : index
    %c9_104 = arith.constant 9 : index
    %c0_105 = arith.constant 0 : index
    %132 = vector.load %arg27[%c0_103, %c9_104, %c0_105] : memref<2x32x240xbf16, #tpu.memory_space<vmem>>, vector<2x16x240xbf16>
    %133 = vector.shape_cast %132 : vector<2x16x240xbf16> to vector<32x240xbf16>
    %c2_106 = arith.constant 2 : index
    %c0_107 = arith.constant 0 : index
    %c0_108 = arith.constant 0 : index
    %134 = vector.load %arg32[%c2_106, %c0_107, %c0_108] : memref<3x240x256xbf16, #tpu.memory_space<vmem>>, vector<1x240x256xbf16>
    %135 = vector.shape_cast %134 : vector<1x240x256xbf16> to vector<240x256xbf16>
    %cst_109 = arith.constant dense<0.000000e+00> : vector<32x256xf32>
    %136 = tpu.matmul %133, %135, %cst_109 {dimension_numbers = #tpu.dot_dimension_numbers<[1], [0], [0], [1], [0, 0, 1, 1], [], []>} : vector<32x240xbf16>, vector<240x256xbf16>, vector<32x256xf32> -> vector<32x256xf32>
    %137 = arith.addf %131, %136 : vector<32x256xf32>
    %c0_110 = arith.constant 0 : index
    %c0_111 = arith.constant 0 : index
    %138 = vector.load %arg10[%c0_110, %c0_111] : memref<1x256xf32, #tpu.memory_space<vmem>>, vector<1x256xf32>
    %139 = vector.broadcast %138 : vector<1x256xf32> to vector<32x256xf32>
    %140 = arith.addf %137, %139 : vector<32x256xf32>
    %cst_112 = arith.constant 0.000000e+00 : f32
    %141 = vector.broadcast %cst_112 : f32 to vector<32x256xf32>
    %142 = arith.maximumf %140, %141 : vector<32x256xf32>
    %143 = vector.extract_strided_slice %142 {offsets = [0, 0], sizes = [32, 224], strides = [1, 1]} : vector<32x256xf32> to vector<32x224xf32>
    %144 = vector.extract_strided_slice %142 {offsets = [0, 32], sizes = [32, 224], strides = [1, 1]} : vector<32x256xf32> to vector<32x224xf32>
    %145 = arith.maximumf %143, %144 : vector<32x224xf32>
    %146 = vector.shape_cast %145 : vector<32x224xf32> to vector<2x8x2x224xf32>
    %cst_113 = arith.constant dense<0xFF800000> : vector<2x8x224xf32>
    %147 = vector.multi_reduction <maximumf>, %146, %cst_113 [2] : vector<2x8x2x224xf32> to vector<2x8x224xf32>
    %cst_114 = arith.constant 0.000000e+00 : bf16
    %148 = vector.broadcast %cst_114 : bf16 to vector<2x1x224xbf16>
    %c0_115 = arith.constant 0 : index
    %c7_116 = arith.constant 7 : index
    %c0_117 = arith.constant 0 : index
    %149 = vector.load %arg28[%c0_115, %c7_116, %c0_117] : memref<2x24x224xbf16, #tpu.memory_space<vmem>>, vector<2x1x224xbf16>
    tpu.vector_store %arg28[%c0_115, %c7_116, %c0_117], %148 {strides = array<i32>} : memref<2x24x224xbf16, #tpu.memory_space<vmem>>, vector<2x1x224xbf16>,
    %c0_118 = arith.constant 0 : index
    %c16 = arith.constant 16 : index
    %c0_119 = arith.constant 0 : index
    %150 = vector.load %arg28[%c0_118, %c16, %c0_119] : memref<2x24x224xbf16, #tpu.memory_space<vmem>>, vector<2x1x224xbf16>
    tpu.vector_store %arg28[%c0_118, %c16, %c0_119], %148 {strides = array<i32>} : memref<2x24x224xbf16, #tpu.memory_space<vmem>>, vector<2x1x224xbf16>,
    %151 = arith.truncf %147 : vector<2x8x224xf32> to vector<2x8x224xbf16>
    %c0_120 = arith.constant 0 : index
    %c8_121 = arith.constant 8 : index
    %c0_122 = arith.constant 0 : index
    %152 = vector.load %arg28[%c0_120, %c8_121, %c0_122] : memref<2x24x224xbf16, #tpu.memory_space<vmem>>, vector<2x8x224xbf16>
    tpu.vector_store %arg28[%c0_120, %c8_121, %c0_122], %151 {strides = array<i32>} : memref<2x24x224xbf16, #tpu.memory_space<vmem>>, vector<2x8x224xbf16>,
    %c2_i32_123 = arith.constant 2 : i32
    %153 = tpu.memref_slice %arg39[%c2_i32_123] : memref<8x!tpu.dma_semaphore, #tpu.memory_space<semaphore_mem>> -> memref<1x!tpu.dma_semaphore, #tpu.memory_space<semaphore_mem>>
    %154 = tpu.memref_squeeze %153 : memref<1x!tpu.dma_semaphore, #tpu.memory_space<semaphore_mem>> -> memref<!tpu.dma_semaphore, #tpu.memory_space<semaphore_mem>>
    tpu.wait_dma2 semaphore(%154 : memref<!tpu.dma_semaphore, #tpu.memory_space<semaphore_mem>>) src(%arg5 : memref<3x224x256xbf16, #tpu.memory_space<any>>) dst(%arg33 : memref<3x224x256xbf16, #tpu.memory_space<vmem>>)
    %c0_124 = arith.constant 0 : index
    %c7_125 = arith.constant 7 : index
    %c0_126 = arith.constant 0 : index
    %155 = vector.load %arg28[%c0_124, %c7_125, %c0_126] : memref<2x24x224xbf16, #tpu.memory_space<vmem>>, vector<2x8x224xbf16>
    %156 = vector.shape_cast %155 : vector<2x8x224xbf16> to vector<16x224xbf16>
    %c0_127 = arith.constant 0 : index
    %c0_128 = arith.constant 0 : index
    %c0_129 = arith.constant 0 : index
    %157 = vector.load %arg33[%c0_127, %c0_128, %c0_129] : memref<3x224x256xbf16, #tpu.memory_space<vmem>>, vector<1x224x256xbf16>
    %158 = vector.shape_cast %157 : vector<1x224x256xbf16> to vector<224x256xbf16>
    %cst_130 = arith.constant dense<0.000000e+00> : vector<16x256xf32>
    %159 = tpu.matmul %156, %158, %cst_130 {dimension_numbers = #tpu.dot_dimension_numbers<[1], [0], [0], [1], [0, 0, 1, 1], [], []>} : vector<16x224xbf16>, vector<224x256xbf16>, vector<16x256xf32> -> vector<16x256xf32>
    %c0_131 = arith.constant 0 : index
    %c8_132 = arith.constant 8 : index
    %c0_133 = arith.constant 0 : index
    %160 = vector.load %arg28[%c0_131, %c8_132, %c0_133] : memref<2x24x224xbf16, #tpu.memory_space<vmem>>, vector<2x8x224xbf16>
    %161 = vector.shape_cast %160 : vector<2x8x224xbf16> to vector<16x224xbf16>
    %c1_134 = arith.constant 1 : index
    %c0_135 = arith.constant 0 : index
    %c0_136 = arith.constant 0 : index
    %162 = vector.load %arg33[%c1_134, %c0_135, %c0_136] : memref<3x224x256xbf16, #tpu.memory_space<vmem>>, vector<1x224x256xbf16>
    %163 = vector.shape_cast %162 : vector<1x224x256xbf16> to vector<224x256xbf16>
    %cst_137 = arith.constant dense<0.000000e+00> : vector<16x256xf32>
    %164 = tpu.matmul %161, %163, %cst_137 {dimension_numbers = #tpu.dot_dimension_numbers<[1], [0], [0], [1], [0, 0, 1, 1], [], []>} : vector<16x224xbf16>, vector<224x256xbf16>, vector<16x256xf32> -> vector<16x256xf32>
    %165 = arith.addf %159, %164 : vector<16x256xf32>
    %c0_138 = arith.constant 0 : index
    %c9_139 = arith.constant 9 : index
    %c0_140 = arith.constant 0 : index
    %166 = vector.load %arg28[%c0_138, %c9_139, %c0_140] : memref<2x24x224xbf16, #tpu.memory_space<vmem>>, vector<2x8x224xbf16>
    %167 = vector.shape_cast %166 : vector<2x8x224xbf16> to vector<16x224xbf16>
    %c2_141 = arith.constant 2 : index
    %c0_142 = arith.constant 0 : index
    %c0_143 = arith.constant 0 : index
    %168 = vector.load %arg33[%c2_141, %c0_142, %c0_143] : memref<3x224x256xbf16, #tpu.memory_space<vmem>>, vector<1x224x256xbf16>
    %169 = vector.shape_cast %168 : vector<1x224x256xbf16> to vector<224x256xbf16>
    %cst_144 = arith.constant dense<0.000000e+00> : vector<16x256xf32>
    %170 = tpu.matmul %167, %169, %cst_144 {dimension_numbers = #tpu.dot_dimension_numbers<[1], [0], [0], [1], [0, 0, 1, 1], [], []>} : vector<16x224xbf16>, vector<224x256xbf16>, vector<16x256xf32> -> vector<16x256xf32>
    %171 = arith.addf %165, %170 : vector<16x256xf32>
    %c0_145 = arith.constant 0 : index
    %c0_146 = arith.constant 0 : index
    %172 = vector.load %arg11[%c0_145, %c0_146] : memref<1x256xf32, #tpu.memory_space<vmem>>, vector<1x256xf32>
    %173 = vector.broadcast %172 : vector<1x256xf32> to vector<16x256xf32>
    %174 = arith.addf %171, %173 : vector<16x256xf32>
    %cst_147 = arith.constant 0.000000e+00 : f32
    %175 = vector.broadcast %cst_147 : f32 to vector<16x256xf32>
    %176 = arith.maximumf %174, %175 : vector<16x256xf32>
    %cst_148 = arith.constant dense<0.000000e+00> : vector<256xf32>
    %177 = vector.multi_reduction <add>, %176, %cst_148 [0] : vector<16x256xf32> to vector<256xf32>
    %178 = vector.shape_cast %177 : vector<256xf32> to vector<1x256xf32>
    %cst_149 = arith.constant 6.250000e-02 : f32
    %179 = vector.broadcast %cst_149 : f32 to vector<1x256xf32>
    %180 = arith.mulf %178, %179 : vector<1x256xf32>
    %181 = arith.mulf %176, %176 : vector<16x256xf32>
    %cst_150 = arith.constant dense<0.000000e+00> : vector<256xf32>
    %182 = vector.multi_reduction <add>, %181, %cst_150 [0] : vector<16x256xf32> to vector<256xf32>
    %183 = vector.shape_cast %182 : vector<256xf32> to vector<1x256xf32>
    %cst_151 = arith.constant 6.250000e-02 : f32
    %184 = vector.broadcast %cst_151 : f32 to vector<1x256xf32>
    %185 = arith.mulf %183, %184 : vector<1x256xf32>
    %c6_i32_152 = arith.constant 6 : i32
    %186 = tpu.memref_slice %arg39[%c6_i32_152] : memref<8x!tpu.dma_semaphore, #tpu.memory_space<semaphore_mem>> -> memref<1x!tpu.dma_semaphore, #tpu.memory_space<semaphore_mem>>
    %187 = tpu.memref_squeeze %186 : memref<1x!tpu.dma_semaphore, #tpu.memory_space<semaphore_mem>> -> memref<!tpu.dma_semaphore, #tpu.memory_space<semaphore_mem>>
    tpu.wait_dma2 semaphore(%187 : memref<!tpu.dma_semaphore, #tpu.memory_space<semaphore_mem>>) src(%arg21 : memref<256x256xf32, #tpu.memory_space<any>>) dst(%arg37 : memref<256x256xf32, #tpu.memory_space<vmem>>)
    %188 = tpu.concatenate %180, %185 in 0 : vector<1x256xf32>, vector<1x256xf32> -> vector<2x256xf32>
    %c0_153 = arith.constant 0 : index
    %c0_154 = arith.constant 0 : index
    %189 = vector.load %arg37[%c0_153, %c0_154] : memref<256x256xf32, #tpu.memory_space<vmem>>, vector<256x256xf32>
    %cst_155 = arith.constant dense<0.000000e+00> : vector<2x256xf32>
    %190 = tpu.matmul %188, %189, %cst_155 {dimension_numbers = #tpu.dot_dimension_numbers<[1], [0], [0], [1], [0, 0, 1, 1], [], []>} : vector<2x256xf32>, vector<256x256xf32>, vector<2x256xf32> -> vector<2x256xf32>
    %191 = vector.extract_strided_slice %190 {offsets = [0, 0], sizes = [1, 256], strides = [1, 1]} : vector<2x256xf32> to vector<1x256xf32>
    %192 = vector.extract_strided_slice %190 {offsets = [1, 0], sizes = [1, 256], strides = [1, 1]} : vector<2x256xf32> to vector<1x256xf32>
    %193 = arith.mulf %191, %191 : vector<1x256xf32>
    %194 = arith.subf %192, %193 : vector<1x256xf32>
    %cst_156 = arith.constant 0.000000e+00 : f32
    %195 = vector.broadcast %cst_156 : f32 to vector<1x256xf32>
    %196 = arith.maximumf %194, %195 : vector<1x256xf32>
    %cst_157 = arith.constant 1.000000e-03 : f32
    %197 = vector.broadcast %cst_157 : f32 to vector<1x256xf32>
    %198 = arith.addf %196, %197 : vector<1x256xf32>
    %199 = math.rsqrt %198 : vector<1x256xf32>
    %200 = vector.broadcast %191 : vector<1x256xf32> to vector<16x256xf32>
    %201 = arith.subf %176, %200 : vector<16x256xf32>
    %c0_158 = arith.constant 0 : index
    %c0_159 = arith.constant 0 : index
    %202 = vector.load %arg16[%c0_158, %c0_159] : memref<1x256xf32, #tpu.memory_space<vmem>>, vector<1x256xf32>
    %203 = arith.mulf %199, %202 : vector<1x256xf32>
    %204 = vector.broadcast %203 : vector<1x256xf32> to vector<16x256xf32>
    %205 = arith.mulf %201, %204 : vector<16x256xf32>
    %c0_160 = arith.constant 0 : index
    %c0_161 = arith.constant 0 : index
    %206 = vector.load %arg17[%c0_160, %c0_161] : memref<1x256xf32, #tpu.memory_space<vmem>>, vector<1x256xf32>
    %207 = vector.broadcast %206 : vector<1x256xf32> to vector<16x256xf32>
    %208 = arith.addf %205, %207 : vector<16x256xf32>
    %209 = vector.extract_strided_slice %208 {offsets = [0, 0], sizes = [16, 192], strides = [1, 1]} : vector<16x256xf32> to vector<16x192xf32>
    %210 = vector.extract_strided_slice %208 {offsets = [0, 64], sizes = [16, 192], strides = [1, 1]} : vector<16x256xf32> to vector<16x192xf32>
    %211 = arith.maximumf %209, %210 : vector<16x192xf32>
    %212 = vector.shape_cast %211 : vector<16x192xf32> to vector<2x4x2x192xf32>
    %cst_162 = arith.constant dense<0xFF800000> : vector<2x4x192xf32>
    %213 = vector.multi_reduction <maximumf>, %212, %cst_162 [2] : vector<2x4x2x192xf32> to vector<2x4x192xf32>
    %cst_163 = arith.constant 0.000000e+00 : bf16
    %214 = vector.broadcast %cst_163 : bf16 to vector<2x1x192xbf16>
    %c0_164 = arith.constant 0 : index
    %c7_165 = arith.constant 7 : index
    %c0_166 = arith.constant 0 : index
    %215 = vector.load %arg29[%c0_164, %c7_165, %c0_166] : memref<2x20x192xbf16, #tpu.memory_space<vmem>>, vector<2x1x192xbf16>
    tpu.vector_store %arg29[%c0_164, %c7_165, %c0_166], %214 {strides = array<i32>} : memref<2x20x192xbf16, #tpu.memory_space<vmem>>, vector<2x1x192xbf16>,
    %c0_167 = arith.constant 0 : index
    %c12 = arith.constant 12 : index
    %c0_168 = arith.constant 0 : index
    %216 = vector.load %arg29[%c0_167, %c12, %c0_168] : memref<2x20x192xbf16, #tpu.memory_space<vmem>>, vector<2x1x192xbf16>
    tpu.vector_store %arg29[%c0_167, %c12, %c0_168], %214 {strides = array<i32>} : memref<2x20x192xbf16, #tpu.memory_space<vmem>>, vector<2x1x192xbf16>,
    %217 = arith.truncf %213 : vector<2x4x192xf32> to vector<2x4x192xbf16>
    %c0_169 = arith.constant 0 : index
    %c8_170 = arith.constant 8 : index
    %c0_171 = arith.constant 0 : index
    %218 = vector.load %arg29[%c0_169, %c8_170, %c0_171] : memref<2x20x192xbf16, #tpu.memory_space<vmem>>, vector<2x4x192xbf16>
    tpu.vector_store %arg29[%c0_169, %c8_170, %c0_171], %217 {strides = array<i32>} : memref<2x20x192xbf16, #tpu.memory_space<vmem>>, vector<2x4x192xbf16>,
    %c3_i32_172 = arith.constant 3 : i32
    %219 = tpu.memref_slice %arg39[%c3_i32_172] : memref<8x!tpu.dma_semaphore, #tpu.memory_space<semaphore_mem>> -> memref<1x!tpu.dma_semaphore, #tpu.memory_space<semaphore_mem>>
    %220 = tpu.memref_squeeze %219 : memref<1x!tpu.dma_semaphore, #tpu.memory_space<semaphore_mem>> -> memref<!tpu.dma_semaphore, #tpu.memory_space<semaphore_mem>>
    tpu.wait_dma2 semaphore(%220 : memref<!tpu.dma_semaphore, #tpu.memory_space<semaphore_mem>>) src(%arg6 : memref<3x192x256xbf16, #tpu.memory_space<any>>) dst(%arg34 : memref<3x192x256xbf16, #tpu.memory_space<vmem>>)
    %c0_173 = arith.constant 0 : index
    %c7_174 = arith.constant 7 : index
    %c0_175 = arith.constant 0 : index
    %221 = vector.load %arg29[%c0_173, %c7_174, %c0_175] : memref<2x20x192xbf16, #tpu.memory_space<vmem>>, vector<2x4x192xbf16>
    %222 = vector.shape_cast %221 : vector<2x4x192xbf16> to vector<8x192xbf16>
    %c0_176 = arith.constant 0 : index
    %c0_177 = arith.constant 0 : index
    %c0_178 = arith.constant 0 : index
    %223 = vector.load %arg34[%c0_176, %c0_177, %c0_178] : memref<3x192x256xbf16, #tpu.memory_space<vmem>>, vector<1x192x256xbf16>
    %224 = vector.shape_cast %223 : vector<1x192x256xbf16> to vector<192x256xbf16>
    %cst_179 = arith.constant dense<0.000000e+00> : vector<8x256xf32>
    %225 = tpu.matmul %222, %224, %cst_179 {dimension_numbers = #tpu.dot_dimension_numbers<[1], [0], [0], [1], [0, 0, 1, 1], [], []>} : vector<8x192xbf16>, vector<192x256xbf16>, vector<8x256xf32> -> vector<8x256xf32>
    %c0_180 = arith.constant 0 : index
    %c8_181 = arith.constant 8 : index
    %c0_182 = arith.constant 0 : index
    %226 = vector.load %arg29[%c0_180, %c8_181, %c0_182] : memref<2x20x192xbf16, #tpu.memory_space<vmem>>, vector<2x4x192xbf16>
    %227 = vector.shape_cast %226 : vector<2x4x192xbf16> to vector<8x192xbf16>
    %c1_183 = arith.constant 1 : index
    %c0_184 = arith.constant 0 : index
    %c0_185 = arith.constant 0 : index
    %228 = vector.load %arg34[%c1_183, %c0_184, %c0_185] : memref<3x192x256xbf16, #tpu.memory_space<vmem>>, vector<1x192x256xbf16>
    %229 = vector.shape_cast %228 : vector<1x192x256xbf16> to vector<192x256xbf16>
    %cst_186 = arith.constant dense<0.000000e+00> : vector<8x256xf32>
    %230 = tpu.matmul %227, %229, %cst_186 {dimension_numbers = #tpu.dot_dimension_numbers<[1], [0], [0], [1], [0, 0, 1, 1], [], []>} : vector<8x192xbf16>, vector<192x256xbf16>, vector<8x256xf32> -> vector<8x256xf32>
    %231 = arith.addf %225, %230 : vector<8x256xf32>
    %c0_187 = arith.constant 0 : index
    %c9_188 = arith.constant 9 : index
    %c0_189 = arith.constant 0 : index
    %232 = vector.load %arg29[%c0_187, %c9_188, %c0_189] : memref<2x20x192xbf16, #tpu.memory_space<vmem>>, vector<2x4x192xbf16>
    %233 = vector.shape_cast %232 : vector<2x4x192xbf16> to vector<8x192xbf16>
    %c2_190 = arith.constant 2 : index
    %c0_191 = arith.constant 0 : index
    %c0_192 = arith.constant 0 : index
    %234 = vector.load %arg34[%c2_190, %c0_191, %c0_192] : memref<3x192x256xbf16, #tpu.memory_space<vmem>>, vector<1x192x256xbf16>
    %235 = vector.shape_cast %234 : vector<1x192x256xbf16> to vector<192x256xbf16>
    %cst_193 = arith.constant dense<0.000000e+00> : vector<8x256xf32>
    %236 = tpu.matmul %233, %235, %cst_193 {dimension_numbers = #tpu.dot_dimension_numbers<[1], [0], [0], [1], [0, 0, 1, 1], [], []>} : vector<8x192xbf16>, vector<192x256xbf16>, vector<8x256xf32> -> vector<8x256xf32>
    %237 = arith.addf %231, %236 : vector<8x256xf32>
    %c0_194 = arith.constant 0 : index
    %c0_195 = arith.constant 0 : index
    %238 = vector.load %arg12[%c0_194, %c0_195] : memref<1x256xf32, #tpu.memory_space<vmem>>, vector<1x256xf32>
    %239 = vector.broadcast %238 : vector<1x256xf32> to vector<8x256xf32>
    %240 = arith.addf %237, %239 : vector<8x256xf32>
    %cst_196 = arith.constant 0.000000e+00 : f32
    %241 = vector.broadcast %cst_196 : f32 to vector<8x256xf32>
    %242 = arith.maximumf %240, %241 : vector<8x256xf32>
    %243 = vector.extract_strided_slice %242 {offsets = [0, 0], sizes = [8, 128], strides = [1, 1]} : vector<8x256xf32> to vector<8x128xf32>
    %244 = vector.extract_strided_slice %242 {offsets = [0, 128], sizes = [8, 128], strides = [1, 1]} : vector<8x256xf32> to vector<8x128xf32>
    %245 = arith.maximumf %243, %244 : vector<8x128xf32>
    %246 = vector.shape_cast %245 : vector<8x128xf32> to vector<2x2x2x128xf32>
    %cst_197 = arith.constant dense<0xFF800000> : vector<2x2x128xf32>
    %247 = vector.multi_reduction <maximumf>, %246, %cst_197 [2] : vector<2x2x2x128xf32> to vector<2x2x128xf32>
    %cst_198 = arith.constant 0.000000e+00 : bf16
    %248 = vector.broadcast %cst_198 : bf16 to vector<2x1x128xbf16>
    %c0_199 = arith.constant 0 : index
    %c7_200 = arith.constant 7 : index
    %c0_201 = arith.constant 0 : index
    %249 = vector.load %arg30[%c0_199, %c7_200, %c0_201] : memref<2x18x128xbf16, #tpu.memory_space<vmem>>, vector<2x1x128xbf16>
    tpu.vector_store %arg30[%c0_199, %c7_200, %c0_201], %248 {strides = array<i32>} : memref<2x18x128xbf16, #tpu.memory_space<vmem>>, vector<2x1x128xbf16>,
    %c0_202 = arith.constant 0 : index
    %c10 = arith.constant 10 : index
    %c0_203 = arith.constant 0 : index
    %250 = vector.load %arg30[%c0_202, %c10, %c0_203] : memref<2x18x128xbf16, #tpu.memory_space<vmem>>, vector<2x1x128xbf16>
    tpu.vector_store %arg30[%c0_202, %c10, %c0_203], %248 {strides = array<i32>} : memref<2x18x128xbf16, #tpu.memory_space<vmem>>, vector<2x1x128xbf16>,
    %251 = arith.truncf %247 : vector<2x2x128xf32> to vector<2x2x128xbf16>
    %c0_204 = arith.constant 0 : index
    %c8_205 = arith.constant 8 : index
    %c0_206 = arith.constant 0 : index
    %252 = vector.load %arg30[%c0_204, %c8_205, %c0_206] : memref<2x18x128xbf16, #tpu.memory_space<vmem>>, vector<2x2x128xbf16>
    tpu.vector_store %arg30[%c0_204, %c8_205, %c0_206], %251 {strides = array<i32>} : memref<2x18x128xbf16, #tpu.memory_space<vmem>>, vector<2x2x128xbf16>,
    %c4_i32_207 = arith.constant 4 : i32
    %253 = tpu.memref_slice %arg39[%c4_i32_207] : memref<8x!tpu.dma_semaphore, #tpu.memory_space<semaphore_mem>> -> memref<1x!tpu.dma_semaphore, #tpu.memory_space<semaphore_mem>>
    %254 = tpu.memref_squeeze %253 : memref<1x!tpu.dma_semaphore, #tpu.memory_space<semaphore_mem>> -> memref<!tpu.dma_semaphore, #tpu.memory_space<semaphore_mem>>
    tpu.wait_dma2 semaphore(%254 : memref<!tpu.dma_semaphore, #tpu.memory_space<semaphore_mem>>) src(%arg7 : memref<3x128x256xbf16, #tpu.memory_space<any>>) dst(%arg35 : memref<3x128x256xbf16, #tpu.memory_space<vmem>>)
    %c0_208 = arith.constant 0 : index
    %c7_209 = arith.constant 7 : index
    %c0_210 = arith.constant 0 : index
    %255 = vector.load %arg30[%c0_208, %c7_209, %c0_210] : memref<2x18x128xbf16, #tpu.memory_space<vmem>>, vector<2x2x128xbf16>
    %256 = vector.shape_cast %255 : vector<2x2x128xbf16> to vector<4x128xbf16>
    %c0_211 = arith.constant 0 : index
    %c0_212 = arith.constant 0 : index
    %c0_213 = arith.constant 0 : index
    %257 = vector.load %arg35[%c0_211, %c0_212, %c0_213] : memref<3x128x256xbf16, #tpu.memory_space<vmem>>, vector<1x128x256xbf16>
    %258 = vector.shape_cast %257 : vector<1x128x256xbf16> to vector<128x256xbf16>
    %cst_214 = arith.constant dense<0.000000e+00> : vector<4x256xf32>
    %259 = tpu.matmul %256, %258, %cst_214 {dimension_numbers = #tpu.dot_dimension_numbers<[1], [0], [0], [1], [0, 0, 1, 1], [], []>} : vector<4x128xbf16>, vector<128x256xbf16>, vector<4x256xf32> -> vector<4x256xf32>
    %c0_215 = arith.constant 0 : index
    %c8_216 = arith.constant 8 : index
    %c0_217 = arith.constant 0 : index
    %260 = vector.load %arg30[%c0_215, %c8_216, %c0_217] : memref<2x18x128xbf16, #tpu.memory_space<vmem>>, vector<2x2x128xbf16>
    %261 = vector.shape_cast %260 : vector<2x2x128xbf16> to vector<4x128xbf16>
    %c1_218 = arith.constant 1 : index
    %c0_219 = arith.constant 0 : index
    %c0_220 = arith.constant 0 : index
    %262 = vector.load %arg35[%c1_218, %c0_219, %c0_220] : memref<3x128x256xbf16, #tpu.memory_space<vmem>>, vector<1x128x256xbf16>
    %263 = vector.shape_cast %262 : vector<1x128x256xbf16> to vector<128x256xbf16>
    %cst_221 = arith.constant dense<0.000000e+00> : vector<4x256xf32>
    %264 = tpu.matmul %261, %263, %cst_221 {dimension_numbers = #tpu.dot_dimension_numbers<[1], [0], [0], [1], [0, 0, 1, 1], [], []>} : vector<4x128xbf16>, vector<128x256xbf16>, vector<4x256xf32> -> vector<4x256xf32>
    %265 = arith.addf %259, %264 : vector<4x256xf32>
    %c0_222 = arith.constant 0 : index
    %c9_223 = arith.constant 9 : index
    %c0_224 = arith.constant 0 : index
    %266 = vector.load %arg30[%c0_222, %c9_223, %c0_224] : memref<2x18x128xbf16, #tpu.memory_space<vmem>>, vector<2x2x128xbf16>
    %267 = vector.shape_cast %266 : vector<2x2x128xbf16> to vector<4x128xbf16>
    %c2_225 = arith.constant 2 : index
    %c0_226 = arith.constant 0 : index
    %c0_227 = arith.constant 0 : index
    %268 = vector.load %arg35[%c2_225, %c0_226, %c0_227] : memref<3x128x256xbf16, #tpu.memory_space<vmem>>, vector<1x128x256xbf16>
    %269 = vector.shape_cast %268 : vector<1x128x256xbf16> to vector<128x256xbf16>
    %cst_228 = arith.constant dense<0.000000e+00> : vector<4x256xf32>
    %270 = tpu.matmul %267, %269, %cst_228 {dimension_numbers = #tpu.dot_dimension_numbers<[1], [0], [0], [1], [0, 0, 1, 1], [], []>} : vector<4x128xbf16>, vector<128x256xbf16>, vector<4x256xf32> -> vector<4x256xf32>
    %271 = arith.addf %265, %270 : vector<4x256xf32>
    %c0_229 = arith.constant 0 : index
    %c0_230 = arith.constant 0 : index
    %272 = vector.load %arg13[%c0_229, %c0_230] : memref<1x256xf32, #tpu.memory_space<vmem>>, vector<1x256xf32>
    %273 = vector.broadcast %272 : vector<1x256xf32> to vector<4x256xf32>
    %274 = arith.addf %271, %273 : vector<4x256xf32>
    %cst_231 = arith.constant 0.000000e+00 : f32
    %275 = vector.broadcast %cst_231 : f32 to vector<4x256xf32>
    %276 = arith.maximumf %274, %275 : vector<4x256xf32>
    %cst_232 = arith.constant dense<0.000000e+00> : vector<256xf32>
    %277 = vector.multi_reduction <add>, %276, %cst_232 [0] : vector<4x256xf32> to vector<256xf32>
    %278 = vector.shape_cast %277 : vector<256xf32> to vector<1x256xf32>
    %cst_233 = arith.constant 2.500000e-01 : f32
    %279 = vector.broadcast %cst_233 : f32 to vector<1x256xf32>
    %280 = arith.mulf %278, %279 : vector<1x256xf32>
    %281 = arith.mulf %276, %276 : vector<4x256xf32>
    %cst_234 = arith.constant dense<0.000000e+00> : vector<256xf32>
    %282 = vector.multi_reduction <add>, %281, %cst_234 [0] : vector<4x256xf32> to vector<256xf32>
    %283 = vector.shape_cast %282 : vector<256xf32> to vector<1x256xf32>
    %cst_235 = arith.constant 2.500000e-01 : f32
    %284 = vector.broadcast %cst_235 : f32 to vector<1x256xf32>
    %285 = arith.mulf %283, %284 : vector<1x256xf32>
    %286 = arith.mulf %280, %280 : vector<1x256xf32>
    %287 = arith.subf %285, %286 : vector<1x256xf32>
    %cst_236 = arith.constant 0.000000e+00 : f32
    %288 = vector.broadcast %cst_236 : f32 to vector<1x256xf32>
    %289 = arith.maximumf %287, %288 : vector<1x256xf32>
    %cst_237 = arith.constant 1.000000e-03 : f32
    %290 = vector.broadcast %cst_237 : f32 to vector<1x256xf32>
    %291 = arith.addf %289, %290 : vector<1x256xf32>
    %292 = math.rsqrt %291 : vector<1x256xf32>
    %293 = vector.broadcast %280 : vector<1x256xf32> to vector<4x256xf32>
    %294 = arith.subf %276, %293 : vector<4x256xf32>
    %c0_238 = arith.constant 0 : index
    %c0_239 = arith.constant 0 : index
    %295 = vector.load %arg18[%c0_238, %c0_239] : memref<1x256xf32, #tpu.memory_space<vmem>>, vector<1x256xf32>
    %296 = arith.mulf %292, %295 : vector<1x256xf32>
    %297 = vector.broadcast %296 : vector<1x256xf32> to vector<4x256xf32>
    %298 = arith.mulf %294, %297 : vector<4x256xf32>
    %c0_240 = arith.constant 0 : index
    %c0_241 = arith.constant 0 : index
    %299 = vector.load %arg19[%c0_240, %c0_241] : memref<1x256xf32, #tpu.memory_space<vmem>>, vector<1x256xf32>
    %300 = vector.broadcast %299 : vector<1x256xf32> to vector<4x256xf32>
    %301 = arith.addf %298, %300 : vector<4x256xf32>
    %c7_i32_242 = arith.constant 7 : i32
    %302 = tpu.memref_slice %arg39[%c7_i32_242] : memref<8x!tpu.dma_semaphore, #tpu.memory_space<semaphore_mem>> -> memref<1x!tpu.dma_semaphore, #tpu.memory_space<semaphore_mem>>
    %303 = tpu.memref_squeeze %302 : memref<1x!tpu.dma_semaphore, #tpu.memory_space<semaphore_mem>> -> memref<!tpu.dma_semaphore, #tpu.memory_space<semaphore_mem>>
    tpu.wait_dma2 semaphore(%303 : memref<!tpu.dma_semaphore, #tpu.memory_space<semaphore_mem>>) src(%arg22 : memref<2x256x128xbf16, #tpu.memory_space<any>>) dst(%arg38 : memref<2x256x128xbf16, #tpu.memory_space<vmem>>)
    %304 = vector.shape_cast %301 : vector<4x256xf32> to vector<2x2x256xf32>
    %305 = vector.extract_strided_slice %304 {offsets = [0, 0, 0], sizes = [2, 1, 256], strides = [1, 1, 1]} : vector<2x2x256xf32> to vector<2x1x256xf32>
    %306 = vector.shape_cast %305 : vector<2x1x256xf32> to vector<2x256xf32>
    %307 = arith.truncf %306 : vector<2x256xf32> to vector<2x256xbf16>
    %c0_243 = arith.constant 0 : index
    %c0_244 = arith.constant 0 : index
    %c0_245 = arith.constant 0 : index
    %308 = vector.load %arg38[%c0_243, %c0_244, %c0_245] : memref<2x256x128xbf16, #tpu.memory_space<vmem>>, vector<1x256x128xbf16>
    %309 = vector.shape_cast %308 : vector<1x256x128xbf16> to vector<256x128xbf16>
    %cst_246 = arith.constant dense<0.000000e+00> : vector<2x128xf32>
    %310 = tpu.matmul %307, %309, %cst_246 {dimension_numbers = #tpu.dot_dimension_numbers<[1], [0], [0], [1], [0, 0, 1, 1], [], []>} : vector<2x256xbf16>, vector<256x128xbf16>, vector<2x128xf32> -> vector<2x128xf32>
    %311 = vector.extract_strided_slice %304 {offsets = [0, 1, 0], sizes = [2, 1, 256], strides = [1, 1, 1]} : vector<2x2x256xf32> to vector<2x1x256xf32>
    %312 = vector.shape_cast %311 : vector<2x1x256xf32> to vector<2x256xf32>
    %313 = arith.truncf %312 : vector<2x256xf32> to vector<2x256xbf16>
    %c1_247 = arith.constant 1 : index
    %c0_248 = arith.constant 0 : index
    %c0_249 = arith.constant 0 : index
    %314 = vector.load %arg38[%c1_247, %c0_248, %c0_249] : memref<2x256x128xbf16, #tpu.memory_space<vmem>>, vector<1x256x128xbf16>
    %315 = vector.shape_cast %314 : vector<1x256x128xbf16> to vector<256x128xbf16>
    %cst_250 = arith.constant dense<0.000000e+00> : vector<2x128xf32>
    %316 = tpu.matmul %313, %315, %cst_250 {dimension_numbers = #tpu.dot_dimension_numbers<[1], [0], [0], [1], [0, 0, 1, 1], [], []>} : vector<2x256xbf16>, vector<256x128xbf16>, vector<2x128xf32> -> vector<2x128xf32>
    %317 = arith.addf %310, %316 : vector<2x128xf32>
    %c0_251 = arith.constant 0 : index
    %c0_252 = arith.constant 0 : index
    %318 = vector.load %arg23[%c0_251, %c0_252] : memref<1x128xf32, #tpu.memory_space<vmem>>, vector<1x128xf32>
    %319 = vector.broadcast %318 : vector<1x128xf32> to vector<2x128xf32>
    %320 = arith.addf %317, %319 : vector<2x128xf32>
    %cst_253 = arith.constant dense<0xFF800000> : vector<2xf32>
    %321 = vector.multi_reduction <maximumf>, %320, %cst_253 [1] : vector<2x128xf32> to vector<2xf32>
    %322 = vector.shape_cast %321 : vector<2xf32> to vector<2x1xf32>
    %323 = vector.broadcast %322 : vector<2x1xf32> to vector<2x128xf32>
    %324 = arith.subf %320, %323 : vector<2x128xf32>
    %325 = math.exp %324 : vector<2x128xf32>
    %cst_254 = arith.constant dense<0.000000e+00> : vector<2xf32>
    %326 = vector.multi_reduction <add>, %325, %cst_254 [1] : vector<2x128xf32> to vector<2xf32>
    %327 = vector.shape_cast %326 : vector<2xf32> to vector<2x1xf32>
    %328 = vector.broadcast %327 : vector<2x1xf32> to vector<2x128xf32>
    %329 = arith.divf %325, %328 : vector<2x128xf32>
    %c0_255 = arith.constant 0 : index
    %c0_256 = arith.constant 0 : index
    %330 = vector.load %arg24[%c0_255, %c0_256] : memref<2x128xf32, #tpu.memory_space<vmem>>, vector<2x128xf32>
    tpu.vector_store %arg24[%c0_255, %c0_256], %329 {strides = array<i32>} : memref<2x128xf32, #tpu.memory_space<vmem>>, vector<2x128xf32>,
    return
  }
  func.func @transform_0(%arg0: i32) -> (i32, i32, i32) {
    %c0_i32 = arith.constant 0 : i32
    %c0_i32_0 = arith.constant 0 : i32
    %c0_i32_1 = arith.constant 0 : i32
    %c0_i32_2 = arith.constant 0 : i32
    return %c0_i32, %c0_i32_0, %c0_i32_1 : i32, i32, i32
  }
  func.func @transform_1(%arg0: i32) -> (i32, i32, i32) {
    %c0_i32 = arith.constant 0 : i32
    %c0_i32_0 = arith.constant 0 : i32
    %c0_i32_1 = arith.constant 0 : i32
    %c0_i32_2 = arith.constant 0 : i32
    return %c0_i32, %c0_i32_0, %c0_i32_1 : i32, i32, i32
  }
  func.func @transform_7(%arg0: i32) -> (i32, i32) {
    %c0_i32 = arith.constant 0 : i32
    %c0_i32_0 = arith.constant 0 : i32
    %c0_i32_1 = arith.constant 0 : i32
    return %c0_i32, %c0_i32_0 : i32, i32
  }
  func.func @transform_8(%arg0: i32) -> (i32, i32) {
    %c0_i32 = arith.constant 0 : i32
    %c0_i32_0 = arith.constant 0 : i32
    %c0_i32_1 = arith.constant 0 : i32
    return %c0_i32, %c0_i32_0 : i32, i32
  }
  func.func @transform_9(%arg0: i32) -> (i32, i32) {
    %c0_i32 = arith.constant 0 : i32
    %c0_i32_0 = arith.constant 0 : i32
    %c0_i32_1 = arith.constant 0 : i32
    return %c0_i32, %c0_i32_0 : i32, i32
  }
  func.func @transform_10(%arg0: i32) -> (i32, i32) {
    %c0_i32 = arith.constant 0 : i32
    %c0_i32_0 = arith.constant 0 : i32
    %c0_i32_1 = arith.constant 0 : i32
    return %c0_i32, %c0_i32_0 : i32, i32
  }
  func.func @transform_11(%arg0: i32) -> (i32, i32) {
    %c0_i32 = arith.constant 0 : i32
    %c0_i32_0 = arith.constant 0 : i32
    %c0_i32_1 = arith.constant 0 : i32
    return %c0_i32, %c0_i32_0 : i32, i32
  }
  func.func @transform_12(%arg0: i32) -> (i32, i32) {
    %c0_i32 = arith.constant 0 : i32
    %c0_i32_0 = arith.constant 0 : i32
    %c0_i32_1 = arith.constant 0 : i32
    return %c0_i32, %c0_i32_0 : i32, i32
  }
  func.func @transform_13(%arg0: i32) -> (i32, i32) {
    %c0_i32 = arith.constant 0 : i32
    %c0_i32_0 = arith.constant 0 : i32
    %c0_i32_1 = arith.constant 0 : i32
    return %c0_i32, %c0_i32_0 : i32, i32
  }
  func.func @transform_14(%arg0: i32) -> (i32, i32) {
    %c0_i32 = arith.constant 0 : i32
    %c0_i32_0 = arith.constant 0 : i32
    %c0_i32_1 = arith.constant 0 : i32
    return %c0_i32, %c0_i32_0 : i32, i32
  }
  func.func @transform_15(%arg0: i32) -> (i32, i32) {
    %c0_i32 = arith.constant 0 : i32
    %c0_i32_0 = arith.constant 0 : i32
    %c0_i32_1 = arith.constant 0 : i32
    return %c0_i32, %c0_i32_0 : i32, i32
  }
  func.func @transform_16(%arg0: i32) -> (i32, i32) {
    %c0_i32 = arith.constant 0 : i32
    %c0_i32_0 = arith.constant 0 : i32
    %c0_i32_1 = arith.constant 0 : i32
    return %c0_i32, %c0_i32_0 : i32, i32
  }
  func.func @transform_17(%arg0: i32) -> (i32, i32) {
    %c0_i32 = arith.constant 0 : i32
    %c0_i32_0 = arith.constant 0 : i32
    %c0_i32_1 = arith.constant 0 : i32
    return %c0_i32, %c0_i32_0 : i32, i32
  }
  func.func @transform_18(%arg0: i32) -> (i32, i32) {
    %c0_i32 = arith.constant 0 : i32
    %c0_i32_0 = arith.constant 0 : i32
    %c0_i32_1 = arith.constant 0 : i32
    return %c0_i32, %c0_i32_0 : i32, i32
  }
  func.func @transform_22(%arg0: i32) -> (i32, i32) {
    %c0_i32 = arith.constant 0 : i32
    %c0_i32_0 = arith.constant 0 : i32
    %c0_i32_1 = arith.constant 0 : i32
    return %c0_i32, %c0_i32_0 : i32, i32
  }
  func.func @transform_23(%arg0: i32) -> (i32, i32) {
    %c0_i32 = arith.constant 0 : i32
    %c0_i32_0 = arith.constant 0 : i32
    %c0_i32_1 = arith.constant 0 : i32
    return %c0_i32, %c0_i32_0 : i32, i32
  }
}

</mosaic_0001>

<bundles_post_ra>
// kernel: forward.1
= control target key start
LH: loop header
LB: loop body
LE: loop exit
PB: predicated region body
PF: predicated region fallthrough
CT: control target
= control target key end

     0   :  { %s17221_s0 = inlined_call_operand.vmem [shape: bf16[2,64,96], index: 0, kind: input, shape index: {}]   ;;  %s17222_s1 = inlined_call_operand.hbm [shape: bf16[3,96,256], index: 1, kind: input, shape index: {}]   ;;  %s17223_s2 = inlined_call_operand.hbm [shape: bf16[3,248,256], index: 2, kind: input, shape index: {}]   ;;  %s17224_s3 = inlined_call_operand.hbm [shape: bf16[3,240,256], index: 3, kind: input, shape index: {}]   ;;  %s17225_s4 = inlined_call_operand.hbm [shape: bf16[3,224,256], index: 4, kind: input, shape index: {}]   ;;  %s17226_s5 = inlined_call_operand.vmem [shape: bf16[3,192,256], index: 5, kind: input, shape index: {}]   ;;  %s17227_s6 = inlined_call_operand.hbm [shape: bf16[3,128,256], index: 6, kind: input, shape index: {}]   ;;  %s17228_s7 = inlined_call_operand.vmem [shape: f32[1,256], index: 7, kind: input, shape index: {}]   ;;  %s17229_s8 = inlined_call_operand.vmem [shape: f32[1,256], index: 8, kind: input, shape index: {}]   ;;  %s17230_s9 = inlined_call_operand.vmem [shape: f32[1,256], index: 9, kind: input, shape index: {}]   ;;  %s17231_s10 = inlined_call_operand.vmem [shape: f32[1,256], index: 10, kind: input, shape index: {}]   ;;  %s17232_s11 = inlined_call_operand.vmem [shape: f32[1,256], index: 11, kind: input, shape index: {}]   ;;  %s17233_s12 = inlined_call_operand.vmem [shape: f32[1,256], index: 12, kind: input, shape index: {}]   ;;  %s17234_s13 = inlined_call_operand.vmem [shape: f32[1,256], index: 13, kind: input, shape index: {}]   ;;  %s17235_s14 = inlined_call_operand.vmem [shape: f32[1,256], index: 14, kind: input, shape index: {}]   ;;  %s17236_s15 = inlined_call_operand.vmem [shape: f32[1,256], index: 15, kind: input, shape index: {}]   ;;  %s17237_s16 = inlined_call_operand.vmem [shape: f32[1,256], index: 16, kind: input, shape index: {}]   ;;  %s17238_s17 = inlined_call_operand.vmem [shape: f32[1,256], index: 17, kind: input, shape index: {}]   ;;  %s17239_s18 = inlined_call_operand.vmem [shape: f32[1,256], index: 18, kind: input, shape index: {}]   ;;  %s17240_s19 = inlined_call_operand.hbm [shape: f32[256,256], index: 19, kind: input, shape index: {}]   ;;  %s17241_s20 = inlined_call_operand.hbm [shape: f32[256,256], index: 20, kind: input, shape index: {}]   ;;  %s17242_s21 = inlined_call_operand.hbm [shape: bf16[2,256,128], index: 21, kind: input, shape index: {}]   ;;  %s17243_s22 = inlined_call_operand.vmem [shape: f32[1,128], index: 22, kind: input, shape index: {}]   ;;  %s17244_s23 = inlined_call_operand.hbm [shape: f32[2,128], index: 23, kind: output, shape index: {}]  }
   0x1   :  { %17378 = sst [smem:[#allocation128_spill]] %s17221_s0 }
   0x2   :  { %17379 = sst [smem:[#allocation129_spill]] %s17222_s1 }
   0x3   :  { %17380 = sst [smem:[#allocation130_spill]] %s17223_s2 }
   0x4   :  { %17381 = sst [smem:[#allocation131_spill]] %s17224_s3 }
   0x5   :  { %17382 = sst [smem:[#allocation132_spill]] %s17225_s4 }
   0x6   :  { %17383 = sst [smem:[#allocation133_spill]] %s17226_s5 }
   0x7   :  { %17384 = sst [smem:[#allocation134_spill]] %s17227_s6 }
   0x8   :  { %17385 = sst [smem:[#allocation135_spill]] %s17228_s7 }
   0x9   :  { %28 = vsyncpa [#allocation18], 0 }
   0xa   :  { %29 = vsyncpa [#allocation19], 0  ;;  %s14055_s4 = smov [#allocation17]  }
   0xb   :  { %s37_s30 = sshll.u32 %s14055_s4, 4  ;;  %s38_s30 = int_to_ptr.vmem [resolvable:$true] %s37_s30 }
   0xc   :  { %s13863_s24 = scalar_lea.vmem %s38_s30, 4608  ;;  %p13868_p1 = scmp.lt.s32.totalorder %s38_s30, %s38_s30 }
   0xd   :  { %p13864_p0 = scmp.ne.s32.totalorder %s38_s30, %s13863_s24  ;;  %p13869_p2 = scmp.lt.s32.totalorder %s13863_s24, %s13863_s24 }
   0xf   :  { %p13870_p3 = por %p13869_p2, %p13868_p1 }
  0x11   :  { %p13871_p4 = pnand %p13870_p3, %p13864_p0 }
  0x13   :  { %13874 = shalt.err (!%p13871_p4)
}
  0x14   :  { %s14056_s25 = smov 128   ;;  %s14057_s5 = smov 8  }
  0x15   :  { %s17386_s2 = sld [smem:[#allocation129_spill]] }
  0x1b   :  { %43 = dma.hbm_to_vmem [thread:$0]  %s17386_s2, 4608, %s38_s30, [#allocation18], %s14056_s25, %s14056_s25, %s14057_s5  }
  0x1c   :  { %14035 = dma.done.wait [#allocation18], 4608  }
  0x1d   :  { %14036 = vsyncadd [#allocation18], 4294962688  ;;  %s14058_s6 = smov [#allocation8]   ;;  %s14059_s7 = smov [#allocation9]  }
  0x1e   :  { %s81_s27 = sshll.u32 %s14058_s6, 4  ;;  %s93_s28 = sshll.u32 %s14059_s7, 4  ;;  %s82_s27 = int_to_ptr.vmem [resolvable:$true] %s81_s27  ;;  %s94_s28 = int_to_ptr.vmem [resolvable:$true] %s93_s28 }
  0x1f   :  { %s13883_s29 = scalar_lea.vmem %s82_s27, 11904  ;;  %p13888_p6 = scmp.lt.s32.totalorder %s82_s27, %s82_s27 }
  0x20   :  { %p13884_p5 = scmp.ne.s32.totalorder %s82_s27, %s13883_s29  ;;  %p13889_p7 = scmp.lt.s32.totalorder %s13883_s29, %s13883_s29 }
  0x22   :  { %p13890_p8 = por %p13889_p7, %p13888_p6 }
  0x24   :  { %p13891_p9 = pnand %p13890_p8, %p13884_p5 }
  0x26   :  { %13894 = shalt.err (!%p13891_p9)  }
  0x27   :  { %s17387_s4 = sld [smem:[#allocation130_spill]]  ;;  %s13903_s30 = scalar_lea.vmem %s94_s28, 11520 }
  0x28   :  { %p13904_p10 = scmp.ne.s32.totalorder %s94_s28, %s13903_s30  ;;  %p13908_p11 = scmp.lt.s32.totalorder %s94_s28, %s94_s28 }
  0x29   :  { %p13909_p12 = scmp.lt.s32.totalorder %s13903_s30, %s13903_s30 }
  0x2b   :  { %p13910_p13 = por %p13909_p12, %p13908_p11 }
  0x2d   :  { %84 = dma.hbm_to_vmem [thread:$0]  %s17387_s4, 11904, %s82_s27, [#allocation16] }
  0x2e   :  { %p13911_p0 = pnand %p13910_p13, %p13904_p10 }
  0x30   :  { %13914 = shalt.err (!%p13911_p0)  }
  0x31   :  { %s17388_s5 = sld [smem:[#allocation131_spill]]  ;;  %s14060_s1 = smov [#allocation10]  }
  0x32   :  { %s105_s26 = sshll.u32 %s14060_s1, 4  ;;  %s17389_s7 = sld [smem:[#allocation133_spill]]  ;;  %s106_s26 = int_to_ptr.vmem [resolvable:$true] %s105_s26 }
  0x33   :  { %s13923_s1 = scalar_lea.vmem %s106_s26, 10752  ;;  %p13928_p2 = scmp.lt.s32.totalorder %s106_s26, %s106_s26 }
  0x34   :  { %p13924_p1 = scmp.ne.s32.totalorder %s106_s26, %s13923_s1  ;;  %p13929_p3 = scmp.lt.s32.totalorder %s13923_s1, %s13923_s1 }
  0x36   :  { %p13930_p4 = por %p13929_p3, %p13928_p2 }
  0x37   :  { %96 = dma.hbm_to_vmem [thread:$0]  %s17388_s5, 11520, %s94_s28, [#allocation16 + $0x1] }
  0x38   :  { %v14205_v0 = vld [vmem:[%s17389_s7] sm:$0xff]  ;;  %v14210_v1 = vld [vmem:[%s17389_s7 + $0x8] sm:$0xff]  ;;  %v14215_v2 = vld [vmem:[%s17389_s7 + $0x10] sm:$0xff]  ;;  %p13931_p5 = pnand %p13930_p4, %p13924_p1 }
  0x39   :  { %17390 = vst [vmem:[#allocation48_spill] sm:$0xff] %v14205_v0  ;;  %17391 = vst [vmem:[#allocation49_spill] sm:$0xff] %v14210_v1  ;;  %v14220_v3 = vld [vmem:[%s17389_s7 + $0x18] sm:$0xff]  ;;  %v14225_v4 = vld [vmem:[%s17389_s7 + $0x20] sm:$0xff] }
  0x3a   :  { %17392 = vst [vmem:[#allocation50_spill] sm:$0xff] %v14215_v2  ;;  %17393 = vst [vmem:[#allocation51_spill] sm:$0xff] %v14220_v3  ;;  %v14230_v5 = vld [vmem:[%s17389_s7 + $0x28] sm:$0xff] }
  0x3b   :  { %17394 = vst [vmem:[#allocation52_spill] sm:$0xff] %v14225_v4  ;;  %17395 = vst [vmem:[#allocation53_spill] sm:$0xff] %v14230_v5 }
  0x3c   :  { %13934 = shalt.err (!%p13931_p5)  }
  0x3d   :  { %s17396_s29 = sld [smem:[#allocation132_spill]]  ;;  %v14238_v6 = vld [vmem:[%s17389_s7 + $0x30] sm:$0xff]  ;;  %v14243_v7 = vld [vmem:[%s17389_s7 + $0x38] sm:$0xff]  ;;  %v14248_v8 = vld [vmem:[%s17389_s7 + $0x40] sm:$0xff]  ;;  %vm343_vm0 = vcmask 781315   ;;  %vm377_vm2 = vcmask 781312  }
  0x3e   :  { %17397 = vst [vmem:[#allocation54_spill] sm:$0xff] %v14238_v6  ;;  %17398 = vst [vmem:[#allocation55_spill] sm:$0xff] %v14243_v7  ;;  %v14253_v9 = vld [vmem:[%s17389_s7 + $0x48] sm:$0xff]  ;;  %v14258_v10 = vld [vmem:[%s17389_s7 + $0x50] sm:$0xff]  ;;  %vm344_vm1 = vsmask.f32 7950 }
  0x3f   :  { %17399 = vst [vmem:[#allocation56_spill] sm:$0xff] %v14248_v8  ;;  %17400 = vst [vmem:[#allocation57_spill] sm:$0xff] %v14253_v9  ;;  %v14263_v11 = vld [vmem:[%s17389_s7 + $0x58] sm:$0xff]  ;;  %v14268_v12 = vld [vmem:[%s17389_s7 + $0x60] sm:$0xff]  ;;  %vm17375_vm3 = vcmask 1043459   ;;  %vm3618_vm4 = vcmask 982023  }
  0x40   :  { %17401 = vst [vmem:[#allocation58_spill] sm:$0xff] %v14258_v10  ;;  %17402 = vst [vmem:[#allocation59_spill] sm:$0xff] %v14263_v11  ;;  %v14273_v13 = vld [vmem:[%s17389_s7 + $0x68] sm:$0xff]  ;;  %v14278_v14 = vld [vmem:[%s17389_s7 + $0x70] sm:$0xff]  ;;  %s17463_s25 = sld [smem:[#allocation128_spill]]  ;;  %vm17369_vm8 = vcmask 1040384  }
  0x41   :  { %17403 = vst [vmem:[#allocation60_spill] sm:$0xff] %v14268_v12  ;;  %17404 = vst [vmem:[#allocation61_spill] sm:$0xff] %v14273_v13  ;;  %v14283_v15 = vld [vmem:[%s17389_s7 + $0x78] sm:$0xff]  ;;  %v14288_v16 = vld [vmem:[%s17389_s7 + $0x80] sm:$0xff]  ;;  %vm17368_vm6 = vsmask.f32 7966 }
  0x42   :  { %17405 = vst [vmem:[#allocation62_spill] sm:$0xff] %v14278_v14  ;;  %17406 = vst [vmem:[#allocation63_spill] sm:$0xff] %v14283_v15  ;;  %v14293_v17 = vld [vmem:[%s17389_s7 + $0x88] sm:$0xff]  ;;  %v14298_v18 = vld [vmem:[%s17389_s7 + $0x90] sm:$0xff]  ;;  %vm3630_vm10 = vcmask 978948  }
  0x43   :  { %108 = dma.hbm_to_vmem [thread:$0]  %s17396_s29, 10752, %s106_s26, [#allocation16 + $0x2]  ;;  %17407 = vst [vmem:[#allocation64_spill] sm:$0xff] %v14288_v16  ;;  %17408 = vst [vmem:[#allocation65_spill] sm:$0xff] %v14293_v17  ;;  %v14303_v19 = vld [vmem:[%s17389_s7 + $0x98] sm:$0xff]  ;;  %v14308_v20 = vld [vmem:[%s17389_s7 + $0xa0] sm:$0xff] }
  0x44   :  { %17409 = vst [vmem:[#allocation66_spill] sm:$0xff] %v14298_v18  ;;  %17410 = vst [vmem:[#allocation67_spill] sm:$0xff] %v14303_v19  ;;  %v14313_v21 = vld [vmem:[%s17389_s7 + $0xa8] sm:$0xff]  ;;  %v14318_v22 = vld [vmem:[%s17389_s7 + $0xb0] sm:$0xff]  ;;  %vm17367_vm11 = vsmask.f32 4352 }
  0x45   :  { %17411 = vst [vmem:[#allocation68_spill] sm:$0xff] %v14308_v20  ;;  %17412 = vst [vmem:[#allocation69_spill] sm:$0xff] %v14313_v21  ;;  %v14323_v23 = vld [vmem:[%s17389_s7 + $0xb8] sm:$0xff]  ;;  %v14328_v24 = vld [vmem:[%s17389_s7 + $0xc0] sm:$0xff]  ;;  %vm17361_vm12 = vsmask.f32 256 }
  0x46   :  { %17413 = vst [vmem:[#allocation70_spill] sm:$0xff] %v14318_v22  ;;  %17414 = vst [vmem:[#allocation71_spill] sm:$0xff] %v14323_v23  ;;  %v14333_v25 = vld [vmem:[%s17389_s7 + $0xc8] sm:$0xff]  ;;  %v14338_v26 = vld [vmem:[%s17389_s7 + $0xd0] sm:$0xff]  ;;  %vm17360_vm15 = vsmask.f32 4368 }
  0x47   :  { %17415 = vst [vmem:[#allocation72_spill] sm:$0xff] %v14328_v24  ;;  %17416 = vst [vmem:[#allocation73_spill] sm:$0xff] %v14333_v25  ;;  %v14343_v27 = vld [vmem:[%s17389_s7 + $0xd8] sm:$0xff]  ;;  %v14348_v28 = vld [vmem:[%s17389_s7 + $0xe0] sm:$0xff] }
  0x48   :  { %17417 = vst [vmem:[#allocation74_spill] sm:$0xff] %v14338_v26  ;;  %17418 = vst [vmem:[#allocation75_spill] sm:$0xff] %v14343_v27  ;;  %v14353_v29 = vld [vmem:[%s17389_s7 + $0xe8] sm:$0xff]  ;;  %v14358_v30 = vld [vmem:[%s17389_s7 + $0xf0] sm:$0xff] }
  0x49   :  { %17419 = vst [vmem:[#allocation76_spill] sm:$0xff] %v14348_v28  ;;  %17420 = vst [vmem:[#allocation77_spill] sm:$0xff] %v14353_v29  ;;  %v14363_v31 = vld [vmem:[%s17389_s7 + $0xf8] sm:$0xff]  ;;  %v14368_v32 = vld [vmem:[%s17389_s7 + $0x100] sm:$0xff] }
  0x4a   :  { %17421 = vst [vmem:[#allocation78_spill] sm:$0xff] %v14358_v30  ;;  %17422 = vst [vmem:[#allocation79_spill] sm:$0xff] %v14363_v31  ;;  %v14373_v33 = vld [vmem:[%s17389_s7 + $0x108] sm:$0xff]  ;;  %v14378_v34 = vld [vmem:[%s17389_s7 + $0x110] sm:$0xff] }
  0x4b   :  { %17423 = vst [vmem:[#allocation80_spill] sm:$0xff] %v14368_v32  ;;  %17424 = vst [vmem:[#allocation81_spill] sm:$0xff] %v14373_v33  ;;  %v14383_v35 = vld [vmem:[%s17389_s7 + $0x118] sm:$0xff]  ;;  %v14388_v36 = vld [vmem:[%s17389_s7 + $0x120] sm:$0xff] }
  0x4c   :  { %17425 = vst [vmem:[#allocation82_spill] sm:$0xff] %v14378_v34  ;;  %17426 = vst [vmem:[#allocation83_spill] sm:$0xff] %v14383_v35  ;;  %v14393_v37 = vld [vmem:[%s17389_s7 + $0x128] sm:$0xff]  ;;  %v14398_v38 = vld [vmem:[%s17389_s7 + $0x130] sm:$0xff] }
  0x4d   :  { %17427 = vst [vmem:[#allocation84_spill] sm:$0xff] %v14388_v36  ;;  %17428 = vst [vmem:[#allocation85_spill] sm:$0xff] %v14393_v37  ;;  %v14403_v39 = vld [vmem:[%s17389_s7 + $0x138] sm:$0xff]  ;;  %v14408_v40 = vld [vmem:[%s17389_s7 + $0x140] sm:$0xff] }
  0x4e   :  { %17429 = vst [vmem:[#allocation86_spill] sm:$0xff] %v14398_v38  ;;  %17430 = vst [vmem:[#allocation87_spill] sm:$0xff] %v14403_v39  ;;  %v14413_v41 = vld [vmem:[%s17389_s7 + $0x148] sm:$0xff]  ;;  %v14418_v42 = vld [vmem:[%s17389_s7 + $0x150] sm:$0xff] }
  0x4f   :  { %17431 = vst [vmem:[#allocation88_spill] sm:$0xff] %v14408_v40  ;;  %17432 = vst [vmem:[#allocation89_spill] sm:$0xff] %v14413_v41  ;;  %v14423_v43 = vld [vmem:[%s17389_s7 + $0x158] sm:$0xff]  ;;  %v14428_v44 = vld [vmem:[%s17389_s7 + $0x160] sm:$0xff] }
  0x50   :  { %17433 = vst [vmem:[#allocation90_spill] sm:$0xff] %v14418_v42  ;;  %17434 = vst [vmem:[#allocation91_spill] sm:$0xff] %v14423_v43  ;;  %v14433_v45 = vld [vmem:[%s17389_s7 + $0x168] sm:$0xff]  ;;  %v14438_v46 = vld [vmem:[%s17389_s7 + $0x170] sm:$0xff] }
  0x51   :  { %17435 = vst [vmem:[#allocation92_spill] sm:$0xff] %v14428_v44  ;;  %17436 = vst [vmem:[#allocation93_spill] sm:$0xff] %v14433_v45  ;;  %v14443_v47 = vld [vmem:[%s17389_s7 + $0x178] sm:$0xff]  ;;  %v14448_v48 = vld [vmem:[%s17389_s7 + $0x180] sm:$0xff] }
  0x52   :  { %17437 = vst [vmem:[#allocation94_spill] sm:$0xff] %v14438_v46  ;;  %17438 = vst [vmem:[#allocation95_spill] sm:$0xff] %v14443_v47  ;;  %v14453_v49 = vld [vmem:[%s17389_s7 + $0x188] sm:$0xff]  ;;  %v14458_v50 = vld [vmem:[%s17389_s7 + $0x190] sm:$0xff] }
  0x53   :  { %17439 = vst [vmem:[#allocation96_spill] sm:$0xff] %v14448_v48  ;;  %17440 = vst [vmem:[#allocation97_spill] sm:$0xff] %v14453_v49  ;;  %v14463_v51 = vld [vmem:[%s17389_s7 + $0x198] sm:$0xff]  ;;  %v14468_v52 = vld [vmem:[%s17389_s7 + $0x1a0] sm:$0xff] }
  0x54   :  { %17441 = vst [vmem:[#allocation98_spill] sm:$0xff] %v14458_v50  ;;  %17442 = vst [vmem:[#allocation99_spill] sm:$0xff] %v14463_v51  ;;  %v14473_v53 = vld [vmem:[%s17389_s7 + $0x1a8] sm:$0xff]  ;;  %v14478_v54 = vld [vmem:[%s17389_s7 + $0x1b0] sm:$0xff] }
  0x55   :  { %17443 = vst [vmem:[#allocation100_spill] sm:$0xff] %v14468_v52  ;;  %17444 = vst [vmem:[#allocation101_spill] sm:$0xff] %v14473_v53  ;;  %v14483_v55 = vld [vmem:[%s17389_s7 + $0x1b8] sm:$0xff]  ;;  %v14488_v56 = vld [vmem:[%s17389_s7 + $0x1c0] sm:$0xff] }
  0x56   :  { %17445 = vst [vmem:[#allocation102_spill] sm:$0xff] %v14478_v54  ;;  %17446 = vst [vmem:[#allocation103_spill] sm:$0xff] %v14483_v55  ;;  %v14493_v57 = vld [vmem:[%s17389_s7 + $0x1c8] sm:$0xff]  ;;  %v14498_v58 = vld [vmem:[%s17389_s7 + $0x1d0] sm:$0xff]  ;;  %v17269_v54 = vmov 0  }
  0x57   :  { %17447 = vst [vmem:[#allocation104_spill] sm:$0xff] %v14488_v56  ;;  %17448 = vst [vmem:[#allocation105_spill] sm:$0xff] %v14493_v57  ;;  %v14503_v59 = vld [vmem:[%s17389_s7 + $0x1d8] sm:$0xff]  ;;  %v14508_v60 = vld [vmem:[%s17389_s7 + $0x1e0] sm:$0xff]  ;;  %748 = vmatprep.mubr.bf16.mxu0 %v17269_v54  ;;  %969 = vmatprep.mubr.bf16.mxu1 %v17269_v54 }
  0x58   :  { %17449 = vst [vmem:[#allocation106_spill] sm:$0xff] %v14498_v58  ;;  %17450 = vst [vmem:[#allocation107_spill] sm:$0xff] %v14503_v59  ;;  %v14513_v61 = vld [vmem:[%s17389_s7 + $0x1e8] sm:$0xff]  ;;  %v14518_v62 = vld [vmem:[%s17389_s7 + $0x1f0] sm:$0xff] }
  0x59   :  { %17451 = vst [vmem:[#allocation108_spill] sm:$0xff] %v14508_v60  ;;  %17452 = vst [vmem:[#allocation109_spill] sm:$0xff] %v14513_v61  ;;  %v14523_v63 = vld [vmem:[%s17389_s7 + $0x1f8] sm:$0xff]  ;;  %v14528_v48 = vld [vmem:[%s17389_s7 + $0x200] sm:$0xff] }
  0x5a   :  { %17453 = vst [vmem:[#allocation110_spill] sm:$0xff] %v14518_v62  ;;  %17454 = vst [vmem:[#allocation111_spill] sm:$0xff] %v14523_v63  ;;  %v14533_v49 = vld [vmem:[%s17389_s7 + $0x208] sm:$0xff]  ;;  %v14538_v50 = vld [vmem:[%s17389_s7 + $0x210] sm:$0xff] }
  0x5b   :  { %17455 = vst [vmem:[#allocation112_spill] sm:$0xff] %v14528_v48  ;;  %17456 = vst [vmem:[#allocation113_spill] sm:$0xff] %v14533_v49  ;;  %v14543_v51 = vld [vmem:[%s17389_s7 + $0x218] sm:$0xff]  ;;  %v14548_v52 = vld [vmem:[%s17389_s7 + $0x220] sm:$0xff] }
  0x5c   :  { %17457 = vst [vmem:[#allocation114_spill] sm:$0xff] %v14538_v50  ;;  %17458 = vst [vmem:[#allocation115_spill] sm:$0xff] %v14543_v51  ;;  %v14553_v48 = vld [vmem:[%s17389_s7 + $0x228] sm:$0xff]  ;;  %v14558_v49 = vld [vmem:[%s17389_s7 + $0x230] sm:$0xff] }
  0x5d   :  { %17459 = vst [vmem:[#allocation116_spill] sm:$0xff] %v14548_v52  ;;  %17460 = vst [vmem:[#allocation117_spill] sm:$0xff] %v14553_v48  ;;  %v14563_v50 = vld [vmem:[%s17389_s7 + $0x238] sm:$0xff]  ;;  %v13262_v55 = vld [vmem:[#allocation17 + $0xa4] ss:$8 sps:$4 sm:$0xff]  }
  0x5e   :  { %17461 = vst [vmem:[#allocation118_spill] sm:$0xff] %v14558_v49  ;;  %17462 = vst [vmem:[#allocation119_spill] sm:$0xff] %v14563_v50  ;;  %v13256_v51 = vld [vmem:[#allocation17 + $0xb4] ss:$8 sps:$4 sm:$0xff]   ;;  %v13260_v52 = vld [vmem:[#allocation17 + $0xb0] ss:$8 sps:$4 sm:$0xff]  }
  0x5f   :  { %v13258_v53 = vld [vmem:[#allocation17 + $0x54] ss:$8 sps:$4 sm:$0xff]   ;;  %720 = vmatprep.subr.bf16.mxu0 %v13256_v51  ;;  %v13261_v48 = vld [vmem:[#allocation17 + $0x50] ss:$8 sps:$4 sm:$0xff]   ;;  %v13264_v49 = vld [vmem:[#allocation17 + $0x44] ss:$8 sps:$4 sm:$0xff]  }
  0x60   :  { %941 = vmatprep.subr.bf16.mxu1 %v13258_v53  ;;  %721 = vmatpush1.bf16.msra.mxu0 %v13260_v52  ;;  %v13266_v56 = vld [vmem:[#allocation17 + $0xa0] ss:$8 sps:$4 sm:$0xff]   ;;  %v13268_v50 = vld [vmem:[#allocation17 + $0x94] ss:$8 sps:$4 sm:$0xff]   ;;  %v13272_v59 = vld [vmem:[#allocation17 + $0x90] ss:$8 sps:$4 sm:$0xff]  }
  0x61   :  { %942 = vmatpush1.bf16.msra.mxu1 %v13261_v48  ;;  %722 = vmatprep.subr.bf16.mxu0 %v13262_v55  ;;  %v13267_v57 = vld [vmem:[#allocation17 + $0x40] ss:$8 sps:$4 sm:$0xff]   ;;  %v13270_v58 = vld [vmem:[#allocation17 + $0x34] ss:$8 sps:$4 sm:$0xff]   ;;  %v13273_v60 = vld [vmem:[#allocation17 + $0x30] ss:$8 sps:$4 sm:$0xff]  }
  0x62   :  { %943 = vmatprep.subr.bf16.mxu1 %v13264_v49  ;;  %v13274_v61 = vld [vmem:[#allocation17 + $0x84] ss:$8 sps:$4 sm:$0xff]   ;;  %v13278_v54 = vld [vmem:[#allocation17 + $0x80] ss:$8 sps:$4 sm:$0xff]   ;;  %v13280_v48 = vld [vmem:[#allocation17 + $0x74] ss:$8 sps:$4 sm:$0xff]  }
  0x63   :  { %v13276_v51 = vld [vmem:[#allocation17 + $0x24] ss:$8 sps:$4 sm:$0xff]   ;;  %v13279_v52 = vld [vmem:[#allocation17 + $0x20] ss:$8 sps:$4 sm:$0xff]   ;;  %v13282_v53 = vld [vmem:[#allocation17 + $0x14] ss:$8 sps:$4 sm:$0xff]  }
  0x64   :  { %723 = vmatpush1.bf16.msra.mxu0 %v13266_v56  ;;  %v13284_v49 = vld [vmem:[#allocation17 + $0x70] ss:$8 sps:$4 sm:$0xff]   ;;  %v362_v56 = vld [vmem:[%s17463_s25 + $0x4] sm:$0xf]  ;;  %vm14574_vm5 = vmand %vm343_vm0, %vm344_vm1 }
  0x65   :  { %944 = vmatpush1.bf16.msra.mxu1 %v13267_v57  ;;  %724 = vmatprep.subr.bf16.mxu0 %v13268_v50  ;;  %v13285_v55 = vld [vmem:[#allocation17 + $0x10] ss:$8 sps:$4 sm:$0xff]   ;;  %v361_v50 = vld [vmem:[%s17463_s25] sm:$0xf]  ;;  %379 = vst.msk [vmem:[#allocation2 + $0x8] sm:$0xf] %vm377_vm2, %v362_v56  ;;  %vm14584_vm7 = vmand %vm17375_vm3, %vm344_vm1 }
  0x66   :  { %945 = vmatprep.subr.bf16.mxu1 %v13270_v58  ;;  %v13286_v58 = vld [vmem:[#allocation17 + $0x64] ss:$8 sps:$4 sm:$0xff]   ;;  %378 = vst.msk [vmem:[#allocation2 + $0x4] sm:$0xf] %vm377_vm2, %v361_v50  ;;  %vm3620_vm9 = vmand %vm3618_vm4, %vm17368_vm6  ;;  %v3634_v50 = vld [vmem:[#allocation3 + $0x28] sm:$0x11] }
  0x67   :  { %vm3621_vm13 = vmor %vm3620_vm9, %vm14584_vm7  ;;  %v3637_v56 = vld [vmem:[#allocation3 + $0x58] sm:$0x11]  ;;  %v13295_v63 = vld [vmem:[#allocation17 + $0x114] ss:$8 sps:$4 sm:$0xff]   ;;  %vm17366_vm1 = vcmask 785408  }
  0x68   :  { %725 = vmatpush1.bf16.msra.mxu0 %v13272_v59  ;;  %v13288_v59 = vld [vmem:[#allocation17 + $0x4] ss:$8 sps:$4 sm:$0xff]   ;;  %vm14594_vm14 = vmand %vm17369_vm8, %vm17361_vm12  ;;  %v369_v20 = vld [vmem:[%s17463_s25 + $0x20] sm:$0xf] }
  0x69   :  { %946 = vmatpush1.bf16.msra.mxu1 %v13273_v60  ;;  %726 = vmatprep.subr.bf16.mxu0 %v13274_v61  ;;  %v13290_v60 = vld [vmem:[#allocation17 + $0x60] ss:$8 sps:$4 sm:$0xff]   ;;  %vm3632_vm0 = vmand %vm3630_vm10, %vm17367_vm11  ;;  %386 = vst.msk [vmem:[#allocation2 + $0x2c] sm:$0xf] %vm377_vm2, %v369_v20 }
  0x6a   :  { %947 = vmatprep.subr.bf16.mxu1 %v13276_v51  ;;  %v13291_v61 = vld [vmem:[#allocation17] ss:$8 sps:$4 sm:$0xff]   ;;  %vm3633_vm4 = vmor %vm3632_vm0, %vm14594_vm14 }
  0x6b   :  { %vm14612_vm9 = vmor %vm17361_vm12, %vm17360_vm15  ;;  %v371_v45 = vld [vmem:[%s17463_s25 + $0x28] sm:$0xf] }
  0x6c   :  { %727 = vmatpush1.bf16.msra.mxu0 %v13278_v54  ;;  %v346_v54 = vld [vmem:[#allocation2] sm:$0x8]  ;;  %388 = vst.msk [vmem:[#allocation2 + $0x34] sm:$0xf] %vm377_vm2, %v371_v45 }
  0x6d   :  { %948 = vmatpush1.bf16.msra.mxu1 %v13279_v52  ;;  %728 = vmatprep.subr.bf16.mxu0 %v13280_v48  ;;  %v347_v51 = vsel %vm14574_vm5, 0, %v346_v54  ;;  %v17466_v52 = vmov 0  ;;  %v3622_v48 = vld [vmem:[#allocation3] sm:$0x88] }
  0x6e   :  { %949 = vmatprep.subr.bf16.mxu1 %v13282_v53  ;;  %v17467_v52 = vsel %vm14584_vm7, 4294967295, %v17466_v52  ;;  %v3625_v53 = vld [vmem:[#allocation3 + $0x30] sm:$0x88]  ;;  %348 = vst [vmem:[#allocation2] sm:$0x8] %v347_v51  ;;  %v3623_v54 = vsel %vm3621_vm13, 0, %v3622_v48 }
  0x6f   :  { %17468 = vst [vmem:[#allocation120_spill] sm:$0xff] %v17467_v52  ;;  %v3626_v62 = vsel %vm3621_vm13, 0, %v3625_v53  ;;  %v17469_v51 = vmov 0  ;;  %3624 = vst [vmem:[#allocation3] sm:$0x88] %v3623_v54  ;;  %v3635_v48 = vsel %vm3633_vm4, 0, %v3634_v50 }
  0x70   :  { %729 = vmatpush1.bf16.msra.mxu0 %v13284_v49  ;;  %v17470_v51 = vsel %vm14594_vm14, 4294967295, %v17469_v51  ;;  %v363_v49 = vld [vmem:[%s17463_s25 + $0x8] sm:$0xf]  ;;  %3627 = vst [vmem:[#allocation3 + $0x30] sm:$0x88] %v3626_v62  ;;  %v3638_v53 = vsel %vm3633_vm4, 0, %v3637_v56 }
  0x71   :  { %950 = vmatpush1.bf16.msra.mxu1 %v13285_v55  ;;  %730 = vmatprep.subr.bf16.mxu0 %v13286_v58  ;;  %17471 = vst [vmem:[#allocation121_spill] sm:$0xff] %v17470_v51  ;;  %v364_v55 = vld [vmem:[%s17463_s25 + $0xc] sm:$0xf]  ;;  %380 = vst.msk [vmem:[#allocation2 + $0xc] sm:$0xf] %vm377_vm2, %v363_v49  ;;  %v17472_v49 = vmov 0 }
  0x72   :  { %951 = vmatprep.subr.bf16.mxu1 %v13288_v59  ;;  %v13293_v58 = vld [vmem:[#allocation17 + $0x110] ss:$8 sps:$4 sm:$0xff]   ;;  %381 = vst.msk [vmem:[#allocation2 + $0x10] sm:$0xf] %vm377_vm2, %v364_v55  ;;  %v395_v59 = vld [vmem:[#allocation2 + $0x4] sm:$0xf] }
  0x73   :  { %v396_v62 = vld [vmem:[#allocation2 + $0x8] sm:$0xf]  ;;  %v420_v54 = vshrl.u32 %v395_v59, 16  ;;  %v423_v16 = vshll.u32 %v395_v59, 16  ;;  %v17473_v49 = vsel %vm14612_vm9, 4294967295, %v17472_v49 }
  0x74   :  { %731 = vmatpush1.bf16.msra.mxu0 %v13290_v60  ;;  %v429_v17 = vshrl.u32 %v396_v62, 16  ;;  %v432_v40 = vshll.u32 %v396_v62, 16  ;;  %17474 = vst [vmem:[#allocation122_spill] sm:$0xff] %v17473_v49  ;;  %3636 = vst [vmem:[#allocation3 + $0x28] sm:$0x11] %v3635_v48  ;;  %v12340_v60 = vcombine.low %v395_v59, %v396_v62 }
  0x75   :  { %952 = vmatpush1.bf16.msra.mxu1 %v13291_v61  ;;  %3639 = vst [vmem:[#allocation3 + $0x58] sm:$0x11] %v3638_v53  ;;  %1364 = vmatprep.subr.bf16.mxu0 %v13295_v63  ;;  %v13299_v55 = vld [vmem:[#allocation17 + $0x104] ss:$8 sps:$4 sm:$0xff]   ;;  %v394_v61 = vld [vmem:[#allocation2] sm:$0x8] }
  0x76   :  { %v365_v50 = vld [vmem:[%s17463_s25 + $0x10] sm:$0xf]  ;;  %v366_v56 = vld [vmem:[%s17463_s25 + $0x14] sm:$0xf]  ;;  %v422_v41 = vrot.slane %v420_v54, 7  ;;  %v431_v18 = vrot.slane %v429_v17, 7 }
  0x77   :  { %v415_v19 = vshrl.u32 %v394_v61, 16  ;;  %382 = vst.msk [vmem:[#allocation2 + $0x14] sm:$0xf] %vm377_vm2, %v365_v50  ;;  %383 = vst.msk [vmem:[#allocation2 + $0x18] sm:$0xf] %vm377_vm2, %v366_v56  ;;  %12360 = vmatmul.mubr.msk.bf16.vlgmr.msra.gmra.mxu0 %vm17366_vm1, %v12340_v60  ;;  %v17475_v54 = vmov 0  }
  0x78   :  { %v13297_v63 = vld [vmem:[#allocation17 + $0x100] ss:$8 sps:$4 sm:$0xff]   ;;  %v13303_v59 = vld [vmem:[#allocation17 + $0xf4] ss:$8 sps:$4 sm:$0xff]   ;;  %v367_v62 = vld [vmem:[%s17463_s25 + $0x18] sm:$0xf]  ;;  %v425_v53 = vor.u32 %v423_v16, %v422_v41  ;;  %v434_v43 = vor.u32 %v432_v40, %v431_v18  ;;  %1365 = vmatpush1.bf16.msra.mxu0 %v13293_v58  ;;  %758 = vmatprep.mubr.bf16.mxu0 %v17475_v54 }
  0x79   :  { %v12338_v48 = vrot.slane %v415_v19, 11  ;;  %v427_v42 = vrot.slane %v422_v41, 4  ;;  %v397_v17 = vld [vmem:[#allocation2 + $0xc] sm:$0xf]  ;;  %v368_v61 = vld [vmem:[%s17463_s25 + $0x1c] sm:$0xf]  ;;  %1366 = vmatprep.subr.bf16.mxu0 %v13299_v55 }
  0x7a   :  { %384 = vst.msk [vmem:[#allocation2 + $0x1c] sm:$0xf] %vm377_vm2, %v367_v62  ;;  %v398_v60 = vld [vmem:[#allocation2 + $0x10] sm:$0xf]  ;;  %v438_v50 = vshrl.u32 %v397_v17, 16  ;;  %v441_v56 = vshll.u32 %v397_v17, 16 }
  0x7b   :  { %385 = vst.msk [vmem:[#allocation2 + $0x20] sm:$0xf] %vm377_vm2, %v368_v61  ;;  %v426_v16 = vsel %vm14612_vm9, %v12338_v48, %v425_v53  ;;  %v435_v19 = vsel %vm14612_vm9, %v427_v42, %v434_v43  ;;  %v447_v40 = vshrl.u32 %v398_v60, 16  ;;  %v450_v41 = vshll.u32 %v398_v60, 16  ;;  %v13301_v58 = vld [vmem:[#allocation17 + $0xf0] ss:$8 sps:$4 sm:$0xff]  }
  0x7c   :  { %v370_v62 = vld [vmem:[%s17463_s25 + $0x24] sm:$0xf]  ;;  %v12368_v55 = vcombine.low %v426_v16, %v435_v19  ;;  %v440_v21 = vrot.slane %v438_v50, 7  ;;  %v12341_v61 = vcombine.low %v397_v17, %v398_v60  ;;  %v436_v44 = vrot.slane %v431_v18, 4  ;;  %v349_v42 = vld [vmem:[#allocation2 + $0x28] sm:$0x8]  ;;  %1367 = vmatpush1.bf16.msra.mxu0 %v13297_v63 }
  0x7d   :  { %387 = vst.msk [vmem:[#allocation2 + $0x30] sm:$0xf] %vm377_vm2, %v370_v62  ;;  %v449_v43 = vrot.slane %v447_v40, 7  ;;  %v350_v48 = vsel %vm14574_vm5, 0, %v349_v42  ;;  %v13308_v53 = vld [vmem:[#allocation17 + $0xe4] ss:$8 sps:$4 sm:$0xff]   ;;  %1368 = vmatprep.subr.bf16.mxu0 %v13303_v59 }
  0x7e   :  { %12388 = vmatmul.mubr.msk.bf16.vlgmr.msra.gmra.mxu1 %vm17366_vm1, %v12368_v55  ;;  %v443_v50 = vor.u32 %v441_v56, %v440_v21  ;;  %v445_v17 = vrot.slane %v440_v21, 4  ;;  %v399_v18 = vld [vmem:[#allocation2 + $0x14] sm:$0xf]  ;;  %v400_v60 = vld [vmem:[#allocation2 + $0x18] sm:$0xf] }
  0x7f   :  { %351 = vst [vmem:[#allocation2 + $0x28] sm:$0x8] %v350_v48  ;;  %979 = vmatprep.mubr.bf16.mxu1 %v17475_v54  ;;  %v452_v20 = vor.u32 %v450_v41, %v449_v43  ;;  %v456_v57 = vshrl.u32 %v399_v18, 16  ;;  %v459_v63 = vshll.u32 %v399_v18, 16  ;;  %v465_v16 = vshrl.u32 %v400_v60, 16  ;;  %12361 = vmatmul.mubr.msk.bf16.gmra.mxu0 %vm17366_vm1, %v12341_v61 }
  0x80   :  { %v372_v19 = vld [vmem:[%s17463_s25 + $0x2c] sm:$0xf]  ;;  %v444_v21 = vsel %vm14612_vm9, %v436_v44, %v443_v50  ;;  %v468_v56 = vshll.u32 %v400_v60, 16  ;;  %v13306_v40 = vld [vmem:[#allocation17 + $0xe0] ss:$8 sps:$4 sm:$0xff]   ;;  %768 = vmatprep.mubr.bf16.mxu0 %v17475_v54  ;;  %1369 = vmatpush1.bf16.msra.mxu0 %v13301_v58  ;;  %v454_v61 = vrot.slane %v449_v43, 4 }
  0x81   :  { %v14660_v59 = vld [vmem:[#allocation2 + $0x1c] sm:$0xf]  ;;  %389 = vst.msk [vmem:[#allocation2 + $0x38] sm:$0xf] %vm377_vm2, %v372_v19  ;;  %v453_v45 = vsel %vm14612_vm9, %v445_v17, %v452_v20  ;;  %v458_v41 = vrot.slane %v456_v57, 7  ;;  %v467_v62 = vrot.slane %v465_v16, 7  ;;  %1370 = vmatprep.subr.bf16.mxu0 %v13308_v53  ;;  %v12342_v19 = vcombine.low %v399_v18, %v400_v60 }
  0x82   :  { %v402_v55 = vld [vmem:[#allocation2 + $0x20] sm:$0xf]  ;;  %v12369_v42 = vcombine.low %v444_v21, %v453_v45  ;;  %v474_v48 = vshrl.u32 %v14660_v59, 16  ;;  %v13312_v44 = vld [vmem:[#allocation17 + $0xd4] ss:$8 sps:$4 sm:$0xff]   ;;  %v477_v43 = vshll.u32 %v14660_v59, 16 }
  0x83   :  { %v461_v50 = vor.u32 %v459_v63, %v458_v41  ;;  %v463_v22 = vrot.slane %v458_v41, 4  ;;  %v470_v23 = vor.u32 %v468_v56, %v467_v62  ;;  %v483_v46 = vshrl.u32 %v402_v55, 16  ;;  %v373_v17 = vld [vmem:[%s17463_s25 + $0x30] sm:$0xf]  ;;  %v374_v53 = vld [vmem:[%s17463_s25 + $0x34] sm:$0xf] }
  0x84   :  { %1371 = vmatpush1.bf16.msra.mxu0 %v13306_v40  ;;  %v13310_v20 = vld [vmem:[#allocation17 + $0xd0] ss:$8 sps:$4 sm:$0xff]   ;;  %390 = vst.msk [vmem:[#allocation2 + $0x3c] sm:$0xf] %vm377_vm2, %v373_v17  ;;  %v476_v58 = vrot.slane %v474_v48, 7  ;;  %v486_v63 = vshll.u32 %v402_v55, 16 }
  0x85   :  { %1372 = vmatprep.subr.bf16.mxu0 %v13312_v44  ;;  %v462_v18 = vsel %vm14612_vm9, %v454_v61, %v461_v50  ;;  %v471_v60 = vsel %vm14612_vm9, %v463_v22, %v470_v23  ;;  %v485_v57 = vrot.slane %v483_v46, 7  ;;  %v404_v16 = vld [vmem:[#allocation2 + $0x2c] sm:$0xf]  ;;  %391 = vst.msk [vmem:[#allocation2 + $0x40] sm:$0xf] %vm377_vm2, %v374_v53  ;;  %v472_v46 = vrot.slane %v467_v62, 4 }
  0x86   :  { %12389 = vmatmul.mubr.msk.bf16.gmra.mxu1 %vm17366_vm1, %v12369_v42  ;;  %v13316_v21 = vld [vmem:[#allocation17 + $0xc4] ss:$8 sps:$4 sm:$0xff]   ;;  %v405_v56 = vld [vmem:[#allocation2 + $0x30] sm:$0xf]  ;;  %v375_v40 = vld [vmem:[%s17463_s25 + $0x38] sm:$0xf]  ;;  %v12370_v23 = vcombine.low %v462_v18, %v471_v60  ;;  %v479_v41 = vor.u32 %v477_v43, %v476_v58  ;;  %v12343_v50 = vcombine.low %v14660_v59, %v402_v55 }
  0x87   :  { %989 = vmatprep.mubr.bf16.mxu1 %v17475_v54  ;;  %12362 = vmatmul.mubr.msk.bf16.gmra.mxu0 %vm17366_vm1, %v12342_v19  ;;  %v376_v45 = vld [vmem:[%s17463_s25 + $0x3c] sm:$0xf]  ;;  %v13314_v22 = vld [vmem:[#allocation17 + $0xc0] ss:$8 sps:$4 sm:$0xff]   ;;  %392 = vst.msk [vmem:[#allocation2 + $0x44] sm:$0xf] %vm377_vm2, %v375_v40  ;;  %v488_v48 = vor.u32 %v486_v63, %v485_v57 }
  0x88   :  { %778 = vmatprep.mubr.bf16.mxu0 %v17475_v54  ;;  %1373 = vmatpush1.bf16.msra.mxu0 %v13310_v20  ;;  %393 = vst.msk [vmem:[#allocation2 + $0x48] sm:$0xf] %vm377_vm2, %v376_v45  ;;  %v496_v42 = vshrl.u32 %v404_v16, 16  ;;  %v481_v61 = vrot.slane %v476_v58, 4  ;;  %v505_v44 = vshrl.u32 %v405_v56, 16  ;;  %v480_v17 = vsel %vm14612_vm9, %v472_v46, %v479_v41 }
  0x89   :  { %1374 = vmatprep.subr.bf16.mxu0 %v13316_v21  ;;  %v403_v19 = vld [vmem:[#allocation2 + $0x28] sm:$0x8]  ;;  %v499_v53 = vshll.u32 %v404_v16, 16  ;;  %v508_v58 = vshll.u32 %v405_v56, 16  ;;  %v406_v60 = vld [vmem:[#allocation2 + $0x34] sm:$0xf] }
  0x8a   :  { %v498_v20 = vrot.slane %v496_v42, 7  ;;  %v489_v62 = vsel %vm14612_vm9, %v481_v61, %v488_v48  ;;  %v507_v43 = vrot.slane %v505_v44, 7  ;;  %v491_v18 = vshrl.u32 %v403_v19, 16  ;;  %v407_v59 = vld [vmem:[#allocation2 + $0x38] sm:$0xf] }
  0x8b   :  { %v12371_v55 = vcombine.low %v480_v17, %v489_v62  ;;  %v514_v63 = vshrl.u32 %v406_v60, 16  ;;  %v517_v41 = vshll.u32 %v406_v60, 16  ;;  %v526_v44 = vshll.u32 %v407_v59, 16 }
  0x8c   :  { %1375 = vmatpush1.bf16.msra.mxu0 %v13314_v22  ;;  %v501_v57 = vor.u32 %v499_v53, %v498_v20  ;;  %v12339_v21 = vrot.slane %v491_v18, 11  ;;  %v503_v40 = vrot.slane %v498_v20, 4  ;;  %v510_v45 = vor.u32 %v508_v58, %v507_v43  ;;  %v409_v19 = vld [vmem:[#allocation2 + $0x40] sm:$0xf] }
  0x8d   :  { %v523_v22 = vshrl.u32 %v407_v59, 16  ;;  %v516_v46 = vrot.slane %v514_v63, 7 }
  0x8e   :  { %12390 = vmatmul.mubr.msk.bf16.gmra.mxu1 %vm17366_vm1, %v12370_v23  ;;  %v12344_v23 = vcombine.low %v404_v16, %v405_v56  ;;  %v502_v42 = vsel %vm14612_vm9, %v12339_v21, %v501_v57  ;;  %v511_v61 = vsel %vm14612_vm9, %v503_v40, %v510_v45 }
  0x8f   :  { %999 = vmatprep.mubr.bf16.mxu1 %v17475_v54  ;;  %12363 = vmatmul.mubr.msk.bf16.gmra.mxu0 %vm17366_vm1, %v12343_v50  ;;  %v525_v48 = vrot.slane %v523_v22, 7  ;;  %v408_v50 = vld [vmem:[#allocation2 + $0x3c] sm:$0xf] }
  0x90   :  { %788 = vmatprep.mubr.bf16.mxu0 %v17475_v54 }
  0x96   :  { %12391 = vmatmul.mubr.msk.bf16.gmra.mxu1 %vm17366_vm1, %v12371_v55 }
  0x97   :  { %1009 = vmatprep.mubr.bf16.mxu1 %v17475_v54  ;;  %12364 = vmatmul.mubr.msk.bf16.gmra.mxu0 %vm17366_vm1, %v12344_v23 }
  0x98   :  { %294 = vsyncadd [#allocation16 + $0x3], 9216  ;;  %798 = vmatprep.mubr.bf16.mxu0 %v17475_v54  ;;  %vm352_vm2 = vcmask 778240   ;;  %v12372_v16 = vcombine.low %v502_v42, %v511_v61  ;;  %v512_v56 = vrot.slane %v507_v43, 4  ;;  %v519_v17 = vor.u32 %v517_v41, %v516_v46  ;;  %v355_v57 = vld [vmem:[#allocation2 + $0x24] sm:$0x1] }
  0x99   :  { %v532_v20 = vshrl.u32 %v408_v50, 16  ;;  %v521_v53 = vrot.slane %v516_v46, 4  ;;  %v528_v62 = vor.u32 %v526_v44, %v525_v48  ;;  %v541_v58 = vshrl.u32 %v409_v19, 16  ;;  %vm14710_vm5 = vmand %vm352_vm2, %vm17361_vm12  ;;  %v1050_v63 = vld [vmem:[#allocation2 + $0x4] sm:$0xf]  ;;  %s17483_s2 = sld [smem:[#allocation135_spill]] }
  0x9a   :  { %v12345_v18 = vcombine.low %v406_v60, %v407_v59  ;;  %v520_v21 = vsel %vm14612_vm9, %v512_v56, %v519_v17  ;;  %v535_v43 = vshll.u32 %v408_v50, 16  ;;  %v1051_v45 = vld [vmem:[#allocation2 + $0x8] sm:$0xf]  ;;  %v544_v22 = vshll.u32 %v409_v19, 16  ;;  %v14725_v46 = vld [vmem:[#allocation2 + $0x44] sm:$0xf] }
  0x9b   :  { %v534_v40 = vrot.slane %v532_v20, 7  ;;  %v529_v60 = vsel %vm14612_vm9, %v521_v53, %v528_v62  ;;  %v14720_v59 = vrot.slane %v541_v58, 7  ;;  %v356_v23 = vsel %vm14710_vm5, 0, %v355_v57  ;;  %v411_v41 = vld [vmem:[#allocation2 + $0x48] sm:$0xf]  ;;  %s14062_s6 = smov 120  }
  0x9c   :  { %v1072_v42 = vshrl.u32 %v1050_v63, 16  ;;  %v1075_v61 = vshll.u32 %v1050_v63, 16  ;;  %357 = vst [vmem:[#allocation2 + $0x24] sm:$0x1] %v356_v23  ;;  %v1081_v44 = vshll.u32 %v1051_v45, 16  ;;  %v12373_v56 = vcombine.low %v520_v21, %v529_v60  ;;  %s14064_s29 = smov [#allocation12]  }
  0x9d   :  { %v530_v17 = vrot.slane %v525_v48, 4  ;;  %v537_v20 = vor.u32 %v535_v43, %v534_v40  ;;  %v539_v53 = vrot.slane %v534_v40, 4  ;;  %v546_v62 = vor.u32 %v544_v22, %v14720_v59  ;;  %v1052_v1 = vld [vmem:[#allocation2 + $0xc] sm:$0xf]  ;;  %v1053_v21 = vld [vmem:[#allocation2 + $0x10] sm:$0xf] }
  0x9e   :  { %12392 = vmatmul.mubr.msk.bf16.gmra.mxu1 %vm17366_vm1, %v12372_v16  ;;  %v1085_v16 = vshrl.u32 %v1051_v45, 16  ;;  %v550_v58 = vshrl.u32 %v14725_v46, 16  ;;  %v559_v57 = vshrl.u32 %v411_v41, 16  ;;  %v1074_v47 = vrot.slane %v1072_v42, 4  ;;  %s303_s27 = sshll.u32 %s14064_s29, 4  ;;  %s14065_s3 = smov [#allocation13]   ;;  %s304_s27 = int_to_ptr.vmem [resolvable:$true] %s303_s27 }
  0x9f   :  { %1019 = vmatprep.mubr.bf16.mxu1 %v17475_v54  ;;  %12365 = vmatmul.mubr.msk.bf16.gmra.mxu0 %vm17366_vm1, %v12345_v18  ;;  %v12346_v18 = vcombine.low %v408_v50, %v409_v19  ;;  %v1077_v0 = vrot.slane %v1075_v61, 5  ;;  %v1083_v24 = vrot.slane %v1081_v44, 5  ;;  %v553_v23 = vshll.u32 %v14725_v46, 16  ;;  %v1505_v34 = vld [vmem:[%s17483_s2] sm:$0x3]  ;;  %s315_s0 = sshll.u32 %s14065_s3, 4  ;;  %p13948_p7 = scmp.lt.s32.totalorder %s304_s27, %s304_s27  ;;  %s316_s0 = int_to_ptr.vmem [resolvable:$true] %s315_s0 }
  0xa0   :  { %808 = vmatprep.mubr.bf16.mxu0 %v17475_v54  ;;  %v1087_v63 = vrot.slane %v1085_v16, 4  ;;  %v562_v45 = vshll.u32 %v411_v41, 16  ;;  %v538_v48 = vsel %vm14612_vm9, %v530_v17, %v537_v20  ;;  %v547_v40 = vsel %vm14612_vm9, %v539_v53, %v546_v62  ;;  %v358_v62 = vld [vmem:[#allocation2 + $0x4c] sm:$0x1]  ;;  %s13943_s4 = scalar_lea.vmem %s304_s27, 6144 }
  0xa1   :  { %v552_v50 = vrot.slane %v550_v58, 7  ;;  %v561_v19 = vrot.slane %v559_v57, 7  ;;  %v1078_v43 = vor.u32 %v1077_v0, %v1074_v47  ;;  %v1091_v60 = vshll.u32 %v1052_v1, 16  ;;  %p13944_p6 = scmp.ne.s32.totalorder %s304_s27, %s13943_s4  ;;  %p13949_p8 = scmp.lt.s32.totalorder %s13943_s4, %s13943_s4 }
  0xa2   :  { %v1088_v22 = vor.u32 %v1087_v63, %v1083_v24  ;;  %v1095_v42 = vshrl.u32 %v1052_v1, 16  ;;  %v1101_v61 = vshll.u32 %v1053_v21, 16  ;;  %v1105_v44 = vshrl.u32 %v1053_v21, 16 }
  0xa3   :  { %v12374_v16 = vcombine.low %v538_v48, %v547_v40  ;;  %vm1068_vm10 = vsmask.f32 3328  ;;  %vm1069_vm13 = vsmask.f32 7440  ;;  %v555_v17 = vor.u32 %v553_v23, %v552_v50  ;;  %v1055_v48 = vld [vmem:[#allocation2 + $0x18] sm:$0xf]  ;;  %p13950_p9 = por %p13949_p8, %p13948_p7 }
  0xa4   :  { %v557_v20 = vrot.slane %v552_v50, 4  ;;  %v564_v53 = vor.u32 %v562_v45, %v561_v19  ;;  %v12347_v58 = vcombine.low %v14725_v46, %v411_v41  ;;  %v1079_v57 = vrot.slane %v1078_v43, 4  ;;  %vm14741_vm0 = vmor %vm1068_vm10, %vm1069_vm13 }
  0xa5   :  { %v1093_v0 = vrot.slane %v1091_v60, 5  ;;  %v17478_v47 = vmov 0  ;;  %v1089_v1 = vrot.slane %v1088_v22, 4  ;;  %v1103_v63 = vrot.slane %v1101_v61, 5  ;;  %p13951_p10 = pnand %p13950_p9, %p13944_p6 }
  0xa6   :  { %12393 = vmatmul.mubr.msk.bf16.gmra.mxu1 %vm17366_vm1, %v12373_v56  ;;  %v548_v56 = vrot.slane %v14720_v59, 4  ;;  %v17479_v47 = vsel %vm14741_vm0, 4294967295, %v17478_v47  ;;  %v1107_v21 = vrot.slane %v1105_v44, 4  ;;  %v1054_v59 = vld [vmem:[#allocation2 + $0x14] sm:$0xf]  ;;  %v359_v23 = vsel %vm14710_vm5, 0, %v358_v62 }
  0xa7   :  { %1029 = vmatprep.mubr.bf16.mxu1 %v17475_v54  ;;  %12366 = vmatmul.mubr.msk.bf16.gmra.mxu0 %vm17366_vm1, %v12346_v18  ;;  %17480 = vst [vmem:[#allocation123_spill] sm:$0xff] %v17479_v47  ;;  %v1097_v18 = vrot.slane %v1095_v42, 4  ;;  %v565_v41 = vsel %vm14612_vm9, %v557_v20, %v564_v53  ;;  %360 = vst [vmem:[#allocation2 + $0x4c] sm:$0x1] %v359_v23  ;;  %v1084_v45 = vsel %vm14741_vm0, %v1079_v57, %v1083_v24  ;;  %v1056_v44 = vld [vmem:[#allocation2 + $0x1c] sm:$0xf]  ;;  %v1507_v6 = vlaneseq }
  0xa8   :  { %818 = vmatprep.mubr.bf16.mxu0 %v17475_v54  ;;  %v556_v46 = vsel %vm14612_vm9, %v548_v56, %v555_v17  ;;  %v1115_v40 = vshrl.u32 %v1054_v59, 16  ;;  %v1121_v50 = vshll.u32 %v1055_v48, 16  ;;  %v1125_v19 = vshrl.u32 %v1055_v48, 16  ;;  %v1057_v62 = vld [vmem:[#allocation2 + $0x20] sm:$0xf] }
  0xa9   :  { %v1094_v55 = vsel %vm14741_vm0, %v1089_v1, %v1093_v0  ;;  %v1098_v43 = vor.u32 %v1097_v18, %v1093_v0  ;;  %v1108_v60 = vor.u32 %v1107_v21, %v1103_v63  ;;  %v1111_v22 = vshll.u32 %v1054_v59, 16 }
  0xaa   :  { %v12375_v42 = vcombine.low %v556_v46, %v565_v41  ;;  %v12396_v61 = vcombine.low %v1084_v45, %v1094_v55  ;;  %v1123_v56 = vrot.slane %v1121_v50, 5  ;;  %v1127_v17 = vrot.slane %v1125_v19, 4  ;;  %v1059_v50 = vld [vmem:[#allocation2 + $0x2c] sm:$0xf] }
  0xab   :  { %v1099_v20 = vrot.slane %v1098_v43, 4  ;;  %v1109_v53 = vrot.slane %v1108_v60, 4  ;;  %v1113_v24 = vrot.slane %v1111_v22, 5  ;;  %v1135_v0 = vshrl.u32 %v1056_v44, 16  ;;  %v1058_v43 = vld [vmem:[#allocation2 + $0x24] sm:$0x1] }
  0xac   :  { %v1128_v1 = vor.u32 %v1127_v17, %v1123_v56  ;;  %v1141_v48 = vshll.u32 %v1057_v62, 16  ;;  %v1145_v59 = vshrl.u32 %v1057_v62, 16  ;;  %v1060_v60 = vld [vmem:[#allocation2 + $0x30] sm:$0xf]  ;;  %v1156_v22 = vshrl.u32 %v1059_v50, 16 }
  0xad   :  { %v1104_v18 = vsel %vm14741_vm0, %v1099_v20, %v1103_v63  ;;  %v1114_v21 = vsel %vm14741_vm0, %v1109_v53, %v1113_v24  ;;  %v1151_v17 = vshll.u32 %v1058_v43, 16  ;;  %v1165_v20 = vshll.u32 %v1060_v60, 16 }
  0xae   :  { %12394 = vmatmul.mubr.msk.bf16.gmra.mxu1 %vm17366_vm1, %v12374_v16  ;;  %v1117_v16 = vrot.slane %v1115_v40, 4  ;;  %v12397_v46 = vcombine.low %v1104_v18, %v1114_v21  ;;  %v1129_v45 = vrot.slane %v1128_v1, 4  ;;  %v1137_v40 = vrot.slane %v1135_v0, 4 }
  0xaf   :  { %1039 = vmatprep.mubr.bf16.mxu1 %v17475_v54  ;;  %12367 = vmatmul.mubr.msk.bf16.gmra.mxu0 %vm17366_vm1, %v12347_v58  ;;  %v1131_v58 = vshll.u32 %v1056_v44, 16  ;;  %v1143_v19 = vrot.slane %v1141_v48, 5  ;;  %v1147_v55 = vrot.slane %v1145_v59, 4  ;;  %v1159_v44 = vshll.u32 %v1059_v50, 16  ;;  %v1062_v48 = vld [vmem:[#allocation2 + $0x38] sm:$0xf] }
  0xb0   :  { %1392 = vmatprep.mubr.bf16.mxu0 %v17475_v54  ;;  %v1118_v57 = vor.u32 %v1117_v16, %v1113_v24  ;;  %v1169_v53 = vshrl.u32 %v1060_v60, 16  ;;  %v1153_v18 = vrot.slane %v1151_v17, 5  ;;  %v1167_v21 = vrot.slane %v1165_v20, 5  ;;  %v1064_v17 = vld [vmem:[#allocation2 + $0x40] sm:$0xf] }
  0xb1   :  { %v1133_v23 = vrot.slane %v1131_v58, 5  ;;  %v1148_v16 = vor.u32 %v1147_v55, %v1143_v19  ;;  %v1061_v58 = vld [vmem:[#allocation2 + $0x34] sm:$0xf]  ;;  %v1161_v1 = vrot.slane %v1159_v44, 5  ;;  %v1189_v55 = vshrl.u32 %v1062_v48, 16 }
  0xb2   :  { %v1119_v41 = vrot.slane %v1118_v57, 4  ;;  %v1158_v57 = vrot.slane %v1156_v22, 4  ;;  %v14869_v8 = vshrl.u32 %v1507_v6, 7  ;;  %vm1677_vm4 = vcmask 982016  }
  0xb3   :  { %v1149_v0 = vrot.slane %v1148_v16, 4  ;;  %v1191_v16 = vrot.slane %v1189_v55, 4  ;;  %vm2718_vm2 = vcmask 1041408   ;;  %vm2726_vm5 = vcmask 975872  }
  0xb4   :  { %v1124_v63 = vsel %vm14741_vm0, %v1119_v41, %v1123_v56  ;;  %v1171_v56 = vrot.slane %v1169_v53, 4  ;;  %v1162_v59 = vor.u32 %v1161_v1, %v1158_v57  ;;  %v1185_v41 = vshll.u32 %v1062_v48, 16  ;;  %17481 = vst [vmem:[#allocation124_spill] sm:$0xff] %v14869_v8 }
  0xb5   :  { %v1205_v57 = vshll.u32 %v1064_v17, 16  ;;  %v1209_v1 = vshrl.u32 %v1064_v17, 16  ;;  %v14878_v10 = vsub.s32 0, %v14869_v8  ;;  %v14886_v35 = vsub.s32 1, %v14869_v8 }
  0xb6   :  { %12395 = vmatmul.mubr.msk.bf16.gmra.mxu1 %vm17366_vm1, %v12375_v42  ;;  %v1134_v42 = vsel %vm14741_vm0, %v1129_v45, %v1133_v23  ;;  %v1172_v50 = vor.u32 %v1171_v56, %v1167_v21  ;;  %v1163_v60 = vrot.slane %v1162_v59, 4  ;;  %v1187_v44 = vrot.slane %v1185_v41, 5 }
  0xb7   :  { %12416 = vmatmul.mubr.msk.bf16.vlgmr.msra.gmra.mxu0 %vm17366_vm1, %v12396_v61  ;;  %v1138_v61 = vor.u32 %v1137_v40, %v1133_v23  ;;  %v12398_v24 = vcombine.low %v1124_v63, %v1134_v42  ;;  %v1175_v23 = vshll.u32 %v1061_v58, 16  ;;  %v1154_v40 = vsel %vm14741_vm0, %v1149_v0, %v1153_v18  ;;  %17482 = vst [vmem:[#allocation125_spill] sm:$0xff] %v14878_v10 }
  0xb8   :  { %1402 = vmatprep.mubr.bf16.mxu0 %v17475_v54  ;;  %v1173_v63 = vrot.slane %v1172_v50, 4  ;;  %v1168_v20 = vsel %vm14741_vm0, %v1163_v60, %v1167_v21  ;;  %v1211_v41 = vrot.slane %v1209_v1, 4  ;;  %v1066_v21 = vld [vmem:[#allocation2 + $0x48] sm:$0xf]  ;;  %17484 = vst [vmem:[#allocation126_spill] sm:$0xff] %v14886_v35  ;;  %v14893_v36 = vrot.slane %v1505_v34, %v14878_v10 }
  0xb9   :  { %v1139_v62 = vrot.slane %v1138_v61, 4  ;;  %v1177_v42 = vrot.slane %v1175_v23, 5  ;;  %v1063_v61 = vld [vmem:[#allocation2 + $0x3c] sm:$0xf]  ;;  %v1065_v23 = vld [vmem:[#allocation2 + $0x44] sm:$0xf]  ;;  %v14896_v38 = vrot.slane %v1505_v34, %v14886_v35 }
  0xba   :  { %v1195_v53 = vshll.u32 %v1063_v61, 16  ;;  %v1215_v50 = vshll.u32 %v1065_v23, 16  ;;  %v1219_v55 = vshrl.u32 %v1065_v23, 16  ;;  %vm17377_vm10 = vcmask 1041409  }
  0xbb   :  { %v1144_v45 = vsel %vm14741_vm0, %v1139_v62, %v1143_v19  ;;  %v1178_v62 = vsel %vm14741_vm0, %v1173_v63, %v1177_v42  ;;  %v1229_v63 = vshrl.u32 %v1066_v21, 16  ;;  %vm17376_vm13 = vcmask 1042434  }
  0xbc   :  { %v12399_v43 = vcombine.low %v1144_v45, %v1154_v40  ;;  %v12400_v0 = vcombine.low %v1168_v20, %v1178_v62  ;;  %v1197_v59 = vrot.slane %v1195_v53, 5  ;;  %v1221_v20 = vrot.slane %v1219_v55, 4 }
  0xbd   :  { %v1231_v53 = vrot.slane %v1229_v63, 4  ;;  %vm17374_vm15 = vcmask 1044484   ;;  %vm17370_vm12 = vcmask 1045509   ;;  %vm17372_vm11 = vcmask 1047559  }
  0xbe   :  { %vm17371_vm6 = vcmask 1043456   ;;  %vm4352_vm8 = vcmask 982020  }
  0xbf   :  { %12417 = vmatmul.mubr.msk.bf16.gmra.mxu0 %vm17366_vm1, %v12397_v46  ;;  %v1179_v46 = vshrl.u32 %v1061_v58, 16  ;;  %v1192_v58 = vor.u32 %v1191_v16, %v1187_v44  ;;  %v1217_v16 = vrot.slane %v1215_v50, 5 }
  0xc0   :  { %1412 = vmatprep.mubr.bf16.mxu0 %v17475_v54 }
  0xc1   :  { %v1181_v22 = vrot.slane %v1179_v46, 4  ;;  %v1193_v48 = vrot.slane %v1192_v58, 4  ;;  %v1207_v46 = vrot.slane %v1205_v57, 5  ;;  %v1222_v58 = vor.u32 %v1221_v20, %v1217_v16 }
  0xc3   :  { %v1182_v19 = vor.u32 %v1181_v22, %v1177_v42  ;;  %v1212_v60 = vor.u32 %v1211_v41, %v1207_v46  ;;  %v1225_v22 = vshll.u32 %v1066_v21, 16 }
  0xc5   :  { %v1183_v18 = vrot.slane %v1182_v19, 4  ;;  %v1213_v17 = vrot.slane %v1212_v60, 4  ;;  %v1227_v19 = vrot.slane %v1225_v22, 5 }
  0xc7   :  { %12418 = vmatmul.mubr.msk.bf16.gmra.mxu0 %vm17366_vm1, %v12398_v24  ;;  %v1199_v24 = vshrl.u32 %v1063_v61, 16  ;;  %v1188_v45 = vsel %vm14741_vm0, %v1183_v18, %v1187_v44  ;;  %v1218_v62 = vsel %vm14741_vm0, %v1213_v17, %v1217_v16  ;;  %v1232_v57 = vor.u32 %v1231_v53, %v1227_v19 }
  0xc8   :  { %1422 = vmatprep.mubr.bf16.mxu0 %v17475_v54  ;;  %v1223_v18 = vrot.slane %v1222_v58, 4 }
  0xc9   :  { %v1201_v56 = vrot.slane %v1199_v24, 4  ;;  %v1067_v24 = vld [vmem:[#allocation2 + $0x4c] sm:$0x1] }
  0xca   :  { %v1235_v1 = vshll.u32 %v1067_v24, 16 }
  0xcb   :  { %v1202_v40 = vor.u32 %v1201_v56, %v1197_v59  ;;  %v1233_v56 = vrot.slane %v1232_v57, 4 }
  0xcd   :  { %v1203_v61 = vrot.slane %v1202_v40, 4 }
  0xcf   :  { %12419 = vmatmul.mubr.msk.bf16.gmra.mxu0 %vm17366_vm1, %v12399_v43  ;;  %v1198_v43 = vsel %vm14741_vm0, %v1193_v48, %v1197_v59  ;;  %v1208_v44 = vsel %vm14741_vm0, %v1203_v61, %v1207_v46  ;;  %v1237_v48 = vrot.slane %v1235_v1, 5  ;;  %v1228_v59 = vsel %vm14741_vm0, %v1223_v18, %v1227_v19 }
  0xd0   :  { %1432 = vmatprep.mubr.bf16.mxu0 %v17475_v54  ;;  %v12401_v42 = vcombine.low %v1188_v45, %v1198_v43 }
  0xd1   :  { %v1238_v23 = vsel %vm14741_vm0, %v1233_v56, %v1237_v48 }
  0xd2   :  { %v12403_v46 = vcombine.low %v1228_v59, %v1238_v23 }
  0xd7   :  { %12420 = vmatmul.mubr.msk.bf16.gmra.mxu0 %vm17366_vm1, %v12400_v0  ;;  %v12402_v0 = vcombine.low %v1208_v44, %v1218_v62 }
  0xd8   :  { %1442 = vmatprep.mubr.bf16.mxu0 %v17475_v54 }
  0xdf   :  { %12421 = vmatmul.mubr.msk.bf16.gmra.mxu0 %vm17366_vm1, %v12401_v42 }
  0xe0   :  { %1452 = vmatprep.mubr.bf16.mxu0 %v17475_v54 }
  0xe7   :  { %12422 = vmatmul.mubr.msk.bf16.gmra.mxu0 %vm17366_vm1, %v12402_v0 }
  0xe8   :  { %1462 = vmatprep.mubr.bf16.mxu0 %v17475_v54 }
  0xef   :  { %12423 = vmatmul.mubr.msk.bf16.gmra.mxu0 %vm17366_vm1, %v12403_v46  ;;  %vm17373_vm1 = vcmask 1046534  }
 0x137   :  { %v750_v41 = vpop.f32.mrf.mxu0 }
 0x139   :  { %v752_v21 = vpop.f32.mrf.mxu0 }
 0x13b   :  { %v754_v45 = vpop.f32.mrf.mxu0 }
 0x13d   :  { %v756_v50 = vpop.f32.mrf.mxu0 }
 0x13e   :  { %v971_v40 = vpop.f32.mrf.mxu1 }
 0x13f   :  { %v14803_v43 = vpop.f32.mrf.mxu0  ;;  %v972_v13 = vadd.f32 %v971_v40, %v750_v41 }
 0x140   :  { %v973_v55 = vpop.f32.mrf.mxu1 }
 0x141   :  { %v14805_v22 = vpop.f32.mrf.mxu0  ;;  %v974_v14 = vadd.f32 %v973_v55, %v752_v21 }
 0x142   :  { %v975_v60 = vpop.f32.mrf.mxu1 }
 0x143   :  { %v14807_v42 = vpop.f32.mrf.mxu0  ;;  %v976_v52 = vadd.f32 %v975_v60, %v754_v45 }
 0x144   :  { %v977_v63 = vpop.f32.mrf.mxu1 }
 0x145   :  { %v14809_v16 = vpop.f32.mrf.mxu0 }
 0x146   :  { %v981_v61 = vpop.f32.mrf.mxu1 }
 0x147   :  { %v14811_v17 = vpop.f32.mrf.mxu0 }
 0x148   :  { %v983_v20 = vpop.f32.mrf.mxu1 }
 0x149   :  { %v14813_v19 = vpop.f32.mrf.mxu0 }
 0x14a   :  { %v14817_v24 = vpop.f32.mrf.mxu1 }
 0x14b   :  { %v14815_v53 = vpop.f32.mrf.mxu0 }
 0x14c   :  { %v14823_v58 = vpop.f32.mrf.mxu1 }
 0x14d   :  { %v14819_v44 = vpop.f32.mrf.mxu0 }
 0x14e   :  { %v14829_v0 = vpop.f32.mrf.mxu1 }
 0x14f   :  { %v14821_v62 = vpop.f32.mrf.mxu0 }
 0x150   :  { %v14835_v48 = vpop.f32.mrf.mxu1 }
 0x151   :  { %v14825_v57 = vpop.f32.mrf.mxu0 }
 0x152   :  { %v14841_v46 = vpop.f32.mrf.mxu1 }
 0x153   :  { %v14827_v1 = vpop.f32.mrf.mxu0 }
 0x154   :  { %v14847_v2 = vpop.f32.mrf.mxu1 }
 0x155   :  { %v14831_v18 = vpop.f32.mrf.mxu0 }
 0x156   :  { %v14853_v27 = vpop.f32.mrf.mxu1 }
 0x157   :  { %v14833_v56 = vpop.f32.mrf.mxu0 }
 0x158   :  { %v14859_v28 = vpop.f32.mrf.mxu1 }
 0x159   :  { %v14837_v59 = vpop.f32.mrf.mxu0 }
 0x15a   :  { %v14865_v30 = vpop.f32.mrf.mxu1 }
 0x15b   :  { %v14839_v23 = vpop.f32.mrf.mxu0 }
 0x15c   :  { %v14873_v32 = vpop.f32.mrf.mxu1 }
 0x15d   :  { %v14843_v54 = vpop.f32.mrf.mxu0 }
 0x15e   :  { %v14888_v6 = vpop.f32.mrf.mxu1 }
 0x15f   :  { %v14845_v25 = vpop.f32.mrf.mxu0 }
 0x160   :  { %v14898_v39 = vpop.f32.mrf.mxu1 }
 0x161   :  { %v14849_v3 = vpop.f32.mrf.mxu0 }
 0x163   :  { %v14851_v26 = vpop.f32.mrf.mxu0 }
 0x165   :  { %v14855_v4 = vpop.f32.mrf.mxu0 }
 0x167   :  { %v14857_v5 = vpop.f32.mrf.mxu0 }
 0x169   :  { %v14861_v29 = vpop.f32.mrf.mxu0 }
 0x16b   :  { %v14863_v7 = vpop.f32.mrf.mxu0 }
 0x16d   :  { %v14867_v31 = vpop.f32.mrf.mxu0 }
 0x16f   :  { %v14871_v9 = vpop.f32.mrf.mxu0 }
 0x171   :  { %v14875_v33 = vpop.f32.mrf.mxu0 }
 0x173   :  { %v14880_v11 = vpop.f32.mrf.mxu0 }
 0x175   :  { %v14890_v12 = vpop.f32.mrf.mxu0 }
 0x176   :  { %17485 = vst [vmem:[#allocation127_spill] sm:$0xff] %v14890_v12  ;;  %v978_v12 = vadd.f32 %v977_v63, %v756_v50  ;;  %v986_v50 = vadd.f32 %v14817_v24, %v14807_v42  ;;  %v992_v42 = vadd.f32 %v14829_v0, %v14811_v17  ;;  %v994_v17 = vadd.f32 %v14835_v48, %v14813_v19 }
 0x177   :  { %v1394_v37 = vpop.f32.mrf.mxu0 }
 0x178   :  { %v1473_v15 = vadd.f32 %v1394_v37, %v972_v13  ;;  %v14907_v13 = vpop.f32.mrf.mxu1  ;;  %v982_v37 = vadd.f32 %v981_v61, %v14803_v43  ;;  %v988_v61 = vadd.f32 %v14823_v58, %v14809_v16 }
 0x179   :  { %v1396_v51 = vpop.f32.mrf.mxu0 }
 0x17a   :  { %v1474_v47 = vadd.f32 %v1396_v51, %v974_v14  ;;  %v14901_v49 = vadd.f32 %v14893_v36, %v1473_v15  ;;  %v984_v14 = vadd.f32 %v983_v20, %v14805_v22  ;;  %v14921_v45 = vpop.f32.mrf.mxu1 }
 0x17b   :  { %v1398_v8 = vpop.f32.mrf.mxu0 }
 0x17c   :  { %v14904_v41 = vadd.f32 %v14896_v38, %v1474_v47  ;;  %v1475_v40 = vadd.f32 %v1398_v8, %v976_v52  ;;  %v1549_v21 = vmax.f32 %v14901_v49, 0.0  ;;  %v14940_v24 = vpop.f32.mrf.mxu1 }
 0x17d   :  { %v1400_v34 = vpop.f32.mrf.mxu0 }
 0x17e   :  { %v1476_v55 = vadd.f32 %v1400_v34, %v978_v12  ;;  %1613 = vrot.lane.b32.xlu0 %v1549_v21, %s14062_s6  ;;  %v1550_v51 = vmax.f32 %v14904_v41, 0.0  ;;  %v14916_v8 = vadd.f32 %v14893_v36, %v1475_v40 }
 0x17f   :  { %v1404_v15 = vpop.f32.mrf.mxu0 }
 0x180   :  { %v1477_v52 = vadd.f32 %v1404_v15, %v982_v37  ;;  %v14919_v47 = vadd.f32 %v14896_v38, %v1476_v55  ;;  %v1551_v20 = vmax.f32 %v14916_v8, 0.0 }
 0x181   :  { %v1406_v12 = vpop.f32.mrf.mxu0 }
 0x182   :  { %v14926_v43 = vadd.f32 %v14893_v36, %v1477_v52  ;;  %v1478_v60 = vadd.f32 %v1406_v12, %v984_v14  ;;  %1615 = vrot.lane.b32.xlu0 %v1550_v51, %s14062_s6  ;;  %v1552_v22 = vmax.f32 %v14919_v47, 0.0  ;;  %v996_v52 = vadd.f32 %v14841_v46, %v14815_v53  ;;  %v14960_v12 = vpop.f32.mrf.mxu1 }
 0x183   :  { %v1408_v63 = vpop.f32.mrf.mxu0  ;;  %v998_v53 = vadd.f32 %v14847_v2, %v14819_v44 }
 0x184   :  { %v1479_v40 = vadd.f32 %v1408_v63, %v986_v50  ;;  %1619 = vrot.lane.b32.xlu1 %v1552_v22, %s14062_s6  ;;  %v17359_v37 = vmax.f32 %v14926_v43, 0.0  ;;  %v14944_v55 = vadd.f32 %v14896_v38, %v1478_v60 }
 0x185   :  { %v1410_v34 = vpop.f32.mrf.mxu0 }
 0x186   :  { %v14947_v16 = vadd.f32 %v14893_v36, %v1479_v40  ;;  %v1480_v58 = vadd.f32 %v1410_v34, %v988_v61  ;;  %1617 = vrot.lane.b32.xlu0 %v1551_v20, %s14062_s6  ;;  %v17358_v60 = vmax.f32 %v14944_v55, 0.0  ;;  %v14980_v34 = vpop.f32.mrf.mxu1 }
 0x187   :  { %v1414_v14 = vpop.f32.mrf.mxu0 }
 0x188   :  { %v17357_v0 = vmax.f32 %v14947_v16, 0.0  ;;  %v1481_v15 = vadd.f32 %v1414_v14, %v992_v42  ;;  %1621 = vrot.lane.b32.xlu1 %v17359_v37, %s14062_s6  ;;  %v14964_v63 = vadd.f32 %v14896_v38, %v1480_v58  ;;  %v1002_v42 = vadd.f32 %v14853_v27, %v14821_v62 }
 0x189   :  { %v1416_v50 = vpop.f32.mrf.mxu0  ;;  %v1004_v27 = vadd.f32 %v14859_v28, %v14825_v57 }
 0x18a   :  { %v14967_v19 = vadd.f32 %v14893_v36, %v1481_v15  ;;  %v1482_v48 = vadd.f32 %v1416_v50, %v994_v17  ;;  %1625 = vrot.lane.b32.xlu0 %v17357_v0, %s14062_s6  ;;  %v17356_v14 = vmax.f32 %v14964_v63, 0.0  ;;  %v1006_v50 = vadd.f32 %v14865_v30, %v14827_v1 }
 0x18b   :  { %v1418_v61 = vpop.f32.mrf.mxu0 }
 0x18c   :  { %v17355_v46 = vmax.f32 %v14967_v19, 0.0  ;;  %v1483_v40 = vadd.f32 %v1418_v61, %v996_v52  ;;  %1623 = vrot.lane.b32.xlu1 %v17358_v60, %s14062_s6  ;;  %v14984_v17 = vadd.f32 %v14896_v38, %v1482_v48  ;;  %v1027_v48 = vpop.f32.mrf.mxu1 }
 0x18d   :  { %v1420_v58 = vpop.f32.mrf.mxu0 }
 0x18e   :  { %v14987_v2 = vadd.f32 %v14893_v36, %v1483_v40  ;;  %v1484_v44 = vadd.f32 %v1420_v58, %v998_v53  ;;  %1629 = vrot.lane.b32.xlu0 %v17355_v46, %s14062_s6  ;;  %v17354_v53 = vmax.f32 %v14984_v17, 0.0 }
 0x18f   :  { %v1424_v15 = vpop.f32.mrf.mxu0 }
 0x190   :  { %v17332_v62 = vmax.f32 %v14987_v2, 0.0  ;;  %v1485_v52 = vadd.f32 %v1424_v15, %v1002_v42  ;;  %1627 = vrot.lane.b32.xlu1 %v17356_v14, %s14062_s6  ;;  %v15002_v40 = vadd.f32 %v14896_v38, %v1484_v44  ;;  %v1008_v42 = vadd.f32 %v14873_v32, %v14831_v18  ;;  %v1031_v15 = vpop.f32.mrf.mxu1 }
 0x191   :  { %v1426_v61 = vpop.f32.mrf.mxu0  ;;  %v1012_v44 = vadd.f32 %v14888_v6, %v14833_v56 }
 0x192   :  { %v15005_v58 = vadd.f32 %v14893_v36, %v1485_v52  ;;  %v1486_v28 = vadd.f32 %v1426_v61, %v1004_v27  ;;  %1633 = vrot.lane.b32.xlu0 %v17332_v62, %s14062_s6  ;;  %v17353_v52 = vmax.f32 %v15002_v40, 0.0 }
 0x193   :  { %v1428_v57 = vpop.f32.mrf.mxu0 }
 0x194   :  { %v17333_v30 = vmax.f32 %v15005_v58, 0.0  ;;  %v1487_v1 = vadd.f32 %v1428_v57, %v1006_v50  ;;  %1631 = vrot.lane.b32.xlu1 %v17354_v53, %s14062_s6  ;;  %v15020_v61 = vadd.f32 %v14896_v38, %v1486_v28  ;;  %v1014_v50 = vadd.f32 %v14898_v39, %v14837_v59  ;;  %v1033_v57 = vpop.f32.mrf.mxu1 }
 0x195   :  { %v1430_v27 = vpop.f32.mrf.mxu0  ;;  %v1016_v28 = vadd.f32 %v14907_v13, %v14839_v23 }
 0x196   :  { %v15023_v62 = vadd.f32 %v14893_v36, %v1487_v1  ;;  %v1488_v32 = vadd.f32 %v1430_v27, %v1008_v42  ;;  %1637 = vrot.lane.b32.xlu0 %v17333_v30, %s14062_s6  ;;  %v17352_v1 = vmax.f32 %v15020_v61, 0.0 }
 0x197   :  { %v1434_v18 = vpop.f32.mrf.mxu0 }
 0x198   :  { %v17334_v56 = vmax.f32 %v15023_v62, 0.0  ;;  %v1489_v6 = vadd.f32 %v1434_v18, %v1012_v44  ;;  %1635 = vrot.lane.b32.xlu1 %v17353_v52, %s14062_s6  ;;  %v15038_v27 = vadd.f32 %v14896_v38, %v1488_v32  ;;  %v1018_v44 = vadd.f32 %v14921_v45, %v14843_v54  ;;  %v1035_v18 = vpop.f32.mrf.mxu1 }
 0x199   :  { %v1436_v42 = vpop.f32.mrf.mxu0  ;;  %v1022_v32 = vadd.f32 %v14940_v24, %v14845_v25 }
 0x19a   :  { %v15041_v30 = vadd.f32 %v14893_v36, %v1489_v6  ;;  %v1490_v39 = vadd.f32 %v1436_v42, %v1014_v50  ;;  %1641 = vrot.lane.b32.xlu0 %v17334_v56, %s14062_s6  ;;  %v17351_v6 = vmax.f32 %v15038_v27, 0.0 }
 0x19b   :  { %v1438_v59 = vpop.f32.mrf.mxu0 }
 0x19c   :  { %v17335_v23 = vmax.f32 %v15041_v30, 0.0  ;;  %v1491_v13 = vadd.f32 %v1438_v59, %v1016_v28  ;;  %1639 = vrot.lane.b32.xlu1 %v17352_v1, %s14062_s6  ;;  %v15056_v42 = vadd.f32 %v14896_v38, %v1490_v39  ;;  %v1024_v28 = vadd.f32 %v14960_v12, %v14849_v3  ;;  %v1037_v59 = vpop.f32.mrf.mxu1 }
 0x19d   :  { %v1440_v50 = vpop.f32.mrf.mxu0  ;;  %v1026_v39 = vadd.f32 %v14980_v34, %v14851_v26 }
 0x19e   :  { %v15059_v56 = vadd.f32 %v14893_v36, %v1491_v13  ;;  %v1492_v54 = vadd.f32 %v1440_v50, %v1018_v44  ;;  %1645 = vrot.lane.b32.xlu0 %v17335_v23, %s14062_s6  ;;  %v17350_v13 = vmax.f32 %v15056_v42, 0.0 }
 0x19f   :  { %v1444_v45 = vpop.f32.mrf.mxu0 }
 0x1a0   :  { %v17336_v25 = vmax.f32 %v15059_v56, 0.0  ;;  %v1493_v24 = vadd.f32 %v1444_v45, %v1022_v32  ;;  %1643 = vrot.lane.b32.xlu1 %v17351_v6, %s14062_s6  ;;  %v15074_v50 = vadd.f32 %v14896_v38, %v1492_v54  ;;  %v1028_v32 = vadd.f32 %v1027_v48, %v14855_v4  ;;  %v1041_v45 = vpop.f32.mrf.mxu1 }
 0x1a1   :  { %v1446_v44 = vpop.f32.mrf.mxu0  ;;  %v1032_v54 = vadd.f32 %v1031_v15, %v14857_v5 }
 0x1a2   :  { %v15077_v23 = vadd.f32 %v14893_v36, %v1493_v24  ;;  %v1494_v3 = vadd.f32 %v1446_v44, %v1024_v28  ;;  %1649 = vrot.lane.b32.xlu0 %v17336_v25, %s14062_s6  ;;  %v17349_v28 = vmax.f32 %v15074_v50, 0.0 }
 0x1a3   :  { %v1448_v12 = vpop.f32.mrf.mxu0 }
 0x1a4   :  { %v17337_v26 = vmax.f32 %v15077_v23, 0.0  ;;  %v1495_v34 = vadd.f32 %v1448_v12, %v1026_v39  ;;  %1647 = vrot.lane.b32.xlu1 %v17350_v13, %s14062_s6  ;;  %v15090_v44 = vadd.f32 %v14896_v38, %v1494_v3  ;;  %v1034_v39 = vadd.f32 %v1033_v57, %v14861_v29  ;;  %v1043_v12 = vpop.f32.mrf.mxu1 }
 0x1a5   :  { %v1450_v24 = vpop.f32.mrf.mxu0  ;;  %v1036_v3 = vadd.f32 %v1035_v18, %v14863_v7 }
 0x1a6   :  { %v15093_v25 = vadd.f32 %v14893_v36, %v1495_v34  ;;  %v1496_v4 = vadd.f32 %v1450_v24, %v1028_v32  ;;  %1653 = vrot.lane.b32.xlu0 %v17337_v26, %s14062_s6  ;;  %v17348_v32 = vmax.f32 %v15090_v44, 0.0 }
 0x1a7   :  { %v1454_v48 = vpop.f32.mrf.mxu0 }
 0x1a8   :  { %v17338_v5 = vmax.f32 %v15093_v25, 0.0  ;;  %v1497_v15 = vadd.f32 %v1454_v48, %v1032_v54  ;;  %1651 = vrot.lane.b32.xlu1 %v17349_v28, %s14062_s6  ;;  %v15106_v24 = vadd.f32 %v14896_v38, %v1496_v4  ;;  %v1038_v54 = vadd.f32 %v1037_v59, %v14867_v31  ;;  %v1045_v48 = vpop.f32.mrf.mxu1 }
 0x1a9   :  { %v1456_v34 = vpop.f32.mrf.mxu0  ;;  %v1042_v4 = vadd.f32 %v1041_v45, %v14871_v9 }
 0x1aa   :  { %v15109_v26 = vadd.f32 %v14893_v36, %v1497_v15  ;;  %v1498_v29 = vadd.f32 %v1456_v34, %v1034_v39  ;;  %1657 = vrot.lane.b32.xlu0 %v17338_v5, %s14062_s6  ;;  %v17340_v39 = vmax.f32 %v15106_v24, 0.0 }
 0x1ab   :  { %v1458_v57 = vpop.f32.mrf.mxu0 }
 0x1ac   :  { %v17339_v7 = vmax.f32 %v15109_v26, 0.0  ;;  %v1499_v18 = vadd.f32 %v1458_v57, %v1036_v3  ;;  %1655 = vrot.lane.b32.xlu1 %v17348_v32, %s14062_s6  ;;  %v15122_v34 = vadd.f32 %v14896_v38, %v1498_v29  ;;  %v1044_v3 = vadd.f32 %v1043_v12, %v14875_v33  ;;  %v1047_v57 = vpop.f32.mrf.mxu1 }
 0x1ad   :  { %v1460_v15 = vpop.f32.mrf.mxu0  ;;  %v1046_v29 = vadd.f32 %v1045_v48, %v14880_v11 }
 0x1ae   :  { %v15125_v5 = vadd.f32 %v14893_v36, %v1499_v18  ;;  %v1500_v31 = vadd.f32 %v1460_v15, %v1038_v54  ;;  %1661 = vrot.lane.b32.xlu0 %v17339_v7, %s14062_s6  ;;  %v17347_v54 = vmax.f32 %v15122_v34, 0.0 }
 0x1af   :  { %v1464_v59 = vpop.f32.mrf.mxu0 }
 0x1b0   :  { %v17345_v9 = vmax.f32 %v15125_v5, 0.0  ;;  %v1501_v45 = vadd.f32 %v1464_v59, %v1042_v4  ;;  %1659 = vrot.lane.b32.xlu1 %v17340_v39, %s14062_s6  ;;  %v15138_v15 = vadd.f32 %v14896_v38, %v1500_v31  ;;  %v17486_v4 = vld [vmem:[#allocation127_spill] sm:$0xff] }
 0x1b1   :  { %v1466_v18 = vpop.f32.mrf.mxu0  ;;  %v1048_v59 = vadd.f32 %v1047_v57, %v17486_v4 }
 0x1b2   :  { %v15141_v7 = vadd.f32 %v14893_v36, %v1501_v45  ;;  %v1502_v33 = vadd.f32 %v1466_v18, %v1044_v3  ;;  %1665 = vrot.lane.b32.xlu0 %v17345_v9, %s14062_s6  ;;  %v17344_v39 = vmax.f32 %v15138_v15, 0.0 }
 0x1b3   :  { %v1468_v12 = vpop.f32.mrf.mxu0 }
 0x1b4   :  { %v17342_v11 = vmax.f32 %v15141_v7, 0.0  ;;  %v1503_v48 = vadd.f32 %v1468_v12, %v1046_v29  ;;  %1663 = vrot.lane.b32.xlu1 %v17347_v54, %s14062_s6  ;;  %v15153_v45 = vadd.f32 %v14896_v38, %v1502_v33  ;;  %v14063_v33 = vmov 1983009808  }
 0x1b5   :  { %v1470_v31 = vpop.f32.mrf.mxu0  ;;  %v1793_v4 = vunpack.c.l.s4 %v14063_v33 }
 0x1b6   :  { %v15156_v3 = vadd.f32 %v14893_v36, %v1503_v48  ;;  %v1504_v18 = vadd.f32 %v1470_v31, %v1048_v59  ;;  %1669 = vrot.lane.b32.xlu0 %v17342_v11, %s14062_s6  ;;  %v17343_v57 = vmax.f32 %v15153_v45, 0.0 }
 0x1b7   :  { %v1794_v48 = vunpack.c.0.s8 %v1793_v4 }
 0x1b8   :  { %v17341_v29 = vmax.f32 %v15156_v3, 0.0  ;;  %1667 = vrot.lane.b32.xlu1 %v17344_v39, %s14062_s6  ;;  %v15167_v12 = vadd.f32 %v14896_v38, %v1504_v18 }
 0x1ba   :  { %1673 = vrot.lane.b32.xlu0 %v17341_v29, %s14062_s6  ;;  %v17346_v36 = vmax.f32 %v15167_v12, 0.0  ;;  %v17487_v29 = vld [vmem:[#allocation124_spill] sm:$0xff] }
 0x1bb   :  { %v15183_v11 = vsub.s32 %v1794_v48, %v17487_v29 }
 0x1bc   :  { %1671 = vrot.lane.b32.xlu1 %v17343_v57, %s14062_s6 }
 0x1c0   :  { %1675 = vrot.lane.b32.xlu1 %v17346_v36, %s14062_s6 }
 0x1f0   :  { %v1614_v59 = vpop.permute.xlu0 %1613 }
 0x1f4   :  { %v1616_v38 = vpop.permute.xlu0 %1615 }
 0x1f5   :  { %v1678_v31 = vsel %vm1677_vm4, %v1614_v59, %v1616_v38  ;;  %v1727_v18 = vmax.f32 %v1550_v51, %v1616_v38 }
 0x1f6   :  { %v1726_v57 = vmax.f32 %v1549_v21, %v1678_v31  ;;  %v1620_v36 = vpop.permute.xlu1 %1619 }
 0x1f7   :  { %v1729_v51 = vmax.f32 %v1552_v22, %v1620_v36 }
 0x1f8   :  { %v1790_v39 = vcombine.low %v1726_v57, %v1727_v18  ;;  %v1791_v9 = vcombine.high %v1726_v57, %v1727_v18  ;;  %v1618_v54 = vpop.permute.xlu0 %1617 }
 0x1f9   :  { %v1679_v33 = vsel %vm1677_vm4, %v1618_v54, %v1620_v36 }
 0x1fa   :  { %v1798_v4 = vrot.slane %v1790_v39, %v15183_v11  ;;  %v1805_v32 = vrot.slane %v1791_v9, %v15183_v11  ;;  %v1728_v41 = vmax.f32 %v1551_v20, %v1679_v33 }
 0x1fc   :  { %v1806_v59 = vcombine.high %v1798_v4, %v1798_v4  ;;  %v1807_v49 = vcombine.high %v1805_v32, %v1805_v32  ;;  %v2084_v21 = vrot.slane %v1798_v4, %v15183_v11  ;;  %v2100_v57 = vrot.slane %v1805_v32, %v15183_v11 }
 0x1fd   :  { %v1808_v48 = vcombine.low %v1728_v41, %v1729_v51  ;;  %v1809_v54 = vcombine.high %v1728_v41, %v1729_v51 }
 0x1fe   :  { %v2085_v38 = vcombine.high %v2084_v21, %v2084_v21  ;;  %v2092_v39 = vrot.slane %v1806_v59, %v15183_v11  ;;  %v2101_v9 = vcombine.high %v2100_v57, %v2100_v57  ;;  %v2108_v8 = vrot.slane %v1807_v49, %v15183_v11 }
 0x1ff   :  { %v2719_v20 = vsel %vm2718_vm2, %v2084_v21, -inf  ;;  %v2748_v47 = vsel %vm2718_vm2, %v2100_v57, -inf  ;;  %v15201_v22 = vrot.slane %v1808_v48, %v15183_v11  ;;  %v15204_v36 = vrot.slane %v1809_v54, %v15183_v11 }
 0x200   :  { %v2093_v32 = vcombine.high %v2092_v39, %v2092_v39  ;;  %v2109_v31 = vcombine.high %v2108_v8, %v2108_v8  ;;  %v2720_v18 = vrot.slane %v2719_v20, 4  ;;  %v2727_v33 = vsel %vm2726_vm5, %v2085_v38, -inf }
 0x201   :  { %v2728_v4 = vrot.slane %v2727_v33, 4  ;;  %v2734_v41 = vsel %vm2718_vm2, %v2092_v39, -inf  ;;  %v2749_v51 = vrot.slane %v2748_v47, 4  ;;  %v2755_v59 = vsel %vm2726_vm5, %v2101_v9, -inf }
 0x202   :  { %v2721_v49 = vmax.f32 %v2719_v20, %v2720_v18  ;;  %v2735_v21 = vrot.slane %v2734_v41, 4  ;;  %v2741_v57 = vsel %vm2726_vm5, %v2093_v32, -inf  ;;  %v2756_v48 = vrot.slane %v2755_v59, 4 }
 0x203   :  { %v2729_v28 = vmax.f32 %v2727_v33, %v2728_v4  ;;  %v2742_v13 = vrot.slane %v2741_v57, 4  ;;  %v2750_v54 = vmax.f32 %v2748_v47, %v2749_v51  ;;  %v2762_v6 = vsel %vm2718_vm2, %v2108_v8, -inf }
 0x204   :  { %v2722_v1 = vrot.slane %v2721_v49, 2  ;;  %v2736_v52 = vmax.f32 %v2734_v41, %v2735_v21  ;;  %v2757_v53 = vmax.f32 %v2755_v59, %v2756_v48  ;;  %v2763_v38 = vrot.slane %v2762_v6, 4 }
 0x205   :  { %v2730_v46 = vrot.slane %v2729_v28, 2  ;;  %v2743_v14 = vmax.f32 %v2741_v57, %v2742_v13  ;;  %v2751_v39 = vrot.slane %v2750_v54, 2  ;;  %v2769_v0 = vsel %vm2726_vm5, %v2109_v31, -inf }
 0x206   :  { %v2723_v9 = vmax.f32 %v2721_v49, %v2722_v1  ;;  %v2737_v20 = vrot.slane %v2736_v52, 2  ;;  %v2758_v18 = vrot.slane %v2757_v53, 2  ;;  %v2764_v60 = vmax.f32 %v2762_v6, %v2763_v38 }
 0x207   :  { %v2731_v32 = vmax.f32 %v2729_v28, %v2730_v46  ;;  %v2744_v37 = vrot.slane %v2743_v14, 2  ;;  %v2752_v33 = vmax.f32 %v2750_v54, %v2751_v39  ;;  %v2770_v4 = vrot.slane %v2769_v0, 4 }
 0x208   :  { %v2724_v47 = vrot.slane %v2723_v9, 1  ;;  %v2738_v8 = vmax.f32 %v2736_v52, %v2737_v20  ;;  %v2759_v51 = vmax.f32 %v2757_v53, %v2758_v18  ;;  %v2765_v41 = vrot.slane %v2764_v60, 2 }
 0x209   :  { %v2732_v59 = vrot.slane %v2731_v32, 1  ;;  %v2745_v21 = vmax.f32 %v2743_v14, %v2744_v37  ;;  %v2753_v13 = vrot.slane %v2752_v33, 1  ;;  %v2771_v57 = vmax.f32 %v2769_v0, %v2770_v4 }
 0x20a   :  { %v2725_v48 = vmax.f32 %v2723_v9, %v2724_v47  ;;  %v2739_v31 = vrot.slane %v2738_v8, 1  ;;  %v2760_v1 = vrot.slane %v2759_v51, 1  ;;  %v2766_v49 = vmax.f32 %v2764_v60, %v2765_v41 }
 0x20b   :  { %v2733_v29 = vmax.f32 %v2731_v32, %v2732_v59  ;;  %v2746_v6 = vrot.slane %v2745_v21, 1  ;;  %v2754_v46 = vmax.f32 %v2752_v33, %v2753_v13  ;;  %v2772_v28 = vrot.slane %v2771_v57, 2 }
 0x20c   :  { %v2740_v54 = vmax.f32 %v2738_v8, %v2739_v31  ;;  %v2761_v38 = vmax.f32 %v2759_v51, %v2760_v1  ;;  %v2767_v39 = vrot.slane %v2766_v49, 1  ;;  %v1824_v53 = vcombine.high %v15201_v22, %v15201_v22 }
 0x20d   :  { %v2747_v52 = vmax.f32 %v2745_v21, %v2746_v6  ;;  %v2773_v20 = vmax.f32 %v2771_v57, %v2772_v28  ;;  %v13070_v18 = vpack.c.bf16 %v2733_v29, %v2725_v48  ;;  %v1825_v37 = vcombine.high %v15204_v36, %v15204_v36 }
 0x20e   :  { %v2768_v0 = vmax.f32 %v2766_v49, %v2767_v39  ;;  %v13072_v14 = vpack.c.bf16 %v2761_v38, %v2754_v46  ;;  %v2116_v60 = vrot.slane %v15201_v22, %v15183_v11  ;;  %v2124_v9 = vrot.slane %v1824_v53, %v15183_v11 }
 0x20f   :  { %v2774_v32 = vrot.slane %v2773_v20, 1  ;;  %v13071_v33 = vpack.c.bf16 %v2747_v52, %v2740_v54  ;;  %v4088_v4 = vunpack.c.l.b16 %v13070_v18  ;;  %v4089_v47 = vunpack.c.h.b16 %v13070_v18 }
 0x210   :  { %v4092_v8 = vunpack.c.l.b16 %v13072_v14  ;;  %v4093_v51 = vunpack.c.h.b16 %v13072_v14  ;;  %v2117_v41 = vcombine.high %v2116_v60, %v2116_v60  ;;  %v2125_v59 = vcombine.high %v2124_v9, %v2124_v9 }
 0x211   :  { %v2775_v21 = vmax.f32 %v2773_v20, %v2774_v32  ;;  %v4090_v29 = vunpack.c.l.b16 %v13071_v33  ;;  %v4091_v13 = vunpack.c.h.b16 %v13071_v33  ;;  %v2132_v57 = vrot.slane %v15204_v36, %v15183_v11 }
 0x212   :  { %v2140_v48 = vrot.slane %v1825_v37, %v15183_v11  ;;  %v2776_v22 = vsel %vm2718_vm2, %v2116_v60, -inf  ;;  %v2783_v31 = vsel %vm2726_vm5, %v2117_v41, -inf  ;;  %v2790_v1 = vsel %vm2718_vm2, %v2124_v9, -inf }
 0x213   :  { %v13073_v49 = vpack.c.bf16 %v2775_v21, %v2768_v0  ;;  %v4217_v6 = vsel %vm17377_vm10, %v4090_v29, %v4088_v4  ;;  %v4230_v46 = vsel %vm17377_vm10, %v4091_v13, %v4089_v47  ;;  %v2133_v28 = vcombine.high %v2132_v57, %v2132_v57  ;;  %v1622_v47 = vpop.permute.xlu1 %1621 }
 0x214   :  { %v4219_v54 = vsel %vm17376_vm13, %v4092_v8, %v4217_v6  ;;  %v4231_v38 = vsel %vm17376_vm13, %v4093_v51, %v4230_v46  ;;  %v2141_v39 = vcombine.high %v2140_v48, %v2140_v48  ;;  %v2777_v36 = vrot.slane %v2776_v22, 4 }
 0x215   :  { %v4094_v53 = vunpack.c.l.b16 %v13073_v49  ;;  %v4095_v52 = vunpack.c.h.b16 %v13073_v49  ;;  %v2784_v20 = vrot.slane %v2783_v31, 4  ;;  %v2791_v18 = vrot.slane %v2790_v1, 4 }
 0x216   :  { %v2778_v37 = vmax.f32 %v2776_v22, %v2777_v36  ;;  %v2797_v14 = vsel %vm2726_vm5, %v2125_v59, -inf  ;;  %v2804_v0 = vsel %vm2718_vm2, %v2132_v57, -inf  ;;  %v2811_v60 = vsel %vm2726_vm5, %v2133_v28, -inf }
 0x217   :  { %v15233_v9 = vsel %vm17375_vm3, %v4094_v53, %v4219_v54  ;;  %v15236_v32 = vsel %vm17375_vm3, %v4095_v52, %v4231_v38  ;;  %v2785_v33 = vmax.f32 %v2783_v31, %v2784_v20  ;;  %v2792_v4 = vmax.f32 %v2790_v1, %v2791_v18  ;;  %v1624_v10 = vpop.permute.xlu1 %1623 }
 0x218   :  { %v2779_v8 = vrot.slane %v2778_v37, 2  ;;  %v2798_v51 = vrot.slane %v2797_v14, 4  ;;  %v2805_v41 = vrot.slane %v2804_v0, 4  ;;  %v2812_v21 = vrot.slane %v2811_v60, 4 }
 0x219   :  { %v2786_v29 = vrot.slane %v2785_v33, 2  ;;  %v2793_v13 = vrot.slane %v2792_v4, 2  ;;  %v2818_v59 = vsel %vm2718_vm2, %v2140_v48, -inf  ;;  %v2825_v57 = vsel %vm2726_vm5, %v2141_v39, -inf }
 0x21a   :  { %v2780_v22 = vmax.f32 %v2778_v37, %v2779_v8  ;;  %v2799_v49 = vmax.f32 %v2797_v14, %v2798_v51  ;;  %v2806_v6 = vmax.f32 %v2804_v0, %v2805_v41  ;;  %v2813_v46 = vmax.f32 %v2811_v60, %v2812_v21 }
 0x21b   :  { %v2787_v28 = vmax.f32 %v2785_v33, %v2786_v29  ;;  %v2794_v54 = vmax.f32 %v2792_v4, %v2793_v13  ;;  %v2819_v31 = vrot.slane %v2818_v59, 4  ;;  %v2826_v1 = vrot.slane %v2825_v57, 4 }
 0x21c   :  { %v2781_v38 = vrot.slane %v2780_v22, 1  ;;  %v2800_v36 = vrot.slane %v2799_v49, 2  ;;  %v2807_v53 = vrot.slane %v2806_v6, 2  ;;  %v2814_v52 = vrot.slane %v2813_v46, 2 }
 0x21d   :  { %v2788_v20 = vrot.slane %v2787_v28, 1  ;;  %v2795_v18 = vrot.slane %v2794_v54, 1  ;;  %v2820_v35 = vmax.f32 %v2818_v59, %v2819_v31  ;;  %v2827_v48 = vmax.f32 %v2825_v57, %v2826_v1 }
 0x21e   :  { %v2782_v39 = vmax.f32 %v2780_v22, %v2781_v38  ;;  %v2801_v37 = vmax.f32 %v2799_v49, %v2800_v36  ;;  %v2808_v14 = vmax.f32 %v2806_v6, %v2807_v53  ;;  %v2815_v0 = vmax.f32 %v2813_v46, %v2814_v52 }
 0x21f   :  { %v2789_v60 = vmax.f32 %v2787_v28, %v2788_v20  ;;  %v2796_v33 = vmax.f32 %v2794_v54, %v2795_v18  ;;  %v2821_v4 = vrot.slane %v2820_v35, 2  ;;  %v2828_v8 = vrot.slane %v2827_v48, 2 }
 0x220   :  { %v2802_v51 = vrot.slane %v2801_v37, 1  ;;  %v2809_v41 = vrot.slane %v2808_v14, 1  ;;  %v2816_v21 = vrot.slane %v2815_v0, 1  ;;  %v1680_v29 = vsel %vm1677_vm4, %v1622_v47, %v1624_v10 }
 0x221   :  { %v2822_v13 = vmax.f32 %v2820_v35, %v2821_v4  ;;  %v2829_v59 = vmax.f32 %v2827_v48, %v2828_v8  ;;  %v13074_v57 = vpack.c.bf16 %v2789_v60, %v2782_v39  ;;  %v17488_v22 = vmax.f32 %v14926_v43, 0.0  ;;  %v1628_v35 = vpop.permute.xlu1 %1627  ;;  %v1626_v60 = vpop.permute.xlu0 %1625 }
 0x222   :  { %v2803_v6 = vmax.f32 %v2801_v37, %v2802_v51  ;;  %v2810_v46 = vmax.f32 %v2808_v14, %v2809_v41  ;;  %v2817_v28 = vmax.f32 %v2815_v0, %v2816_v21  ;;  %v17489_v54 = vmax.f32 %v14944_v55, 0.0 }
 0x223   :  { %v1730_v49 = vmax.f32 %v17488_v22, %v1680_v29  ;;  %v2823_v1 = vrot.slane %v2822_v13, 1  ;;  %v2830_v38 = vrot.slane %v2829_v59, 1  ;;  %v4096_v36 = vunpack.c.l.b16 %v13074_v57 }
 0x224   :  { %v1731_v31 = vmax.f32 %v17489_v54, %v1624_v10  ;;  %v4097_v53 = vunpack.c.h.b16 %v13074_v57  ;;  %v13075_v52 = vpack.c.bf16 %v2803_v6, %v2796_v33  ;;  %v13076_v20 = vpack.c.bf16 %v2817_v28, %v2810_v46 }
 0x225   :  { %v2824_v48 = vmax.f32 %v2822_v13, %v2823_v1  ;;  %v2831_v39 = vmax.f32 %v2829_v59, %v2830_v38  ;;  %v4223_v43 = vsel %vm17374_vm15, %v4096_v36, %v15233_v9  ;;  %v1681_v51 = vsel %vm1677_vm4, %v1626_v60, %v1628_v35 }
 0x226   :  { %v1826_v18 = vcombine.low %v1730_v49, %v1731_v31  ;;  %v1827_v47 = vcombine.high %v1730_v49, %v1731_v31  ;;  %v4233_v37 = vsel %vm17374_vm15, %v4097_v53, %v15236_v32  ;;  %v4098_v14 = vunpack.c.l.b16 %v13075_v52 }
 0x227   :  { %v4099_v55 = vunpack.c.h.b16 %v13075_v52  ;;  %v4100_v10 = vunpack.c.l.b16 %v13076_v20  ;;  %v4101_v0 = vunpack.c.h.b16 %v13076_v20  ;;  %v13077_v4 = vpack.c.bf16 %v2831_v39, %v2824_v48 }
 0x228   :  { %v1834_v33 = vrot.slane %v1826_v18, %v15183_v11  ;;  %v1841_v8 = vrot.slane %v1827_v47, %v15183_v11  ;;  %v4225_v41 = vsel %vm17370_vm12, %v4098_v14, %v4223_v43  ;;  %v17490_v9 = vmax.f32 %v14947_v16, 0.0 }
 0x229   :  { %v4234_v21 = vsel %vm17370_vm12, %v4099_v55, %v4233_v37  ;;  %v17491_v32 = vmax.f32 %v14964_v63, 0.0  ;;  %v4102_v59 = vunpack.c.l.b16 %v13077_v4  ;;  %v4103_v57 = vunpack.c.h.b16 %v13077_v4  ;;  %vm15268_vm12 = vmor %vm4352_vm8, %vm17371_vm6 }
 0x22a   :  { %v15256_v29 = vmax.f32 %v17490_v9, %v1681_v51  ;;  %v4227_v22 = vsel %vm17373_vm1, %v4100_v10, %v4225_v41  ;;  %v4235_v49 = vsel %vm17373_vm1, %v4101_v0, %v4234_v21  ;;  %v1842_v6 = vcombine.high %v1834_v33, %v1834_v33 }
 0x22b   :  { %v15260_v13 = vmax.f32 %v17491_v32, %v1628_v35  ;;  %v1843_v46 = vcombine.high %v1841_v8, %v1841_v8  ;;  %v2148_v28 = vrot.slane %v1834_v33, %v15183_v11  ;;  %v2164_v54 = vrot.slane %v1841_v8, %v15183_v11 }
 0x22c   :  { %v4229_v63 = vsel %vm17372_vm11, %v4102_v59, %v4227_v22  ;;  %v4236_v31 = vsel %vm17372_vm11, %v4103_v57, %v4235_v49  ;;  %v2156_v52 = vrot.slane %v1842_v6, %v15183_v11  ;;  %vm17496_vm8 = vcmask 1045509  }
 0x22d   :  { %v1844_v1 = vcombine.low %v15256_v29, %v15260_v13  ;;  %v1845_v38 = vcombine.high %v15256_v29, %v15260_v13  ;;  %v4335_v36 = vpack.c.b16 %v4236_v31, %v4229_v63  ;;  %v2149_v53 = vcombine.high %v2148_v28, %v2148_v28  ;;  %vm17497_vm6 = vmmov %vm17496_vm8 }
 0x22e   :  { %v2165_v20 = vcombine.high %v2164_v54, %v2164_v54  ;;  %v2172_v18 = vrot.slane %v1843_v46, %v15183_v11  ;;  %v2832_v47 = vsel %vm2718_vm2, %v2148_v28, -inf  ;;  %v2860_v35 = vsel %vm2718_vm2, %v2164_v54, -inf }
 0x22f   :  { %v15283_v48 = vrot.slane %v1844_v1, %v15183_v11  ;;  %4354 = vst.msk [vmem:[#allocation3 + $0x8] sm:$0xff] %vm15268_vm12, %v4335_v36  ;;  %v2157_v39 = vcombine.high %v2156_v52, %v2156_v52  ;;  %v2833_v43 = vrot.slane %v2832_v47, 4  ;;  %v2839_v37 = vsel %vm2726_vm5, %v2149_v53, -inf }
 0x230   :  { %v2846_v14 = vsel %vm2718_vm2, %v2156_v52, -inf  ;;  %v2173_v55 = vcombine.high %v2172_v18, %v2172_v18  ;;  %v2840_v10 = vrot.slane %v2839_v37, 4  ;;  %v2861_v60 = vrot.slane %v2860_v35, 4 }
 0x231   :  { %v2847_v0 = vrot.slane %v2846_v14, 4  ;;  %v2834_v4 = vmax.f32 %v2832_v47, %v2833_v43  ;;  %v2853_v33 = vsel %vm2726_vm5, %v2157_v39, -inf  ;;  %v2867_v8 = vsel %vm2726_vm5, %v2165_v20, -inf }
 0x232   :  { %v2874_v51 = vsel %vm2718_vm2, %v2172_v18, -inf  ;;  %v2841_v41 = vmax.f32 %v2839_v37, %v2840_v10  ;;  %v2854_v9 = vrot.slane %v2853_v33, 4  ;;  %v2862_v29 = vmax.f32 %v2860_v35, %v2861_v60 }
 0x233   :  { %v2848_v21 = vmax.f32 %v2846_v14, %v2847_v0  ;;  %v2835_v32 = vrot.slane %v2834_v4, 2  ;;  %v2868_v13 = vrot.slane %v2867_v8, 4  ;;  %v2875_v59 = vrot.slane %v2874_v51, 4 }
 0x234   :  { %v2881_v57 = vsel %vm2726_vm5, %v2173_v55, -inf  ;;  %v2842_v22 = vrot.slane %v2841_v41, 2  ;;  %v2855_v6 = vmax.f32 %v2853_v33, %v2854_v9  ;;  %v2863_v46 = vrot.slane %v2862_v29, 2 }
 0x235   :  { %v2849_v49 = vrot.slane %v2848_v21, 2  ;;  %v2836_v28 = vmax.f32 %v2834_v4, %v2835_v32  ;;  %v2869_v54 = vmax.f32 %v2867_v8, %v2868_v13  ;;  %v2876_v63 = vmax.f32 %v2874_v51, %v2875_v59 }
 0x236   :  { %v2882_v31 = vrot.slane %v2881_v57, 4  ;;  %v2843_v1 = vmax.f32 %v2841_v41, %v2842_v22  ;;  %v2856_v53 = vrot.slane %v2855_v6, 2  ;;  %v2864_v52 = vmax.f32 %v2862_v29, %v2863_v46 }
 0x237   :  { %v2850_v36 = vmax.f32 %v2848_v21, %v2849_v49  ;;  %v2837_v20 = vrot.slane %v2836_v28, 1  ;;  %v2870_v18 = vrot.slane %v2869_v54, 2  ;;  %v2877_v47 = vrot.slane %v2876_v63, 2 }
 0x238   :  { %v2883_v35 = vmax.f32 %v2881_v57, %v2882_v31  ;;  %v2844_v39 = vrot.slane %v2843_v1, 1  ;;  %v2857_v37 = vmax.f32 %v2855_v6, %v2856_v53  ;;  %v2865_v14 = vrot.slane %v2864_v52, 1 }
 0x239   :  { %v2851_v43 = vrot.slane %v2850_v36, 1  ;;  %v2838_v55 = vmax.f32 %v2836_v28, %v2837_v20  ;;  %v2871_v10 = vmax.f32 %v2869_v54, %v2870_v18  ;;  %v2878_v0 = vmax.f32 %v2876_v63, %v2877_v47 }
 0x23a   :  { %v2884_v60 = vrot.slane %v2883_v35, 2  ;;  %v2845_v4 = vmax.f32 %v2843_v1, %v2844_v39  ;;  %v2858_v8 = vrot.slane %v2857_v37, 1  ;;  %v2866_v51 = vmax.f32 %v2864_v52, %v2865_v14 }
 0x23b   :  { %v2852_v33 = vmax.f32 %v2850_v36, %v2851_v43  ;;  %v2872_v41 = vrot.slane %v2871_v10, 1  ;;  %v2879_v21 = vrot.slane %v2878_v0, 1  ;;  %v1859_v29 = vrot.slane %v1845_v38, %v15183_v11 }
 0x23c   :  { %v2885_v9 = vmax.f32 %v2883_v35, %v2884_v60  ;;  %v2859_v32 = vmax.f32 %v2857_v37, %v2858_v8  ;;  %v13078_v13 = vpack.c.bf16 %v2845_v4, %v2838_v55  ;;  %v1860_v59 = vcombine.high %v15283_v48, %v15283_v48 }
 0x23d   :  { %v2180_v57 = vrot.slane %v15283_v48, %v15183_v11  ;;  %v2873_v22 = vmax.f32 %v2871_v10, %v2872_v41  ;;  %v2880_v49 = vmax.f32 %v2878_v0, %v2879_v21  ;;  %v1861_v46 = vcombine.high %v1859_v29, %v1859_v29 }
 0x23e   :  { %v2886_v6 = vrot.slane %v2885_v9, 1  ;;  %v13079_v28 = vpack.c.bf16 %v2859_v32, %v2852_v33  ;;  %v4104_v54 = vunpack.c.l.b16 %v13078_v13  ;;  %v4105_v63 = vunpack.c.h.b16 %v13078_v13 }
 0x23f   :  { %v2181_v31 = vcombine.high %v2180_v57, %v2180_v57  ;;  %v13080_v36 = vpack.c.bf16 %v2873_v22, %v2866_v51  ;;  %v2188_v38 = vrot.slane %v1860_v59, %v15183_v11  ;;  %v2196_v53 = vrot.slane %v1859_v29, %v15183_v11 }
 0x240   :  { %v2887_v1 = vmax.f32 %v2885_v9, %v2886_v6  ;;  %v4106_v52 = vunpack.c.l.b16 %v13079_v28  ;;  %v4107_v20 = vunpack.c.h.b16 %v13079_v28  ;;  %v2204_v18 = vrot.slane %v1861_v46, %v15183_v11  ;;  %v1632_v9 = vpop.permute.xlu1 %1631 }
 0x241   :  { %v2888_v48 = vsel %vm2718_vm2, %v2180_v57, -inf  ;;  %v4108_v35 = vunpack.c.l.b16 %v13080_v36  ;;  %v4109_v39 = vunpack.c.h.b16 %v13080_v36  ;;  %v2189_v43 = vcombine.high %v2188_v38, %v2188_v38  ;;  %v1630_v57 = vpop.permute.xlu0 %1629 }
 0x242   :  { %v13081_v47 = vpack.c.bf16 %v2887_v1, %v2880_v49  ;;  %v4237_v37 = vsel %vm17377_vm10, %v4106_v52, %v4104_v54  ;;  %v4244_v14 = vsel %vm17377_vm10, %v4107_v20, %v4105_v63  ;;  %v2197_v55 = vcombine.high %v2196_v53, %v2196_v53 }
 0x243   :  { %v2205_v10 = vcombine.high %v2204_v18, %v2204_v18  ;;  %v4238_v4 = vsel %vm17376_vm13, %v4108_v35, %v4237_v37  ;;  %v4245_v33 = vsel %vm17376_vm13, %v4109_v39, %v4244_v14  ;;  %v2889_v8 = vrot.slane %v2888_v48, 4 }
 0x244   :  { %v4110_v0 = vunpack.c.l.b16 %v13081_v47  ;;  %v4111_v60 = vunpack.c.h.b16 %v13081_v47  ;;  %v2895_v51 = vsel %vm2726_vm5, %v2181_v31, -inf  ;;  %v2902_v41 = vsel %vm2718_vm2, %v2188_v38, -inf  ;;  %v1636_v14 = vpop.permute.xlu1 %1635 }
 0x245   :  { %v2909_v21 = vsel %vm2726_vm5, %v2189_v43, -inf  ;;  %v2896_v13 = vrot.slane %v2895_v51, 4  ;;  %v2903_v59 = vrot.slane %v2902_v41, 4  ;;  %v2890_v22 = vmax.f32 %v2888_v48, %v2889_v8 }
 0x246   :  { %v15310_v29 = vsel %vm17375_vm3, %v4110_v0, %v4238_v4  ;;  %v15313_v32 = vsel %vm17375_vm3, %v4111_v60, %v4245_v33  ;;  %v2910_v49 = vrot.slane %v2909_v21, 4  ;;  %v2916_v6 = vsel %vm2718_vm2, %v2196_v53, -inf }
 0x247   :  { %v2923_v46 = vsel %vm2726_vm5, %v2197_v55, -inf  ;;  %v2897_v28 = vmax.f32 %v2895_v51, %v2896_v13  ;;  %v2904_v54 = vmax.f32 %v2902_v41, %v2903_v59  ;;  %v2917_v63 = vrot.slane %v2916_v6, 4 }
 0x248   :  { %v2924_v31 = vrot.slane %v2923_v46, 4  ;;  %v2891_v1 = vrot.slane %v2890_v22, 2  ;;  %v2911_v36 = vmax.f32 %v2909_v21, %v2910_v49  ;;  %v2930_v38 = vsel %vm2718_vm2, %v2204_v18, -inf  ;;  %v1634_v18 = vpop.permute.xlu0 %1633 }
 0x249   :  { %v2937_v52 = vsel %vm2726_vm5, %v2205_v10, -inf  ;;  %v2898_v20 = vrot.slane %v2897_v28, 2  ;;  %v2905_v47 = vrot.slane %v2904_v54, 2  ;;  %v2918_v35 = vmax.f32 %v2916_v6, %v2917_v63 }
 0x24a   :  { %v2925_v39 = vmax.f32 %v2923_v46, %v2924_v31  ;;  %v2892_v48 = vmax.f32 %v2890_v22, %v2891_v1  ;;  %v2912_v43 = vrot.slane %v2911_v36, 2  ;;  %v2931_v37 = vrot.slane %v2930_v38, 4 }
 0x24b   :  { %v2938_v53 = vrot.slane %v2937_v52, 4  ;;  %v2899_v55 = vmax.f32 %v2897_v28, %v2898_v20  ;;  %v2906_v0 = vmax.f32 %v2904_v54, %v2905_v47  ;;  %v2919_v60 = vrot.slane %v2918_v35, 2 }
 0x24c   :  { %v2926_v4 = vrot.slane %v2925_v39, 2  ;;  %v2893_v33 = vrot.slane %v2892_v48, 1  ;;  %v2913_v8 = vmax.f32 %v2911_v36, %v2912_v43  ;;  %v2932_v51 = vmax.f32 %v2930_v38, %v2931_v37  ;;  %v1640_v38 = vpop.permute.xlu1 %1639 }
 0x24d   :  { %v2939_v41 = vmax.f32 %v2937_v52, %v2938_v53  ;;  %v2900_v21 = vrot.slane %v2899_v55, 1  ;;  %v2907_v10 = vrot.slane %v2906_v0, 1  ;;  %v2920_v13 = vmax.f32 %v2918_v35, %v2919_v60 }
 0x24e   :  { %v2927_v59 = vmax.f32 %v2925_v39, %v2926_v4  ;;  %v2894_v49 = vmax.f32 %v2892_v48, %v2893_v33  ;;  %v2914_v6 = vrot.slane %v2913_v8, 1  ;;  %v2933_v22 = vrot.slane %v2932_v51, 2  ;;  %v1638_v4 = vpop.permute.xlu0 %1637 }
 0x24f   :  { %v2940_v46 = vrot.slane %v2939_v41, 2  ;;  %v2901_v63 = vmax.f32 %v2899_v55, %v2900_v21  ;;  %v2908_v31 = vmax.f32 %v2906_v0, %v2907_v10  ;;  %v2921_v1 = vrot.slane %v2920_v13, 1 }
 0x250   :  { %v2928_v28 = vrot.slane %v2927_v59, 1  ;;  %v2915_v54 = vmax.f32 %v2913_v8, %v2914_v6  ;;  %v2934_v20 = vmax.f32 %v2932_v51, %v2933_v22  ;;  %v1682_v36 = vsel %vm1677_vm4, %v1630_v57, %v1632_v9 }
 0x251   :  { %v2941_v47 = vmax.f32 %v2939_v41, %v2940_v46  ;;  %v2922_v52 = vmax.f32 %v2920_v13, %v2921_v1  ;;  %v13082_v37 = vpack.c.bf16 %v2901_v63, %v2894_v49  ;;  %v17494_v35 = vmax.f32 %v14967_v19, 0.0  ;;  %v15331_v63 = vpop.permute.xlu1 %1643 }
 0x252   :  { %v2929_v43 = vmax.f32 %v2927_v59, %v2928_v28  ;;  %v2935_v48 = vrot.slane %v2934_v20, 1  ;;  %v13083_v60 = vpack.c.bf16 %v2915_v54, %v2908_v31  ;;  %v17495_v55 = vmax.f32 %v14984_v17, 0.0 }
 0x253   :  { %v1734_v39 = vmax.f32 %v17494_v35, %v1682_v36  ;;  %v2942_v53 = vrot.slane %v2941_v47, 1  ;;  %v4112_v8 = vunpack.c.l.b16 %v13082_v37  ;;  %v4113_v51 = vunpack.c.h.b16 %v13082_v37 }
 0x254   :  { %v1735_v0 = vmax.f32 %v17495_v55, %v1632_v9  ;;  %v13084_v33 = vpack.c.bf16 %v2929_v43, %v2922_v52  ;;  %v1683_v41 = vsel %vm1677_vm4, %v1634_v18, %v1636_v14  ;;  %v2936_v57 = vmax.f32 %v2934_v20, %v2935_v48  ;;  %v1642_v52 = vpop.permute.xlu0 %1641 }
 0x255   :  { %v2943_v21 = vmax.f32 %v2941_v47, %v2942_v53  ;;  %v4114_v10 = vunpack.c.l.b16 %v13083_v60  ;;  %v4115_v13 = vunpack.c.h.b16 %v13083_v60  ;;  %v4240_v19 = vsel %vm17374_vm15, %v4112_v8, %v15310_v29 }
 0x256   :  { %v4116_v59 = vunpack.c.l.b16 %v13084_v33  ;;  %v4117_v49 = vunpack.c.h.b16 %v13084_v33  ;;  %v4247_v6 = vsel %vm17374_vm15, %v4113_v51, %v15313_v32  ;;  %v1862_v46 = vcombine.low %v1734_v39, %v1735_v0 }
 0x257   :  { %v13085_v17 = vpack.c.bf16 %v2943_v21, %v2936_v57  ;;  %v4241_v9 = vsel %vm17496_vm8, %v4114_v10, %v4240_v19  ;;  %v4248_v22 = vsel %vm17497_vm6, %v4115_v13, %v4247_v6  ;;  %v1863_v1 = vcombine.high %v1734_v39, %v1735_v0  ;;  %vm17503_vm8 = vmmov %vm17497_vm6 }
 0x258   :  { %v4242_v18 = vsel %vm17373_vm1, %v4116_v59, %v4241_v9  ;;  %v4249_v31 = vsel %vm17373_vm1, %v4117_v49, %v4248_v22  ;;  %v17498_v28 = vmax.f32 %v14987_v2, 0.0  ;;  %v1870_v32 = vrot.slane %v1862_v46, %v15183_v11 }
 0x259   :  { %v4118_v29 = vunpack.c.l.b16 %v13085_v17  ;;  %v4119_v20 = vunpack.c.h.b16 %v13085_v17  ;;  %v17499_v47 = vmax.f32 %v15002_v40, 0.0  ;;  %v1877_v43 = vrot.slane %v1863_v1, %v15183_v11 }
 0x25a   :  { %v15337_v54 = vmax.f32 %v17498_v28, %v1683_v41  ;;  %v15346_v37 = vsel %vm1677_vm4, %v1638_v4, %v1640_v38  ;;  %v17500_v35 = vmax.f32 %v15020_v61, 0.0  ;;  %v15354_v2 = vsel %vm1677_vm4, %v1642_v52, %v15331_v63 }
 0x25b   :  { %v15342_v36 = vmax.f32 %v17499_v47, %v1636_v14  ;;  %v4243_v48 = vsel %vm17372_vm11, %v4118_v29, %v4242_v18  ;;  %v4250_v40 = vsel %vm17372_vm11, %v4119_v20, %v4249_v31  ;;  %v1878_v14 = vcombine.high %v1870_v32, %v1870_v32 }
 0x25c   :  { %v15350_v39 = vmax.f32 %v17500_v35, %v1640_v38  ;;  %v2212_v53 = vrot.slane %v1870_v32, %v15183_v11  ;;  %v4336_v60 = vpack.c.b16 %v4250_v40, %v4243_v48  ;;  %v1879_v55 = vcombine.high %v1877_v43, %v1877_v43 }
 0x25d   :  { %v2228_v0 = vrot.slane %v1877_v43, %v15183_v11  ;;  %v1880_v61 = vcombine.low %v15337_v54, %v15342_v36  ;;  %v2220_v4 = vrot.slane %v1878_v14, %v15183_v11  ;;  %v1881_v8 = vcombine.high %v15337_v54, %v15342_v36 }
 0x25e   :  { %v2213_v38 = vcombine.high %v2212_v53, %v2212_v53  ;;  %v2944_v33 = vsel %vm2718_vm2, %v2212_v53, -inf  ;;  %4355 = vst.msk [vmem:[#allocation3 + $0x10] sm:$0xff] %vm15268_vm12, %v4336_v60  ;;  %v2236_v41 = vrot.slane %v1879_v55, %v15183_v11 }
 0x25f   :  { %v2229_v51 = vcombine.high %v2228_v0, %v2228_v0  ;;  %v2945_v57 = vrot.slane %v2944_v33, 4  ;;  %v2972_v21 = vsel %vm2718_vm2, %v2228_v0, -inf  ;;  %v2221_v10 = vcombine.high %v2220_v4, %v2220_v4 }
 0x260   :  { %v2951_v13 = vsel %vm2726_vm5, %v2213_v38, -inf  ;;  %v2958_v59 = vsel %vm2718_vm2, %v2220_v4, -inf  ;;  %v2973_v49 = vrot.slane %v2972_v21, 4  ;;  %v2237_v19 = vcombine.high %v2236_v41, %v2236_v41 }
 0x261   :  { %v2946_v6 = vmax.f32 %v2944_v33, %v2945_v57  ;;  %v2952_v17 = vrot.slane %v2951_v13, 4  ;;  %v2959_v9 = vrot.slane %v2958_v59, 4  ;;  %v2965_v22 = vsel %vm2726_vm5, %v2221_v10, -inf }
 0x262   :  { %v2974_v46 = vmax.f32 %v2972_v21, %v2973_v49  ;;  %v2979_v18 = vsel %vm2726_vm5, %v2229_v51, -inf  ;;  %v2986_v31 = vsel %vm2718_vm2, %v2236_v41, -inf  ;;  %v2966_v29 = vrot.slane %v2965_v22, 4 }
 0x263   :  { %v2947_v1 = vrot.slane %v2946_v6, 2  ;;  %v2953_v28 = vmax.f32 %v2951_v13, %v2952_v17  ;;  %v2960_v54 = vmax.f32 %v2958_v59, %v2959_v9  ;;  %v2980_v32 = vrot.slane %v2979_v18, 4 }
 0x264   :  { %v2975_v20 = vrot.slane %v2974_v46, 2  ;;  %v2987_v47 = vrot.slane %v2986_v31, 4  ;;  %v2993_v36 = vsel %vm2726_vm5, %v2237_v19, -inf  ;;  %v2967_v48 = vmax.f32 %v2965_v22, %v2966_v29 }
 0x265   :  { %v2948_v52 = vmax.f32 %v2946_v6, %v2947_v1  ;;  %v2954_v43 = vrot.slane %v2953_v28, 2  ;;  %v2961_v35 = vrot.slane %v2960_v54, 2  ;;  %v2981_v14 = vmax.f32 %v2979_v18, %v2980_v32 }
 0x266   :  { %v2976_v40 = vmax.f32 %v2974_v46, %v2975_v20  ;;  %v2988_v53 = vmax.f32 %v2986_v31, %v2987_v47  ;;  %v2994_v60 = vrot.slane %v2993_v36, 4  ;;  %v2968_v4 = vrot.slane %v2967_v48, 2 }
 0x267   :  { %v2949_v55 = vrot.slane %v2948_v52, 1  ;;  %v2955_v0 = vmax.f32 %v2953_v28, %v2954_v43  ;;  %v2962_v38 = vmax.f32 %v2960_v54, %v2961_v35  ;;  %v2982_v51 = vrot.slane %v2981_v14, 2 }
 0x268   :  { %v2977_v33 = vrot.slane %v2976_v40, 1  ;;  %v2989_v41 = vrot.slane %v2988_v53, 2  ;;  %v2995_v57 = vmax.f32 %v2993_v36, %v2994_v60  ;;  %v2969_v59 = vmax.f32 %v2967_v48, %v2968_v4 }
 0x269   :  { %v2950_v21 = vmax.f32 %v2948_v52, %v2949_v55  ;;  %v2956_v10 = vrot.slane %v2955_v0, 1  ;;  %v2963_v13 = vrot.slane %v2962_v38, 1  ;;  %v2983_v19 = vmax.f32 %v2981_v14, %v2982_v51 }
 0x26a   :  { %v2978_v49 = vmax.f32 %v2976_v40, %v2977_v33  ;;  %v2990_v6 = vmax.f32 %v2988_v53, %v2989_v41  ;;  %v2996_v17 = vrot.slane %v2995_v57, 2  ;;  %v2970_v46 = vrot.slane %v2969_v59, 1 }
 0x26b   :  { %v2957_v9 = vmax.f32 %v2955_v0, %v2956_v10  ;;  %v2964_v22 = vmax.f32 %v2962_v38, %v2963_v13  ;;  %v1888_v18 = vrot.slane %v1880_v61, %v15183_v11  ;;  %v2984_v31 = vrot.slane %v2983_v19, 1 }
 0x26c   :  { %v2991_v1 = vrot.slane %v2990_v6, 1  ;;  %v2997_v28 = vmax.f32 %v2995_v57, %v2996_v17  ;;  %v1895_v54 = vrot.slane %v1881_v8, %v15183_v11  ;;  %v2971_v29 = vmax.f32 %v2969_v59, %v2970_v46 }
 0x26d   :  { %v13086_v20 = vpack.c.bf16 %v2957_v9, %v2950_v21  ;;  %v1896_v32 = vcombine.high %v1888_v18, %v1888_v18  ;;  %v2244_v47 = vrot.slane %v1888_v18, %v15183_v11  ;;  %v2985_v36 = vmax.f32 %v2983_v19, %v2984_v31 }
 0x26e   :  { %v2992_v52 = vmax.f32 %v2990_v6, %v2991_v1  ;;  %v2998_v43 = vrot.slane %v2997_v28, 1  ;;  %v1897_v35 = vcombine.high %v1895_v54, %v1895_v54  ;;  %v13087_v48 = vpack.c.bf16 %v2971_v29, %v2964_v22 }
 0x26f   :  { %v4120_v40 = vunpack.c.l.b16 %v13086_v20  ;;  %v4121_v14 = vunpack.c.h.b16 %v13086_v20  ;;  %v2245_v53 = vcombine.high %v2244_v47, %v2244_v47  ;;  %v13088_v61 = vpack.c.bf16 %v2985_v36, %v2978_v49 }
 0x270   :  { %v2999_v60 = vmax.f32 %v2997_v28, %v2998_v43  ;;  %v2252_v55 = vrot.slane %v1896_v32, %v15183_v11  ;;  %v2260_v0 = vrot.slane %v1895_v54, %v15183_v11  ;;  %v4122_v8 = vunpack.c.l.b16 %v13087_v48 }
 0x271   :  { %v4123_v38 = vunpack.c.h.b16 %v13087_v48  ;;  %v2268_v4 = vrot.slane %v1897_v35, %v15183_v11  ;;  %v3000_v33 = vsel %vm2718_vm2, %v2244_v47, -inf  ;;  %v4124_v41 = vunpack.c.l.b16 %v13088_v61 }
 0x272   :  { %v13089_v51 = vpack.c.bf16 %v2999_v60, %v2992_v52  ;;  %v4125_v57 = vunpack.c.h.b16 %v13088_v61  ;;  %v2253_v21 = vcombine.high %v2252_v55, %v2252_v55  ;;  %v4251_v10 = vsel %vm17377_vm10, %v4122_v8, %v4120_v40 }
 0x273   :  { %v4258_v13 = vsel %vm17377_vm10, %v4123_v38, %v4121_v14  ;;  %v2261_v59 = vcombine.high %v2260_v0, %v2260_v0  ;;  %v2269_v49 = vcombine.high %v2268_v4, %v2268_v4  ;;  %v4252_v17 = vsel %vm17376_vm13, %v4124_v41, %v4251_v10 }
 0x274   :  { %v4126_v19 = vunpack.c.l.b16 %v13089_v51  ;;  %v4127_v6 = vunpack.c.h.b16 %v13089_v51  ;;  %v4259_v9 = vsel %vm17376_vm13, %v4125_v57, %v4258_v13  ;;  %v3001_v22 = vrot.slane %v3000_v33, 4 }
 0x275   :  { %v3007_v46 = vsel %vm2726_vm5, %v2245_v53, -inf  ;;  %v3014_v18 = vsel %vm2718_vm2, %v2252_v55, -inf  ;;  %v3021_v31 = vsel %vm2726_vm5, %v2253_v21, -inf  ;;  %v3028_v47 = vsel %vm2718_vm2, %v2260_v0, -inf }
 0x276   :  { %v15391_v1 = vsel %vm17375_vm3, %v4126_v19, %v4252_v17  ;;  %v15394_v28 = vsel %vm17375_vm3, %v4127_v6, %v4259_v9  ;;  %v3008_v54 = vrot.slane %v3007_v46, 4  ;;  %v3015_v29 = vrot.slane %v3014_v18, 4 }
 0x277   :  { %v3002_v20 = vmax.f32 %v3000_v33, %v3001_v22  ;;  %v3022_v32 = vrot.slane %v3021_v31, 4  ;;  %v3035_v36 = vsel %vm2726_vm5, %v2261_v59, -inf  ;;  %v3029_v35 = vrot.slane %v3028_v47, 4 }
 0x278   :  { %v3009_v52 = vmax.f32 %v3007_v46, %v3008_v54  ;;  %v3016_v43 = vmax.f32 %v3014_v18, %v3015_v29  ;;  %v3036_v48 = vrot.slane %v3035_v36, 4  ;;  %v3042_v53 = vsel %vm2718_vm2, %v2268_v4, -inf }
 0x279   :  { %v3003_v40 = vrot.slane %v3002_v20, 2  ;;  %v3023_v14 = vmax.f32 %v3021_v31, %v3022_v32  ;;  %v3049_v60 = vsel %vm2726_vm5, %v2269_v49, -inf  ;;  %v3030_v8 = vmax.f32 %v3028_v47, %v3029_v35 }
 0x27a   :  { %v3010_v61 = vrot.slane %v3009_v52, 2  ;;  %v3017_v55 = vrot.slane %v3016_v43, 2  ;;  %v3037_v38 = vmax.f32 %v3035_v36, %v3036_v48  ;;  %v3043_v41 = vrot.slane %v3042_v53, 4 }
 0x27b   :  { %v3004_v33 = vmax.f32 %v3002_v20, %v3003_v40  ;;  %v3024_v51 = vrot.slane %v3023_v14, 2  ;;  %v3050_v0 = vrot.slane %v3049_v60, 4  ;;  %v3031_v10 = vrot.slane %v3030_v8, 2 }
 0x27c   :  { %v3011_v57 = vmax.f32 %v3009_v52, %v3010_v61  ;;  %v3018_v21 = vmax.f32 %v3016_v43, %v3017_v55  ;;  %v3038_v13 = vrot.slane %v3037_v38, 2  ;;  %v3044_v6 = vmax.f32 %v3042_v53, %v3043_v41 }
 0x27d   :  { %v3005_v59 = vrot.slane %v3004_v33, 1  ;;  %v3025_v19 = vmax.f32 %v3023_v14, %v3024_v51  ;;  %v3051_v17 = vmax.f32 %v3049_v60, %v3050_v0  ;;  %v3032_v22 = vmax.f32 %v3030_v8, %v3031_v10 }
 0x27e   :  { %v3012_v9 = vrot.slane %v3011_v57, 1  ;;  %v3019_v4 = vrot.slane %v3018_v21, 1  ;;  %v3039_v49 = vmax.f32 %v3037_v38, %v3038_v13  ;;  %v3045_v31 = vrot.slane %v3044_v6, 2 }
 0x27f   :  { %v3006_v46 = vmax.f32 %v3004_v33, %v3005_v59  ;;  %v3026_v18 = vrot.slane %v3025_v19, 1  ;;  %v3052_v54 = vrot.slane %v3051_v17, 2  ;;  %v3033_v32 = vrot.slane %v3032_v22, 1 }
 0x280   :  { %v3013_v29 = vmax.f32 %v3011_v57, %v3012_v9  ;;  %v3020_v20 = vmax.f32 %v3018_v21, %v3019_v4  ;;  %v3040_v47 = vrot.slane %v3039_v49, 1  ;;  %v3046_v52 = vmax.f32 %v3044_v6, %v3045_v31 }
 0x281   :  { %v3027_v36 = vmax.f32 %v3025_v19, %v3026_v18  ;;  %v3053_v43 = vmax.f32 %v3051_v17, %v3052_v54  ;;  %v17501_v35 = vmax.f32 %v15005_v58, 0.0  ;;  %v3034_v40 = vmax.f32 %v3032_v22, %v3033_v32 }
 0x282   :  { %v3041_v14 = vmax.f32 %v3039_v49, %v3040_v47  ;;  %v13090_v53 = vpack.c.bf16 %v3013_v29, %v3006_v46  ;;  %v17502_v60 = vmax.f32 %v15023_v62, 0.0  ;;  %v3047_v55 = vrot.slane %v3046_v52, 1 }
 0x283   :  { %v1738_v48 = vmax.f32 %v17501_v35, %v15346_v37  ;;  %v3054_v8 = vrot.slane %v3053_v43, 1  ;;  %v13091_v38 = vpack.c.bf16 %v3027_v36, %v3020_v20  ;;  %v17504_v49 = vmax.f32 %v15038_v27, 0.0 }
 0x284   :  { %v15406_v61 = vmax.f32 %v17502_v60, %v15354_v2  ;;  %v13092_v51 = vpack.c.bf16 %v3041_v14, %v3034_v40  ;;  %v4128_v41 = vunpack.c.l.b16 %v13090_v53  ;;  %v4129_v0 = vunpack.c.h.b16 %v13090_v53 }
 0x285   :  { %v1898_v33 = vcombine.low %v1738_v48, %v15350_v39  ;;  %v1899_v57 = vcombine.high %v1738_v48, %v15350_v39  ;;  %v3048_v58 = vmax.f32 %v3046_v52, %v3047_v55  ;;  %v3055_v37 = vmax.f32 %v3053_v43, %v3054_v8 }
 0x286   :  { %v4130_v21 = vunpack.c.l.b16 %v13091_v38  ;;  %v4131_v10 = vunpack.c.h.b16 %v13091_v38  ;;  %v4132_v13 = vunpack.c.l.b16 %v13092_v51  ;;  %v4133_v59 = vunpack.c.h.b16 %v13092_v51 }
 0x287   :  { %v4254_v62 = vsel %vm17374_vm15, %v4128_v41, %v15391_v1  ;;  %v4261_v2 = vsel %vm17374_vm15, %v4129_v0, %v15394_v28  ;;  %v13093_v19 = vpack.c.bf16 %v3055_v37, %v3048_v58  ;;  %v1906_v9 = vrot.slane %v1898_v33, %v15183_v11 }
 0x288   :  { %v4255_v6 = vsel %vm17497_vm6, %v4130_v21, %v4254_v62  ;;  %v4262_v17 = vsel %vm17503_vm8, %v4131_v10, %v4261_v2  ;;  %v1913_v22 = vrot.slane %v1899_v57, %v15183_v11  ;;  %v15423_v1 = vmax.f32 %v17504_v49, %v15331_v63  ;;  %vm17507_vm8 = vmmov %vm17497_vm6 }
 0x289   :  { %v4256_v39 = vsel %vm17373_vm1, %v4132_v13, %v4255_v6  ;;  %v4263_v4 = vsel %vm17373_vm1, %v4133_v59, %v4262_v17  ;;  %v4134_v46 = vunpack.c.l.b16 %v13093_v19  ;;  %v4135_v28 = vunpack.c.h.b16 %v13093_v19 }
 0x28a   :  { %v1914_v18 = vcombine.high %v1906_v9, %v1906_v9  ;;  %v2276_v31 = vrot.slane %v1906_v9, %v15183_v11  ;;  %v1915_v54 = vcombine.high %v1913_v22, %v1913_v22  ;;  %v2292_v29 = vrot.slane %v1913_v22, %v15183_v11 }
 0x28b   :  { %v1916_v20 = vcombine.low %v15406_v61, %v15423_v1  ;;  %v1917_v32 = vcombine.high %v15406_v61, %v15423_v1  ;;  %v4257_v47 = vsel %vm17372_vm11, %v4134_v46, %v4256_v39  ;;  %v4264_v27 = vsel %vm17372_vm11, %v4135_v28, %v4263_v4 }
 0x28c   :  { %v2277_v63 = vcombine.high %v2276_v31, %v2276_v31  ;;  %v2284_v36 = vrot.slane %v1914_v18, %v15183_v11  ;;  %v4337_v52 = vpack.c.b16 %v4264_v27, %v4257_v47  ;;  %v2293_v43 = vcombine.high %v2292_v29, %v2292_v29 }
 0x28d   :  { %v2300_v35 = vrot.slane %v1915_v54, %v15183_v11  ;;  %v3056_v48 = vsel %vm2718_vm2, %v2276_v31, -inf  ;;  %v3084_v33 = vsel %vm2718_vm2, %v2292_v29, -inf }
 0x28e   :  { %v2285_v40 = vcombine.high %v2284_v36, %v2284_v36  ;;  %v3057_v14 = vrot.slane %v3056_v48, 4  ;;  %v3063_v53 = vsel %vm2726_vm5, %v2277_v63, -inf  ;;  %v3070_v60 = vsel %vm2718_vm2, %v2284_v36, -inf  ;;  %4356 = vst.msk [vmem:[#allocation3 + $0x18] sm:$0xff] %vm15268_vm12, %v4337_v52 }
 0x28f   :  { %v2301_v55 = vcombine.high %v2300_v35, %v2300_v35  ;;  %v3064_v8 = vrot.slane %v3063_v53, 4  ;;  %v3071_v38 = vrot.slane %v3070_v60, 4  ;;  %v3085_v0 = vrot.slane %v3084_v33, 4 }
 0x290   :  { %v3058_v51 = vmax.f32 %v3056_v48, %v3057_v14  ;;  %v3077_v41 = vsel %vm2726_vm5, %v2285_v40, -inf  ;;  %v3091_v57 = vsel %vm2726_vm5, %v2293_v43, -inf  ;;  %v3098_v62 = vsel %vm2718_vm2, %v2300_v35, -inf }
 0x291   :  { %v3065_v58 = vmax.f32 %v3063_v53, %v3064_v8  ;;  %v3072_v37 = vmax.f32 %v3070_v60, %v3071_v38  ;;  %v3078_v21 = vrot.slane %v3077_v41, 4  ;;  %v3092_v10 = vrot.slane %v3091_v57, 4 }
 0x292   :  { %v3059_v13 = vrot.slane %v3058_v51, 2  ;;  %v3086_v59 = vmax.f32 %v3084_v33, %v3085_v0  ;;  %v3105_v2 = vsel %vm2726_vm5, %v2301_v55, -inf  ;;  %v3099_v22 = vrot.slane %v3098_v62, 4 }
 0x293   :  { %v3066_v19 = vrot.slane %v3065_v58, 2  ;;  %v3073_v6 = vrot.slane %v3072_v37, 2  ;;  %v3079_v17 = vmax.f32 %v3077_v41, %v3078_v21  ;;  %v3093_v9 = vmax.f32 %v3091_v57, %v3092_v10 }
 0x294   :  { %v3060_v39 = vmax.f32 %v3058_v51, %v3059_v13  ;;  %v3087_v4 = vrot.slane %v3086_v59, 2  ;;  %v3106_v49 = vrot.slane %v3105_v2, 4  ;;  %v3100_v47 = vmax.f32 %v3098_v62, %v3099_v22 }
 0x295   :  { %v3067_v46 = vmax.f32 %v3065_v58, %v3066_v19  ;;  %v3074_v28 = vmax.f32 %v3072_v37, %v3073_v6  ;;  %v3080_v18 = vrot.slane %v3079_v17, 2  ;;  %v3094_v31 = vrot.slane %v3093_v9, 2 }
 0x296   :  { %v3061_v54 = vrot.slane %v3060_v39, 1  ;;  %v3088_v29 = vmax.f32 %v3086_v59, %v3087_v4  ;;  %v3107_v27 = vmax.f32 %v3105_v2, %v3106_v49  ;;  %v3101_v40 = vrot.slane %v3100_v47, 2 }
 0x297   :  { %v3068_v63 = vrot.slane %v3067_v46, 1  ;;  %v3075_v36 = vrot.slane %v3074_v28, 1  ;;  %v3081_v52 = vmax.f32 %v3079_v17, %v3080_v18  ;;  %v3095_v43 = vmax.f32 %v3093_v9, %v3094_v31 }
 0x298   :  { %v3062_v35 = vmax.f32 %v3060_v39, %v3061_v54  ;;  %v3089_v48 = vrot.slane %v3088_v29, 1  ;;  %v3108_v14 = vrot.slane %v3107_v27, 2  ;;  %v3102_v33 = vmax.f32 %v3100_v47, %v3101_v40 }
 0x299   :  { %v3069_v53 = vmax.f32 %v3067_v46, %v3068_v63  ;;  %v3076_v60 = vmax.f32 %v3074_v28, %v3075_v36  ;;  %v3082_v55 = vrot.slane %v3081_v52, 1  ;;  %v3096_v8 = vrot.slane %v3095_v43, 1 }
 0x29a   :  { %v3090_v38 = vmax.f32 %v3088_v29, %v3089_v48  ;;  %v3109_v51 = vmax.f32 %v3107_v27, %v3108_v14  ;;  %v1924_v41 = vrot.slane %v1916_v20, %v15183_v11  ;;  %v1931_v37 = vrot.slane %v1917_v32, %v15183_v11 }
 0x29b   :  { %v3083_v0 = vmax.f32 %v3081_v52, %v3082_v55  ;;  %v3097_v57 = vmax.f32 %v3095_v43, %v3096_v8  ;;  %v13094_v58 = vpack.c.bf16 %v3069_v53, %v3062_v35  ;;  %v3103_v21 = vrot.slane %v3102_v33, 1 }
 0x29c   :  { %v3110_v10 = vrot.slane %v3109_v51, 1  ;;  %v1932_v13 = vcombine.high %v1924_v41, %v1924_v41  ;;  %v2308_v59 = vrot.slane %v1924_v41, %v15183_v11  ;;  %v1933_v20 = vcombine.high %v1931_v37, %v1931_v37 }
 0x29d   :  { %v13095_v62 = vpack.c.bf16 %v3083_v0, %v3076_v60  ;;  %v13096_v2 = vpack.c.bf16 %v3097_v57, %v3090_v38  ;;  %v4136_v19 = vunpack.c.l.b16 %v13094_v58  ;;  %v4137_v6 = vunpack.c.h.b16 %v13094_v58 }
 0x29e   :  { %v3104_v17 = vmax.f32 %v3102_v33, %v3103_v21  ;;  %v3111_v9 = vmax.f32 %v3109_v51, %v3110_v10  ;;  %v2309_v39 = vcombine.high %v2308_v59, %v2308_v59  ;;  %v2316_v61 = vrot.slane %v1932_v13, %v15183_v11 }
 0x29f   :  { %v4138_v4 = vunpack.c.l.b16 %v13095_v62  ;;  %v4139_v22 = vunpack.c.h.b16 %v13095_v62  ;;  %v4140_v49 = vunpack.c.l.b16 %v13096_v2  ;;  %v4141_v46 = vunpack.c.h.b16 %v13096_v2 }
 0x2a0   :  { %v13097_v28 = vpack.c.bf16 %v3111_v9, %v3104_v17  ;;  %v2324_v1 = vrot.slane %v1931_v37, %v15183_v11  ;;  %v2332_v32 = vrot.slane %v1933_v20, %v15183_v11  ;;  %v3112_v54 = vsel %vm2718_vm2, %v2308_v59, -inf }
 0x2a1   :  { %v4265_v18 = vsel %vm17377_vm10, %v4138_v4, %v4136_v19  ;;  %v4272_v31 = vsel %vm17377_vm10, %v4139_v22, %v4137_v6  ;;  %v3119_v29 = vsel %vm2726_vm5, %v2309_v39, -inf  ;;  %v2317_v52 = vcombine.high %v2316_v61, %v2316_v61 }
 0x2a2   :  { %v4142_v47 = vunpack.c.l.b16 %v13097_v28  ;;  %v4143_v27 = vunpack.c.h.b16 %v13097_v28  ;;  %v4266_v63 = vsel %vm17376_vm13, %v4140_v49, %v4265_v18  ;;  %v4273_v36 = vsel %vm17376_vm13, %v4141_v46, %v4272_v31 }
 0x2a3   :  { %v2325_v43 = vcombine.high %v2324_v1, %v2324_v1  ;;  %v2333_v35 = vcombine.high %v2332_v32, %v2332_v32  ;;  %v3113_v48 = vrot.slane %v3112_v54, 4  ;;  %v3120_v53 = vrot.slane %v3119_v29, 4 }
 0x2a4   :  { %v15461_v40 = vsel %vm17375_vm3, %v4142_v47, %v4266_v63  ;;  %v15464_v14 = vsel %vm17375_vm3, %v4143_v27, %v4273_v36  ;;  %v3126_v60 = vsel %vm2718_vm2, %v2316_v61, -inf  ;;  %v3133_v38 = vsel %vm2726_vm5, %v2317_v52, -inf  ;;  %v1646_v36 = vpop.permute.xlu0 %1645 }
 0x2a5   :  { %v3114_v55 = vmax.f32 %v3112_v54, %v3113_v48  ;;  %v3127_v8 = vrot.slane %v3126_v60, 4  ;;  %v3140_v33 = vsel %vm2718_vm2, %v2324_v1, -inf  ;;  %v3121_v51 = vmax.f32 %v3119_v29, %v3120_v53  ;;  %v1648_v54 = vpop.permute.xlu1 %1647 }
 0x2a6   :  { %v3134_v41 = vrot.slane %v3133_v38, 4  ;;  %v3141_v0 = vrot.slane %v3140_v33, 4  ;;  %v3147_v57 = vsel %vm2726_vm5, %v2325_v43, -inf  ;;  %v3154_v10 = vsel %vm2718_vm2, %v2332_v32, -inf }
 0x2a7   :  { %v3115_v58 = vrot.slane %v3114_v55, 2  ;;  %v3128_v37 = vmax.f32 %v3126_v60, %v3127_v8  ;;  %v3148_v21 = vrot.slane %v3147_v57, 4  ;;  %v3122_v13 = vrot.slane %v3121_v51, 2 }
 0x2a8   :  { %v3135_v59 = vmax.f32 %v3133_v38, %v3134_v41  ;;  %v3142_v62 = vmax.f32 %v3140_v33, %v3141_v0  ;;  %v3155_v2 = vrot.slane %v3154_v10, 4  ;;  %v3161_v9 = vsel %vm2726_vm5, %v2333_v35, -inf }
 0x2a9   :  { %v3116_v19 = vmax.f32 %v3114_v55, %v3115_v58  ;;  %v3129_v6 = vrot.slane %v3128_v37, 2  ;;  %v3149_v17 = vmax.f32 %v3147_v57, %v3148_v21  ;;  %v3123_v20 = vmax.f32 %v3121_v51, %v3122_v13 }
 0x2aa   :  { %v3136_v39 = vrot.slane %v3135_v59, 2  ;;  %v3143_v4 = vrot.slane %v3142_v62, 2  ;;  %v3156_v22 = vmax.f32 %v3154_v10, %v3155_v2  ;;  %v3162_v61 = vrot.slane %v3161_v9, 4 }
 0x2ab   :  { %v3117_v49 = vrot.slane %v3116_v19, 1  ;;  %v3130_v46 = vmax.f32 %v3128_v37, %v3129_v6  ;;  %v3150_v28 = vrot.slane %v3149_v17, 2  ;;  %v3124_v1 = vrot.slane %v3123_v20, 1 }
 0x2ac   :  { %v3137_v18 = vmax.f32 %v3135_v59, %v3136_v39  ;;  %v3144_v32 = vmax.f32 %v3142_v62, %v3143_v4  ;;  %v3157_v31 = vrot.slane %v3156_v22, 2  ;;  %v3163_v63 = vmax.f32 %v3161_v9, %v3162_v61 }
 0x2ad   :  { %v3118_v29 = vmax.f32 %v3116_v19, %v3117_v49  ;;  %v3131_v47 = vrot.slane %v3130_v46, 1  ;;  %v3151_v27 = vmax.f32 %v3149_v17, %v3150_v28  ;;  %v3125_v52 = vmax.f32 %v3123_v20, %v3124_v1  ;;  %v1652_v20 = vpop.permute.xlu1 %1651  ;;  %v1650_v28 = vpop.permute.xlu0 %1649 }
 0x2ae   :  { %v3138_v43 = vrot.slane %v3137_v18, 1  ;;  %v3145_v35 = vrot.slane %v3144_v32, 1  ;;  %v3158_v48 = vmax.f32 %v3156_v22, %v3157_v31  ;;  %v3164_v55 = vrot.slane %v3163_v63, 2 }
 0x2af   :  { %v3132_v53 = vmax.f32 %v3130_v46, %v3131_v47  ;;  %v3152_v60 = vrot.slane %v3151_v27, 1  ;;  %v1686_v8 = vsel %vm1677_vm4, %v1646_v36, %v1648_v54  ;;  %v13098_v41 = vpack.c.bf16 %v3125_v52, %v3118_v29 }
 0x2b0   :  { %v3139_v38 = vmax.f32 %v3137_v18, %v3138_v43  ;;  %v3146_v33 = vmax.f32 %v3144_v32, %v3145_v35  ;;  %v3159_v51 = vrot.slane %v3158_v48, 1  ;;  %v3165_v57 = vmax.f32 %v3163_v63, %v3164_v55 }
 0x2b1   :  { %v3153_v0 = vmax.f32 %v3151_v27, %v3152_v60  ;;  %v17505_v58 = vmax.f32 %v15041_v30, 0.0  ;;  %v17506_v21 = vmax.f32 %v15056_v42, 0.0  ;;  %v4144_v62 = vunpack.c.l.b16 %v13098_v41 }
 0x2b2   :  { %v3160_v13 = vmax.f32 %v3158_v48, %v3159_v51  ;;  %v13099_v59 = vpack.c.bf16 %v3139_v38, %v3132_v53  ;;  %v4145_v2 = vunpack.c.h.b16 %v13098_v41  ;;  %v3166_v19 = vrot.slane %v3165_v57, 1 }
 0x2b3   :  { %v1742_v37 = vmax.f32 %v17505_v58, %v1686_v8  ;;  %v1743_v10 = vmax.f32 %v17506_v21, %v1648_v54  ;;  %v13100_v6 = vpack.c.bf16 %v3153_v0, %v3146_v33  ;;  %v4268_v22 = vsel %vm17374_vm15, %v4144_v62, %v15461_v40 }
 0x2b4   :  { %v4146_v39 = vunpack.c.l.b16 %v13099_v59  ;;  %v4147_v4 = vunpack.c.h.b16 %v13099_v59  ;;  %v4275_v30 = vsel %vm17374_vm15, %v4145_v2, %v15464_v14  ;;  %v3167_v49 = vmax.f32 %v3165_v57, %v3166_v19 }
 0x2b5   :  { %v1934_v17 = vcombine.low %v1742_v37, %v1743_v10  ;;  %v1935_v9 = vcombine.high %v1742_v37, %v1743_v10  ;;  %v4148_v42 = vunpack.c.l.b16 %v13100_v6  ;;  %v4149_v46 = vunpack.c.h.b16 %v13100_v6 }
 0x2b6   :  { %v4269_v1 = vsel %vm17497_vm6, %v4146_v39, %v4268_v22  ;;  %v4276_v18 = vsel %vm17507_vm8, %v4147_v4, %v4275_v30  ;;  %v1687_v31 = vsel %vm1677_vm4, %v1650_v28, %v1652_v20  ;;  %v13101_v54 = vpack.c.bf16 %v3167_v49, %v3160_v13  ;;  %vm17512_vm8 = vmmov %vm17497_vm6 }
 0x2b7   :  { %v1942_v61 = vrot.slane %v1934_v17, %v15183_v11  ;;  %v1949_v32 = vrot.slane %v1935_v9, %v15183_v11  ;;  %v4270_v40 = vsel %vm17373_vm1, %v4148_v42, %v4269_v1  ;;  %v4277_v29 = vsel %vm17373_vm1, %v4149_v46, %v4276_v18 }
 0x2b8   :  { %v17508_v36 = vmax.f32 %v15059_v56, 0.0  ;;  %v4150_v43 = vunpack.c.l.b16 %v13101_v54  ;;  %v4151_v35 = vunpack.c.h.b16 %v13101_v54  ;;  %v17509_v53 = vmax.f32 %v15074_v50, 0.0 }
 0x2b9   :  { %v1950_v14 = vcombine.high %v1942_v61, %v1942_v61  ;;  %v1951_v47 = vcombine.high %v1949_v32, %v1949_v32  ;;  %v2340_v27 = vrot.slane %v1942_v61, %v15183_v11  ;;  %v2356_v63 = vrot.slane %v1949_v32, %v15183_v11 }
 0x2ba   :  { %v15492_v52 = vmax.f32 %v17508_v36, %v1687_v31  ;;  %v15497_v60 = vmax.f32 %v17509_v53, %v1652_v20  ;;  %v4271_v51 = vsel %vm17372_vm11, %v4150_v43, %v4270_v40  ;;  %v4278_v56 = vsel %vm17372_vm11, %v4151_v35, %v4277_v29 }
 0x2bb   :  { %v2348_v48 = vrot.slane %v1950_v14, %v15183_v11  ;;  %v2341_v55 = vcombine.high %v2340_v27, %v2340_v27  ;;  %v2357_v8 = vcombine.high %v2356_v63, %v2356_v63  ;;  %v2364_v38 = vrot.slane %v1951_v47, %v15183_v11 }
 0x2bc   :  { %v3168_v33 = vsel %vm2718_vm2, %v2340_v27, -inf  ;;  %v4338_v57 = vpack.c.b16 %v4278_v56, %v4271_v51  ;;  %v3196_v2 = vsel %vm2718_vm2, %v2356_v63, -inf }
 0x2bd   :  { %v2349_v41 = vcombine.high %v2348_v48, %v2348_v48  ;;  %v3169_v0 = vrot.slane %v3168_v33, 4  ;;  %v2365_v58 = vcombine.high %v2364_v38, %v2364_v38  ;;  %v3175_v37 = vsel %vm2726_vm5, %v2341_v55, -inf }
 0x2be   :  { %v3182_v50 = vsel %vm2718_vm2, %v2348_v48, -inf  ;;  %v3176_v10 = vrot.slane %v3175_v37, 4  ;;  %4357 = vst.msk [vmem:[#allocation3 + $0x20] sm:$0xff] %vm15268_vm12, %v4338_v57  ;;  %v3203_v19 = vsel %vm2726_vm5, %v2357_v8, -inf  ;;  %v3210_v6 = vsel %vm2718_vm2, %v2364_v38, -inf }
 0x2bf   :  { %v3170_v21 = vmax.f32 %v3168_v33, %v3169_v0  ;;  %v3183_v13 = vrot.slane %v3182_v50, 4  ;;  %v3189_v59 = vsel %vm2726_vm5, %v2349_v41, -inf  ;;  %v3197_v39 = vrot.slane %v3196_v2, 4 }
 0x2c0   :  { %v3190_v62 = vrot.slane %v3189_v59, 4  ;;  %v3177_v9 = vmax.f32 %v3175_v37, %v3176_v10  ;;  %v3204_v22 = vrot.slane %v3203_v19, 4  ;;  %v3211_v30 = vrot.slane %v3210_v6, 4 }
 0x2c1   :  { %v3171_v17 = vrot.slane %v3170_v21, 2  ;;  %v3184_v20 = vmax.f32 %v3182_v50, %v3183_v13  ;;  %v3217_v49 = vsel %vm2726_vm5, %v2365_v58, -inf  ;;  %v3198_v61 = vmax.f32 %v3196_v2, %v3197_v39 }
 0x2c2   :  { %v3191_v4 = vmax.f32 %v3189_v59, %v3190_v62  ;;  %v3178_v46 = vrot.slane %v3177_v9, 2  ;;  %v3205_v18 = vmax.f32 %v3203_v19, %v3204_v22  ;;  %v3212_v32 = vmax.f32 %v3210_v6, %v3211_v30 }
 0x2c3   :  { %v3172_v42 = vmax.f32 %v3170_v21, %v3171_v17  ;;  %v3185_v28 = vrot.slane %v3184_v20, 2  ;;  %v3218_v31 = vrot.slane %v3217_v49, 4  ;;  %v3199_v14 = vrot.slane %v3198_v61, 2 }
 0x2c4   :  { %v3192_v1 = vrot.slane %v3191_v4, 2  ;;  %v3179_v40 = vmax.f32 %v3177_v9, %v3178_v46  ;;  %v3206_v27 = vrot.slane %v3205_v18, 2  ;;  %v3213_v63 = vrot.slane %v3212_v32, 2 }
 0x2c5   :  { %v3173_v54 = vrot.slane %v3172_v42, 1  ;;  %v3186_v29 = vmax.f32 %v3184_v20, %v3185_v28  ;;  %v3219_v36 = vmax.f32 %v3217_v49, %v3218_v31  ;;  %v3200_v53 = vmax.f32 %v3198_v61, %v3199_v14 }
 0x2c6   :  { %v3193_v47 = vmax.f32 %v3191_v4, %v3192_v1  ;;  %v3180_v35 = vrot.slane %v3179_v40, 1  ;;  %v3207_v8 = vmax.f32 %v3205_v18, %v3206_v27  ;;  %v3214_v38 = vmax.f32 %v3212_v32, %v3213_v63 }
 0x2c7   :  { %v3174_v43 = vmax.f32 %v3172_v42, %v3173_v54  ;;  %v3187_v48 = vrot.slane %v3186_v29, 1  ;;  %v3220_v33 = vrot.slane %v3219_v36, 2  ;;  %v3201_v41 = vrot.slane %v3200_v53, 1 }
 0x2c8   :  { %v3194_v55 = vrot.slane %v3193_v47, 1  ;;  %v3181_v51 = vmax.f32 %v3179_v40, %v3180_v35  ;;  %v1952_v0 = vcombine.low %v15492_v52, %v15497_v60  ;;  %v3208_v58 = vrot.slane %v3207_v8, 1 }
 0x2c9   :  { %v3188_v56 = vmax.f32 %v3186_v29, %v3187_v48  ;;  %v3215_v37 = vrot.slane %v3214_v38, 1  ;;  %v3221_v50 = vmax.f32 %v3219_v36, %v3220_v33  ;;  %v3202_v21 = vmax.f32 %v3200_v53, %v3201_v41 }
 0x2ca   :  { %v3195_v57 = vmax.f32 %v3193_v47, %v3194_v55  ;;  %v13102_v10 = vpack.c.bf16 %v3181_v51, %v3174_v43  ;;  %v1953_v13 = vcombine.high %v15492_v52, %v15497_v60  ;;  %v1960_v59 = vrot.slane %v1952_v0, %v15183_v11 }
 0x2cb   :  { %v3209_v62 = vmax.f32 %v3207_v8, %v3208_v58  ;;  %v3216_v2 = vmax.f32 %v3214_v38, %v3215_v37  ;;  %v3222_v19 = vrot.slane %v3221_v50, 1 }
 0x2cc   :  { %v13103_v6 = vpack.c.bf16 %v3195_v57, %v3188_v56  ;;  %v4152_v17 = vunpack.c.l.b16 %v13102_v10  ;;  %v4153_v9 = vunpack.c.h.b16 %v13102_v10  ;;  %v1967_v20 = vrot.slane %v1953_v13, %v15183_v11 }
 0x2cd   :  { %v1968_v39 = vcombine.high %v1960_v59, %v1960_v59  ;;  %v3223_v4 = vmax.f32 %v3221_v50, %v3222_v19  ;;  %v13104_v22 = vpack.c.bf16 %v3209_v62, %v3202_v21  ;;  %v2372_v46 = vrot.slane %v1960_v59, %v15183_v11 }
 0x2ce   :  { %v4154_v30 = vunpack.c.l.b16 %v13103_v6  ;;  %v4155_v49 = vunpack.c.h.b16 %v13103_v6  ;;  %v1969_v42 = vcombine.high %v1967_v20, %v1967_v20  ;;  %v2388_v60 = vrot.slane %v1967_v20, %v15183_v11 }
 0x2cf   :  { %v2380_v52 = vrot.slane %v1968_v39, %v15183_v11  ;;  %v13105_v28 = vpack.c.bf16 %v3223_v4, %v3216_v2  ;;  %v4156_v61 = vunpack.c.l.b16 %v13104_v22  ;;  %v4157_v1 = vunpack.c.h.b16 %v13104_v22 }
 0x2d0   :  { %v4279_v18 = vsel %vm17377_vm10, %v4154_v30, %v4152_v17  ;;  %v4286_v32 = vsel %vm17377_vm10, %v4155_v49, %v4153_v9  ;;  %v2373_v31 = vcombine.high %v2372_v46, %v2372_v46  ;;  %v2389_v40 = vcombine.high %v2388_v60, %v2388_v60  ;;  %v1656_v30 = vpop.permute.xlu1 %1655 }
 0x2d1   :  { %v2381_v54 = vcombine.high %v2380_v52, %v2380_v52  ;;  %v4158_v29 = vunpack.c.l.b16 %v13105_v28  ;;  %v4159_v14 = vunpack.c.h.b16 %v13105_v28  ;;  %v4280_v47 = vsel %vm17376_vm13, %v4156_v61, %v4279_v18 }
 0x2d2   :  { %v4287_v27 = vsel %vm17376_vm13, %v4157_v1, %v4286_v32  ;;  %v2396_v63 = vrot.slane %v1969_v42, %v15183_v11  ;;  %v3224_v36 = vsel %vm2718_vm2, %v2372_v46, -inf  ;;  %v3231_v43 = vsel %vm2726_vm5, %v2373_v31, -inf }
 0x2d3   :  { %v3238_v35 = vsel %vm2718_vm2, %v2380_v52, -inf  ;;  %v15530_v48 = vsel %vm17375_vm3, %v4158_v29, %v4280_v47  ;;  %v15533_v53 = vsel %vm17375_vm3, %v4159_v14, %v4287_v27  ;;  %v3225_v55 = vrot.slane %v3224_v36, 4 }
 0x2d4   :  { %v3232_v8 = vrot.slane %v3231_v43, 4  ;;  %v2397_v38 = vcombine.high %v2396_v63, %v2396_v63  ;;  %v3239_v33 = vrot.slane %v3238_v35, 4  ;;  %v3245_v51 = vsel %vm2726_vm5, %v2381_v54, -inf }
 0x2d5   :  { %v3252_v56 = vsel %vm2718_vm2, %v2388_v60, -inf  ;;  %v3226_v41 = vmax.f32 %v3224_v36, %v3225_v55  ;;  %v3246_v57 = vrot.slane %v3245_v51, 4  ;;  %v3259_v50 = vsel %vm2726_vm5, %v2389_v40, -inf  ;;  %v1654_v60 = vpop.permute.xlu0 %1653 }
 0x2d6   :  { %v3233_v0 = vmax.f32 %v3231_v43, %v3232_v8  ;;  %v3253_v58 = vrot.slane %v3252_v56, 4  ;;  %v3240_v37 = vmax.f32 %v3238_v35, %v3239_v33  ;;  %v3266_v21 = vsel %vm2718_vm2, %v2396_v63, -inf }
 0x2d7   :  { %v3273_v10 = vsel %vm2726_vm5, %v2397_v38, -inf  ;;  %v3227_v13 = vrot.slane %v3226_v41, 2  ;;  %v3247_v62 = vmax.f32 %v3245_v51, %v3246_v57  ;;  %v3260_v6 = vrot.slane %v3259_v50, 4  ;;  %v1660_v51 = vpop.permute.xlu1 %1659 }
 0x2d8   :  { %v3234_v59 = vrot.slane %v3233_v0, 2  ;;  %v3254_v2 = vmax.f32 %v3252_v56, %v3253_v58  ;;  %v3241_v19 = vrot.slane %v3240_v37, 2  ;;  %v3267_v17 = vrot.slane %v3266_v21, 4 }
 0x2d9   :  { %v3274_v9 = vrot.slane %v3273_v10, 4  ;;  %v3228_v20 = vmax.f32 %v3226_v41, %v3227_v13  ;;  %v3248_v4 = vrot.slane %v3247_v62, 2  ;;  %v3261_v42 = vmax.f32 %v3259_v50, %v3260_v6 }
 0x2da   :  { %v3235_v39 = vmax.f32 %v3233_v0, %v3234_v59  ;;  %v3255_v22 = vrot.slane %v3254_v2, 2  ;;  %v3242_v49 = vmax.f32 %v3240_v37, %v3241_v19  ;;  %v3268_v46 = vmax.f32 %v3266_v21, %v3267_v17 }
 0x2db   :  { %v3275_v52 = vmax.f32 %v3273_v10, %v3274_v9  ;;  %v3229_v28 = vrot.slane %v3228_v20, 1  ;;  %v3249_v1 = vmax.f32 %v3247_v62, %v3248_v4  ;;  %v3262_v31 = vrot.slane %v3261_v42, 2  ;;  %v1658_v10 = vpop.permute.xlu0 %1657 }
 0x2dc   :  { %v3236_v61 = vrot.slane %v3235_v39, 1  ;;  %v3256_v18 = vmax.f32 %v3254_v2, %v3255_v22  ;;  %v3243_v32 = vrot.slane %v3242_v49, 1  ;;  %v3269_v54 = vrot.slane %v3268_v46, 2 }
 0x2dd   :  { %v3276_v40 = vrot.slane %v3275_v52, 2  ;;  %v3230_v29 = vmax.f32 %v3228_v20, %v3229_v28  ;;  %v3250_v47 = vrot.slane %v3249_v1, 1  ;;  %v3263_v36 = vmax.f32 %v3261_v42, %v3262_v31  ;;  %v1664_v28 = vpop.permute.xlu1 %1663 }
 0x2de   :  { %v3237_v14 = vmax.f32 %v3235_v39, %v3236_v61  ;;  %v3257_v27 = vrot.slane %v3256_v18, 1  ;;  %v3244_v63 = vmax.f32 %v3242_v49, %v3243_v32  ;;  %v3270_v43 = vmax.f32 %v3268_v46, %v3269_v54 }
 0x2df   :  { %v3277_v35 = vmax.f32 %v3275_v52, %v3276_v40  ;;  %v3251_v55 = vmax.f32 %v3249_v1, %v3250_v47  ;;  %v1688_v33 = vsel %vm1677_vm4, %v1654_v60, %v1656_v30  ;;  %v3264_v56 = vrot.slane %v3263_v36, 1  ;;  %v1662_v31 = vpop.permute.xlu0 %1661 }
 0x2e0   :  { %v3258_v8 = vmax.f32 %v3256_v18, %v3257_v27  ;;  %v13106_v38 = vpack.c.bf16 %v3237_v14, %v3230_v29  ;;  %v3271_v41 = vrot.slane %v3270_v43, 1  ;;  %v17510_v57 = vmax.f32 %v15077_v23, 0.0 }
 0x2e1   :  { %v3278_v0 = vrot.slane %v3277_v35, 1  ;;  %v13107_v37 = vpack.c.bf16 %v3251_v55, %v3244_v63  ;;  %v17511_v13 = vmax.f32 %v15090_v44, 0.0  ;;  %v3265_v62 = vmax.f32 %v3263_v36, %v3264_v56 }
 0x2e2   :  { %v1746_v58 = vmax.f32 %v17510_v57, %v1688_v33  ;;  %v4160_v50 = vunpack.c.l.b16 %v13106_v38  ;;  %v4161_v21 = vunpack.c.h.b16 %v13106_v38  ;;  %v3272_v2 = vmax.f32 %v3270_v43, %v3271_v41 }
 0x2e3   :  { %v1747_v59 = vmax.f32 %v17511_v13, %v1656_v30  ;;  %v3279_v19 = vmax.f32 %v3277_v35, %v3278_v0  ;;  %v1689_v6 = vsel %vm1677_vm4, %v1658_v10, %v1660_v51  ;;  %v4162_v17 = vunpack.c.l.b16 %v13107_v37 }
 0x2e4   :  { %v4163_v9 = vunpack.c.h.b16 %v13107_v37  ;;  %v4282_v20 = vsel %vm17374_vm15, %v4160_v50, %v15530_v48  ;;  %v4289_v23 = vsel %vm17374_vm15, %v4161_v21, %v15533_v53  ;;  %v13108_v39 = vpack.c.bf16 %v3265_v62, %v3258_v8 }
 0x2e5   :  { %v13109_v4 = vpack.c.bf16 %v3279_v19, %v3272_v2  ;;  %v1970_v22 = vcombine.low %v1746_v58, %v1747_v59  ;;  %v1971_v49 = vcombine.high %v1746_v58, %v1747_v59  ;;  %v4283_v44 = vsel %vm17497_vm6, %v4162_v17, %v4282_v20 }
 0x2e6   :  { %v4290_v30 = vsel %vm17512_vm8, %v4163_v9, %v4289_v23  ;;  %v17513_v42 = vmax.f32 %v15093_v25, 0.0  ;;  %v17514_v52 = vmax.f32 %v15106_v24, 0.0  ;;  %v4164_v61 = vunpack.c.l.b16 %v13108_v39 }
 0x2e7   :  { %v4165_v48 = vunpack.c.h.b16 %v13108_v39  ;;  %v4166_v1 = vunpack.c.l.b16 %v13109_v4  ;;  %v4167_v18 = vunpack.c.h.b16 %v13109_v4  ;;  %v1978_v53 = vrot.slane %v1970_v22, %v15183_v11 }
 0x2e8   :  { %v1748_v46 = vmax.f32 %v17513_v42, %v1689_v6  ;;  %v1749_v60 = vmax.f32 %v17514_v52, %v1660_v51  ;;  %v1985_v32 = vrot.slane %v1971_v49, %v15183_v11  ;;  %v4284_v29 = vsel %vm17373_vm1, %v4164_v61, %v4283_v44 }
 0x2e9   :  { %v4291_v25 = vsel %vm17373_vm1, %v4165_v48, %v4290_v30  ;;  %v1690_v14 = vsel %vm1677_vm4, %v1662_v31, %v1664_v28  ;;  %v17515_v24 = vmax.f32 %v15122_v34, 0.0  ;;  %v4285_v27 = vsel %vm17372_vm11, %v4166_v1, %v4284_v29 }
 0x2ea   :  { %v1988_v54 = vcombine.low %v1748_v46, %v1749_v60  ;;  %v1989_v40 = vcombine.high %v1748_v46, %v1749_v60  ;;  %v4292_v63 = vsel %vm17372_vm11, %v4167_v18, %v4291_v25  ;;  %v1986_v36 = vcombine.high %v1978_v53, %v1978_v53 }
 0x2eb   :  { %v15563_v47 = vmax.f32 %v17515_v24, %v1664_v28  ;;  %v1987_v43 = vcombine.high %v1985_v32, %v1985_v32  ;;  %v4339_v35 = vpack.c.b16 %v4292_v63, %v4285_v27  ;;  %v2404_v55 = vrot.slane %v1978_v53, %v15183_v11 }
 0x2ec   :  { %v2420_v8 = vrot.slane %v1985_v32, %v15183_v11  ;;  %v15570_v38 = vrot.slane %v1988_v54, %v15183_v11  ;;  %v2412_v33 = vrot.slane %v1986_v36, %v15183_v11  ;;  %v15575_v51 = vrot.slane %v1989_v40, %v15183_v11 }
 0x2ed   :  { %v2428_v34 = vrot.slane %v1987_v43, %v15183_v11  ;;  %v17516_v56 = vmax.f32 %v15109_v26, 0.0  ;;  %4358 = vst.msk [vmem:[#allocation3 + $0x38] sm:$0xff] %vm15268_vm12, %v4339_v35  ;;  %v2405_v0 = vcombine.high %v2404_v55, %v2404_v55  ;;  %v3280_v58 = vsel %vm2718_vm2, %v2404_v55, -inf }
 0x2ee   :  { %v2421_v57 = vcombine.high %v2420_v8, %v2420_v8  ;;  %v3308_v37 = vsel %vm2718_vm2, %v2420_v8, -inf  ;;  %v2413_v50 = vcombine.high %v2412_v33, %v2412_v33  ;;  %v3281_v10 = vrot.slane %v3280_v58, 4 }
 0x2ef   :  { %v15579_v41 = vmax.f32 %v17516_v56, %v1690_v14  ;;  %v2429_v21 = vcombine.high %v2428_v34, %v2428_v34  ;;  %v3294_v13 = vsel %vm2718_vm2, %v2412_v33, -inf  ;;  %v3287_v59 = vsel %vm2726_vm5, %v2405_v0, -inf }
 0x2f0   :  { %v3295_v62 = vrot.slane %v3294_v13, 4  ;;  %v3309_v26 = vrot.slane %v3308_v37, 4  ;;  %v3315_v2 = vsel %vm2726_vm5, %v2421_v57, -inf  ;;  %v3282_v19 = vmax.f32 %v3280_v58, %v3281_v10 }
 0x2f1   :  { %v3288_v6 = vrot.slane %v3287_v59, 4  ;;  %v3301_v17 = vsel %vm2726_vm5, %v2413_v50, -inf  ;;  %v3316_v9 = vrot.slane %v3315_v2, 4  ;;  %v3322_v4 = vsel %vm2718_vm2, %v2428_v34, -inf }
 0x2f2   :  { %v3296_v20 = vmax.f32 %v3294_v13, %v3295_v62  ;;  %v3302_v23 = vrot.slane %v3301_v17, 4  ;;  %v3310_v39 = vmax.f32 %v3308_v37, %v3309_v26  ;;  %v3283_v22 = vrot.slane %v3282_v19, 2 }
 0x2f3   :  { %v3289_v49 = vmax.f32 %v3287_v59, %v3288_v6  ;;  %v3317_v44 = vmax.f32 %v3315_v2, %v3316_v9  ;;  %v3323_v30 = vrot.slane %v3322_v4, 4  ;;  %v3329_v60 = vsel %vm2726_vm5, %v2429_v21, -inf }
 0x2f4   :  { %v3297_v42 = vrot.slane %v3296_v20, 2  ;;  %v3303_v46 = vmax.f32 %v3301_v17, %v3302_v23  ;;  %v3311_v52 = vrot.slane %v3310_v39, 2  ;;  %v3284_v28 = vmax.f32 %v3282_v19, %v3283_v22 }
 0x2f5   :  { %v3290_v61 = vrot.slane %v3289_v49, 2  ;;  %v3318_v48 = vrot.slane %v3317_v44, 2  ;;  %v3324_v1 = vmax.f32 %v3322_v4, %v3323_v30  ;;  %v3330_v31 = vrot.slane %v3329_v60, 4 }
 0x2f6   :  { %v3298_v18 = vmax.f32 %v3296_v20, %v3297_v42  ;;  %v3304_v53 = vrot.slane %v3303_v46, 2  ;;  %v3312_v32 = vmax.f32 %v3310_v39, %v3311_v52  ;;  %v3285_v54 = vrot.slane %v3284_v28, 1 }
 0x2f7   :  { %v3291_v40 = vmax.f32 %v3289_v49, %v3290_v61  ;;  %v3319_v29 = vmax.f32 %v3317_v44, %v3318_v48  ;;  %v3325_v25 = vrot.slane %v3324_v1, 2  ;;  %v3331_v63 = vmax.f32 %v3329_v60, %v3330_v31 }
 0x2f8   :  { %v3299_v14 = vrot.slane %v3298_v18, 1  ;;  %v3305_v24 = vmax.f32 %v3303_v46, %v3304_v53  ;;  %v3313_v27 = vrot.slane %v3312_v32, 1 }
 0x2f9   :  { %13954 = shalt.err (!%p13951_p10)  }
 0x2fa   :  { %s17517_s7 = sld [smem:[#allocation134_spill]]  ;;  %v3286_v36 = vmax.f32 %v3284_v28, %v3285_v54  ;;  %v3292_v43 = vrot.slane %v3291_v40, 1  ;;  %v3320_v35 = vrot.slane %v3319_v29, 1  ;;  %v3326_v55 = vmax.f32 %v3324_v1, %v3325_v25  ;;  %s13963_s24 = scalar_lea.vmem %s316_s0, 8192 }
 0x2fb   :  { %v3300_v8 = vmax.f32 %v3298_v18, %v3299_v14  ;;  %v3306_v33 = vrot.slane %v3305_v24, 1  ;;  %v3314_v34 = vmax.f32 %v3312_v32, %v3313_v27  ;;  %v3332_v56 = vrot.slane %v3331_v63, 2  ;;  %p13964_p11 = scmp.ne.s32.totalorder %s316_s0, %s13963_s24  ;;  %p13968_p12 = scmp.lt.s32.totalorder %s316_s0, %s316_s0 }
 0x2fc   :  { %p13969_p13 = scmp.lt.s32.totalorder %s13963_s24, %s13963_s24 }
 0x2fe   :  { %p13970_p0 = por %p13969_p13, %p13968_p12 }
 0x300   :  { %306 = dma.hbm_to_vmem [thread:$0]  %s17517_s7, 6144, %s304_s27, [#allocation16 + $0x4] }
 0x301   :  { %p13971_p1 = pnand %p13970_p0, %p13964_p11 }
 0x303   :  { %13974 = shalt.err (!%p13971_p1)  }
 0x304   :  { %318 = dma.hbm_to_vmem [thread:$0]  %s17240_s19, 8192, %s316_s0, [#allocation16 + $0x5]  ;;  %v3293_v0 = vmax.f32 %v3291_v40, %v3292_v43  ;;  %v3321_v57 = vmax.f32 %v3319_v29, %v3320_v35  ;;  %v3327_v58 = vrot.slane %v3326_v55, 1  ;;  %v2004_v37 = vcombine.high %v15570_v38, %v15570_v38 }
 0x305   :  { %s14066_s25 = smov [#allocation14]   ;;  %v3307_v50 = vmax.f32 %v3305_v24, %v3306_v33  ;;  %v3333_v21 = vmax.f32 %v3331_v63, %v3332_v56  ;;  %v2005_v10 = vcombine.high %v15575_v51, %v15575_v51  ;;  %v2436_v13 = vrot.slane %v15570_v38, %v15183_v11  ;;  %s14067_s2 = smov [#allocation15]  }
 0x306   :  { %s327_s1 = sshll.u32 %s14066_s25, 4  ;;  %s339_s6 = sshll.u32 %s14067_s2, 4  ;;  %v3328_v59 = vmax.f32 %v3326_v55, %v3327_v58  ;;  %v13110_v62 = vpack.c.bf16 %v3293_v0, %v3286_v36  ;;  %v13112_v26 = vpack.c.bf16 %v3321_v57, %v3314_v34  ;;  %v2444_v2 = vrot.slane %v2004_v37, %v15183_v11  ;;  %s328_s1 = int_to_ptr.vmem [resolvable:$true] %s327_s1  ;;  %s340_s6 = int_to_ptr.vmem [resolvable:$true] %s339_s6 }
 0x307   :  { %s13983_s19 = scalar_lea.vmem %s328_s1, 8192  ;;  %p13988_p3 = scmp.lt.s32.totalorder %s328_s1, %s328_s1 }
 0x308   :  { %p13984_p2 = scmp.ne.s32.totalorder %s328_s1, %s13983_s19  ;;  %p13989_p4 = scmp.lt.s32.totalorder %s13983_s19, %s13983_s19 }
 0x30a   :  { %p13990_p5 = por %p13989_p4, %p13988_p3 }
 0x30c   :  { %p13991_p6 = pnand %p13990_p5, %p13984_p2 }
 0x30e   :  { %13994 = shalt.err (!%p13991_p6)  }
 0x30f   :  { %330 = dma.hbm_to_vmem [thread:$0]  %s17241_s20, 8192, %s328_s1, [#allocation16 + $0x6]  ;;  %v3334_v38 = vrot.slane %v3333_v21, 1  ;;  %v13111_v19 = vpack.c.bf16 %v3307_v50, %v3300_v8  ;;  %v2437_v6 = vcombine.high %v2436_v13, %v2436_v13  ;;  %v2452_v17 = vrot.slane %v15575_v51, %v15183_v11 }
 0x310   :  { %v4168_v9 = vunpack.c.l.b16 %v13110_v62  ;;  %v4169_v20 = vunpack.c.h.b16 %v13110_v62  ;;  %v4172_v23 = vunpack.c.l.b16 %v13112_v26  ;;  %v4173_v39 = vunpack.c.h.b16 %v13112_v26  ;;  %s14003_s3 = scalar_lea.vmem %s340_s6, 4096  ;;  %p14008_p8 = scmp.lt.s32.totalorder %s340_s6, %s340_s6 }
 0x311   :  { %p14004_p7 = scmp.ne.s32.totalorder %s340_s6, %s14003_s3  ;;  %p14009_p9 = scmp.lt.s32.totalorder %s14003_s3, %s14003_s3 }
 0x313   :  { %p14010_p10 = por %p14009_p9, %p14008_p8 }
 0x315   :  { %p14011_p11 = pnand %p14010_p10, %p14004_p7 }
 0x317   :  { %14014 = shalt.err (!%p14011_p11)  }
 0x318   :  { %342 = dma.hbm_to_vmem [thread:$0]  %s17242_s21, 4096, %s340_s6, [#allocation16 + $0x7]  ;;  %v3335_v4 = vmax.f32 %v3333_v21, %v3334_v38  ;;  %v4170_v22 = vunpack.c.l.b16 %v13111_v19  ;;  %v4171_v49 = vunpack.c.h.b16 %v13111_v19  ;;  %v2445_v51 = vcombine.high %v2444_v2, %v2444_v2  ;;  %vm17518_vm8 = vmmov %vm17497_vm6 }
 0x319   :  { %v2453_v44 = vcombine.high %v2452_v17, %v2452_v17  ;;  %v2460_v30 = vrot.slane %v2005_v10, %v15183_v11  ;;  %v3336_v42 = vsel %vm2718_vm2, %v2436_v13, -inf  ;;  %v3343_v46 = vsel %vm2726_vm5, %v2437_v6, -inf }
 0x31a   :  { %v13113_v52 = vpack.c.bf16 %v3335_v4, %v3328_v59  ;;  %v4293_v60 = vsel %vm17377_vm10, %v4170_v22, %v4168_v9  ;;  %v4300_v28 = vsel %vm17377_vm10, %v4171_v49, %v4169_v20  ;;  %v3337_v61 = vrot.slane %v3336_v42, 4 }
 0x31b   :  { %v4294_v48 = vsel %vm17376_vm13, %v4172_v23, %v4293_v60  ;;  %v4301_v1 = vsel %vm17376_vm13, %v4173_v39, %v4300_v28  ;;  %v2461_v18 = vcombine.high %v2460_v30, %v2460_v30  ;;  %v3344_v53 = vrot.slane %v3343_v46, 4 }
 0x31c   :  { %v4174_v32 = vunpack.c.l.b16 %v13113_v52  ;;  %v4175_v31 = vunpack.c.h.b16 %v13113_v52  ;;  %v3338_v54 = vmax.f32 %v3336_v42, %v3337_v61  ;;  %v3350_v40 = vsel %vm2718_vm2, %v2444_v2, -inf }
 0x31d   :  { %v3345_v29 = vmax.f32 %v3343_v46, %v3344_v53  ;;  %v3351_v25 = vrot.slane %v3350_v40, 4  ;;  %v3357_v14 = vsel %vm2726_vm5, %v2445_v51, -inf  ;;  %v3364_v24 = vsel %vm2718_vm2, %v2452_v17, -inf }
 0x31e   :  { %v4295_v27 = vsel %vm17375_vm3, %v4174_v32, %v4294_v48  ;;  %v4302_v63 = vsel %vm17375_vm3, %v4175_v31, %v4301_v1  ;;  %v3339_v36 = vrot.slane %v3338_v54, 2  ;;  %v3358_v43 = vrot.slane %v3357_v14, 4 }
 0x31f   :  { %v3346_v35 = vrot.slane %v3345_v29, 2  ;;  %v3352_v55 = vmax.f32 %v3350_v40, %v3351_v25  ;;  %v3365_v8 = vrot.slane %v3364_v24, 4  ;;  %v3371_v33 = vsel %vm2726_vm5, %v2453_v44, -inf }
 0x320   :  { %v3340_v34 = vmax.f32 %v3338_v54, %v3339_v36  ;;  %v3359_v56 = vmax.f32 %v3357_v14, %v3358_v43  ;;  %v3372_v0 = vrot.slane %v3371_v33, 4  ;;  %v3378_v57 = vsel %vm2718_vm2, %v2460_v30, -inf }
 0x321   :  { %v3347_v58 = vmax.f32 %v3345_v29, %v3346_v35  ;;  %v3353_v37 = vrot.slane %v3352_v55, 2  ;;  %v3366_v50 = vmax.f32 %v3364_v24, %v3365_v8  ;;  %v3379_v21 = vrot.slane %v3378_v57, 4 }
 0x322   :  { %v3341_v10 = vrot.slane %v3340_v34, 1  ;;  %v3360_v13 = vrot.slane %v3359_v56, 2  ;;  %v3373_v59 = vmax.f32 %v3371_v33, %v3372_v0  ;;  %v3385_v62 = vsel %vm2726_vm5, %v2461_v18, -inf }
 0x323   :  { %v3348_v26 = vrot.slane %v3347_v58, 1  ;;  %v3354_v2 = vmax.f32 %v3352_v55, %v3353_v37  ;;  %v3367_v38 = vrot.slane %v3366_v50, 2  ;;  %v3380_v19 = vmax.f32 %v3378_v57, %v3379_v21 }
 0x324   :  { %v3342_v6 = vmax.f32 %v3340_v34, %v3341_v10  ;;  %v3361_v17 = vmax.f32 %v3359_v56, %v3360_v13  ;;  %v3374_v9 = vrot.slane %v3373_v59, 2  ;;  %v3386_v20 = vrot.slane %v3385_v62, 4 }
 0x325   :  { %v3349_v23 = vmax.f32 %v3347_v58, %v3348_v26  ;;  %v3355_v39 = vrot.slane %v3354_v2, 1  ;;  %v3368_v4 = vmax.f32 %v3366_v50, %v3367_v38  ;;  %v3381_v22 = vrot.slane %v3380_v19, 2 }
 0x326   :  { %v3362_v49 = vrot.slane %v3361_v17, 1  ;;  %v3375_v51 = vmax.f32 %v3373_v59, %v3374_v9  ;;  %v3387_v44 = vmax.f32 %v3385_v62, %v3386_v20  ;;  %v2006_v30 = vcombine.low %v15579_v41, %v15563_v47 }
 0x327   :  { %v3356_v42 = vmax.f32 %v3354_v2, %v3355_v39  ;;  %v3369_v46 = vrot.slane %v3368_v4, 1  ;;  %v3382_v52 = vmax.f32 %v3380_v19, %v3381_v22  ;;  %v13114_v60 = vpack.c.bf16 %v3349_v23, %v3342_v6 }
 0x328   :  { %v3363_v28 = vmax.f32 %v3361_v17, %v3362_v49  ;;  %v3376_v61 = vrot.slane %v3375_v51, 1  ;;  %v3388_v48 = vrot.slane %v3387_v44, 2  ;;  %v2007_v1 = vcombine.high %v15579_v41, %v15563_v47 }
 0x329   :  { %v3370_v18 = vmax.f32 %v3368_v4, %v3369_v46  ;;  %v3383_v53 = vrot.slane %v3382_v52, 1  ;;  %v4176_v32 = vunpack.c.l.b16 %v13114_v60  ;;  %v4177_v31 = vunpack.c.h.b16 %v13114_v60 }
 0x32a   :  { %v3377_v54 = vmax.f32 %v3375_v51, %v3376_v61  ;;  %v3389_v40 = vmax.f32 %v3387_v44, %v3388_v48  ;;  %v13115_v29 = vpack.c.bf16 %v3363_v28, %v3356_v42  ;;  %v2014_v25 = vrot.slane %v2006_v30, %v15183_v11 }
 0x32b   :  { %v3384_v14 = vmax.f32 %v3382_v52, %v3383_v53  ;;  %v4296_v24 = vsel %vm17374_vm15, %v4176_v32, %v4295_v27  ;;  %v4303_v36 = vsel %vm17374_vm15, %v4177_v31, %v4302_v63  ;;  %v2021_v43 = vrot.slane %v2007_v1, %v15183_v11 }
 0x32c   :  { %v3390_v35 = vrot.slane %v3389_v40, 1  ;;  %v13116_v55 = vpack.c.bf16 %v3377_v54, %v3370_v18  ;;  %v4178_v8 = vunpack.c.l.b16 %v13115_v29  ;;  %v4179_v47 = vunpack.c.h.b16 %v13115_v29  ;;  %v1668_v54 = vpop.permute.xlu1 %1667 }
 0x32d   :  { %v2022_v41 = vcombine.high %v2014_v25, %v2014_v25  ;;  %v2023_v33 = vcombine.high %v2021_v43, %v2021_v43  ;;  %v2468_v34 = vrot.slane %v2014_v25, %v15183_v11  ;;  %v2484_v56 = vrot.slane %v2021_v43, %v15183_v11 }
 0x32e   :  { %v3391_v0 = vmax.f32 %v3389_v40, %v3390_v35  ;;  %v4180_v57 = vunpack.c.l.b16 %v13116_v55  ;;  %v4181_v58 = vunpack.c.h.b16 %v13116_v55  ;;  %v4297_v37 = vsel %vm17497_vm6, %v4178_v8, %v4296_v24  ;;  %v1666_v24 = vpop.permute.xlu0 %1665 }
 0x32f   :  { %v4304_v27 = vsel %vm17518_vm8, %v4179_v47, %v4303_v36  ;;  %v2469_v63 = vcombine.high %v2468_v34, %v2468_v34  ;;  %v2476_v50 = vrot.slane %v2022_v41, %v15183_v11  ;;  %v2485_v21 = vcombine.high %v2484_v56, %v2484_v56  ;;  %vm17523_vm8 = vmmov %vm17497_vm6 }
 0x330   :  { %v13117_v10 = vpack.c.bf16 %v3391_v0, %v3384_v14  ;;  %v4298_v13 = vsel %vm17373_vm1, %v4180_v57, %v4297_v37  ;;  %v4305_v59 = vsel %vm17373_vm1, %v4181_v58, %v4304_v27  ;;  %v2492_v62 = vrot.slane %v2023_v33, %v15183_v11 }
 0x331   :  { %v2477_v26 = vcombine.high %v2476_v50, %v2476_v50  ;;  %v3392_v2 = vsel %vm2718_vm2, %v2468_v34, -inf  ;;  %v3399_v38 = vsel %vm2726_vm5, %v2469_v63, -inf  ;;  %v3406_v19 = vsel %vm2718_vm2, %v2476_v50, -inf }
 0x332   :  { %v4182_v6 = vunpack.c.l.b16 %v13117_v10  ;;  %v4183_v17 = vunpack.c.h.b16 %v13117_v10  ;;  %v2493_v9 = vcombine.high %v2492_v62, %v2492_v62  ;;  %v3393_v20 = vrot.slane %v3392_v2, 4 }
 0x333   :  { %v3400_v23 = vrot.slane %v3399_v38, 4  ;;  %v3407_v39 = vrot.slane %v3406_v19, 4  ;;  %v3413_v4 = vsel %vm2726_vm5, %v2477_v26, -inf  ;;  %v3420_v22 = vsel %vm2718_vm2, %v2484_v56, -inf }
 0x334   :  { %v4299_v49 = vsel %vm17372_vm11, %v4182_v6, %v4298_v13  ;;  %v4306_v51 = vsel %vm17372_vm11, %v4183_v17, %v4305_v59  ;;  %v3394_v44 = vmax.f32 %v3392_v2, %v3393_v20  ;;  %v3414_v30 = vrot.slane %v3413_v4, 4  ;;  %v1672_v59 = vpop.permute.xlu1 %1671 }
 0x335   :  { %v4340_v42 = vpack.c.b16 %v4306_v51, %v4299_v49  ;;  %v3401_v46 = vmax.f32 %v3399_v38, %v3400_v23  ;;  %v3408_v52 = vmax.f32 %v3406_v19, %v3407_v39  ;;  %v3421_v60 = vrot.slane %v3420_v22, 4 }
 0x336   :  { %v3395_v28 = vrot.slane %v3394_v44, 2  ;;  %v3415_v61 = vmax.f32 %v3413_v4, %v3414_v30  ;;  %v3427_v48 = vsel %vm2726_vm5, %v2485_v21, -inf  ;;  %v3434_v1 = vsel %vm2718_vm2, %v2492_v62, -inf }
 0x337   :  { %4359 = vst.msk [vmem:[#allocation3 + $0x40] sm:$0xff] %vm15268_vm12, %v4340_v42  ;;  %v3402_v18 = vrot.slane %v3401_v46, 2  ;;  %v3409_v53 = vrot.slane %v3408_v52, 2  ;;  %v3422_v32 = vmax.f32 %v3420_v22, %v3421_v60  ;;  %v3428_v31 = vrot.slane %v3427_v48, 4 }
 0x338   :  { %v3396_v40 = vmax.f32 %v3394_v44, %v3395_v28  ;;  %v3416_v29 = vrot.slane %v3415_v61, 2  ;;  %v3435_v25 = vrot.slane %v3434_v1, 4  ;;  %v3441_v14 = vsel %vm2726_vm5, %v2493_v9, -inf  ;;  %v1670_v9 = vpop.permute.xlu0 %1669 }
 0x339   :  { %v3403_v36 = vmax.f32 %v3401_v46, %v3402_v18  ;;  %v3410_v43 = vmax.f32 %v3408_v52, %v3409_v53  ;;  %v3423_v35 = vrot.slane %v3422_v32, 2  ;;  %v3429_v55 = vmax.f32 %v3427_v48, %v3428_v31 }
 0x33a   :  { %v3397_v8 = vrot.slane %v3396_v40, 1  ;;  %v3417_v47 = vmax.f32 %v3415_v61, %v3416_v29  ;;  %v3436_v41 = vmax.f32 %v3434_v1, %v3435_v25  ;;  %v3442_v33 = vrot.slane %v3441_v14, 4 }
 0x33b   :  { %v3404_v34 = vrot.slane %v3403_v36, 1  ;;  %v3411_v56 = vrot.slane %v3410_v43, 1  ;;  %v3424_v0 = vmax.f32 %v3422_v32, %v3423_v35  ;;  %v3430_v57 = vrot.slane %v3429_v55, 2  ;;  %v15663_v32 = vpop.permute.xlu1 %1675 }
 0x33c   :  { %v3398_v58 = vmax.f32 %v3396_v40, %v3397_v8  ;;  %v3418_v37 = vrot.slane %v3417_v47, 1  ;;  %v3437_v27 = vrot.slane %v3436_v41, 2  ;;  %v3443_v63 = vmax.f32 %v3441_v14, %v3442_v33 }
 0x33d   :  { %v3405_v50 = vmax.f32 %v3403_v36, %v3404_v34  ;;  %v3412_v21 = vmax.f32 %v3410_v43, %v3411_v56  ;;  %v3425_v10 = vrot.slane %v3424_v0, 1  ;;  %v3431_v13 = vmax.f32 %v3429_v55, %v3430_v57  ;;  %v1674_v43 = vpop.permute.xlu0 %1673 }
 0x33e   :  { %v3419_v62 = vmax.f32 %v3417_v47, %v3418_v37  ;;  %v3438_v26 = vmax.f32 %v3436_v41, %v3437_v27  ;;  %v3444_v2 = vrot.slane %v3443_v63, 2  ;;  %v1691_v38 = vsel %vm1677_vm4, %v1666_v24, %v1668_v54 }
 0x33f   :  { %v3426_v19 = vmax.f32 %v3424_v0, %v3425_v10  ;;  %v3432_v6 = vrot.slane %v3431_v13, 1  ;;  %v13118_v17 = vpack.c.bf16 %v3405_v50, %v3398_v58  ;;  %v17519_v20 = vmax.f32 %v15125_v5, 0.0 }
 0x340   :  { %v3439_v39 = vrot.slane %v3438_v26, 1  ;;  %v3445_v4 = vmax.f32 %v3443_v63, %v3444_v2  ;;  %v13119_v22 = vpack.c.bf16 %v3419_v62, %v3412_v21  ;;  %v17520_v49 = vmax.f32 %v15138_v15, 0.0 }
 0x341   :  { %v1752_v23 = vmax.f32 %v17519_v20, %v1691_v38  ;;  %v3433_v44 = vmax.f32 %v3431_v13, %v3432_v6  ;;  %v4184_v30 = vunpack.c.l.b16 %v13118_v17  ;;  %v4185_v42 = vunpack.c.h.b16 %v13118_v17 }
 0x342   :  { %v1753_v51 = vmax.f32 %v17520_v49, %v1668_v54  ;;  %v1692_v46 = vsel %vm1677_vm4, %v1670_v9, %v1672_v59  ;;  %v3440_v52 = vmax.f32 %v3438_v26, %v3439_v39  ;;  %v3446_v60 = vrot.slane %v3445_v4, 1 }
 0x343   :  { %v4186_v28 = vunpack.c.l.b16 %v13119_v22  ;;  %v4187_v61 = vunpack.c.h.b16 %v13119_v22  ;;  %v13120_v48 = vpack.c.bf16 %v3433_v44, %v3426_v19  ;;  %v17521_v5 = vmax.f32 %v15141_v7, 0.0 }
 0x344   :  { %v2024_v1 = vcombine.low %v1752_v23, %v1753_v51  ;;  %v2025_v18 = vcombine.high %v1752_v23, %v1753_v51  ;;  %v3447_v31 = vmax.f32 %v3445_v4, %v3446_v60  ;;  %v17522_v40 = vmax.f32 %v15153_v45, 0.0 }
 0x345   :  { %v1754_v53 = vmax.f32 %v17521_v5, %v1692_v46  ;;  %v4307_v15 = vsel %vm17377_vm10, %v4186_v28, %v4184_v30  ;;  %v4314_v54 = vsel %vm17377_vm10, %v4187_v61, %v4185_v42  ;;  %v4188_v25 = vunpack.c.l.b16 %v13120_v48 }
 0x346   :  { %v1755_v29 = vmax.f32 %v17522_v40, %v1672_v59  ;;  %v4189_v14 = vunpack.c.h.b16 %v13120_v48  ;;  %v2032_v24 = vrot.slane %v2024_v1, %v15183_v11  ;;  %v2039_v36 = vrot.slane %v2025_v18, %v15183_v11 }
 0x347   :  { %v13121_v35 = vpack.c.bf16 %v3447_v31, %v3440_v52  ;;  %v15673_v8 = vsel %vm1677_vm4, %v1674_v43, %v15663_v32  ;;  %v4308_v47 = vsel %vm17376_vm13, %v4188_v25, %v4307_v15 }
 0x348   :  { %v2042_v7 = vcombine.low %v1754_v53, %v1755_v29  ;;  %v2043_v55 = vcombine.high %v1754_v53, %v1755_v29  ;;  %v4315_v41 = vsel %vm17376_vm13, %v4189_v14, %v4314_v54  ;;  %v2040_v45 = vcombine.high %v2032_v24, %v2032_v24 }
 0x349   :  { %v2041_v33 = vcombine.high %v2039_v36, %v2039_v36  ;;  %v4190_v34 = vunpack.c.l.b16 %v13121_v35  ;;  %v4191_v56 = vunpack.c.h.b16 %v13121_v35  ;;  %v2500_v0 = vrot.slane %v2032_v24, %v15183_v11 }
 0x34a   :  { %v2516_v57 = vrot.slane %v2039_v36, %v15183_v11  ;;  %v2508_v58 = vrot.slane %v2040_v45, %v15183_v11  ;;  %v15682_v27 = vrot.slane %v2042_v7, %v15183_v11  ;;  %v15685_v63 = vrot.slane %v2043_v55, %v15183_v11 }
 0x34b   :  { %v2524_v37 = vrot.slane %v2041_v33, %v15183_v11  ;;  %v15688_v50 = vsel %vm17375_vm3, %v4190_v34, %v4308_v47  ;;  %v15691_v21 = vsel %vm17375_vm3, %v4191_v56, %v4315_v41  ;;  %v2501_v10 = vcombine.high %v2500_v0, %v2500_v0 }
 0x34c   :  { %v2517_v13 = vcombine.high %v2516_v57, %v2516_v57  ;;  %v2509_v59 = vcombine.high %v2508_v58, %v2508_v58  ;;  %v3448_v26 = vsel %vm2718_vm2, %v2500_v0, -inf  ;;  %v3462_v2 = vsel %vm2718_vm2, %v2508_v58, -inf }
 0x34d   :  { %v2525_v62 = vcombine.high %v2524_v37, %v2524_v37  ;;  %v3449_v38 = vrot.slane %v3448_v26, 4  ;;  %v3455_v19 = vsel %vm2726_vm5, %v2501_v10, -inf  ;;  %v3463_v6 = vrot.slane %v3462_v2, 4 }
 0x34e   :  { %v3476_v17 = vsel %vm2718_vm2, %v2516_v57, -inf  ;;  %v3456_v9 = vrot.slane %v3455_v19, 4  ;;  %v3469_v20 = vsel %vm2726_vm5, %v2509_v59, -inf  ;;  %v3483_v39 = vsel %vm2726_vm5, %v2517_v13, -inf }
 0x34f   :  { %v3477_v23 = vrot.slane %v3476_v17, 4  ;;  %v3450_v4 = vmax.f32 %v3448_v26, %v3449_v38  ;;  %v3464_v22 = vmax.f32 %v3462_v2, %v3463_v6  ;;  %v3470_v49 = vrot.slane %v3469_v20, 4 }
 0x350   :  { %v3484_v51 = vrot.slane %v3483_v39, 4  ;;  %v3457_v44 = vmax.f32 %v3455_v19, %v3456_v9  ;;  %v3490_v42 = vsel %vm2718_vm2, %v2524_v37, -inf  ;;  %v3497_v46 = vsel %vm2726_vm5, %v2525_v62, -inf }
 0x351   :  { %v3478_v30 = vmax.f32 %v3476_v17, %v3477_v23  ;;  %v3451_v52 = vrot.slane %v3450_v4, 2  ;;  %v3465_v60 = vrot.slane %v3464_v22, 2  ;;  %v3471_v28 = vmax.f32 %v3469_v20, %v3470_v49 }
 0x352   :  { %v3485_v61 = vmax.f32 %v3483_v39, %v3484_v51  ;;  %v3458_v48 = vrot.slane %v3457_v44, 2  ;;  %v3491_v18 = vrot.slane %v3490_v42, 4  ;;  %v3498_v5 = vrot.slane %v3497_v46, 4 }
 0x353   :  { %v3479_v1 = vrot.slane %v3478_v30, 2  ;;  %v3452_v53 = vmax.f32 %v3450_v4, %v3451_v52  ;;  %v3466_v31 = vmax.f32 %v3464_v22, %v3465_v60  ;;  %v3472_v15 = vrot.slane %v3471_v28, 2 }
 0x354   :  { %v3486_v54 = vrot.slane %v3485_v61, 2  ;;  %v3459_v40 = vmax.f32 %v3457_v44, %v3458_v48  ;;  %v3492_v25 = vmax.f32 %v3490_v42, %v3491_v18  ;;  %v3499_v14 = vmax.f32 %v3497_v46, %v3498_v5 }
 0x355   :  { %v3480_v29 = vmax.f32 %v3478_v30, %v3479_v1  ;;  %v3453_v24 = vrot.slane %v3452_v53, 1  ;;  %v3467_v36 = vrot.slane %v3466_v31, 1  ;;  %v3473_v43 = vmax.f32 %v3471_v28, %v3472_v15 }
 0x356   :  { %v3487_v35 = vmax.f32 %v3485_v61, %v3486_v54  ;;  %v3460_v7 = vrot.slane %v3459_v40, 1  ;;  %v3493_v47 = vrot.slane %v3492_v25, 2  ;;  %v3500_v41 = vrot.slane %v3499_v14, 2 }
 0x357   :  { %v3481_v55 = vrot.slane %v3480_v29, 1  ;;  %v3454_v45 = vmax.f32 %v3452_v53, %v3453_v24  ;;  %v3468_v33 = vmax.f32 %v3466_v31, %v3467_v36  ;;  %v3474_v34 = vrot.slane %v3473_v43, 1 }
 0x358   :  { %v3488_v56 = vrot.slane %v3487_v35, 1  ;;  %v3461_v0 = vmax.f32 %v3459_v40, %v3460_v7  ;;  %v3494_v58 = vmax.f32 %v3492_v25, %v3493_v47  ;;  %v3501_v37 = vmax.f32 %v3499_v14, %v3500_v41 }
 0x359   :  { %v3482_v57 = vmax.f32 %v3480_v29, %v3481_v55  ;;  %v3475_v10 = vmax.f32 %v3473_v43, %v3474_v34  ;;  %v2058_v59 = vcombine.high %v15682_v27, %v15682_v27  ;;  %v2059_v62 = vcombine.high %v15685_v63, %v15685_v63 }
 0x35a   :  { %v3489_v13 = vmax.f32 %v3487_v35, %v3488_v56  ;;  %v3495_v26 = vrot.slane %v3494_v58, 1  ;;  %v3502_v2 = vrot.slane %v3501_v37, 1  ;;  %v13122_v38 = vpack.c.bf16 %v3461_v0, %v3454_v45 }
 0x35b   :  { %v2532_v19 = vrot.slane %v15682_v27, %v15183_v11  ;;  %v13123_v6 = vpack.c.bf16 %v3475_v10, %v3468_v33  ;;  %v2540_v9 = vrot.slane %v2058_v59, %v15183_v11  ;;  %v2548_v20 = vrot.slane %v15685_v63, %v15183_v11 }
 0x35c   :  { %v13124_v17 = vpack.c.bf16 %v3489_v13, %v3482_v57  ;;  %v3496_v23 = vmax.f32 %v3494_v58, %v3495_v26  ;;  %v3503_v39 = vmax.f32 %v3501_v37, %v3502_v2  ;;  %v4192_v4 = vunpack.c.l.b16 %v13122_v38 }
 0x35d   :  { %v4193_v22 = vunpack.c.h.b16 %v13122_v38  ;;  %v4194_v49 = vunpack.c.l.b16 %v13123_v6  ;;  %v4195_v51 = vunpack.c.h.b16 %v13123_v6  ;;  %v2533_v52 = vcombine.high %v2532_v19, %v2532_v19 }
 0x35e   :  { %v4196_v44 = vunpack.c.l.b16 %v13124_v17  ;;  %v4197_v30 = vunpack.c.h.b16 %v13124_v17  ;;  %v13125_v42 = vpack.c.bf16 %v3503_v39, %v3496_v23  ;;  %v4310_v46 = vsel %vm17374_vm15, %v4192_v4, %v15688_v50 }
 0x35f   :  { %v4317_v27 = vsel %vm17374_vm15, %v4193_v22, %v15691_v21  ;;  %v4311_v60 = vsel %vm17497_vm6, %v4194_v49, %v4310_v46  ;;  %v2541_v28 = vcombine.high %v2540_v9, %v2540_v9  ;;  %v2549_v61 = vcombine.high %v2548_v20, %v2548_v20 }
 0x360   :  { %v4318_v63 = vsel %vm17523_vm8, %v4195_v51, %v4317_v27  ;;  %v4198_v48 = vunpack.c.l.b16 %v13125_v42  ;;  %v4199_v1 = vunpack.c.h.b16 %v13125_v42  ;;  %v4312_v18 = vsel %vm17373_vm1, %v4196_v44, %v4311_v60 }
 0x361   :  { %v4319_v5 = vsel %vm17373_vm1, %v4197_v30, %v4318_v63  ;;  %v2556_v53 = vrot.slane %v2059_v62, %v15183_v11  ;;  %v3504_v50 = vsel %vm2718_vm2, %v2532_v19, -inf  ;;  %v3511_v31 = vsel %vm2726_vm5, %v2533_v52, -inf }
 0x362   :  { %v3518_v21 = vsel %vm2718_vm2, %v2540_v9, -inf  ;;  %v4313_v15 = vsel %vm17372_vm11, %v4198_v48, %v4312_v18  ;;  %v4320_v54 = vsel %vm17372_vm11, %v4199_v1, %v4319_v5  ;;  %v3505_v40 = vrot.slane %v3504_v50, 4 }
 0x363   :  { %v3512_v29 = vrot.slane %v3511_v31, 4  ;;  %v4341_v25 = vpack.c.b16 %v4320_v54, %v4313_v15  ;;  %v2557_v14 = vcombine.high %v2556_v53, %v2556_v53  ;;  %v3519_v24 = vrot.slane %v3518_v21, 4 }
 0x364   :  { %v3525_v36 = vsel %vm2726_vm5, %v2541_v28, -inf  ;;  %v3506_v43 = vmax.f32 %v3504_v50, %v3505_v40  ;;  %v3532_v55 = vsel %vm2718_vm2, %v2548_v20, -inf  ;;  %v3539_v45 = vsel %vm2726_vm5, %v2549_v61, -inf }
 0x365   :  { %v3513_v35 = vmax.f32 %v3511_v31, %v3512_v29  ;;  %v3526_v7 = vrot.slane %v3525_v36, 4  ;;  %4360 = vst.msk [vmem:[#allocation3 + $0x48] sm:$0xff] %vm15268_vm12, %v4341_v25  ;;  %v3520_v47 = vmax.f32 %v3518_v21, %v3519_v24  ;;  %v3533_v41 = vrot.slane %v3532_v55, 4 }
 0x366   :  { %v3546_v33 = vsel %vm2718_vm2, %v2556_v53, -inf  ;;  %v3507_v34 = vrot.slane %v3506_v43, 2  ;;  %v3540_v57 = vrot.slane %v3539_v45, 4  ;;  %v3553_v13 = vsel %vm2726_vm5, %v2557_v14, -inf }
 0x367   :  { %v3514_v56 = vrot.slane %v3513_v35, 2  ;;  %v3527_v0 = vmax.f32 %v3525_v36, %v3526_v7  ;;  %v3521_v58 = vrot.slane %v3520_v47, 2  ;;  %v3534_v37 = vmax.f32 %v3532_v55, %v3533_v41 }
 0x368   :  { %v3547_v10 = vrot.slane %v3546_v33, 4  ;;  %v3508_v59 = vmax.f32 %v3506_v43, %v3507_v34  ;;  %v3541_v2 = vmax.f32 %v3539_v45, %v3540_v57  ;;  %v3554_v17 = vrot.slane %v3553_v13, 4 }
 0x369   :  { %v3515_v62 = vmax.f32 %v3513_v35, %v3514_v56  ;;  %v3528_v26 = vrot.slane %v3527_v0, 2  ;;  %v3522_v38 = vmax.f32 %v3520_v47, %v3521_v58  ;;  %v3535_v19 = vrot.slane %v3534_v37, 2 }
 0x36a   :  { %v3548_v6 = vmax.f32 %v3546_v33, %v3547_v10  ;;  %v3509_v9 = vrot.slane %v3508_v59, 1  ;;  %v3542_v39 = vrot.slane %v3541_v2, 2  ;;  %v3555_v51 = vmax.f32 %v3553_v13, %v3554_v17 }
 0x36b   :  { %v3516_v20 = vrot.slane %v3515_v62, 1  ;;  %v3529_v23 = vmax.f32 %v3527_v0, %v3528_v26  ;;  %v3523_v4 = vrot.slane %v3522_v38, 1  ;;  %v3536_v22 = vmax.f32 %v3534_v37, %v3535_v19 }
 0x36c   :  { %v3549_v49 = vrot.slane %v3548_v6, 2  ;;  %v3510_v44 = vmax.f32 %v3508_v59, %v3509_v9  ;;  %v3543_v46 = vmax.f32 %v3541_v2, %v3542_v39  ;;  %v3556_v63 = vrot.slane %v3555_v51, 2 }
 0x36d   :  { %v3517_v30 = vmax.f32 %v3515_v62, %v3516_v20  ;;  %v3530_v42 = vrot.slane %v3529_v23, 1  ;;  %v3524_v27 = vmax.f32 %v3522_v38, %v3523_v4  ;;  %v3537_v52 = vrot.slane %v3536_v22, 1 }
 0x36e   :  { %v3550_v60 = vmax.f32 %v3548_v6, %v3549_v49  ;;  %v3544_v61 = vrot.slane %v3543_v46, 1  ;;  %v17524_v1 = vmax.f32 %v15156_v3, 0.0  ;;  %v3557_v5 = vmax.f32 %v3555_v51, %v3556_v63 }
 0x36f   :  { %v3531_v28 = vmax.f32 %v3529_v23, %v3530_v42  ;;  %v13126_v48 = vpack.c.bf16 %v3517_v30, %v3510_v44  ;;  %v17525_v53 = vmax.f32 %v15167_v12, 0.0  ;;  %v3538_v31 = vmax.f32 %v3536_v22, %v3537_v52 }
 0x370   :  { %v1756_v18 = vmax.f32 %v17524_v1, %v15673_v8  ;;  %v3545_v21 = vmax.f32 %v3543_v46, %v3544_v61  ;;  %v3551_v15 = vrot.slane %v3550_v60, 1  ;;  %v3558_v40 = vrot.slane %v3557_v5, 1 }
 0x371   :  { %v1757_v50 = vmax.f32 %v17525_v53, %v15663_v32  ;;  %v13127_v54 = vpack.c.bf16 %v3531_v28, %v3524_v27  ;;  %v4200_v24 = vunpack.c.l.b16 %v13126_v48  ;;  %v4201_v12 = vunpack.c.h.b16 %v13126_v48 }
 0x372   :  { %v15737_v14 = vpack.c.bf16 %v3545_v21, %v3538_v31  ;;  %v3559_v35 = vmax.f32 %v3557_v5, %v3558_v40  ;;  %v3552_v7 = vmax.f32 %v3550_v60, %v3551_v15 }
 0x373   :  { %v2060_v29 = vcombine.low %v1756_v18, %v1757_v50  ;;  %v2061_v25 = vcombine.high %v1756_v18, %v1757_v50  ;;  %v4202_v36 = vunpack.c.l.b16 %v13127_v54  ;;  %v4203_v43 = vunpack.c.h.b16 %v13127_v54 }
 0x374   :  { %v4204_v55 = vunpack.c.l.b16 %v15737_v14  ;;  %v4205_v33 = vunpack.c.h.b16 %v15737_v14  ;;  %v15747_v0 = vpack.c.bf16 %v3559_v35, %v3552_v7 }
 0x375   :  { %v2068_v3 = vrot.slane %v2060_v29, %v15183_v11  ;;  %v2075_v8 = vrot.slane %v2061_v25, %v15183_v11  ;;  %v4321_v32 = vsel %vm17377_vm10, %v4202_v36, %v4200_v24  ;;  %v4328_v34 = vsel %vm17377_vm10, %v4203_v43, %v4201_v12 }
 0x376   :  { %v15750_v57 = vsel %vm17376_vm13, %v4204_v55, %v4321_v32  ;;  %v4329_v43 = vsel %vm17376_vm13, %v4205_v33, %v4328_v34  ;;  %v4206_v7 = vunpack.c.l.b16 %v15747_v0 }
 0x377   :  { %v2076_v47 = vcombine.high %v2068_v3, %v2068_v3  ;;  %v2077_v41 = vcombine.high %v2075_v8, %v2075_v8  ;;  %v2564_v45 = vrot.slane %v2068_v3, %v15183_v11  ;;  %v2580_v56 = vrot.slane %v2075_v8, %v15183_v11 }
 0x378   :  { %v4323_v33 = vsel %vm17375_vm3, %v4206_v7, %v15750_v57 }
 0x379   :  { %v2565_v58 = vcombine.high %v2564_v45, %v2564_v45  ;;  %v2572_v37 = vrot.slane %v2076_v47, %v15183_v11  ;;  %v2581_v10 = vcombine.high %v2580_v56, %v2580_v56  ;;  %v2588_v13 = vrot.slane %v2077_v41, %v15183_v11 }
 0x37a   :  { %v3560_v59 = vsel %vm2718_vm2, %v2564_v45, -inf  ;;  %v3588_v62 = vsel %vm2718_vm2, %v2580_v56, -inf  ;;  %v4207_v47 = vunpack.c.h.b16 %v15747_v0 }
 0x37b   :  { %v2573_v26 = vcombine.high %v2572_v37, %v2572_v37  ;;  %v3561_v2 = vrot.slane %v3560_v59, 4  ;;  %v3567_v38 = vsel %vm2726_vm5, %v2565_v58, -inf  ;;  %v3574_v19 = vsel %vm2718_vm2, %v2572_v37, -inf }
 0x37c   :  { %v2589_v6 = vcombine.high %v2588_v13, %v2588_v13  ;;  %v3568_v17 = vrot.slane %v3567_v38, 4  ;;  %v3575_v9 = vrot.slane %v3574_v19, 4  ;;  %v3589_v20 = vrot.slane %v3588_v62, 4 }
 0x37d   :  { %v3562_v23 = vmax.f32 %v3560_v59, %v3561_v2  ;;  %v3581_v39 = vsel %vm2726_vm5, %v2573_v26, -inf  ;;  %v3595_v4 = vsel %vm2726_vm5, %v2581_v10, -inf  ;;  %v3602_v22 = vsel %vm2718_vm2, %v2588_v13, -inf }
 0x37e   :  { %v3569_v49 = vmax.f32 %v3567_v38, %v3568_v17  ;;  %v3576_v51 = vmax.f32 %v3574_v19, %v3575_v9  ;;  %v3582_v44 = vrot.slane %v3581_v39, 4  ;;  %v3590_v30 = vmax.f32 %v3588_v62, %v3589_v20 }
 0x37f   :  { %v3563_v42 = vrot.slane %v3562_v23, 2  ;;  %v3596_v46 = vrot.slane %v3595_v4, 4  ;;  %v3603_v27 = vrot.slane %v3602_v22, 4  ;;  %v3609_v52 = vsel %vm2726_vm5, %v2589_v6, -inf  ;;  %vm17526_vm5 = vmmov %vm17497_vm6 }
 0x380   :  { %v3570_v60 = vrot.slane %v3569_v49, 2  ;;  %v3577_v63 = vrot.slane %v3576_v51, 2  ;;  %v3583_v28 = vmax.f32 %v3581_v39, %v3582_v44  ;;  %v3591_v61 = vrot.slane %v3590_v30, 2  ;;  %vm17527_vm6 = vmmov %vm17526_vm5 }
 0x381   :  { %v3564_v48 = vmax.f32 %v3562_v23, %v3563_v42  ;;  %v3597_v1 = vmax.f32 %v3595_v4, %v3596_v46  ;;  %v3604_v18 = vmax.f32 %v3602_v22, %v3603_v27  ;;  %v3610_v5 = vrot.slane %v3609_v52, 4 }
 0x382   :  { %v3571_v53 = vmax.f32 %v3569_v49, %v3570_v60  ;;  %v3578_v50 = vmax.f32 %v3576_v51, %v3577_v63  ;;  %v3584_v31 = vrot.slane %v3583_v28, 2  ;;  %v3592_v21 = vmax.f32 %v3590_v30, %v3591_v61 }
 0x383   :  { %v3565_v15 = vrot.slane %v3564_v48, 1  ;;  %v3598_v54 = vrot.slane %v3597_v1, 2  ;;  %v3605_v40 = vrot.slane %v3604_v18, 2  ;;  %v3611_v29 = vmax.f32 %v3609_v52, %v3610_v5 }
 0x384   :  { %v3572_v25 = vrot.slane %v3571_v53, 1  ;;  %v3579_v14 = vrot.slane %v3578_v50, 1  ;;  %v3585_v24 = vmax.f32 %v3583_v28, %v3584_v31  ;;  %v3593_v36 = vrot.slane %v3592_v21, 1 }
 0x385   :  { %v3599_v35 = vmax.f32 %v3597_v1, %v3598_v54  ;;  %v3606_v3 = vmax.f32 %v3604_v18, %v3605_v40  ;;  %v3612_v8 = vrot.slane %v3611_v29, 2  ;;  %v3566_v12 = vmax.f32 %v3564_v48, %v3565_v15 }
 0x386   :  { %v3573_v32 = vmax.f32 %v3571_v53, %v3572_v25  ;;  %v3586_v55 = vrot.slane %v3585_v24, 1  ;;  %v3580_v58 = vmax.f32 %v3578_v50, %v3579_v14  ;;  %v3594_v10 = vmax.f32 %v3592_v21, %v3593_v36 }
 0x387   :  { %v3600_v41 = vrot.slane %v3599_v35, 1  ;;  %v3607_v45 = vrot.slane %v3606_v3, 1  ;;  %v3613_v56 = vmax.f32 %v3611_v29, %v3612_v8  ;;  %v4330_v34 = vsel %vm17375_vm3, %v4207_v47, %v4329_v43 }
 0x388   :  { %v3587_v37 = vmax.f32 %v3585_v24, %v3586_v55  ;;  %v13130_v13 = vpack.c.bf16 %v3573_v32, %v3566_v12 }
 0x389   :  { %v3601_v59 = vmax.f32 %v3599_v35, %v3600_v41  ;;  %v3614_v62 = vrot.slane %v3613_v56, 1  ;;  %v3608_v19 = vmax.f32 %v3606_v3, %v3607_v45 }
 0x38a   :  { %v13131_v26 = vpack.c.bf16 %v3587_v37, %v3580_v58  ;;  %v4208_v2 = vunpack.c.l.b16 %v13130_v13  ;;  %v4209_v38 = vunpack.c.h.b16 %v13130_v13 }
 0x38b   :  { %v3615_v6 = vmax.f32 %v3613_v56, %v3614_v62  ;;  %v13132_v0 = vpack.c.bf16 %v3601_v59, %v3594_v10 }
 0x38c   :  { %v4210_v17 = vunpack.c.l.b16 %v13131_v26  ;;  %v4211_v9 = vunpack.c.h.b16 %v13131_v26  ;;  %v4324_v20 = vsel %vm17374_vm15, %v4208_v2, %v4323_v33  ;;  %v4331_v23 = vsel %vm17374_vm15, %v4209_v38, %v4330_v34 }
 0x38d   :  { %v13133_v39 = vpack.c.bf16 %v3615_v6, %v3608_v19  ;;  %v4212_v4 = vunpack.c.l.b16 %v13132_v0  ;;  %v4213_v22 = vunpack.c.h.b16 %v13132_v0 }
 0x38e   :  { %v4325_v49 = vsel %vm17526_vm5, %v4210_v17, %v4324_v20  ;;  %v4332_v57 = vsel %vm17527_vm6, %v4211_v9, %v4331_v23 }
 0x38f   :  { %v4214_v51 = vunpack.c.l.b16 %v13133_v39  ;;  %v4215_v44 = vunpack.c.h.b16 %v13133_v39  ;;  %v4326_v30 = vsel %vm17373_vm1, %v4212_v4, %v4325_v49  ;;  %v4333_v42 = vsel %vm17373_vm1, %v4213_v22, %v4332_v57 }
 0x391   :  { %v4327_v46 = vsel %vm17372_vm11, %v4214_v51, %v4326_v30  ;;  %v4334_v27 = vsel %vm17372_vm11, %v4215_v44, %v4333_v42 }
 0x392   :  { %v4342_v52 = vpack.c.b16 %v4334_v27, %v4327_v46 }
 0x394   :  { %4361 = vst.msk [vmem:[#allocation3 + $0x50] sm:$0xff] %vm15268_vm12, %v4342_v52 }
 0x395   :  { %14037 = dma.done.wait [#allocation16], 11904 }
 0x396   :  { %14038 = vsyncadd [#allocation16], 4294955392  ;;  %v13318_v60 = vld [vmem:[#allocation8 + $0x16c] ss:$8 sps:$4 sm:$0xff]   ;;  %v13322_v28 = vld [vmem:[#allocation8 + $0x168] ss:$8 sps:$4 sm:$0xff]  }
 0x397   :  { %v13320_v63 = vld [vmem:[#allocation8 + $0x74] ss:$8 sps:$4 sm:$0xff]   ;;  %4729 = vmatprep.subr.bf16.mxu1 %v13318_v60  ;;  %v13323_v61 = vld [vmem:[#allocation8 + $0x70] ss:$8 sps:$4 sm:$0xff]   ;;  %v13326_v1 = vld [vmem:[#allocation8 + $0x64] ss:$8 sps:$4 sm:$0xff]  }
 0x398   :  { %5003 = vmatprep.subr.bf16.mxu0 %v13320_v63  ;;  %v13324_v48 = vld [vmem:[#allocation8 + $0x15c] ss:$8 sps:$4 sm:$0xff]   ;;  %4730 = vmatpush1.bf16.msra.mxu1 %v13322_v28  ;;  %v13328_v18 = vld [vmem:[#allocation8 + $0x158] ss:$8 sps:$4 sm:$0xff]   ;;  %v13330_v53 = vld [vmem:[#allocation8 + $0x14c] ss:$8 sps:$4 sm:$0xff]  }
 0x399   :  { %5004 = vmatpush1.bf16.msra.mxu0 %v13323_v61  ;;  %4731 = vmatprep.subr.bf16.mxu1 %v13324_v48  ;;  %v13329_v5 = vld [vmem:[#allocation8 + $0x60] ss:$8 sps:$4 sm:$0xff]   ;;  %v13332_v50 = vld [vmem:[#allocation8 + $0x54] ss:$8 sps:$4 sm:$0xff]   ;;  %v13335_v31 = vld [vmem:[#allocation8 + $0x50] ss:$8 sps:$4 sm:$0xff]  }
 0x39a   :  { %5005 = vmatprep.subr.bf16.mxu0 %v13326_v1  ;;  %v13334_v16 = vld [vmem:[#allocation8 + $0x148] ss:$8 sps:$4 sm:$0xff]   ;;  %v13336_v21 = vld [vmem:[#allocation8 + $0x13c] ss:$8 sps:$4 sm:$0xff]   ;;  %v13340_v54 = vld [vmem:[#allocation8 + $0x138] ss:$8 sps:$4 sm:$0xff]  }
 0x39b   :  { %v13338_v15 = vld [vmem:[#allocation8 + $0x44] ss:$8 sps:$4 sm:$0xff]   ;;  %v13341_v40 = vld [vmem:[#allocation8 + $0x40] ss:$8 sps:$4 sm:$0xff]   ;;  %v13344_v25 = vld [vmem:[#allocation8 + $0x34] ss:$8 sps:$4 sm:$0xff]  }
 0x39c   :  { %4732 = vmatpush1.bf16.msra.mxu1 %v13328_v18  ;;  %v13342_v29 = vld [vmem:[#allocation8 + $0x12c] ss:$8 sps:$4 sm:$0xff]   ;;  %v13346_v14 = vld [vmem:[#allocation8 + $0x128] ss:$8 sps:$4 sm:$0xff]   ;;  %v13348_v36 = vld [vmem:[#allocation8 + $0x11c] ss:$8 sps:$4 sm:$0xff]  }
 0x39d   :  { %5006 = vmatpush1.bf16.msra.mxu0 %v13329_v5  ;;  %4733 = vmatprep.subr.bf16.mxu1 %v13330_v53  ;;  %v13347_v24 = vld [vmem:[#allocation8 + $0x30] ss:$8 sps:$4 sm:$0xff]   ;;  %v13350_v43 = vld [vmem:[#allocation8 + $0x24] ss:$8 sps:$4 sm:$0xff]   ;;  %v13353_v3 = vld [vmem:[#allocation8 + $0x20] ss:$8 sps:$4 sm:$0xff]  }
 0x39e   :  { %5007 = vmatprep.subr.bf16.mxu0 %v13332_v50  ;;  %v13352_v35 = vld [vmem:[#allocation8 + $0x118] ss:$8 sps:$4 sm:$0xff]   ;;  %v13354_v8 = vld [vmem:[#allocation8 + $0x10c] ss:$8 sps:$4 sm:$0xff]   ;;  %v13358_v12 = vld [vmem:[#allocation8 + $0x108] ss:$8 sps:$4 sm:$0xff]  }
 0x39f   :  { %v13356_v7 = vld [vmem:[#allocation8 + $0x14] ss:$8 sps:$4 sm:$0xff]   ;;  %v13359_v32 = vld [vmem:[#allocation8 + $0x10] ss:$8 sps:$4 sm:$0xff]   ;;  %v13362_v47 = vld [vmem:[#allocation8 + $0x4] ss:$8 sps:$4 sm:$0xff]  }
 0x3a0   :  { %4734 = vmatpush1.bf16.msra.mxu1 %v13334_v16  ;;  %v13360_v55 = vld [vmem:[#allocation8 + $0xfc] ss:$8 sps:$4 sm:$0xff]   ;;  %v4519_v41 = vld [vmem:[#allocation8 + $0x1e8] sm:$0xff]  ;;  %v4487_v45 = vld [vmem:[#allocation8 + $0xf0] sm:$0xff]  ;;  %vm17528_vm12 = vcmask 1043456  }
 0x3a1   :  { %5008 = vmatpush1.bf16.msra.mxu0 %v13335_v31  ;;  %4735 = vmatprep.subr.bf16.mxu1 %v13336_v21  ;;  %v13364_v56 = vld [vmem:[#allocation8 + $0xf8] ss:$8 sps:$4 sm:$0xff]   ;;  %v12529_v37 = vcombine.high %v4519_v41, %v4519_v41  ;;  %v12574_v10 = vcombine.high %v4487_v45, %v4487_v45  ;;  %v12528_v13 = vcombine.low %v4519_v41, %v4519_v41  ;;  %v13370_v62 = vld [vmem:[#allocation8 + $0x1dc] ss:$8 sps:$4 sm:$0xff]   ;;  %vm17529_vm8 = vmmov %vm17528_vm12 }
 0x3a2   :  { %5009 = vmatprep.subr.bf16.mxu0 %v13338_v15  ;;  %v13365_v58 = vld [vmem:[#allocation8] ss:$8 sps:$4 sm:$0xff]   ;;  %v12573_v59 = vcombine.low %v4487_v45, %v4487_v45  ;;  %vm17530_vm5 = vmmov %vm17529_vm8  ;;  %v13372_v26 = vld [vmem:[#allocation8 + $0xe4] ss:$8 sps:$4 sm:$0xff]  }
 0x3a3   :  { %v4724_v33 = vsel %vm17530_vm5, %v12528_v13, 0  ;;  %vm17531_vm6 = vmmov %vm17530_vm5  ;;  %v13374_v2 = vld [vmem:[#allocation8 + $0x1d8] ss:$8 sps:$4 sm:$0xff]   ;;  %v13376_v19 = vld [vmem:[#allocation8 + $0x1cc] ss:$8 sps:$4 sm:$0xff]  }
 0x3a4   :  { %4736 = vmatpush1.bf16.msra.mxu1 %v13340_v54  ;;  %v4998_v34 = vsel %vm17531_vm6, %v12573_v59, 0  ;;  %v13375_v38 = vld [vmem:[#allocation8 + $0xe0] ss:$8 sps:$4 sm:$0xff]   ;;  %v13378_v6 = vld [vmem:[#allocation8 + $0xd4] ss:$8 sps:$4 sm:$0xff]  }
 0x3a5   :  { %5010 = vmatpush1.bf16.msra.mxu0 %v13341_v40  ;;  %4737 = vmatprep.subr.bf16.mxu1 %v13342_v29  ;;  %v13380_v0 = vld [vmem:[#allocation8 + $0x1c8] ss:$8 sps:$4 sm:$0xff]   ;;  %v13382_v9 = vld [vmem:[#allocation8 + $0x1bc] ss:$8 sps:$4 sm:$0xff]   ;;  %v13386_v44 = vld [vmem:[#allocation8 + $0x1b8] ss:$8 sps:$4 sm:$0xff]  }
 0x3a6   :  { %5011 = vmatprep.subr.bf16.mxu0 %v13344_v25  ;;  %v13381_v17 = vld [vmem:[#allocation8 + $0xd0] ss:$8 sps:$4 sm:$0xff]   ;;  %v13384_v20 = vld [vmem:[#allocation8 + $0xc4] ss:$8 sps:$4 sm:$0xff]   ;;  %v13387_v46 = vld [vmem:[#allocation8 + $0xc0] ss:$8 sps:$4 sm:$0xff]  }
 0x3a7   :  { %v15782_v23 = vld [vmem:[#allocation3 + $0x8] sm:$0xff]  ;;  %v15784_v39 = vld [vmem:[#allocation3 + $0x10] sm:$0xff]  ;;  %v4367_v4 = vld [vmem:[#allocation3] sm:$0x88] }
 0x3a8   :  { %4738 = vmatpush1.bf16.msra.mxu1 %v13346_v14  ;;  %v12491_v22 = vcombine.high %v15782_v23, %v15784_v39  ;;  %v4378_v49 = vshrl.u32 %v4367_v4, 16  ;;  %v4383_v57 = vshrl.u32 %v15782_v23, 16  ;;  %v4386_v51 = vshll.u32 %v15782_v23, 16  ;;  %v13388_v60 = vld [vmem:[#allocation8 + $0x1ac] ss:$8 sps:$4 sm:$0xff]   ;;  %v15811_v14 = vld [vmem:[#allocation3 + $0x18] sm:$0xff] }
 0x3a9   :  { %5012 = vmatpush1.bf16.msra.mxu0 %v13347_v24  ;;  %4739 = vmatprep.subr.bf16.mxu1 %v13348_v36  ;;  %v4392_v30 = vshrl.u32 %v15784_v39, 16  ;;  %v4395_v42 = vshll.u32 %v15784_v39, 16  ;;  %v13390_v63 = vld [vmem:[#allocation8 + $0xb4] ss:$8 sps:$4 sm:$0xff]   ;;  %v13392_v1 = vld [vmem:[#allocation8 + $0x1a8] ss:$8 sps:$4 sm:$0xff]  }
 0x3aa   :  { %5013 = vmatprep.subr.bf16.mxu0 %v13350_v43  ;;  %v12488_v27 = vrot.slane %v4378_v49, 11  ;;  %v4385_v52 = vrot.slane %v4383_v57, 7  ;;  %12531 = vmatprep.mubr.msk.bf16.mxu1 %vm1677_vm4, %v12491_v22  ;;  %v13393_v5 = vld [vmem:[#allocation8 + $0xb0] ss:$8 sps:$4 sm:$0xff]   ;;  %v13394_v53 = vld [vmem:[#allocation8 + $0x19c] ss:$8 sps:$4 sm:$0xff]   ;;  %v12490_v22 = vcombine.low %v15782_v23, %v15784_v39 }
 0x3ab   :  { %v4394_v28 = vrot.slane %v4392_v30, 7  ;;  %v13396_v31 = vld [vmem:[#allocation8 + $0xa4] ss:$8 sps:$4 sm:$0xff]   ;;  %v13398_v54 = vld [vmem:[#allocation8 + $0x198] ss:$8 sps:$4 sm:$0xff]   ;;  %v4401_v36 = vshrl.u32 %v15811_v14, 16 }
 0x3ac   :  { %4740 = vmatpush1.bf16.msra.mxu1 %v13352_v35  ;;  %v4388_v61 = vor.u32 %v4386_v51, %v4385_v52  ;;  %v4390_v48 = vrot.slane %v4385_v52, 4  ;;  %v13399_v40 = vld [vmem:[#allocation8 + $0xa0] ss:$8 sps:$4 sm:$0xff]   ;;  %v13400_v29 = vld [vmem:[#allocation8 + $0x18c] ss:$8 sps:$4 sm:$0xff]   ;;  %v4404_v43 = vshll.u32 %v15811_v14, 16 }
 0x3ad   :  { %5014 = vmatpush1.bf16.msra.mxu0 %v13353_v3  ;;  %4741 = vmatprep.subr.bf16.mxu1 %v13354_v8  ;;  %v4397_v18 = vor.u32 %v4395_v42, %v4394_v28  ;;  %v13402_v25 = vld [vmem:[#allocation8 + $0x94] ss:$8 sps:$4 sm:$0xff]   ;;  %v15813_v24 = vld [vmem:[#allocation3 + $0x20] sm:$0xff] }
 0x3ae   :  { %5015 = vmatprep.subr.bf16.mxu0 %v13356_v7  ;;  %v15803_v16 = vsel %vm14612_vm9, %v12488_v27, %v4388_v61  ;;  %v13404_v35 = vld [vmem:[#allocation8 + $0x188] ss:$8 sps:$4 sm:$0xff]   ;;  %v4410_v3 = vshrl.u32 %v15813_v24, 16  ;;  %v4413_v8 = vshll.u32 %v15813_v24, 16  ;;  %v4372_v13 = vld [vmem:[#allocation3 + $0x30] sm:$0x88] }
 0x3af   :  { %v15807_v21 = vsel %vm14612_vm9, %v4390_v48, %v4397_v18  ;;  %v13405_v7 = vld [vmem:[#allocation8 + $0x90] ss:$8 sps:$4 sm:$0xff]   ;;  %v15826_v45 = vld [vmem:[#allocation3 + $0x40] sm:$0xff]  ;;  %v13419_v27 = vld [vmem:[#allocation8 + $0x254] ss:$8 sps:$4 sm:$0xff]  }
 0x3b0   :  { %4742 = vmatpush1.bf16.msra.mxu1 %v13358_v12  ;;  %v12536_v15 = vcombine.high %v15803_v16, %v15807_v21  ;;  %v13406_v12 = vld [vmem:[#allocation8 + $0x17c] ss:$8 sps:$4 sm:$0xff]   ;;  %v4412_v41 = vrot.slane %v4410_v3, 7  ;;  %v12535_v4 = vcombine.low %v15803_v16, %v15807_v21  ;;  %v13417_v18 = vld [vmem:[#allocation8 + $0x250] ss:$8 sps:$4 sm:$0xff]  }
 0x3b1   :  { %5016 = vmatpush1.bf16.msra.mxu0 %v13359_v32  ;;  %4743 = vmatprep.subr.bf16.mxu1 %v13360_v55  ;;  %v4403_v32 = vrot.slane %v4401_v36, 7  ;;  %v15822_v55 = vld [vmem:[#allocation3 + $0x38] sm:$0xff]  ;;  %v15850_v49 = vld [vmem:[#allocation3 + $0x50] sm:$0xff] }
 0x3b2   :  { %5017 = vmatprep.subr.bf16.mxu0 %v13362_v47  ;;  %12576 = vmatprep.mubr.msk.bf16.mxu0 %vm1677_vm4, %v12536_v15  ;;  %v13408_v47 = vld [vmem:[#allocation8 + $0x84] ss:$8 sps:$4 sm:$0xff]   ;;  %v4415_v59 = vor.u32 %v4413_v8, %v4412_v41  ;;  %v5098_v41 = vrot.slane %v4395_v42, 5 }
 0x3b3   :  { %v13428_v23 = vld [vmem:[#allocation8 + $0x224] ss:$8 sps:$4 sm:$0xff]  }
 0x3b4   :  { %4744 = vmatpush1.bf16.msra.mxu1 %v13364_v56  ;;  %v4423_v56 = vshrl.u32 %v15822_v55, 16 }
 0x3b5   :  { %5018 = vmatpush1.bf16.msra.mxu0 %v13365_v58  ;;  %12530 = vmatprep.subr.msk.bf16.mxu1 %vm17528_vm12, %v12529_v37  ;;  %v4399_v58 = vrot.slane %v4394_v28, 4  ;;  %v4406_v37 = vor.u32 %v4404_v43, %v4403_v32  ;;  %vm17534_vm12 = vmmov %vm17530_vm5 }
 0x3b6   :  { %12575 = vmatprep.subr.msk.bf16.mxu0 %vm17529_vm8, %v12574_v10  ;;  %v4408_v10 = vrot.slane %v4403_v32, 4  ;;  %vm17535_vm8 = vmmov %vm17530_vm5 }
 0x3b8   :  { %4746 = vmatpush2.bf16.msra.mxu1 %v4724_v33  ;;  %v13410_v33 = vld [vmem:[#allocation8 + $0x178] ss:$8 sps:$4 sm:$0xff]  }
 0x3b9   :  { %5020 = vmatpush2.bf16.msra.mxu0 %v4998_v34  ;;  %4747 = vmatprep.subr.bf16.mxu1 %v13370_v62  ;;  %v4432_v62 = vshrl.u32 %v15826_v45, 16  ;;  %v13411_v34 = vld [vmem:[#allocation8 + $0x80] ss:$8 sps:$4 sm:$0xff]  }
 0x3ba   :  { %5021 = vmatprep.subr.bf16.mxu0 %v13372_v26  ;;  %v13416_v26 = vld [vmem:[#allocation8 + $0x264] ss:$8 sps:$4 sm:$0xff]  }
 0x3bc   :  { %4748 = vmatpush2.bf16.msra.mxu1 %v13374_v2  ;;  %v4418_v2 = vshrl.u32 %v4372_v13, 16 }
 0x3bd   :  { %5022 = vmatpush2.bf16.msra.mxu0 %v13375_v38  ;;  %4749 = vmatprep.subr.bf16.mxu1 %v13376_v19  ;;  %v4425_v38 = vrot.slane %v4423_v56, 7  ;;  %v4426_v19 = vshll.u32 %v15822_v55, 16 }
 0x3be   :  { %5023 = vmatprep.subr.bf16.mxu0 %v13378_v6  ;;  %v4407_v6 = vsel %vm14612_vm9, %v4399_v58, %v4406_v37  ;;  %v5102_v58 = vrot.slane %v4392_v30, 4 }
 0x3bf   :  { %v4430_v28 = vrot.slane %v4425_v38, 4 }
 0x3c0   :  { %4750 = vmatpush2.bf16.msra.mxu1 %v13380_v0  ;;  %v4416_v0 = vsel %vm14612_vm9, %v4408_v10, %v4415_v59  ;;  %v13423_v59 = vld [vmem:[#allocation8 + $0x230] ss:$8 sps:$4 sm:$0xff]  }
 0x3c1   :  { %5024 = vmatpush2.bf16.msra.mxu0 %v13381_v17  ;;  %4751 = vmatprep.subr.bf16.mxu1 %v13382_v9  ;;  %v4434_v17 = vrot.slane %v4432_v62, 7  ;;  %v4435_v9 = vshll.u32 %v15826_v45, 16  ;;  %v12538_v52 = vcombine.high %v4407_v6, %v4416_v0 }
 0x3c2   :  { %5025 = vmatprep.subr.bf16.mxu0 %v13384_v20  ;;  %v15844_v20 = vld [vmem:[#allocation3 + $0x48] sm:$0xff] }
 0x3c3   :  { %v4437_v61 = vor.u32 %v4435_v9, %v4434_v17  ;;  %v4441_v48 = vshrl.u32 %v15844_v20, 16  ;;  %v4444_v16 = vshll.u32 %v15844_v20, 16  ;;  %v4439_v37 = vrot.slane %v4434_v17, 4 }
 0x3c4   :  { %4752 = vmatpush2.bf16.msra.mxu1 %v13386_v44  ;;  %v13414_v44 = vld [vmem:[#allocation8 + $0x260] ss:$8 sps:$4 sm:$0xff]  }
 0x3c5   :  { %5026 = vmatpush2.bf16.msra.mxu0 %v13387_v46  ;;  %4753 = vmatprep.subr.bf16.mxu1 %v13388_v60  ;;  %v12493_v46 = vcombine.high %v15811_v14, %v15813_v24  ;;  %v12489_v60 = vrot.slane %v4418_v2, 11  ;;  %v4443_v21 = vrot.slane %v4441_v48, 7  ;;  %v12497_v2 = vcombine.high %v15844_v20, %v15850_v49 }
 0x3c6   :  { %5027 = vmatprep.subr.bf16.mxu0 %v13390_v63  ;;  %v4428_v63 = vor.u32 %v4426_v19, %v4425_v38  ;;  %v13431_v38 = vld [vmem:[#allocation8 + $0x214] ss:$8 sps:$4 sm:$0xff]  }
 0x3c7   :  { %v4446_v10 = vor.u32 %v4444_v16, %v4443_v21  ;;  %v4448_v13 = vrot.slane %v4443_v21, 4 }
 0x3c8   :  { %4754 = vmatpush2.bf16.msra.mxu1 %v13392_v1  ;;  %v4450_v1 = vshrl.u32 %v15850_v49, 16 }
 0x3c9   :  { %5028 = vmatpush2.bf16.msra.mxu0 %v13393_v5  ;;  %4755 = vmatprep.subr.bf16.mxu1 %v13394_v53  ;;  %v13422_v5 = vld [vmem:[#allocation8 + $0x244] ss:$8 sps:$4 sm:$0xff]   ;;  %v4429_v53 = vsel %vm14612_vm9, %v12489_v60, %v4428_v63  ;;  %v4447_v30 = vsel %vm14612_vm9, %v4439_v37, %v4446_v10  ;;  %v13432_v63 = vld [vmem:[#allocation8 + $0x200] ss:$8 sps:$4 sm:$0xff]   ;;  %v5122_v37 = vrot.slane %v4410_v3, 4 }
 0x3ca   :  { %5029 = vmatprep.subr.bf16.mxu0 %v13396_v31  ;;  %v4438_v31 = vsel %vm14612_vm9, %v4430_v28, %v4437_v61  ;;  %v4452_v15 = vrot.slane %v4450_v1, 7  ;;  %v13437_v61 = vld [vmem:[#allocation8 + $0x1f4] ss:$8 sps:$4 sm:$0xff]  }
 0x3cb   :  { %v12540_v32 = vcombine.high %v4429_v53, %v4438_v31  ;;  %v5080_v10 = vld [vmem:[#allocation3 + $0x28] sm:$0x11] }
 0x3cc   :  { %4756 = vmatpush2.bf16.msra.mxu1 %v13398_v54  ;;  %v4453_v54 = vshll.u32 %v15850_v49, 16  ;;  %v13466_v3 = vld [vmem:[#allocation8 + $0x274] ss:$8 sps:$4 sm:$0xff]  }
 0x3cd   :  { %5030 = vmatpush2.bf16.msra.mxu0 %v13399_v40  ;;  %4757 = vmatprep.subr.bf16.mxu1 %v13400_v29  ;;  %v12492_v40 = vcombine.low %v15811_v14, %v15813_v24  ;;  %v12537_v29 = vcombine.low %v4407_v6, %v4416_v0  ;;  %v5133_v14 = vrot.slane %v4423_v56, 4  ;;  %v5142_v24 = vrot.slane %v4435_v9, 5 }
 0x3ce   :  { %5031 = vmatprep.subr.bf16.mxu0 %v13402_v25  ;;  %v13420_v25 = vld [vmem:[#allocation8 + $0x240] ss:$8 sps:$4 sm:$0xff]  }
 0x3d0   :  { %4758 = vmatpush2.bf16.msra.mxu1 %v13404_v35  ;;  %v12495_v35 = vcombine.high %v15822_v55, %v15826_v45 }
 0x3d1   :  { %5032 = vmatpush2.bf16.msra.mxu0 %v13405_v7  ;;  %4759 = vmatprep.subr.bf16.mxu1 %v13406_v12  ;;  %v5089_v7 = vrot.slane %v4383_v57, 4  ;;  %v13425_v12 = vld [vmem:[#allocation8 + $0x234] ss:$8 sps:$4 sm:$0xff]   ;;  %v4455_v57 = vor.u32 %v4453_v54, %v4452_v15 }
 0x3d2   :  { %5033 = vmatprep.subr.bf16.mxu0 %v13408_v47  ;;  %v5092_v47 = vrot.slane %v4386_v51, 5  ;;  %v5103_v51 = vor.u32 %v5102_v58, %v5098_v41  ;;  %v13444_v15 = vld [vmem:[#allocation8 + $0x2d4] ss:$8 sps:$4 sm:$0xff]   ;;  %v5118_v58 = vrot.slane %v4413_v8, 5 }
 0x3d3   :  { %v4456_v42 = vsel %vm14612_vm9, %v4448_v13, %v4455_v57  ;;  %v13458_v13 = vld [vmem:[#allocation8 + $0x290] ss:$8 sps:$4 sm:$0xff]   ;;  %v13463_v57 = vld [vmem:[#allocation8 + $0x284] ss:$8 sps:$4 sm:$0xff]  }
 0x3d4   :  { %4760 = vmatpush2.bf16.msra.mxu1 %v13410_v33  ;;  %v5093_v39 = vor.u32 %v5092_v47, %v5089_v7  ;;  %v12494_v33 = vcombine.low %v15822_v55, %v15826_v45  ;;  %v12542_v6 = vcombine.high %v4447_v30, %v4456_v42  ;;  %v5104_v17 = vrot.slane %v5103_v51, 4  ;;  %v13450_v7 = vld [vmem:[#allocation8 + $0x2b0] ss:$8 sps:$4 sm:$0xff]   ;;  %v13460_v47 = vld [vmem:[#allocation8 + $0x294] ss:$8 sps:$4 sm:$0xff]  }
 0x3d5   :  { %5034 = vmatpush2.bf16.msra.mxu0 %v13411_v34  ;;  %5407 = vmatprep.subr.bf16.mxu1 %v13416_v26  ;;  %v12539_v34 = vcombine.low %v4429_v53, %v4438_v31  ;;  %v13426_v26 = vld [vmem:[#allocation8 + $0x220] ss:$8 sps:$4 sm:$0xff]   ;;  %v12541_v60 = vcombine.low %v4447_v30, %v4456_v42  ;;  %v5152_v45 = vrot.slane %v4444_v16, 5 }
 0x3d6   :  { %v5094_v0 = vrot.slane %v5093_v39, 4  ;;  %v5126_v39 = vshll.u32 %v5080_v10, 16  ;;  %v13461_v51 = vld [vmem:[#allocation8 + $0x280] ss:$8 sps:$4 sm:$0xff]  }
 0x3d7   :  { %4762 = vmatmul.mubr.bf16.vlgmr.msra.gmra.mxu1 %v12490_v22  ;;  %v13429_v22 = vld [vmem:[#allocation8 + $0x210] ss:$8 sps:$4 sm:$0xff]  }
 0x3d8   :  { %5036 = vmatmul.mubr.bf16.vlgmr.msra.gmra.mxu0 %v12535_v4  ;;  %5408 = vmatpush1.bf16.msra.mxu1 %v13414_v44  ;;  %v15900_v4 = vrot.slane %v4404_v43, 5  ;;  %v13434_v44 = vld [vmem:[#allocation8 + $0x204] ss:$8 sps:$4 sm:$0xff]   ;;  %v12496_v43 = vcombine.low %v15844_v20, %v15850_v49  ;;  %v5128_v42 = vrot.slane %v5126_v39, 5 }
 0x3d9   :  { %12532 = vmatprep.mubr.msk.bf16.mxu1 %vm1677_vm4, %v12493_v46  ;;  %5409 = vmatprep.subr.bf16.mxu1 %v13419_v27  ;;  %v15906_v27 = vsel %vm14741_vm0, %v5094_v0, %v5098_v41  ;;  %v5112_v41 = vrot.slane %v4401_v36, 4  ;;  %v5136_v36 = vrot.slane %v4426_v19, 5  ;;  %v5085_v0 = vld [vmem:[#allocation3 + $0x58] sm:$0x11] }
 0x3da   :  { %12577 = vmatprep.mubr.msk.bf16.mxu0 %vm1677_vm4, %v12538_v52  ;;  %v15911_v52 = vsel %vm14741_vm0, %v5104_v17, %v15900_v4  ;;  %v5162_v17 = vrot.slane %v4453_v54, 5 }
 0x3db   :  { %v12581_v28 = vcombine.high %v15906_v27, %v15911_v52  ;;  %v5137_v19 = vor.u32 %v5136_v36, %v5133_v14  ;;  %v12580_v9 = vcombine.low %v15906_v27, %v15911_v52 }
 0x3dc   :  { %5410 = vmatpush1.bf16.msra.mxu1 %v13417_v18  ;;  %v5205_v18 = vld [vmem:[#allocation8 + $0x2e0] sm:$0xff] }
 0x3dd   :  { %5411 = vmatprep.subr.bf16.mxu1 %v13422_v5  ;;  %v13435_v5 = vld [vmem:[#allocation8 + $0x1f0] ss:$8 sps:$4 sm:$0xff]   ;;  %v12619_v53 = vcombine.high %v5205_v18, %v5205_v18  ;;  %v12618_v31 = vcombine.low %v5205_v18, %v5205_v18 }
 0x3df   :  { %4772 = vmatmul.mubr.bf16.gmra.mxu1 %v12492_v40  ;;  %v5402_v21 = vsel %vm17535_vm8, %v12618_v31, 0  ;;  %v13442_v40 = vld [vmem:[#allocation8 + $0x2d0] ss:$8 sps:$4 sm:$0xff]  }
 0x3e0   :  { %5046 = vmatmul.mubr.bf16.gmra.mxu0 %v12537_v29  ;;  %5412 = vmatpush1.bf16.msra.mxu1 %v13420_v25  ;;  %v13447_v29 = vld [vmem:[#allocation8 + $0x2c4] ss:$8 sps:$4 sm:$0xff]   ;;  %v13445_v25 = vld [vmem:[#allocation8 + $0x2c0] ss:$8 sps:$4 sm:$0xff]  }
 0x3e1   :  { %12533 = vmatprep.mubr.msk.bf16.mxu1 %vm1677_vm4, %v12495_v35  ;;  %5413 = vmatprep.subr.bf16.mxu1 %v13425_v12  ;;  %v13452_v35 = vld [vmem:[#allocation8 + $0x2b4] ss:$8 sps:$4 sm:$0xff]   ;;  %v13455_v12 = vld [vmem:[#allocation8 + $0x2a4] ss:$8 sps:$4 sm:$0xff]  }
 0x3e2   :  { %12578 = vmatprep.mubr.msk.bf16.mxu0 %vm1677_vm4, %v12540_v32  ;;  %v13453_v32 = vld [vmem:[#allocation8 + $0x2a0] ss:$8 sps:$4 sm:$0xff]  }
 0x3e4   :  { %5414 = vmatpush1.bf16.msra.mxu1 %v13423_v59  ;;  %v5113_v59 = vor.u32 %v5112_v41, %v15900_v4  ;;  %v5166_v4 = vrot.slane %v4450_v1, 4 }
 0x3e5   :  { %5415 = vmatprep.subr.bf16.mxu1 %v13428_v23  ;;  %v5123_v23 = vor.u32 %v5122_v37, %v5118_v58 }
 0x3e6   :  { %v5114_v8 = vrot.slane %v5113_v59, 4  ;;  %v5167_v16 = vor.u32 %v5166_v4, %v5162_v17 }
 0x3e7   :  { %4782 = vmatmul.mubr.bf16.gmra.mxu1 %v12494_v33  ;;  %v5124_v30 = vrot.slane %v5123_v23, 4  ;;  %v5146_v33 = vrot.slane %v4432_v62, 4  ;;  %v5156_v62 = vrot.slane %v4441_v48, 4 }
 0x3e8   :  { %5056 = vmatmul.mubr.bf16.gmra.mxu0 %v12539_v34  ;;  %5416 = vmatpush1.bf16.msra.mxu1 %v13426_v26  ;;  %v13464_v34 = vld [vmem:[#allocation8 + $0x270] ss:$8 sps:$4 sm:$0xff]   ;;  %v5119_v56 = vsel %vm14741_vm0, %v5114_v8, %v5118_v58 }
 0x3e9   :  { %12534 = vmatprep.mubr.msk.bf16.mxu1 %vm1677_vm4, %v12497_v2  ;;  %5417 = vmatprep.subr.bf16.mxu1 %v13431_v38  ;;  %v5129_v55 = vsel %vm14741_vm0, %v5124_v30, %v5128_v42  ;;  %v5147_v26 = vor.u32 %v5146_v33, %v5142_v24  ;;  %v5138_v38 = vrot.slane %v5137_v19, 4  ;;  %v5157_v48 = vor.u32 %v5156_v62, %v5152_v45 }
 0x3ea   :  { %12579 = vmatprep.mubr.msk.bf16.mxu0 %vm1677_vm4, %v12542_v6  ;;  %v12583_v2 = vcombine.high %v5119_v56, %v5129_v55  ;;  %v12582_v27 = vcombine.low %v5119_v56, %v5129_v55  ;;  %v5496_v56 = vld [vmem:[%s17229_s8] sm:$0x3] }
 0x3eb   :  { %v5148_v6 = vrot.slane %v5147_v26, 4 }
 0x3ec   :  { %5418 = vmatpush1.bf16.msra.mxu1 %v13429_v22  ;;  %v5170_v22 = vshll.u32 %v5085_v0, 16  ;;  %v17536_v0 = vld [vmem:[#allocation125_spill] sm:$0xff] }
 0x3ed   :  { %5419 = vmatprep.subr.bf16.mxu1 %v13434_v44  ;;  %v5143_v44 = vsel %vm14741_vm0, %v5138_v38, %v5142_v24  ;;  %v5153_v20 = vsel %vm14741_vm0, %v5148_v6, %v5152_v45 }
 0x3ee   :  { %v12585_v52 = vcombine.high %v5143_v44, %v5153_v20  ;;  %v5172_v54 = vrot.slane %v5170_v22, 5 }
 0x3ef   :  { %4792 = vmatmul.mubr.bf16.gmra.mxu1 %v12496_v43  ;;  %v5158_v43 = vrot.slane %v5157_v48, 4 }
 0x3f0   :  { %5066 = vmatmul.mubr.bf16.gmra.mxu0 %v12541_v60  ;;  %5420 = vmatpush1.bf16.msra.mxu1 %v13432_v63  ;;  %v5168_v60 = vrot.slane %v5167_v16, 4  ;;  %v12584_v63 = vcombine.low %v5143_v44, %v5153_v20  ;;  %v17537_v44 = vld [vmem:[#allocation126_spill] sm:$0xff] }
 0x3f1   :  { %12621 = vmatprep.mubr.msk.bf16.mxu1 %vm1677_vm4, %v12581_v28  ;;  %5421 = vmatprep.subr.bf16.mxu1 %v13437_v61  ;;  %v5163_v49 = vsel %vm14741_vm0, %v5158_v43, %v5162_v17  ;;  %v15964_v17 = vrot.slane %v5496_v56, %v17536_v0  ;;  %v15967_v20 = vrot.slane %v5496_v56, %v17537_v44 }
 0x3f2   :  { %v5173_v1 = vsel %vm14741_vm0, %v5168_v60, %v5172_v54 }
 0x3f3   :  { %v12587_v28 = vcombine.high %v5163_v49, %v5173_v1  ;;  %v12586_v61 = vcombine.low %v5163_v49, %v5173_v1 }
 0x3f4   :  { %5422 = vmatpush1.bf16.msra.mxu1 %v13435_v5 }
 0x3f5   :  { %12620 = vmatprep.subr.msk.bf16.mxu1 %vm17534_vm12, %v12619_v53 }
 0x3f8   :  { %5424 = vmatpush2.bf16.msra.mxu1 %v5402_v21 }
 0x3f9   :  { %5425 = vmatprep.subr.bf16.mxu1 %v13444_v15 }
 0x3fc   :  { %5426 = vmatpush2.bf16.msra.mxu1 %v13442_v40 }
 0x3fd   :  { %5427 = vmatprep.subr.bf16.mxu1 %v13447_v29 }
 0x400   :  { %5428 = vmatpush2.bf16.msra.mxu1 %v13445_v25 }
 0x401   :  { %5429 = vmatprep.subr.bf16.mxu1 %v13452_v35 }
 0x404   :  { %5430 = vmatpush2.bf16.msra.mxu1 %v13450_v7 }
 0x405   :  { %5431 = vmatprep.subr.bf16.mxu1 %v13455_v12 }
 0x408   :  { %5432 = vmatpush2.bf16.msra.mxu1 %v13453_v32 }
 0x409   :  { %5433 = vmatprep.subr.bf16.mxu1 %v13460_v47 }
 0x40c   :  { %5434 = vmatpush2.bf16.msra.mxu1 %v13458_v13 }
 0x40d   :  { %5435 = vmatprep.subr.bf16.mxu1 %v13463_v57 }
 0x410   :  { %5436 = vmatpush2.bf16.msra.mxu1 %v13461_v51 }
 0x411   :  { %5437 = vmatprep.subr.bf16.mxu1 %v13466_v3 }
 0x414   :  { %5438 = vmatpush2.bf16.msra.mxu1 %v13464_v34 }
 0x417   :  { %5440 = vmatmul.mubr.bf16.vlgmr.msra.gmra.mxu1 %v12580_v9 }
 0x418   :  { %12622 = vmatprep.mubr.msk.bf16.mxu1 %vm1677_vm4, %v12583_v2 }
 0x41f   :  { %5450 = vmatmul.mubr.bf16.gmra.mxu1 %v12582_v27 }
 0x420   :  { %12623 = vmatprep.mubr.msk.bf16.mxu1 %vm1677_vm4, %v12585_v52 }
 0x427   :  { %5460 = vmatmul.mubr.bf16.gmra.mxu1 %v12584_v63 }
 0x428   :  { %12624 = vmatprep.mubr.msk.bf16.mxu1 %vm1677_vm4, %v12587_v28 }
 0x42f   :  { %5470 = vmatmul.mubr.bf16.gmra.mxu1 %v12586_v61 }
 0x497   :  { %v4763_v18 = vpop.f32.mrf.mxu1 }
 0x498   :  { %v5037_v40 = vpop.f32.mrf.mxu0 }
 0x499   :  { %v4765_v5 = vpop.f32.mrf.mxu1  ;;  %v5038_v19 = vadd.f32 %v5037_v40, %v4763_v18 }
 0x49a   :  { %v5039_v25 = vpop.f32.mrf.mxu0 }
 0x49b   :  { %v4767_v53 = vpop.f32.mrf.mxu1  ;;  %v5040_v2 = vadd.f32 %v5039_v25, %v4765_v5 }
 0x49c   :  { %v5041_v7 = vpop.f32.mrf.mxu0 }
 0x49d   :  { %v4769_v31 = vpop.f32.mrf.mxu1  ;;  %v5042_v33 = vadd.f32 %v5041_v7, %v4767_v53 }
 0x49e   :  { %v5043_v32 = vpop.f32.mrf.mxu0 }
 0x49f   :  { %v4773_v21 = vpop.f32.mrf.mxu1  ;;  %v5044_v62 = vadd.f32 %v5043_v32, %v4769_v31 }
 0x4a0   :  { %v5047_v47 = vpop.f32.mrf.mxu0 }
 0x4a1   :  { %v4775_v15 = vpop.f32.mrf.mxu1  ;;  %v5048_v26 = vadd.f32 %v5047_v47, %v4773_v21 }
 0x4a2   :  { %v5049_v58 = vpop.f32.mrf.mxu0 }
 0x4a3   :  { %v4777_v29 = vpop.f32.mrf.mxu1  ;;  %v5050_v16 = vadd.f32 %v5049_v58, %v4775_v15 }
 0x4a4   :  { %v5051_v10 = vpop.f32.mrf.mxu0 }
 0x4a5   :  { %v4779_v35 = vpop.f32.mrf.mxu1  ;;  %v5052_v43 = vadd.f32 %v5051_v10, %v4777_v29 }
 0x4a6   :  { %v5053_v57 = vpop.f32.mrf.mxu0 }
 0x4a7   :  { %v4783_v12 = vpop.f32.mrf.mxu1  ;;  %v5054_v28 = vadd.f32 %v5053_v57, %v4779_v35 }
 0x4a8   :  { %v5057_v23 = vpop.f32.mrf.mxu0 }
 0x4a9   :  { %v4785_v41 = vpop.f32.mrf.mxu1  ;;  %v5058_v53 = vadd.f32 %v5057_v23, %v4783_v12 }
 0x4aa   :  { %v5059_v51 = vpop.f32.mrf.mxu0 }
 0x4ab   :  { %v4787_v37 = vpop.f32.mrf.mxu1  ;;  %v5060_v15 = vadd.f32 %v5059_v51, %v4785_v41 }
 0x4ac   :  { %v5061_v36 = vpop.f32.mrf.mxu0 }
 0x4ad   :  { %v4789_v13 = vpop.f32.mrf.mxu1  ;;  %v5062_v40 = vadd.f32 %v5061_v36, %v4787_v37 }
 0x4ae   :  { %v5063_v8 = vpop.f32.mrf.mxu0 }
 0x4af   :  { %v4793_v59 = vpop.f32.mrf.mxu1  ;;  %v5064_v57 = vadd.f32 %v5063_v8, %v4789_v13 }
 0x4b0   :  { %v5067_v34 = vpop.f32.mrf.mxu0 }
 0x4b1   :  { %v4795_v39 = vpop.f32.mrf.mxu1  ;;  %v5068_v12 = vadd.f32 %v5067_v34, %v4793_v59 }
 0x4b2   :  { %v5069_v38 = vpop.f32.mrf.mxu0 }
 0x4b3   :  { %v4797_v14 = vpop.f32.mrf.mxu1  ;;  %v5070_v23 = vadd.f32 %v5069_v38, %v4795_v39 }
 0x4b4   :  { %v5071_v54 = vpop.f32.mrf.mxu0 }
 0x4b5   :  { %v4799_v24 = vpop.f32.mrf.mxu1 }
 0x4b6   :  { %v5073_v32 = vpop.f32.mrf.mxu0 }
 0x4d7   :  { %v5441_v3 = vpop.f32.mrf.mxu1 }
 0x4d8   :  { %v5480_v6 = vadd.f32 %v5441_v3, %v5038_v19 }
 0x4d9   :  { %v5443_v30 = vpop.f32.mrf.mxu1 }
 0x4da   :  { %v5481_v22 = vadd.f32 %v5443_v30, %v5040_v2  ;;  %v5508_v49 = vadd.f32 %v15964_v17, %v5480_v6 }
 0x4db   :  { %v5445_v42 = vpop.f32.mrf.mxu1 }
 0x4dc   :  { %v5482_v9 = vadd.f32 %v5445_v42, %v5042_v33  ;;  %v5509_v61 = vadd.f32 %v15967_v20, %v5481_v22  ;;  %v15977_v47 = vmax.f32 %v5508_v49, 0.0  ;;  %v5072_v42 = vadd.f32 %v5071_v54, %v4797_v14 }
 0x4dd   :  { %v5447_v55 = vpop.f32.mrf.mxu1  ;;  %v5074_v33 = vadd.f32 %v5073_v32, %v4799_v24 }
 0x4de   :  { %v5510_v27 = vadd.f32 %v15964_v17, %v5482_v9  ;;  %v5483_v52 = vadd.f32 %v5447_v55, %v5044_v62  ;;  %v15982_v3 = vmax.f32 %v5509_v61, 0.0  ;;  %v5568_v59 = vmul.f32 %v15977_v47, %v15977_v47 }
 0x4df   :  { %v5451_v45 = vpop.f32.mrf.mxu1 }
 0x4e0   :  { %v5484_v4 = vadd.f32 %v5451_v45, %v5048_v26  ;;  %v15973_v31 = vmax.f32 %v5510_v27, 0.0  ;;  %v5511_v21 = vadd.f32 %v15967_v20, %v5483_v52  ;;  %v5569_v14 = vmul.f32 %v15982_v3, %v15982_v3 }
 0x4e1   :  { %v5453_v48 = vpop.f32.mrf.mxu1 }
 0x4e2   :  { %v5512_v1 = vadd.f32 %v15964_v17, %v5484_v4  ;;  %v5485_v63 = vadd.f32 %v5453_v48, %v5050_v16  ;;  %v5570_v41 = vmul.f32 %v15973_v31, %v15973_v31  ;;  %v15986_v37 = vmax.f32 %v5511_v21, 0.0 }
 0x4e3   :  { %v5455_v60 = vpop.f32.mrf.mxu1  ;;  %v5540_v39 = vadd.f32 %v15973_v31, %v15977_v47 }
 0x4e4   :  { %v5486_v18 = vadd.f32 %v5455_v60, %v5052_v43  ;;  %v15979_v58 = vmax.f32 %v5512_v1, 0.0  ;;  %v5513_v35 = vadd.f32 %v15967_v20, %v5485_v63  ;;  %v5584_v2 = vadd.f32 %v5570_v41, %v5568_v59 }
 0x4e5   :  { %v5457_v5 = vpop.f32.mrf.mxu1  ;;  %v5553_v45 = vadd.f32 %v15986_v37, %v15982_v3  ;;  %v5571_v62 = vmul.f32 %v15986_v37, %v15986_v37 }
 0x4e6   :  { %v5514_v29 = vadd.f32 %v15964_v17, %v5486_v18  ;;  %v5487_v25 = vadd.f32 %v5457_v5, %v5054_v28  ;;  %v5572_v8 = vmul.f32 %v15979_v58, %v15979_v58  ;;  %v15998_v34 = vmax.f32 %v5513_v35, 0.0 }
 0x4e7   :  { %v5461_v7 = vpop.f32.mrf.mxu1  ;;  %v5541_v38 = vadd.f32 %v5540_v39, %v15979_v58  ;;  %v5597_v61 = vadd.f32 %v5571_v62, %v5569_v14 }
 0x4e8   :  { %v5488_v10 = vadd.f32 %v5461_v7, %v5058_v53  ;;  %v15989_v56 = vmax.f32 %v5514_v29, 0.0  ;;  %v5515_v55 = vadd.f32 %v15967_v20, %v5487_v25  ;;  %v5585_v27 = vadd.f32 %v5584_v2, %v5572_v8 }
 0x4e9   :  { %v5463_v30 = vpop.f32.mrf.mxu1  ;;  %v5573_v52 = vmul.f32 %v15998_v34, %v15998_v34  ;;  %v5554_v18 = vadd.f32 %v5553_v45, %v15998_v34 }
 0x4ea   :  { %v5516_v51 = vadd.f32 %v15964_v17, %v5488_v10  ;;  %v5489_v36 = vadd.f32 %v5463_v30, %v5060_v15  ;;  %v5574_v6 = vmul.f32 %v15989_v56, %v15989_v56  ;;  %v16012_v4 = vmax.f32 %v5515_v55, 0.0 }
 0x4eb   :  { %v5465_v13 = vpop.f32.mrf.mxu1  ;;  %v5542_v43 = vadd.f32 %v5541_v38, %v15989_v56 }
 0x4ec   :  { %v16002_v24 = vmax.f32 %v5516_v51, 0.0  ;;  %v5517_v19 = vadd.f32 %v15967_v20, %v5489_v36  ;;  %v5490_v26 = vadd.f32 %v5465_v13, %v5062_v40  ;;  %v5586_v21 = vadd.f32 %v5585_v27, %v5574_v6 }
 0x4ed   :  { %v5467_v9 = vpop.f32.mrf.mxu1  ;;  %v5575_v15 = vmul.f32 %v16012_v4, %v16012_v4 }
 0x4ee   :  { %v5518_v22 = vadd.f32 %v15964_v17, %v5490_v26  ;;  %v5491_v48 = vadd.f32 %v5467_v9, %v5064_v57  ;;  %v5576_v54 = vmul.f32 %v16002_v24, %v16002_v24  ;;  %v16020_v49 = vmax.f32 %v5517_v19, 0.0 }
 0x4ef   :  { %v5471_v16 = vpop.f32.mrf.mxu1  ;;  %v5543_v40 = vadd.f32 %v5542_v43, %v16002_v24  ;;  %v5598_v57 = vadd.f32 %v5597_v61, %v5573_v52 }
 0x4f0   :  { %v5492_v60 = vadd.f32 %v5471_v16, %v5068_v12  ;;  %v16022_v1 = vmax.f32 %v5518_v22, 0.0  ;;  %v5519_v63 = vadd.f32 %v15967_v20, %v5491_v48  ;;  %v5555_v12 = vadd.f32 %v5554_v18, %v16012_v4 }
 0x4f1   :  { %v5473_v28 = vpop.f32.mrf.mxu1  ;;  %v5577_v30 = vmul.f32 %v16020_v49, %v16020_v49  ;;  %v5599_v59 = vadd.f32 %v5598_v57, %v5575_v15 }
 0x4f2   :  { %v5520_v5 = vadd.f32 %v15964_v17, %v5492_v60  ;;  %v5493_v53 = vadd.f32 %v5473_v28, %v5070_v23  ;;  %v16030_v29 = vmax.f32 %v5519_v63, 0.0  ;;  %v5578_v7 = vmul.f32 %v16022_v1, %v16022_v1 }
 0x4f3   :  { %v5475_v25 = vpop.f32.mrf.mxu1  ;;  %v5587_v23 = vadd.f32 %v5586_v21, %v5576_v54  ;;  %v5544_v51 = vadd.f32 %v5543_v40, %v16022_v1  ;;  %v5600_v9 = vadd.f32 %v5599_v59, %v5577_v30 }
 0x4f4   :  { %v16034_v32 = vmax.f32 %v5520_v5, 0.0  ;;  %v5521_v35 = vadd.f32 %v15967_v20, %v5493_v53  ;;  %v5494_v10 = vadd.f32 %v5475_v25, %v5072_v42  ;;  %v5556_v42 = vadd.f32 %v5555_v12, %v16020_v49 }
 0x4f5   :  { %v5477_v41 = vpop.f32.mrf.mxu1  ;;  %v5579_v39 = vmul.f32 %v16030_v29, %v16030_v29  ;;  %v5588_v14 = vadd.f32 %v5587_v23, %v5578_v7 }
 0x4f6   :  { %v5580_v36 = vmul.f32 %v16034_v32, %v16034_v32  ;;  %v16043_v55 = vmax.f32 %v5521_v35, 0.0  ;;  %v5522_v13 = vadd.f32 %v15964_v17, %v5494_v10  ;;  %v5495_v8 = vadd.f32 %v5477_v41, %v5074_v33 }
 0x4f7   :  { %v5545_v19 = vadd.f32 %v5544_v51, %v16034_v32  ;;  %v5557_v2 = vadd.f32 %v5556_v42, %v16030_v29  ;;  %v5601_v33 = vadd.f32 %v5600_v9, %v5579_v39 }
 0x4f8   :  { %v16050_v26 = vmax.f32 %v5522_v13, 0.0  ;;  %v5581_v45 = vmul.f32 %v16043_v55, %v16043_v55  ;;  %v5523_v17 = vadd.f32 %v15967_v20, %v5495_v8  ;;  %v5589_v62 = vadd.f32 %v5588_v14, %v5580_v36 }
 0x4f9   :  { %v5558_v22 = vadd.f32 %v5557_v2, %v16043_v55 }
 0x4fa   :  { %v5546_v38 = vadd.f32 %v5545_v19, %v16050_v26  ;;  %v5582_v6 = vmul.f32 %v16050_v26, %v16050_v26  ;;  %v16060_v48 = vmax.f32 %v5523_v17, 0.0  ;;  %v5602_v52 = vadd.f32 %v5601_v33, %v5581_v45 }
 0x4fc   :  { %v5547_v16 = vrot.slane %v5546_v38, 4  ;;  %v5590_v27 = vadd.f32 %v5589_v62, %v5582_v6  ;;  %v5559_v43 = vadd.f32 %v5558_v22, %v16060_v48  ;;  %v5583_v60 = vmul.f32 %v16060_v48, %v16060_v48 }
 0x4fe   :  { %v5548_v20 = vadd.f32 %v5547_v16, %v5546_v38  ;;  %v5591_v54 = vrot.slane %v5590_v27, 4  ;;  %v5560_v63 = vrot.slane %v5559_v43, 4  ;;  %v5603_v28 = vadd.f32 %v5602_v52, %v5583_v60 }
 0x500   :  { %v5549_v61 = vrot.slane %v5548_v20, 2  ;;  %v5592_v18 = vadd.f32 %v5591_v54, %v5590_v27  ;;  %v5561_v5 = vadd.f32 %v5560_v63, %v5559_v43  ;;  %v5604_v53 = vrot.slane %v5603_v28, 4 }
 0x502   :  { %v5550_v21 = vadd.f32 %v5549_v61, %v5548_v20  ;;  %v5593_v15 = vrot.slane %v5592_v18, 2  ;;  %v5562_v40 = vrot.slane %v5561_v5, 2  ;;  %v5605_v25 = vadd.f32 %v5604_v53, %v5603_v28 }
 0x504   :  { %v5551_v7 = vrot.slane %v5550_v21, 1  ;;  %v5594_v35 = vadd.f32 %v5593_v15, %v5592_v18  ;;  %v5563_v10 = vadd.f32 %v5562_v40, %v5561_v5  ;;  %v5606_v57 = vrot.slane %v5605_v25, 2 }
 0x506   :  { %v5552_v12 = vadd.f32 %v5551_v7, %v5550_v21  ;;  %v5595_v23 = vrot.slane %v5594_v35, 1  ;;  %v5564_v30 = vrot.slane %v5563_v10, 1  ;;  %v5607_v41 = vadd.f32 %v5606_v57, %v5605_v25 }
 0x508   :  { %v16065_v51 = vmul.f32 0.015625, %v5552_v12  ;;  %v5596_v36 = vadd.f32 %v5595_v23, %v5594_v35  ;;  %v5565_v13 = vadd.f32 %v5564_v30, %v5563_v10  ;;  %v5608_v59 = vrot.slane %v5607_v41, 1 }
 0x50a   :  { %v16067_v42 = vmul.f32 0.015625, %v5596_v36  ;;  %v5567_v39 = vmul.f32 0.015625, %v5565_v13  ;;  %v5609_v8 = vadd.f32 %v5608_v59, %v5607_v41 }
 0x50c   :  { %v5611_v14 = vmul.f32 0.015625, %v5609_v8 }
 0x50d   :  { %14039 = dma.done.wait [#allocation16 + $0x5], 8192 }
 0x50e   :  { %14040 = vsyncadd [#allocation16 + $0x5], 4294959104  ;;  %vm6878_vm4 = vcmask 916487   ;;  %vm6887_vm5 = vcmask 913412   ;;  %vm17538_vm6 = vcmask 1040384   ;;  %v5650_v16 = vld [vmem:[#allocation13 + $0xf8] sm:$0xff] }
 0x50f   :  { %v5618_v19 = vsel %vm17538_vm6, %v5567_v39, %v5611_v14  ;;  %vm17539_vm12 = vsmask.f32 7966  ;;  %vm17540_vm11 = vsmask.f32 4352  ;;  %v6881_v45 = vld [vmem:[#allocation4] sm:$0x88]  ;;  %5683 = vmatprep.subr.mxu0 %v5650_v16 }
 0x510   :  { %vm6879_vm8 = vmand %vm6878_vm4, %vm17539_vm12  ;;  %5747 = vmatprep.mubr.f32.mxu0 %v5618_v19  ;;  %v6884_v17 = vld [vmem:[#allocation4 + $0x20] sm:$0x88]  ;;  %v6890_v62 = vld [vmem:[#allocation4 + $0x18] sm:$0x11] }
 0x511   :  { %vm6888_vm1 = vmand %vm6887_vm5, %vm17540_vm11  ;;  %v6893_v22 = vld [vmem:[#allocation4 + $0x38] sm:$0x11]  ;;  %v5649_v52 = vld [vmem:[#allocation13 + $0xf0] sm:$0xff]  ;;  %vm5908_vm11 = vcmask 916480  }
 0x512   :  { %vm6880_vm15 = vmor %vm6879_vm8, %vm14584_vm7  ;;  %v5648_v43 = vld [vmem:[#allocation13 + $0xe8] sm:$0xff]  ;;  %v5647_v60 = vld [vmem:[#allocation13 + $0xe0] sm:$0xff]  ;;  %5684 = vmatpush1.msra.mxu0 %v5649_v52 }
 0x513   :  { %vm6889_vm3 = vmor %vm6888_vm1, %vm14594_vm14  ;;  %v6882_v38 = vsel %vm6880_vm15, 0, %v6881_v45  ;;  %v6885_v6 = vsel %vm6880_vm15, 0, %v6884_v17  ;;  %v5646_v20 = vld [vmem:[#allocation13 + $0xd8] sm:$0xff]  ;;  %5685 = vmatprep.subr.mxu0 %v5648_v43  ;;  %v5645_v54 = vld [vmem:[#allocation13 + $0xd0] sm:$0xff]  ;;  %vm6436_vm15 = vcmask 910336   ;;  %vm17544_vm1 = vcmask 1043459  }
 0x514   :  { %v6891_v33 = vsel %vm6889_vm3, 0, %v6890_v62  ;;  %6883 = vst [vmem:[#allocation4] sm:$0x88] %v6882_v38  ;;  %6886 = vst [vmem:[#allocation4 + $0x20] sm:$0x88] %v6885_v6  ;;  %v6894_v27 = vsel %vm6889_vm3, 0, %v6893_v22  ;;  %5686 = vmatpush1.msra.mxu0 %v5647_v60 }
 0x515   :  { %6892 = vst [vmem:[#allocation4 + $0x18] sm:$0x11] %v6891_v33  ;;  %6895 = vst [vmem:[#allocation4 + $0x38] sm:$0x11] %v6894_v27  ;;  %v5644_v63 = vld [vmem:[#allocation13 + $0xc8] sm:$0xff]  ;;  %5687 = vmatprep.subr.mxu0 %v5646_v20  ;;  %v5643_v28 = vld [vmem:[#allocation13 + $0xc0] sm:$0xff] }
 0x516   :  { %5688 = vmatpush1.msra.mxu0 %v5645_v54  ;;  %v5642_v61 = vld [vmem:[#allocation13 + $0xb8] sm:$0xff]  ;;  %v5641_v18 = vld [vmem:[#allocation13 + $0xb0] sm:$0xff]  ;;  %v5640_v5 = vld [vmem:[#allocation13 + $0xa8] sm:$0xff] }
 0x517   :  { %5689 = vmatprep.subr.mxu0 %v5644_v63  ;;  %v5639_v53 = vld [vmem:[#allocation13 + $0xa0] sm:$0xff]  ;;  %v5638_v21 = vld [vmem:[#allocation13 + $0x98] sm:$0xff]  ;;  %v5637_v15 = vld [vmem:[#allocation13 + $0x90] sm:$0xff] }
 0x518   :  { %5690 = vmatpush1.msra.mxu0 %v5643_v28  ;;  %v5636_v40 = vld [vmem:[#allocation13 + $0x88] sm:$0xff]  ;;  %v5635_v25 = vld [vmem:[#allocation13 + $0x80] sm:$0xff]  ;;  %v5634_v7 = vld [vmem:[#allocation13 + $0x78] sm:$0xff] }
 0x519   :  { %5691 = vmatprep.subr.mxu0 %v5642_v61  ;;  %v5633_v35 = vld [vmem:[#allocation13 + $0x70] sm:$0xff]  ;;  %v5632_v10 = vld [vmem:[#allocation13 + $0x68] sm:$0xff]  ;;  %v5631_v57 = vld [vmem:[#allocation13 + $0x60] sm:$0xff] }
 0x51a   :  { %5692 = vmatpush1.msra.mxu0 %v5641_v18  ;;  %v5630_v12 = vld [vmem:[#allocation13 + $0x58] sm:$0xff]  ;;  %v5629_v23 = vld [vmem:[#allocation13 + $0x50] sm:$0xff]  ;;  %v5628_v30 = vld [vmem:[#allocation13 + $0x48] sm:$0xff] }
 0x51b   :  { %5693 = vmatprep.subr.mxu0 %v5640_v5  ;;  %v5627_v41 = vld [vmem:[#allocation13 + $0x40] sm:$0xff]  ;;  %v5626_v36 = vld [vmem:[#allocation13 + $0x38] sm:$0xff]  ;;  %v5625_v13 = vld [vmem:[#allocation13 + $0x30] sm:$0xff] }
 0x51c   :  { %5694 = vmatpush1.msra.mxu0 %v5639_v53  ;;  %v5624_v59 = vld [vmem:[#allocation13 + $0x28] sm:$0xff]  ;;  %v5623_v39 = vld [vmem:[#allocation13 + $0x20] sm:$0xff]  ;;  %v5622_v8 = vld [vmem:[#allocation13 + $0x18] sm:$0xff] }
 0x51d   :  { %5695 = vmatprep.subr.mxu0 %v5638_v21  ;;  %v5621_v14 = vld [vmem:[#allocation13 + $0x10] sm:$0xff]  ;;  %v5620_v19 = vld [vmem:[#allocation13 + $0x8] sm:$0xff]  ;;  %v5619_v45 = vld [vmem:[#allocation13] sm:$0xff] }
 0x51e   :  { %5696 = vmatpush1.msra.mxu0 %v5637_v15  ;;  %v5682_v17 = vld [vmem:[#allocation13 + $0x1f8] sm:$0xff]  ;;  %v5681_v62 = vld [vmem:[#allocation13 + $0x1f0] sm:$0xff]  ;;  %v5680_v38 = vld [vmem:[#allocation13 + $0x1e8] sm:$0xff] }
 0x51f   :  { %5697 = vmatprep.subr.mxu0 %v5636_v40  ;;  %v5679_v6 = vld [vmem:[#allocation13 + $0x1e0] sm:$0xff]  ;;  %v5678_v33 = vld [vmem:[#allocation13 + $0x1d8] sm:$0xff]  ;;  %v5677_v22 = vld [vmem:[#allocation13 + $0x1d0] sm:$0xff] }
 0x520   :  { %5698 = vmatpush1.msra.mxu0 %v5635_v25  ;;  %v5676_v16 = vld [vmem:[#allocation13 + $0x1c8] sm:$0xff]  ;;  %v5675_v27 = vld [vmem:[#allocation13 + $0x1c0] sm:$0xff]  ;;  %v5674_v52 = vld [vmem:[#allocation13 + $0x1b8] sm:$0xff] }
 0x521   :  { %5699 = vmatprep.subr.mxu0 %v5634_v7  ;;  %v5673_v43 = vld [vmem:[#allocation13 + $0x1b0] sm:$0xff]  ;;  %v5672_v60 = vld [vmem:[#allocation13 + $0x1a8] sm:$0xff]  ;;  %v5671_v20 = vld [vmem:[#allocation13 + $0x1a0] sm:$0xff] }
 0x522   :  { %5700 = vmatpush1.msra.mxu0 %v5633_v35  ;;  %v5670_v54 = vld [vmem:[#allocation13 + $0x198] sm:$0xff]  ;;  %v5669_v63 = vld [vmem:[#allocation13 + $0x190] sm:$0xff]  ;;  %v5668_v28 = vld [vmem:[#allocation13 + $0x188] sm:$0xff] }
 0x523   :  { %5701 = vmatprep.subr.mxu0 %v5632_v10  ;;  %v5667_v61 = vld [vmem:[#allocation13 + $0x180] sm:$0xff]  ;;  %v5666_v18 = vld [vmem:[#allocation13 + $0x178] sm:$0xff]  ;;  %v5665_v5 = vld [vmem:[#allocation13 + $0x170] sm:$0xff] }
 0x524   :  { %5702 = vmatpush1.msra.mxu0 %v5631_v57  ;;  %v5664_v53 = vld [vmem:[#allocation13 + $0x168] sm:$0xff]  ;;  %v5663_v21 = vld [vmem:[#allocation13 + $0x160] sm:$0xff]  ;;  %v5662_v15 = vld [vmem:[#allocation13 + $0x158] sm:$0xff] }
 0x525   :  { %5703 = vmatprep.subr.mxu0 %v5630_v12  ;;  %v5661_v40 = vld [vmem:[#allocation13 + $0x150] sm:$0xff]  ;;  %v5660_v25 = vld [vmem:[#allocation13 + $0x148] sm:$0xff]  ;;  %v5659_v7 = vld [vmem:[#allocation13 + $0x140] sm:$0xff] }
 0x526   :  { %5704 = vmatpush1.msra.mxu0 %v5629_v23  ;;  %v5658_v35 = vld [vmem:[#allocation13 + $0x138] sm:$0xff]  ;;  %v5657_v10 = vld [vmem:[#allocation13 + $0x130] sm:$0xff]  ;;  %v5656_v57 = vld [vmem:[#allocation13 + $0x128] sm:$0xff] }
 0x527   :  { %5705 = vmatprep.subr.mxu0 %v5628_v30  ;;  %v5655_v12 = vld [vmem:[#allocation13 + $0x120] sm:$0xff]  ;;  %v5654_v23 = vld [vmem:[#allocation13 + $0x118] sm:$0xff]  ;;  %v5653_v30 = vld [vmem:[#allocation13 + $0x110] sm:$0xff] }
 0x528   :  { %5706 = vmatpush1.msra.mxu0 %v5627_v41  ;;  %v5652_v41 = vld [vmem:[#allocation13 + $0x108] sm:$0xff]  ;;  %vm17543_vm3 = vmmov %vm17538_vm6 }
 0x529   :  { %5707 = vmatprep.subr.mxu0 %v5626_v36  ;;  %v5651_v36 = vld [vmem:[#allocation13 + $0x100] sm:$0xff]  ;;  %vm17545_vm4 = vmmov %vm17544_vm1 }
 0x52a   :  { %5708 = vmatpush1.msra.mxu0 %v5625_v13  ;;  %v5617_v13 = vsel %vm17543_vm3, %v16065_v51, %v16067_v42  ;;  %v5794_v51 = vld [vmem:[%s17234_s13] sm:$0x3]  ;;  %s14068_s13 = smov 112   ;;  %vm17546_vm5 = vmmov %vm17544_vm1  ;;  %vm7248_vm3 = vcmask 916484  }
 0x52b   :  { %5709 = vmatprep.subr.mxu0 %v5624_v59  ;;  %v5799_v42 = vrot.slane %v5794_v51, %v17536_v0  ;;  %vm17547_vm6 = vmmov %vm17544_vm1 }
 0x52c   :  { %5710 = vmatpush1.msra.mxu0 %v5623_v39  ;;  %vm17548_vm12 = vmmov %vm17544_vm1 }
 0x52d   :  { %5711 = vmatprep.subr.mxu0 %v5622_v8  ;;  %vm17549_vm8 = vmmov %vm17544_vm1 }
 0x52e   :  { %5712 = vmatpush1.msra.mxu0 %v5621_v14 }
 0x52f   :  { %5713 = vmatprep.subr.mxu0 %v5620_v19 }
 0x530   :  { %5714 = vmatpush1.msra.mxu0 %v5619_v45 }
 0x531   :  { %5715 = vmatprep.subr.mxu0 %v5682_v17 }
 0x532   :  { %5716 = vmatpush2.msra.mxu0 %v5681_v62 }
 0x533   :  { %5717 = vmatprep.subr.mxu0 %v5680_v38 }
 0x534   :  { %5718 = vmatpush2.msra.mxu0 %v5679_v6 }
 0x535   :  { %5719 = vmatprep.subr.mxu0 %v5678_v33 }
 0x536   :  { %5720 = vmatpush2.msra.mxu0 %v5677_v22 }
 0x537   :  { %5721 = vmatprep.subr.mxu0 %v5676_v16 }
 0x538   :  { %5722 = vmatpush2.msra.mxu0 %v5675_v27  ;;  %v5803_v27 = vrot.slane %v5794_v51, %v17537_v44 }
 0x539   :  { %5723 = vmatprep.subr.mxu0 %v5674_v52  ;;  %v5832_v52 = vld [vmem:[%s17235_s14] sm:$0x3] }
 0x53a   :  { %5724 = vmatpush2.msra.mxu0 %v5673_v43 }
 0x53b   :  { %5725 = vmatprep.subr.mxu0 %v5672_v60 }
 0x53c   :  { %5726 = vmatpush2.msra.mxu0 %v5671_v20 }
 0x53d   :  { %5727 = vmatprep.subr.mxu0 %v5670_v54 }
 0x53e   :  { %5728 = vmatpush2.msra.mxu0 %v5669_v63  ;;  %v16094_v63 = vrot.slane %v5832_v52, %v17536_v0 }
 0x53f   :  { %5729 = vmatprep.subr.mxu0 %v5668_v28 }
 0x540   :  { %5730 = vmatpush2.msra.mxu0 %v5667_v61 }
 0x541   :  { %5731 = vmatprep.subr.mxu0 %v5666_v18 }
 0x542   :  { %5732 = vmatpush2.msra.mxu0 %v5665_v5 }
 0x543   :  { %5733 = vmatprep.subr.mxu0 %v5664_v53 }
 0x544   :  { %5734 = vmatpush2.msra.mxu0 %v5663_v21 }
 0x545   :  { %5735 = vmatprep.subr.mxu0 %v5662_v15 }
 0x546   :  { %5736 = vmatpush2.msra.mxu0 %v5661_v40 }
 0x547   :  { %5737 = vmatprep.subr.mxu0 %v5660_v25 }
 0x548   :  { %5738 = vmatpush2.msra.mxu0 %v5659_v7  ;;  %v5841_v7 = vrot.slane %v5832_v52, %v17537_v44 }
 0x549   :  { %5739 = vmatprep.subr.mxu0 %v5658_v35 }
 0x54a   :  { %5740 = vmatpush2.msra.mxu0 %v5657_v10 }
 0x54b   :  { %5741 = vmatprep.subr.mxu0 %v5656_v57 }
 0x54c   :  { %5742 = vmatpush2.msra.mxu0 %v5655_v12 }
 0x54d   :  { %5743 = vmatprep.subr.mxu0 %v5654_v23 }
 0x54e   :  { %5744 = vmatpush2.msra.mxu0 %v5653_v30 }
 0x54f   :  { %5745 = vmatprep.subr.mxu0 %v5652_v41 }
 0x550   :  { %5746 = vmatpush2.msra.mxu0 %v5651_v36 }
 0x551   :  { %5748 = vmatmul.mubr.f32.vlgmr.msra.gmra.mxu0 %v5617_v13 }
 0x611   :  { %v5749_v59 = vpop.f32.mrf.mxu0 }
 0x612   :  { %v5754_v39 = vmul.f32 %v5749_v59, %v5749_v59  ;;  %v16084_v16 = vrot.slane %v5749_v59, %v17536_v0 }
 0x613   :  { %v5751_v8 = vpop.f32.mrf.mxu0 }
 0x614   :  { %v5758_v14 = vrot.slane %v5754_v39, 7  ;;  %v5755_v19 = vmul.f32 %v5751_v8, %v5751_v8  ;;  %v16091_v20 = vrot.slane %v5751_v8, %v17536_v0  ;;  %v5782_v18 = vsub.f32 %v15979_v58, %v16084_v16 }
 0x615   :  { %v5778_v5 = vsub.f32 %v15977_v47, %v16084_v16  ;;  %v5786_v53 = vsub.f32 %v16002_v24, %v16084_v16  ;;  %v5780_v41 = vsub.f32 %v15973_v31, %v16084_v16  ;;  %v5784_v39 = vsub.f32 %v15989_v56, %v16084_v16 }
 0x616   :  { %v5762_v45 = vsub.f32 %v5749_v59, %v5758_v14  ;;  %v5759_v17 = vrot.slane %v5755_v19, 7  ;;  %v5783_v25 = vsub.f32 %v15998_v34, %v16091_v20  ;;  %v5790_v34 = vsub.f32 %v16034_v32, %v16084_v16 }
 0x617   :  { %v5787_v24 = vsub.f32 %v16020_v49, %v16091_v20  ;;  %v5791_v32 = vsub.f32 %v16043_v55, %v16091_v20  ;;  %v5781_v31 = vsub.f32 %v15986_v37, %v16091_v20  ;;  %v5785_v56 = vsub.f32 %v16012_v4, %v16091_v20 }
 0x618   :  { %v5764_v62 = vmax.f32 %v5762_v45, 0.0  ;;  %v5763_v38 = vsub.f32 %v5751_v8, %v5759_v17  ;;  %v5788_v45 = vsub.f32 %v16022_v1, %v16084_v16  ;;  %v5779_v1 = vsub.f32 %v15982_v3, %v16091_v20 }
 0x61a   :  { %v5766_v6 = vadd.f32 0.001, %v5764_v62  ;;  %v5765_v33 = vmax.f32 %v5763_v38, 0.0 }
 0x61c   :  { %13467 = vrsqrt.f32 %v5766_v6  ;;  %v5767_v22 = vadd.f32 0.001, %v5765_v33  ;;  %v5789_v6 = vsub.f32 %v16030_v29, %v16091_v20  ;;  %v5792_v29 = vsub.f32 %v16050_v26, %v16084_v16 }
 0x61e   :  { %13469 = vrsqrt.f32 %v5767_v22 }
 0x629   :  { %v13468_v43 = vpop.eup %13467 }
 0x62a   :  { %v5806_v60 = vmul.f32 %v13468_v43, %v5799_v42  ;;  %v5793_v42 = vsub.f32 %v16060_v48, %v16091_v20 }
 0x62b   :  { %v13470_v54 = vpop.eup %13469 }
 0x62c   :  { %v5811_v28 = vrot.slane %v5806_v60, %v17537_v44  ;;  %v5807_v61 = vmul.f32 %v13470_v54, %v5803_v27 }
 0x62e   :  { %v5815_v21 = vrot.slane %v5807_v61, %v17537_v44  ;;  %v5820_v15 = vmul.f32 %v5811_v28, %v5782_v18  ;;  %v5816_v40 = vmul.f32 %v5811_v28, %v5778_v5  ;;  %v5824_v10 = vmul.f32 %v5811_v28, %v5786_v53 }
 0x62f   :  { %v5828_v23 = vmul.f32 %v5811_v28, %v5790_v34  ;;  %v5818_v13 = vmul.f32 %v5811_v28, %v5780_v41  ;;  %v5822_v14 = vmul.f32 %v5811_v28, %v5784_v39  ;;  %v5826_v62 = vmul.f32 %v5811_v28, %v5788_v45 }
 0x630   :  { %v16108_v35 = vadd.f32 %v16094_v63, %v5820_v15  ;;  %v16111_v58 = vadd.f32 %v16094_v63, %v5816_v40  ;;  %v5821_v47 = vmul.f32 %v5815_v21, %v5783_v25  ;;  %v16122_v57 = vadd.f32 %v16094_v63, %v5824_v10 }
 0x631   :  { %v5825_v30 = vmul.f32 %v5815_v21, %v5787_v24  ;;  %v16132_v36 = vadd.f32 %v16094_v63, %v5828_v23  ;;  %v5829_v59 = vmul.f32 %v5815_v21, %v5791_v32  ;;  %v16142_v8 = vadd.f32 %v16094_v63, %v5818_v13 }
 0x632   :  { %5884 = vrot.lane.b32.xlu1 %v16108_v35, %s14068_s13  ;;  %5876 = vrot.lane.b32.xlu0 %v16111_v58, %s14068_s13  ;;  %v5849_v12 = vadd.f32 %v5841_v7, %v5821_v47  ;;  %v5819_v19 = vmul.f32 %v5815_v21, %v5781_v31  ;;  %v16155_v37 = vadd.f32 %v16094_v63, %v5822_v14 }
 0x633   :  { %v5853_v49 = vadd.f32 %v5841_v7, %v5825_v30  ;;  %v16144_v55 = vadd.f32 %v5841_v7, %v5829_v59  ;;  %v5823_v38 = vmul.f32 %v5815_v21, %v5785_v56  ;;  %v16168_v4 = vadd.f32 %v16094_v63, %v5826_v62 }
 0x634   :  { %v16157_v17 = vadd.f32 %v5841_v7, %v5819_v19  ;;  %v5827_v22 = vmul.f32 %v5815_v21, %v5789_v6  ;;  %v5817_v51 = vmul.f32 %v5815_v21, %v5779_v1  ;;  %v5831_v52 = vmul.f32 %v5815_v21, %v5793_v42 }
 0x635   :  { %v16170_v33 = vadd.f32 %v5841_v7, %v5823_v38  ;;  %v5830_v43 = vmul.f32 %v5811_v28, %v5792_v29 }
 0x636   :  { %5892 = vrot.lane.b32.xlu0 %v16122_v57, %s14068_s13  ;;  %5886 = vrot.lane.b32.xlu1 %v5849_v12, %s14068_s13  ;;  %v16180_v3 = vadd.f32 %v5841_v7, %v5827_v22  ;;  %v16182_v27 = vadd.f32 %v5841_v7, %v5817_v51  ;;  %v16188_v60 = vadd.f32 %v5841_v7, %v5831_v52 }
 0x637   :  { %v16191_v54 = vadd.f32 %v16094_v63, %v5830_v43 }
 0x63a   :  { %5900 = vrot.lane.b32.xlu0 %v16132_v36, %s14068_s13  ;;  %5894 = vrot.lane.b32.xlu1 %v5853_v49, %s14068_s13 }
 0x63e   :  { %5880 = vrot.lane.b32.xlu0 %v16142_v8, %s14068_s13  ;;  %5902 = vrot.lane.b32.xlu1 %v16144_v55, %s14068_s13 }
 0x642   :  { %5888 = vrot.lane.b32.xlu0 %v16155_v37, %s14068_s13  ;;  %5882 = vrot.lane.b32.xlu1 %v16157_v17, %s14068_s13 }
 0x646   :  { %5896 = vrot.lane.b32.xlu0 %v16168_v4, %s14068_s13  ;;  %5890 = vrot.lane.b32.xlu1 %v16170_v33, %s14068_s13 }
 0x64a   :  { %5898 = vrot.lane.b32.xlu1 %v16180_v3, %s14068_s13  ;;  %5878 = vrot.lane.b32.xlu0 %v16182_v27, %s14068_s13 }
 0x64e   :  { %5906 = vrot.lane.b32.xlu1 %v16188_v60, %s14068_s13  ;;  %5904 = vrot.lane.b32.xlu0 %v16191_v54, %s14068_s13 }
 0x6a4   :  { %v5885_v26 = vpop.permute.xlu1 %5884  ;;  %v16197_v48 = vpop.permute.xlu0 %5876 }
 0x6a8   :  { %v5887_v16 = vpop.permute.xlu1 %5886  ;;  %v5893_v61 = vpop.permute.xlu0 %5892 }
 0x6a9   :  { %v5911_v20 = vsel %vm5908_vm11, %v5885_v26, %v5887_v16  ;;  %v5938_v28 = vmax.f32 %v5849_v12, %v5887_v16 }
 0x6aa   :  { %v5937_v18 = vmax.f32 %v16108_v35, %v5911_v20 }
 0x6ac   :  { %v6001_v5 = vcombine.low %v5937_v18, %v5938_v28  ;;  %v6002_v63 = vcombine.high %v5937_v18, %v5938_v28  ;;  %v5895_v53 = vpop.permute.xlu1 %5894  ;;  %v5901_v35 = vpop.permute.xlu0 %5900 }
 0x6ad   :  { %v5913_v21 = vsel %vm5908_vm11, %v5893_v61, %v5895_v53  ;;  %v16202_v15 = vmax.f32 %v5853_v49, %v5895_v53 }
 0x6ae   :  { %v6009_v40 = vrot.slane %v6001_v5, %v15183_v11  ;;  %v6016_v25 = vrot.slane %v6002_v63, %v15183_v11  ;;  %v5941_v7 = vmax.f32 %v16122_v57, %v5913_v21 }
 0x6b0   :  { %v6017_v10 = vcombine.high %v6009_v40, %v6009_v40  ;;  %v6018_v47 = vcombine.high %v6016_v25, %v6016_v25  ;;  %v6179_v34 = vrot.slane %v6009_v40, %v15183_v11  ;;  %v6195_v24 = vrot.slane %v6016_v25, %v15183_v11  ;;  %v16209_v12 = vpop.permute.xlu1 %5902 }
 0x6b1   :  { %v6037_v23 = vcombine.low %v5941_v7, %v16202_v15  ;;  %v16214_v30 = vsel %vm5908_vm11, %v5901_v35, %v16209_v12  ;;  %v6038_v39 = vcombine.high %v5941_v7, %v16202_v15 }
 0x6b2   :  { %v6180_v41 = vcombine.high %v6179_v34, %v6179_v34  ;;  %v6187_v32 = vrot.slane %v6017_v10, %v15183_v11  ;;  %v6196_v57 = vcombine.high %v6195_v24, %v6195_v24  ;;  %v6203_v49 = vrot.slane %v6018_v47, %v15183_v11 }
 0x6b3   :  { %v6542_v13 = vsel %vm2718_vm2, %v6179_v34, -inf  ;;  %v6570_v59 = vsel %vm2718_vm2, %v6195_v24, -inf  ;;  %v6045_v31 = vrot.slane %v6037_v23, %v15183_v11 }
 0x6b4   :  { %v6188_v14 = vcombine.high %v6187_v32, %v6187_v32  ;;  %v6204_v19 = vcombine.high %v6203_v49, %v6203_v49  ;;  %v6543_v45 = vrot.slane %v6542_v13, 4  ;;  %v6549_v56 = vsel %vm6436_vm15, %v6180_v41, -inf }
 0x6b5   :  { %v6550_v62 = vrot.slane %v6549_v56, 4  ;;  %v6556_v38 = vsel %vm2718_vm2, %v6187_v32, -inf  ;;  %v6571_v6 = vrot.slane %v6570_v59, 4  ;;  %v6577_v1 = vsel %vm6436_vm15, %v6196_v57, -inf }
 0x6b6   :  { %v6544_v22 = vmax.f32 %v6542_v13, %v6543_v45  ;;  %v6557_v51 = vrot.slane %v6556_v38, 4  ;;  %v6563_v42 = vsel %vm6436_vm15, %v6188_v14, -inf  ;;  %v6578_v29 = vrot.slane %v6577_v1, 4 }
 0x6b7   :  { %v6551_v52 = vmax.f32 %v6549_v56, %v6550_v62  ;;  %v6564_v43 = vrot.slane %v6563_v42, 4  ;;  %v6572_v26 = vmax.f32 %v6570_v59, %v6571_v6  ;;  %v6584_v16 = vsel %vm2718_vm2, %v6203_v49, -inf }
 0x6b8   :  { %v6545_v20 = vrot.slane %v6544_v22, 2  ;;  %v6558_v28 = vmax.f32 %v6556_v38, %v6557_v51  ;;  %v6579_v61 = vmax.f32 %v6577_v1, %v6578_v29  ;;  %v6585_v18 = vrot.slane %v6584_v16, 4 }
 0x6b9   :  { %v6552_v5 = vrot.slane %v6551_v52, 2  ;;  %v6565_v63 = vmax.f32 %v6563_v42, %v6564_v43  ;;  %v6573_v53 = vrot.slane %v6572_v26, 2  ;;  %v6591_v21 = vsel %vm6436_vm15, %v6204_v19, -inf }
 0x6ba   :  { %v6546_v15 = vmax.f32 %v6544_v22, %v6545_v20  ;;  %v6559_v40 = vrot.slane %v6558_v28, 2  ;;  %v6580_v25 = vrot.slane %v6579_v61, 2  ;;  %v6586_v7 = vmax.f32 %v6584_v16, %v6585_v18 }
 0x6bb   :  { %v6553_v10 = vmax.f32 %v6551_v52, %v6552_v5  ;;  %v6566_v47 = vrot.slane %v6565_v63, 2  ;;  %v6574_v34 = vmax.f32 %v6572_v26, %v6573_v53  ;;  %v6592_v24 = vrot.slane %v6591_v21, 4 }
 0x6bc   :  { %v6547_v35 = vrot.slane %v6546_v15, 1  ;;  %v6560_v23 = vmax.f32 %v6558_v28, %v6559_v40  ;;  %v6581_v41 = vmax.f32 %v6579_v61, %v6580_v25  ;;  %v6587_v32 = vrot.slane %v6586_v7, 2 }
 0x6bd   :  { %v6554_v57 = vrot.slane %v6553_v10, 1  ;;  %v6567_v49 = vmax.f32 %v6565_v63, %v6566_v47  ;;  %v6575_v13 = vrot.slane %v6574_v34, 1  ;;  %v6593_v59 = vmax.f32 %v6591_v21, %v6592_v24 }
 0x6be   :  { %v6561_v14 = vrot.slane %v6560_v23, 1  ;;  %v6582_v45 = vrot.slane %v6581_v41, 1  ;;  %v6588_v56 = vmax.f32 %v6586_v7, %v6587_v32  ;;  %v6052_v19 = vrot.slane %v6038_v39, %v15183_v11 }
 0x6bf   :  { %v6548_v62 = vmax.f32 %v6546_v15, %v6547_v35  ;;  %v6555_v38 = vmax.f32 %v6553_v10, %v6554_v57  ;;  %v6568_v6 = vrot.slane %v6567_v49, 1  ;;  %v6594_v1 = vrot.slane %v6593_v59, 2 }
 0x6c0   :  { %v6576_v22 = vmax.f32 %v6574_v34, %v6575_v13  ;;  %v6583_v51 = vmax.f32 %v6581_v41, %v6582_v45  ;;  %v6589_v42 = vrot.slane %v6588_v56, 1  ;;  %v6053_v29 = vcombine.high %v6045_v31, %v6045_v31 }
 0x6c1   :  { %v6562_v52 = vmax.f32 %v6560_v23, %v6561_v14  ;;  %v6569_v43 = vmax.f32 %v6567_v49, %v6568_v6  ;;  %v6595_v26 = vmax.f32 %v6593_v59, %v6594_v1  ;;  %v13142_v16 = vpack.c.bf16 %v6555_v38, %v6548_v62 }
 0x6c2   :  { %v6054_v20 = vcombine.high %v6052_v19, %v6052_v19  ;;  %v6243_v28 = vrot.slane %v6045_v31, %v15183_v11  ;;  %v6251_v61 = vrot.slane %v6053_v29, %v15183_v11  ;;  %v6590_v18 = vmax.f32 %v6588_v56, %v6589_v42 }
 0x6c3   :  { %v6596_v5 = vrot.slane %v6595_v26, 1  ;;  %v13143_v39 = vpack.c.bf16 %v6569_v43, %v6562_v52  ;;  %v13144_v63 = vpack.c.bf16 %v6583_v51, %v6576_v22  ;;  %v7136_v53 = vunpack.c.l.b16 %v13142_v16 }
 0x6c4   :  { %v7137_v21 = vunpack.c.h.b16 %v13142_v16  ;;  %v6244_v15 = vcombine.high %v6243_v28, %v6243_v28  ;;  %v6252_v40 = vcombine.high %v6251_v61, %v6251_v61  ;;  %v6259_v47 = vrot.slane %v6052_v19, %v15183_v11 }
 0x6c5   :  { %v6597_v25 = vmax.f32 %v6595_v26, %v6596_v5  ;;  %v7138_v7 = vunpack.c.l.b16 %v13143_v39  ;;  %v7139_v10 = vunpack.c.h.b16 %v13143_v39  ;;  %v6267_v34 = vrot.slane %v6054_v20, %v15183_v11 }
 0x6c6   :  { %v6654_v24 = vsel %vm2718_vm2, %v6243_v28, -inf  ;;  %v6661_v31 = vsel %vm6436_vm15, %v6244_v15, -inf  ;;  %v6668_v35 = vsel %vm2718_vm2, %v6251_v61, -inf  ;;  %v7140_v41 = vunpack.c.l.b16 %v13144_v63 }
 0x6c7   :  { %v16236_v23 = vpack.c.bf16 %v6597_v25, %v6590_v18  ;;  %v7198_v32 = vsel %vm17377_vm10, %v7138_v7, %v7136_v53  ;;  %v6260_v57 = vcombine.high %v6259_v47, %v6259_v47  ;;  %v7141_v49 = vunpack.c.h.b16 %v13144_v63 }
 0x6c8   :  { %v7205_v13 = vsel %vm17377_vm10, %v7139_v10, %v7137_v21  ;;  %v6655_v59 = vrot.slane %v6654_v24, 4  ;;  %v16242_v14 = vmax.f32 %v16144_v55, %v16209_v12  ;;  %v7199_v45 = vsel %vm17376_vm13, %v7140_v41, %v7198_v32 }
 0x6c9   :  { %v6268_v56 = vcombine.high %v6267_v34, %v6267_v34  ;;  %v6662_v19 = vrot.slane %v6661_v31, 4  ;;  %v6669_v62 = vrot.slane %v6668_v35, 4  ;;  %v6675_v6 = vsel %vm6436_vm15, %v6252_v40, -inf }
 0x6ca   :  { %v6656_v38 = vmax.f32 %v6654_v24, %v6655_v59  ;;  %v6682_v1 = vsel %vm2718_vm2, %v6259_v47, -inf  ;;  %v6689_v22 = vsel %vm6436_vm15, %v6260_v57, -inf  ;;  %v7142_v51 = vunpack.c.l.b16 %v16236_v23 }
 0x6cb   :  { %v16250_v42 = vsel %vm17376_vm13, %v7141_v49, %v7205_v13  ;;  %v6663_v29 = vmax.f32 %v6661_v31, %v6662_v19  ;;  %v6670_v55 = vmax.f32 %v6668_v35, %v6669_v62  ;;  %v6676_v52 = vrot.slane %v6675_v6, 4  ;;  %v5883_v13 = vpop.permute.xlu1 %5882 }
 0x6cc   :  { %v6657_v12 = vrot.slane %v6656_v38, 2  ;;  %v6683_v43 = vrot.slane %v6682_v1, 4  ;;  %v6690_v26 = vrot.slane %v6689_v22, 4  ;;  %v6696_v28 = vsel %vm2718_vm2, %v6267_v34, -inf }
 0x6cd   :  { %v6664_v16 = vrot.slane %v6663_v29, 2  ;;  %v6671_v20 = vrot.slane %v6670_v55, 2  ;;  %v6703_v61 = vsel %vm6436_vm15, %v6268_v56, -inf  ;;  %v6677_v5 = vmax.f32 %v6675_v6, %v6676_v52 }
 0x6ce   :  { %v6658_v18 = vmax.f32 %v6656_v38, %v6657_v12  ;;  %v6684_v39 = vmax.f32 %v6682_v1, %v6683_v43  ;;  %v6691_v63 = vmax.f32 %v6689_v22, %v6690_v26  ;;  %v6697_v15 = vrot.slane %v6696_v28, 4  ;;  %v5881_v22 = vpop.permute.xlu0 %5880 }
 0x6cf   :  { %v6665_v53 = vmax.f32 %v6663_v29, %v6664_v16  ;;  %v6672_v21 = vmax.f32 %v6670_v55, %v6671_v20  ;;  %v6704_v40 = vrot.slane %v6703_v61, 4  ;;  %v6678_v7 = vrot.slane %v6677_v5, 2 }
 0x6d0   :  { %v6659_v25 = vrot.slane %v6658_v18, 1  ;;  %v6685_v10 = vrot.slane %v6684_v39, 2  ;;  %v6692_v47 = vrot.slane %v6691_v63, 2  ;;  %v6698_v35 = vmax.f32 %v6696_v28, %v6697_v15 }
 0x6d1   :  { %v6666_v24 = vrot.slane %v6665_v53, 1  ;;  %v6673_v31 = vrot.slane %v6672_v21, 1  ;;  %v6705_v41 = vmax.f32 %v6703_v61, %v6704_v40  ;;  %v6679_v34 = vmax.f32 %v6677_v5, %v6678_v7 }
 0x6d2   :  { %v6660_v32 = vmax.f32 %v6658_v18, %v6659_v25  ;;  %v6686_v57 = vmax.f32 %v6684_v39, %v6685_v10  ;;  %v6693_v49 = vmax.f32 %v6691_v63, %v6692_v47  ;;  %v6699_v19 = vrot.slane %v6698_v35, 2 }
 0x6d3   :  { %v6667_v59 = vmax.f32 %v6665_v53, %v6666_v24  ;;  %v6674_v56 = vmax.f32 %v6672_v21, %v6673_v31  ;;  %v6706_v62 = vrot.slane %v6705_v41, 2  ;;  %v6680_v38 = vrot.slane %v6679_v34, 1 }
 0x6d4   :  { %v6687_v6 = vrot.slane %v6686_v57, 1  ;;  %v6694_v1 = vrot.slane %v6693_v49, 1  ;;  %v5945_v29 = vmax.f32 %v16132_v36, %v16214_v30  ;;  %v6700_v55 = vmax.f32 %v6698_v35, %v6699_v19 }
 0x6d5   :  { %v6707_v12 = vmax.f32 %v6705_v41, %v6706_v62  ;;  %v13150_v52 = vpack.c.bf16 %v6667_v59, %v6660_v32  ;;  %v5910_v43 = vsel %vm5908_vm11, %v5881_v22, %v5883_v13  ;;  %v6681_v26 = vmax.f32 %v6679_v34, %v6680_v38 }
 0x6d6   :  { %v6688_v16 = vmax.f32 %v6686_v57, %v6687_v6  ;;  %v6695_v20 = vmax.f32 %v6693_v49, %v6694_v1  ;;  %v6073_v28 = vcombine.low %v5945_v29, %v16242_v14  ;;  %v7143_v61 = vunpack.c.h.b16 %v16236_v23 }
 0x6d7   :  { %v16260_v18 = vsel %vm17544_vm1, %v7142_v51, %v7199_v45  ;;  %v6701_v5 = vrot.slane %v6700_v55, 1  ;;  %v6708_v39 = vrot.slane %v6707_v12, 1  ;;  %v13151_v63 = vpack.c.bf16 %v6681_v26, %v6674_v56 }
 0x6d8   :  { %v13152_v53 = vpack.c.bf16 %v6695_v20, %v6688_v16  ;;  %v6074_v36 = vcombine.high %v5945_v29, %v16242_v14  ;;  %v6081_v30 = vrot.slane %v6073_v28, %v15183_v11  ;;  %v5935_v40 = vmax.f32 %v16142_v8, %v5910_v43 }
 0x6d9   :  { %v6702_v21 = vmax.f32 %v6700_v55, %v6701_v5  ;;  %v6709_v15 = vmax.f32 %v6707_v12, %v6708_v39  ;;  %v5936_v25 = vmax.f32 %v16157_v17, %v5883_v13  ;;  %v7152_v7 = vunpack.c.l.b16 %v13150_v52 }
 0x6da   :  { %v7153_v10 = vunpack.c.h.b16 %v13150_v52  ;;  %v7154_v23 = vunpack.c.l.b16 %v13151_v63  ;;  %v7155_v47 = vunpack.c.h.b16 %v13151_v63  ;;  %v6088_v51 = vrot.slane %v6074_v36, %v15183_v11 }
 0x6db   :  { %v16266_v45 = vpack.c.bf16 %v6709_v15, %v6702_v21  ;;  %v6089_v24 = vcombine.high %v6081_v30, %v6081_v30  ;;  %v6307_v31 = vrot.slane %v6081_v30, %v15183_v11  ;;  %v16272_v14 = vsel %vm17545_vm4, %v7143_v61, %v16250_v42 }
 0x6dc   :  { %v7212_v35 = vsel %vm17377_vm10, %v7154_v23, %v7152_v7  ;;  %v7219_v8 = vsel %vm17377_vm10, %v7155_v47, %v7153_v10  ;;  %v5983_v17 = vcombine.low %v5935_v40, %v5936_v25  ;;  %v7156_v41 = vunpack.c.l.b16 %v13152_v53 }
 0x6dd   :  { %v7157_v32 = vunpack.c.h.b16 %v13152_v53  ;;  %v7158_v34 = vunpack.c.l.b16 %v16266_v45  ;;  %v5984_v57 = vcombine.high %v5935_v40, %v5936_v25  ;;  %v6090_v49 = vcombine.high %v6088_v51, %v6088_v51 }
 0x6de   :  { %v6308_v13 = vcombine.high %v6307_v31, %v6307_v31  ;;  %v6315_v59 = vrot.slane %v6089_v24, %v15183_v11  ;;  %v6323_v56 = vrot.slane %v6088_v51, %v15183_v11  ;;  %v16280_v19 = vsel %vm17376_vm13, %v7156_v41, %v7212_v35 }
 0x6df   :  { %v16283_v42 = vsel %vm17376_vm13, %v7157_v32, %v7219_v8  ;;  %v6766_v62 = vsel %vm2718_vm2, %v6307_v31, -inf  ;;  %v16287_v38 = vrot.slane %v5983_v17, %v15183_v11  ;;  %v6331_v22 = vrot.slane %v6090_v49, %v15183_v11 }
 0x6e0   :  { %v6316_v6 = vcombine.high %v6315_v59, %v6315_v59  ;;  %v6324_v1 = vcombine.high %v6323_v56, %v6323_v56  ;;  %v6767_v29 = vrot.slane %v6766_v62, 4  ;;  %v6773_v55 = vsel %vm6436_vm15, %v6308_v13, -inf }
 0x6e1   :  { %v6780_v12 = vsel %vm2718_vm2, %v6315_v59, -inf  ;;  %v6794_v52 = vsel %vm2718_vm2, %v6323_v56, -inf  ;;  %v16294_v43 = vrot.slane %v5984_v57, %v15183_v11  ;;  %v6332_v26 = vcombine.high %v6331_v22, %v6331_v22 }
 0x6e2   :  { %v6768_v16 = vmax.f32 %v6766_v62, %v6767_v29  ;;  %v6774_v20 = vrot.slane %v6773_v55, 4  ;;  %v6781_v28 = vrot.slane %v6780_v12, 4  ;;  %v6787_v61 = vsel %vm6436_vm15, %v6316_v6, -inf }
 0x6e3   :  { %v6795_v5 = vrot.slane %v6794_v52, 4  ;;  %v6801_v39 = vsel %vm6436_vm15, %v6324_v1, -inf  ;;  %v6808_v63 = vsel %vm2718_vm2, %v6331_v22, -inf  ;;  %v6788_v21 = vrot.slane %v6787_v61, 4 }
 0x6e4   :  { %v6769_v53 = vrot.slane %v6768_v16, 2  ;;  %v6775_v36 = vmax.f32 %v6773_v55, %v6774_v20  ;;  %v6782_v30 = vmax.f32 %v6780_v12, %v6781_v28  ;;  %v6802_v40 = vrot.slane %v6801_v39, 4 }
 0x6e5   :  { %v6796_v15 = vmax.f32 %v6794_v52, %v6795_v5  ;;  %v6809_v25 = vrot.slane %v6808_v63, 4  ;;  %v6815_v7 = vsel %vm6436_vm15, %v6332_v26, -inf  ;;  %v6789_v51 = vmax.f32 %v6787_v61, %v6788_v21 }
 0x6e6   :  { %v6770_v10 = vmax.f32 %v6768_v16, %v6769_v53  ;;  %v6776_v23 = vrot.slane %v6775_v36, 2  ;;  %v6783_v47 = vrot.slane %v6782_v30, 2  ;;  %v6803_v31 = vmax.f32 %v6801_v39, %v6802_v40 }
 0x6e7   :  { %v6797_v24 = vrot.slane %v6796_v15, 2  ;;  %v6810_v35 = vmax.f32 %v6808_v63, %v6809_v25  ;;  %v6816_v8 = vrot.slane %v6815_v7, 4  ;;  %v6790_v57 = vrot.slane %v6789_v51, 2 }
 0x6e8   :  { %v6771_v17 = vrot.slane %v6770_v10, 1  ;;  %v6777_v41 = vmax.f32 %v6775_v36, %v6776_v23  ;;  %v6784_v32 = vmax.f32 %v6782_v30, %v6783_v47  ;;  %v6804_v13 = vrot.slane %v6803_v31, 2 }
 0x6e9   :  { %v6798_v49 = vmax.f32 %v6796_v15, %v6797_v24  ;;  %v6811_v59 = vrot.slane %v6810_v35, 2  ;;  %v6817_v56 = vmax.f32 %v6815_v7, %v6816_v8  ;;  %v6791_v22 = vmax.f32 %v6789_v51, %v6790_v57 }
 0x6ea   :  { %v6772_v62 = vmax.f32 %v6770_v10, %v6771_v17  ;;  %v6778_v6 = vrot.slane %v6777_v41, 1  ;;  %v6785_v1 = vrot.slane %v6784_v32, 1  ;;  %v6805_v55 = vmax.f32 %v6803_v31, %v6804_v13 }
 0x6eb   :  { %v6799_v29 = vrot.slane %v6798_v49, 1  ;;  %v6812_v12 = vmax.f32 %v6810_v35, %v6811_v59  ;;  %v6818_v52 = vrot.slane %v6817_v56, 2  ;;  %v6792_v20 = vrot.slane %v6791_v22, 1 }
 0x6ec   :  { %v6779_v26 = vmax.f32 %v6777_v41, %v6778_v6  ;;  %v6786_v16 = vmax.f32 %v6784_v32, %v6785_v1  ;;  %v5999_v28 = vcombine.high %v16287_v38, %v16287_v38  ;;  %v6806_v5 = vrot.slane %v6805_v55, 1 }
 0x6ed   :  { %v6800_v61 = vmax.f32 %v6798_v49, %v6799_v29  ;;  %v6813_v39 = vrot.slane %v6812_v12, 1  ;;  %v6819_v63 = vmax.f32 %v6817_v56, %v6818_v52  ;;  %v6793_v53 = vmax.f32 %v6791_v22, %v6792_v20 }
 0x6ee   :  { %v13158_v36 = vpack.c.bf16 %v6779_v26, %v6772_v62  ;;  %v6000_v30 = vcombine.high %v16294_v43, %v16294_v43  ;;  %v6147_v21 = vrot.slane %v16287_v38, %v15183_v11  ;;  %v6807_v15 = vmax.f32 %v6805_v55, %v6806_v5 }
 0x6ef   :  { %v6814_v40 = vmax.f32 %v6812_v12, %v6813_v39  ;;  %v6820_v25 = vrot.slane %v6819_v63, 1  ;;  %v6155_v7 = vrot.slane %v5999_v28, %v15183_v11  ;;  %v13159_v10 = vpack.c.bf16 %v6793_v53, %v6786_v16 }
 0x6f0   :  { %v7168_v23 = vunpack.c.l.b16 %v13158_v36  ;;  %v7169_v47 = vunpack.c.h.b16 %v13158_v36  ;;  %v6148_v51 = vcombine.high %v6147_v21, %v6147_v21  ;;  %v13160_v31 = vpack.c.bf16 %v6807_v15, %v6800_v61 }
 0x6f1   :  { %v6821_v24 = vmax.f32 %v6819_v63, %v6820_v25  ;;  %v6156_v35 = vcombine.high %v6155_v7, %v6155_v7  ;;  %v6163_v8 = vrot.slane %v16294_v43, %v15183_v11  ;;  %v7170_v17 = vunpack.c.l.b16 %v13159_v10 }
 0x6f2   :  { %v7171_v41 = vunpack.c.h.b16 %v13159_v10  ;;  %v6171_v32 = vrot.slane %v6000_v30, %v15183_v11  ;;  %v6486_v38 = vsel %vm2718_vm2, %v6147_v21, -inf  ;;  %v7172_v49 = vunpack.c.l.b16 %v13160_v31  ;;  %v5889_v30 = vpop.permute.xlu0 %5888 }
 0x6f3   :  { %v13161_v57 = vpack.c.bf16 %v6821_v24, %v6814_v40  ;;  %v7173_v13 = vunpack.c.h.b16 %v13160_v31  ;;  %v6164_v59 = vcombine.high %v6163_v8, %v6163_v8  ;;  %v7226_v56 = vsel %vm17377_vm10, %v7170_v17, %v7168_v23 }
 0x6f4   :  { %v7233_v62 = vsel %vm17377_vm10, %v7171_v41, %v7169_v47  ;;  %v6172_v6 = vcombine.high %v6171_v32, %v6171_v32  ;;  %v6487_v1 = vrot.slane %v6486_v38, 4  ;;  %v7227_v43 = vsel %vm17376_vm13, %v7172_v49, %v7226_v56 }
 0x6f5   :  { %v7174_v22 = vunpack.c.l.b16 %v13161_v57  ;;  %v7175_v29 = vunpack.c.h.b16 %v13161_v57  ;;  %v7234_v55 = vsel %vm17376_vm13, %v7173_v13, %v7233_v62  ;;  %v6493_v52 = vsel %vm6436_vm15, %v6148_v51, -inf  ;;  %v5891_v57 = vpop.permute.xlu1 %5890 }
 0x6f6   :  { %v6488_v12 = vmax.f32 %v6486_v38, %v6487_v1  ;;  %v6500_v26 = vsel %vm2718_vm2, %v6155_v7, -inf  ;;  %v6507_v16 = vsel %vm6436_vm15, %v6156_v35, -inf  ;;  %v6494_v61 = vrot.slane %v6493_v52, 4 }
 0x6f7   :  { %v16319_v20 = vsel %vm17546_vm5, %v7174_v22, %v7227_v43  ;;  %v16322_v28 = vsel %vm17547_vm6, %v7175_v29, %v7234_v55  ;;  %v6501_v5 = vrot.slane %v6500_v26, 4  ;;  %v6508_v63 = vrot.slane %v6507_v16, 4 }
 0x6f8   :  { %v6489_v39 = vrot.slane %v6488_v12, 2  ;;  %v6514_v53 = vsel %vm2718_vm2, %v6163_v8, -inf  ;;  %v6521_v36 = vsel %vm6436_vm15, %v6164_v59, -inf  ;;  %v6495_v21 = vmax.f32 %v6493_v52, %v6494_v61 }
 0x6f9   :  { %v6502_v15 = vmax.f32 %v6500_v26, %v6501_v5  ;;  %v6515_v40 = vrot.slane %v6514_v53, 4  ;;  %v6522_v25 = vrot.slane %v6521_v36, 4  ;;  %v6509_v10 = vmax.f32 %v6507_v16, %v6508_v63 }
 0x6fa   :  { %v6490_v7 = vmax.f32 %v6488_v12, %v6489_v39  ;;  %v6528_v23 = vsel %vm2718_vm2, %v6171_v32, -inf  ;;  %v6535_v47 = vsel %vm6436_vm15, %v6172_v6, -inf  ;;  %v6496_v51 = vrot.slane %v6495_v21, 2  ;;  %v5897_v12 = vpop.permute.xlu0 %5896 }
 0x6fb   :  { %v6503_v24 = vrot.slane %v6502_v15, 2  ;;  %v6516_v31 = vmax.f32 %v6514_v53, %v6515_v40  ;;  %v6523_v35 = vmax.f32 %v6521_v36, %v6522_v25  ;;  %v6510_v41 = vrot.slane %v6509_v10, 2  ;;  %v5899_v25 = vpop.permute.xlu1 %5898 }
 0x6fc   :  { %v6491_v17 = vrot.slane %v6490_v7, 1  ;;  %v6529_v8 = vrot.slane %v6528_v23, 4  ;;  %v6536_v38 = vrot.slane %v6535_v47, 4  ;;  %v6497_v49 = vmax.f32 %v6495_v21, %v6496_v51 }
 0x6fd   :  { %v6504_v13 = vmax.f32 %v6502_v15, %v6503_v24  ;;  %v6517_v59 = vrot.slane %v6516_v31, 2  ;;  %v6524_v56 = vrot.slane %v6523_v35, 2  ;;  %v6511_v1 = vmax.f32 %v6509_v10, %v6510_v41 }
 0x6fe   :  { %v6492_v62 = vmax.f32 %v6490_v7, %v6491_v17  ;;  %v6530_v22 = vmax.f32 %v6528_v23, %v6529_v8  ;;  %v6537_v29 = vmax.f32 %v6535_v47, %v6536_v38  ;;  %v6498_v32 = vrot.slane %v6497_v49, 1  ;;  %v5879_v8 = vpop.permute.xlu0 %5878 }
 0x6ff   :  { %v6505_v43 = vrot.slane %v6504_v13, 1  ;;  %v6518_v6 = vmax.f32 %v6516_v31, %v6517_v59  ;;  %v6525_v55 = vmax.f32 %v6523_v35, %v6524_v56  ;;  %v6512_v52 = vrot.slane %v6511_v1, 1 }
 0x700   :  { %v6531_v26 = vrot.slane %v6530_v22, 2  ;;  %v6538_v16 = vrot.slane %v6537_v29, 2  ;;  %v5912_v61 = vsel %vm5908_vm11, %v5889_v30, %v5891_v57  ;;  %v6499_v5 = vmax.f32 %v6497_v49, %v6498_v32 }
 0x701   :  { %v6506_v39 = vmax.f32 %v6504_v13, %v6505_v43  ;;  %v6519_v63 = vrot.slane %v6518_v6, 1  ;;  %v6526_v53 = vrot.slane %v6525_v55, 1  ;;  %v6513_v36 = vmax.f32 %v6511_v1, %v6512_v52 }
 0x702   :  { %v6532_v21 = vmax.f32 %v6530_v22, %v6531_v26  ;;  %v6539_v15 = vmax.f32 %v6537_v29, %v6538_v16  ;;  %v5939_v40 = vmax.f32 %v16155_v37, %v5912_v61  ;;  %v16330_v23 = vpack.c.bf16 %v6499_v5, %v6492_v62 }
 0x703   :  { %v6520_v7 = vmax.f32 %v6518_v6, %v6519_v63  ;;  %v6527_v10 = vmax.f32 %v6525_v55, %v6526_v53  ;;  %v5940_v47 = vmax.f32 %v16170_v33, %v5891_v57  ;;  %v7159_v51 = vunpack.c.h.b16 %v16266_v45 }
 0x704   :  { %v6533_v24 = vrot.slane %v6532_v21, 1  ;;  %v6540_v30 = vrot.slane %v6539_v15, 1  ;;  %v16334_v31 = vpack.c.bf16 %v6513_v36, %v6506_v39  ;;  %v16340_v35 = vsel %vm17548_vm12, %v7158_v34, %v16280_v19 }
 0x705   :  { %v16342_v37 = vpack.c.bf16 %v6527_v10, %v6520_v7  ;;  %v6019_v17 = vcombine.low %v5939_v40, %v5940_v47  ;;  %v5914_v41 = vsel %vm5908_vm11, %v5897_v12, %v5899_v25  ;;  %v16347_v33 = vsel %vm17549_vm8, %v7159_v51, %v16283_v42 }
 0x706   :  { %v6541_v38 = vmax.f32 %v6539_v15, %v6540_v30  ;;  %v7128_v57 = vunpack.c.l.b16 %v16330_v23  ;;  %v7129_v49 = vunpack.c.h.b16 %v16330_v23  ;;  %v6534_v13 = vmax.f32 %v6532_v21, %v6533_v24 }
 0x707   :  { %v7130_v45 = vunpack.c.l.b16 %v16334_v31  ;;  %v6020_v34 = vcombine.high %v5939_v40, %v5940_v47  ;;  %v6027_v19 = vrot.slane %v6019_v17, %v15183_v11  ;;  %v7131_v59 = vunpack.c.h.b16 %v16334_v31 }
 0x708   :  { %v5943_v56 = vmax.f32 %v16168_v4, %v5914_v41  ;;  %v5944_v62 = vmax.f32 %v16180_v3, %v5899_v25  ;;  %v5909_v42 = vsel %vm5908_vm11, %v16197_v48, %v5879_v8  ;;  %v7132_v1 = vunpack.c.l.b16 %v16342_v37 }
 0x709   :  { %v6034_v22 = vrot.slane %v6020_v34, %v15183_v11  ;;  %v6035_v29 = vcombine.high %v6027_v19, %v6027_v19  ;;  %v6211_v32 = vrot.slane %v6027_v19, %v15183_v11  ;;  %v16361_v43 = vpack.c.bf16 %v6541_v38, %v6534_v13 }
 0x70a   :  { %v6055_v6 = vcombine.low %v5943_v56, %v5944_v62  ;;  %v6056_v55 = vcombine.high %v5943_v56, %v5944_v62  ;;  %v16364_v12 = vmax.f32 %v16111_v58, %v5909_v42  ;;  %v16376_v5 = vmax.f32 %v16182_v27, %v5879_v8 }
 0x70b   :  { %v6036_v4 = vcombine.high %v6034_v22, %v6034_v22  ;;  %v6212_v52 = vcombine.high %v6211_v32, %v6211_v32  ;;  %v6219_v3 = vrot.slane %v6035_v29, %v15183_v11  ;;  %v6227_v48 = vrot.slane %v6034_v22, %v15183_v11 }
 0x70c   :  { %v6598_v26 = vsel %vm2718_vm2, %v6211_v32, -inf  ;;  %v16370_v16 = vrot.slane %v6055_v6, %v15183_v11  ;;  %v16373_v61 = vrot.slane %v6056_v55, %v15183_v11  ;;  %vm17550_vm1 = vcmask 1044484  }
 0x70d   :  { %v6220_v39 = vcombine.high %v6219_v3, %v6219_v3  ;;  %v6228_v58 = vcombine.high %v6227_v48, %v6227_v48  ;;  %v6235_v63 = vrot.slane %v6036_v4, %v15183_v11  ;;  %v6599_v53 = vrot.slane %v6598_v26, 4  ;;  %vm17551_vm4 = vmmov %vm17550_vm1 }
 0x70e   :  { %v6605_v36 = vsel %vm6436_vm15, %v6212_v52, -inf  ;;  %v6612_v21 = vsel %vm2718_vm2, %v6219_v3, -inf  ;;  %v6626_v15 = vsel %vm2718_vm2, %v6227_v48, -inf  ;;  %v6071_v40 = vcombine.high %v16370_v16, %v16370_v16 }
 0x70f   :  { %v6236_v25 = vcombine.high %v6235_v63, %v6235_v63  ;;  %v6600_v7 = vmax.f32 %v6598_v26, %v6599_v53  ;;  %v6606_v10 = vrot.slane %v6605_v36, 4  ;;  %v6613_v47 = vrot.slane %v6612_v21, 4 }
 0x710   :  { %v6619_v27 = vsel %vm6436_vm15, %v6220_v39, -inf  ;;  %v6627_v51 = vrot.slane %v6626_v15, 4  ;;  %v6633_v24 = vsel %vm6436_vm15, %v6228_v58, -inf  ;;  %v6640_v30 = vsel %vm2718_vm2, %v6235_v63, -inf }
 0x711   :  { %v6601_v17 = vrot.slane %v6600_v7, 2  ;;  %v6607_v41 = vmax.f32 %v6605_v36, %v6606_v10  ;;  %v6614_v8 = vmax.f32 %v6612_v21, %v6613_v47  ;;  %v6620_v38 = vrot.slane %v6619_v27, 4 }
 0x712   :  { %v6628_v13 = vmax.f32 %v6626_v15, %v6627_v51  ;;  %v6634_v34 = vrot.slane %v6633_v24, 4  ;;  %v6641_v19 = vrot.slane %v6640_v30, 4  ;;  %v6647_v56 = vsel %vm6436_vm15, %v6236_v25, -inf }
 0x713   :  { %v6602_v62 = vmax.f32 %v6600_v7, %v6601_v17  ;;  %v6608_v42 = vrot.slane %v6607_v41, 2  ;;  %v6615_v22 = vrot.slane %v6614_v8, 2  ;;  %v6621_v29 = vmax.f32 %v6619_v27, %v6620_v38 }
 0x714   :  { %v6629_v32 = vrot.slane %v6628_v13, 2  ;;  %v6635_v6 = vmax.f32 %v6633_v24, %v6634_v34  ;;  %v6642_v55 = vmax.f32 %v6640_v30, %v6641_v19  ;;  %v6648_v4 = vrot.slane %v6647_v56, 4 }
 0x715   :  { %v6603_v52 = vrot.slane %v6602_v62, 1  ;;  %v6609_v3 = vmax.f32 %v6607_v41, %v6608_v42  ;;  %v6616_v48 = vmax.f32 %v6614_v8, %v6615_v22  ;;  %v6622_v26 = vrot.slane %v6621_v29, 2 }
 0x716   :  { %v6630_v39 = vmax.f32 %v6628_v13, %v6629_v32  ;;  %v6636_v58 = vrot.slane %v6635_v6, 2  ;;  %v6643_v63 = vrot.slane %v6642_v55, 2  ;;  %v6649_v53 = vmax.f32 %v6647_v56, %v6648_v4 }
 0x717   :  { %v6604_v36 = vmax.f32 %v6602_v62, %v6603_v52  ;;  %v6610_v21 = vrot.slane %v6609_v3, 1  ;;  %v6617_v15 = vrot.slane %v6616_v48, 1  ;;  %v6623_v25 = vmax.f32 %v6621_v29, %v6622_v26 }
 0x718   :  { %v6631_v7 = vrot.slane %v6630_v39, 1  ;;  %v6637_v10 = vmax.f32 %v6635_v6, %v6636_v58  ;;  %v6644_v47 = vmax.f32 %v6642_v55, %v6643_v63  ;;  %v6650_v27 = vrot.slane %v6649_v53, 2 }
 0x719   :  { %v6611_v51 = vmax.f32 %v6609_v3, %v6610_v21  ;;  %v6618_v24 = vmax.f32 %v6616_v48, %v6617_v15  ;;  %v6624_v30 = vrot.slane %v6623_v25, 1  ;;  %v6072_v17 = vcombine.high %v16373_v61, %v16373_v61 }
 0x71a   :  { %v6632_v41 = vmax.f32 %v6630_v39, %v6631_v7  ;;  %v6638_v8 = vrot.slane %v6637_v10, 1  ;;  %v6645_v38 = vrot.slane %v6644_v47, 1  ;;  %v6651_v13 = vmax.f32 %v6649_v53, %v6650_v27 }
 0x71b   :  { %v6625_v34 = vmax.f32 %v6623_v25, %v6624_v30  ;;  %v13146_v19 = vpack.c.bf16 %v6611_v51, %v6604_v36  ;;  %v6275_v56 = vrot.slane %v16370_v16, %v15183_v11  ;;  %v6283_v62 = vrot.slane %v6071_v40, %v15183_v11 }
 0x71c   :  { %v6639_v42 = vmax.f32 %v6637_v10, %v6638_v8  ;;  %v6646_v22 = vmax.f32 %v6644_v47, %v6645_v38  ;;  %v6652_v29 = vrot.slane %v6651_v13, 1  ;;  %v6291_v32 = vrot.slane %v16373_v61, %v15183_v11 }
 0x71d   :  { %v13147_v6 = vpack.c.bf16 %v6625_v34, %v6618_v24  ;;  %v7144_v55 = vunpack.c.l.b16 %v13146_v19  ;;  %v7145_v4 = vunpack.c.h.b16 %v13146_v19  ;;  %v6276_v52 = vcombine.high %v6275_v56, %v6275_v56 }
 0x71e   :  { %v6653_v3 = vmax.f32 %v6651_v13, %v6652_v29  ;;  %v13148_v48 = vpack.c.bf16 %v6639_v42, %v6632_v41  ;;  %v6284_v26 = vcombine.high %v6283_v62, %v6283_v62  ;;  %v6292_v39 = vcombine.high %v6291_v32, %v6291_v32 }
 0x71f   :  { %v7146_v58 = vunpack.c.l.b16 %v13147_v6  ;;  %v7147_v63 = vunpack.c.h.b16 %v13147_v6  ;;  %v7201_v16 = vsel %vm17550_vm1, %v7144_v55, %v16260_v18  ;;  %v7208_v40 = vsel %vm17551_vm4, %v7145_v4, %v16272_v14 }
 0x720   :  { %v13149_v53 = vpack.c.bf16 %v6653_v3, %v6646_v22  ;;  %v7148_v36 = vunpack.c.l.b16 %v13148_v48  ;;  %v7149_v21 = vunpack.c.h.b16 %v13148_v48  ;;  %v6299_v61 = vrot.slane %v6072_v17, %v15183_v11 }
 0x721   :  { %vm17552_vm5 = vcmask 1045509   ;;  %v6710_v7 = vsel %vm2718_vm2, %v6275_v56, -inf  ;;  %v6717_v10 = vsel %vm6436_vm15, %v6276_v52, -inf  ;;  %vm17554_vm12 = vcmask 1046534  }
 0x722   :  { %v7202_v15 = vsel %vm17552_vm5, %v7146_v58, %v7201_v16  ;;  %vm17553_vm6 = vmmov %vm17552_vm5  ;;  %v7150_v47 = vunpack.c.l.b16 %v13149_v53  ;;  %v7151_v27 = vunpack.c.h.b16 %v13149_v53  ;;  %v6300_v14 = vcombine.high %v6299_v61, %v6299_v61 }
 0x723   :  { %v7209_v25 = vsel %vm17553_vm6, %v7147_v63, %v7208_v40  ;;  %v7203_v18 = vsel %vm17554_vm12, %v7148_v36, %v7202_v15  ;;  %vm17555_vm8 = vmmov %vm17554_vm12  ;;  %v6711_v24 = vrot.slane %v6710_v7, 4  ;;  %v6718_v30 = vrot.slane %v6717_v10, 4 }
 0x724   :  { %v7210_v51 = vsel %vm17555_vm8, %v7149_v21, %v7209_v25  ;;  %v6724_v41 = vsel %vm2718_vm2, %v6283_v62, -inf  ;;  %vm17556_vm1 = vcmask 1043456   ;;  %vm17559_vm5 = vcmask 1047559  }
 0x725   :  { %vm16409_vm4 = vmor %vm7248_vm3, %vm17556_vm1  ;;  %v7204_v8 = vsel %vm17559_vm5, %v7150_v47, %v7203_v18  ;;  %v6725_v13 = vrot.slane %v6724_v41, 4  ;;  %v6731_v34 = vsel %vm6436_vm15, %v6284_v26, -inf  ;;  %v6712_v56 = vmax.f32 %v6710_v7, %v6711_v24 }
 0x726   :  { %vm17560_vm6 = vmmov %vm17559_vm5  ;;  %v6719_v42 = vmax.f32 %v6717_v10, %v6718_v30  ;;  %v6732_v22 = vrot.slane %v6731_v34, 4  ;;  %v6738_v62 = vsel %vm2718_vm2, %v6291_v32, -inf  ;;  %v6745_v6 = vsel %vm6436_vm15, %v6292_v39, -inf }
 0x727   :  { %v7211_v38 = vsel %vm17560_vm6, %v7151_v27, %v7210_v51  ;;  %v6726_v29 = vmax.f32 %v6724_v41, %v6725_v13  ;;  %v6752_v55 = vsel %vm2718_vm2, %v6299_v61, -inf  ;;  %v6713_v4 = vrot.slane %v6712_v56, 2 }
 0x728   :  { %v7241_v19 = vpack.c.b16 %v7211_v38, %v7204_v8  ;;  %v6720_v52 = vrot.slane %v6719_v42, 2  ;;  %v6733_v3 = vmax.f32 %v6731_v34, %v6732_v22  ;;  %v6739_v48 = vrot.slane %v6738_v62, 4 }
 0x729   :  { %v6727_v58 = vrot.slane %v6726_v29, 2  ;;  %v6746_v26 = vrot.slane %v6745_v6, 4  ;;  %v6753_v63 = vrot.slane %v6752_v55, 4  ;;  %v6759_v16 = vsel %vm6436_vm15, %v6300_v14, -inf }
 0x72a   :  { %7251 = vst.msk [vmem:[#allocation4 + $0x10] sm:$0xff] %vm16409_vm4, %v7241_v19  ;;  %v6714_v40 = vmax.f32 %v6712_v56, %v6713_v4  ;;  %v6721_v53 = vmax.f32 %v6719_v42, %v6720_v52  ;;  %v6734_v36 = vrot.slane %v6733_v3, 2  ;;  %v6740_v32 = vmax.f32 %v6738_v62, %v6739_v48 }
 0x72b   :  { %v6728_v21 = vmax.f32 %v6726_v29, %v6727_v58  ;;  %v6747_v39 = vmax.f32 %v6745_v6, %v6746_v26  ;;  %v6754_v15 = vmax.f32 %v6752_v55, %v6753_v63  ;;  %v6760_v61 = vrot.slane %v6759_v16, 4 }
 0x72c   :  { %v6715_v25 = vrot.slane %v6714_v40, 1  ;;  %v6722_v7 = vrot.slane %v6721_v53, 1  ;;  %v6735_v10 = vmax.f32 %v6733_v3, %v6734_v36  ;;  %v6741_v47 = vrot.slane %v6740_v32, 2 }
 0x72d   :  { %v6729_v27 = vrot.slane %v6728_v21, 1  ;;  %v6748_v18 = vrot.slane %v6747_v39, 2  ;;  %v6755_v51 = vrot.slane %v6754_v15, 2  ;;  %v6761_v24 = vmax.f32 %v6759_v16, %v6760_v61 }
 0x72e   :  { %v6716_v30 = vmax.f32 %v6714_v40, %v6715_v25  ;;  %v6723_v41 = vmax.f32 %v6721_v53, %v6722_v7  ;;  %v6736_v8 = vrot.slane %v6735_v10, 1  ;;  %v6742_v14 = vmax.f32 %v6740_v32, %v6741_v47  ;;  %v16427_v53 = vpop.permute.xlu1 %5906 }
 0x72f   :  { %v6730_v38 = vmax.f32 %v6728_v21, %v6729_v27  ;;  %v6749_v13 = vmax.f32 %v6747_v39, %v6748_v18  ;;  %v6756_v34 = vmax.f32 %v6754_v15, %v6755_v51  ;;  %v6762_v19 = vrot.slane %v6761_v24, 2 }
 0x730   :  { %v6737_v56 = vmax.f32 %v6735_v10, %v6736_v8  ;;  %v6743_v42 = vrot.slane %v6742_v14, 1  ;;  %v13154_v22 = vpack.c.bf16 %v6723_v41, %v6716_v30  ;;  %v5965_v29 = vcombine.low %v16364_v12, %v16376_v5 }
 0x731   :  { %v6750_v62 = vrot.slane %v6749_v13, 1  ;;  %v6757_v6 = vrot.slane %v6756_v34, 1  ;;  %v6763_v55 = vmax.f32 %v6761_v24, %v6762_v19  ;;  %v5966_v4 = vcombine.high %v16364_v12, %v16376_v5 }
 0x732   :  { %v6744_v52 = vmax.f32 %v6742_v14, %v6743_v42  ;;  %v13155_v3 = vpack.c.bf16 %v6737_v56, %v6730_v38  ;;  %v7160_v48 = vunpack.c.l.b16 %v13154_v22  ;;  %v7161_v58 = vunpack.c.h.b16 %v13154_v22 }
 0x733   :  { %v6751_v26 = vmax.f32 %v6749_v13, %v6750_v62  ;;  %v6758_v63 = vmax.f32 %v6756_v34, %v6757_v6  ;;  %v6764_v16 = vrot.slane %v6763_v55, 1  ;;  %v5973_v40 = vrot.slane %v5965_v29, %v15183_v11 }
 0x734   :  { %v7162_v36 = vunpack.c.l.b16 %v13155_v3  ;;  %v7163_v32 = vunpack.c.h.b16 %v13155_v3  ;;  %vm17561_vm3 = vcmask 1044484   ;;  %v5980_v15 = vrot.slane %v5966_v4, %v15183_v11 }
 0x735   :  { %v7215_v21 = vsel %vm17561_vm3, %v7160_v48, %v16340_v35  ;;  %vm17562_vm12 = vmmov %vm17561_vm3  ;;  %v6765_v12 = vmax.f32 %v6763_v55, %v6764_v16  ;;  %v13156_v5 = vpack.c.bf16 %v6751_v26, %v6744_v52  ;;  %v5981_v61 = vcombine.high %v5973_v40, %v5973_v40 }
 0x736   :  { %v7222_v39 = vsel %vm17562_vm12, %v7161_v58, %v16347_v33  ;;  %vm17563_vm8 = vcmask 1045509   ;;  %v6115_v10 = vrot.slane %v5973_v40, %v15183_v11  ;;  %v16439_v47 = vmax.f32 %v16188_v60, %v16427_v53 }
 0x737   :  { %v7216_v25 = vsel %vm17563_vm8, %v7162_v36, %v7215_v21  ;;  %vm17564_vm1 = vmmov %vm17563_vm8  ;;  %v13157_v27 = vpack.c.bf16 %v6765_v12, %v6758_v63  ;;  %v7164_v35 = vunpack.c.l.b16 %v13156_v5  ;;  %v7165_v18 = vunpack.c.h.b16 %v13156_v5 }
 0x738   :  { %v7223_v7 = vsel %vm17564_vm1, %v7163_v32, %v7222_v39  ;;  %v5982_v51 = vcombine.high %v5980_v15, %v5980_v15  ;;  %v6116_v33 = vcombine.high %v6115_v10, %v6115_v10  ;;  %v6123_v24 = vrot.slane %v5981_v61, %v15183_v11 }
 0x739   :  { %v6131_v30 = vrot.slane %v5980_v15, %v15183_v11  ;;  %v6429_v41 = vsel %vm2718_vm2, %v6115_v10, -inf  ;;  %v7166_v8 = vunpack.c.l.b16 %v13157_v27  ;;  %v7167_v14 = vunpack.c.h.b16 %v13157_v27 }
 0x73a   :  { %vm17565_vm5 = vcmask 1046534   ;;  %v6124_v34 = vcombine.high %v6123_v24, %v6123_v24  ;;  %v6139_v19 = vrot.slane %v5982_v51, %v15183_v11  ;;  %v6430_v56 = vrot.slane %v6429_v41, 4 }
 0x73b   :  { %v7217_v38 = vsel %vm17565_vm5, %v7164_v35, %v7216_v25  ;;  %vm17566_vm6 = vmmov %vm17565_vm5  ;;  %v6132_v60 = vcombine.high %v6131_v30, %v6131_v30  ;;  %vm17567_vm3 = vcmask 1047559   ;;  %v6437_v29 = vsel %vm6436_vm15, %v6116_v33, -inf }
 0x73c   :  { %v7224_v13 = vsel %vm17566_vm6, %v7165_v18, %v7223_v7  ;;  %v7218_v42 = vsel %vm17567_vm3, %v7166_v8, %v7217_v38  ;;  %vm17568_vm12 = vmmov %vm17567_vm3  ;;  %v6444_v62 = vsel %vm2718_vm2, %v6123_v24, -inf  ;;  %v6140_v55 = vcombine.high %v6139_v19, %v6139_v19  ;;  %v5905_v38 = vpop.permute.xlu0 %5904 }
 0x73d   :  { %v7225_v22 = vsel %vm17568_vm12, %v7167_v14, %v7224_v13  ;;  %v6431_v4 = vmax.f32 %v6429_v41, %v6430_v56  ;;  %v6438_v52 = vrot.slane %v6437_v29, 4  ;;  %v6445_v3 = vrot.slane %v6444_v62, 4 }
 0x73e   :  { %v7242_v6 = vpack.c.b16 %v7225_v22, %v7218_v42  ;;  %v6451_v48 = vsel %vm6436_vm15, %v6124_v34, -inf  ;;  %v6458_v58 = vsel %vm2718_vm2, %v6131_v30, -inf  ;;  %v6465_v26 = vsel %vm6436_vm15, %v6132_v60, -inf }
 0x73f   :  { %v6432_v63 = vrot.slane %v6431_v4, 2  ;;  %v6439_v16 = vmax.f32 %v6437_v29, %v6438_v52  ;;  %v6452_v40 = vrot.slane %v6451_v48, 4  ;;  %v6459_v36 = vrot.slane %v6458_v58, 4 }
 0x740   :  { %7252 = vst.msk [vmem:[#allocation4 + $0x28] sm:$0xff] %vm16409_vm4, %v7242_v6  ;;  %v6446_v32 = vmax.f32 %v6444_v62, %v6445_v3  ;;  %v6466_v21 = vrot.slane %v6465_v26, 4  ;;  %v6472_v39 = vsel %vm2718_vm2, %v6139_v19, -inf  ;;  %v6479_v12 = vsel %vm6436_vm15, %v6140_v55, -inf }
 0x741   :  { %v6433_v5 = vmax.f32 %v6431_v4, %v6432_v63  ;;  %v6440_v15 = vrot.slane %v6439_v16, 2  ;;  %v6453_v61 = vmax.f32 %v6451_v48, %v6452_v40  ;;  %v6460_v25 = vmax.f32 %v6458_v58, %v6459_v36 }
 0x742   :  { %v6447_v7 = vrot.slane %v6446_v32, 2  ;;  %v6467_v10 = vmax.f32 %v6465_v26, %v6466_v21  ;;  %v6473_v27 = vrot.slane %v6472_v39, 4  ;;  %v6480_v35 = vrot.slane %v6479_v12, 4 }
 0x743   :  { %v6434_v18 = vrot.slane %v6433_v5, 1  ;;  %v6441_v51 = vmax.f32 %v6439_v16, %v6440_v15  ;;  %v6454_v33 = vrot.slane %v6453_v61, 2  ;;  %v6461_v24 = vrot.slane %v6460_v25, 2 }
 0x744   :  { %v6448_v30 = vmax.f32 %v6446_v32, %v6447_v7  ;;  %v6468_v41 = vrot.slane %v6467_v10, 2  ;;  %v6474_v8 = vmax.f32 %v6472_v39, %v6473_v27  ;;  %v6481_v14 = vmax.f32 %v6479_v12, %v6480_v35 }
 0x745   :  { %v6435_v13 = vmax.f32 %v6433_v5, %v6434_v18  ;;  %v6442_v34 = vrot.slane %v6441_v51, 1  ;;  %v6455_v60 = vmax.f32 %v6453_v61, %v6454_v33  ;;  %v6462_v19 = vmax.f32 %v6460_v25, %v6461_v24 }
 0x746   :  { %v6449_v56 = vrot.slane %v6448_v30, 1  ;;  %v6469_v42 = vmax.f32 %v6467_v10, %v6468_v41  ;;  %v6475_v22 = vrot.slane %v6474_v8, 2  ;;  %v6482_v29 = vrot.slane %v6481_v14, 2 }
 0x747   :  { %v6443_v62 = vmax.f32 %v6441_v51, %v6442_v34  ;;  %v6456_v6 = vrot.slane %v6455_v60, 1  ;;  %v6463_v55 = vrot.slane %v6462_v19, 1  ;;  %v5916_v4 = vsel %vm5908_vm11, %v5905_v38, %v16427_v53 }
 0x748   :  { %v7133_v52 = vunpack.c.h.b16 %v16342_v37  ;;  %v6470_v3 = vrot.slane %v6469_v42, 1  ;;  %v6476_v48 = vmax.f32 %v6474_v8, %v6475_v22  ;;  %v6483_v58 = vmax.f32 %v6481_v14, %v6482_v29 }
 0x749   :  { %v6450_v26 = vmax.f32 %v6448_v30, %v6449_v56  ;;  %v6457_v63 = vmax.f32 %v6455_v60, %v6456_v6  ;;  %v13134_v16 = vpack.c.bf16 %v6443_v62, %v6435_v13  ;;  %v5947_v40 = vmax.f32 %v16191_v54, %v5916_v4 }
 0x74a   :  { %v6464_v36 = vmax.f32 %v6462_v19, %v6463_v55  ;;  %v6471_v32 = vmax.f32 %v6469_v42, %v6470_v3  ;;  %v6477_v21 = vrot.slane %v6476_v48, 1  ;;  %v6484_v39 = vrot.slane %v6483_v58, 1 }
 0x74b   :  { %v7134_v12 = vunpack.c.l.b16 %v16361_v43  ;;  %v13135_v5 = vpack.c.bf16 %v6457_v63, %v6450_v26  ;;  %v7120_v15 = vunpack.c.l.b16 %v13134_v16  ;;  %v6091_v53 = vcombine.low %v5947_v40, %v16439_v47 }
 0x74c   :  { %v6478_v61 = vmax.f32 %v6476_v48, %v6477_v21  ;;  %v6485_v25 = vmax.f32 %v6483_v58, %v6484_v39  ;;  %v13136_v7 = vpack.c.bf16 %v6471_v32, %v6464_v36  ;;  %v6092_v10 = vcombine.high %v5947_v40, %v16439_v47 }
 0x74d   :  { %v7121_v27 = vunpack.c.h.b16 %v13134_v16  ;;  %v7122_v35 = vunpack.c.l.b16 %v13135_v5  ;;  %v7123_v18 = vunpack.c.h.b16 %v13135_v5  ;;  %v6099_v54 = vrot.slane %v6091_v53, %v15183_v11 }
 0x74e   :  { %v13137_v51 = vpack.c.bf16 %v6485_v25, %v6478_v61  ;;  %v7124_v33 = vunpack.c.l.b16 %v13136_v7  ;;  %v7125_v24 = vunpack.c.h.b16 %v13136_v7  ;;  %v6106_v30 = vrot.slane %v6092_v10, %v15183_v11 }
 0x74f   :  { %v7184_v41 = vsel %vm17377_vm10, %v7122_v35, %v7120_v15  ;;  %v7191_v8 = vsel %vm17377_vm10, %v7123_v18, %v7121_v27  ;;  %v6107_v14 = vcombine.high %v6099_v54, %v6099_v54  ;;  %v6339_v38 = vrot.slane %v6099_v54, %v15183_v11 }
 0x750   :  { %v7126_v13 = vunpack.c.l.b16 %v13137_v51  ;;  %v7127_v34 = vunpack.c.h.b16 %v13137_v51  ;;  %v7185_v47 = vsel %vm17376_vm13, %v7124_v33, %v7184_v41  ;;  %v7192_v60 = vsel %vm17376_vm13, %v7125_v24, %v7191_v8 }
 0x751   :  { %v6108_v19 = vcombine.high %v6106_v30, %v6106_v30  ;;  %v6340_v56 = vcombine.high %v6339_v38, %v6339_v38  ;;  %v6347_v42 = vrot.slane %v6107_v14, %v15183_v11  ;;  %v6355_v22 = vrot.slane %v6106_v30, %v15183_v11 }
 0x752   :  { %v7135_v29 = vunpack.c.h.b16 %v16361_v43  ;;  %vm17569_vm8 = vcmask 1043459   ;;  %v6822_v55 = vsel %vm2718_vm2, %v6339_v38, -inf  ;;  %vm17571_vm5 = vcmask 1044484  }
 0x753   :  { %v7186_v62 = vsel %vm17569_vm8, %v7126_v13, %v7185_v47  ;;  %vm17570_vm1 = vmmov %vm17569_vm8  ;;  %v6348_v48 = vcombine.high %v6347_v42, %v6347_v42  ;;  %v6356_v58 = vcombine.high %v6355_v22, %v6355_v22  ;;  %vm17573_vm3 = vcmask 1045509  }
 0x754   :  { %v7193_v6 = vsel %vm17570_vm1, %v7127_v34, %v7192_v60  ;;  %v7187_v4 = vsel %vm17571_vm5, %v7128_v57, %v7186_v62  ;;  %vm17572_vm6 = vmmov %vm17571_vm5  ;;  %v6363_v63 = vrot.slane %v6108_v19, %v15183_v11  ;;  %v6823_v16 = vrot.slane %v6822_v55, 4 }
 0x755   :  { %v7194_v3 = vsel %vm17572_vm6, %v7129_v49, %v7193_v6  ;;  %v7188_v43 = vsel %vm17573_vm3, %v7130_v45, %v7187_v4  ;;  %vm17574_vm12 = vmmov %vm17573_vm3  ;;  %vm17575_vm8 = vcmask 1046534   ;;  %v6829_v49 = vsel %vm6436_vm15, %v6340_v56, -inf }
 0x756   :  { %v7195_v26 = vsel %vm17574_vm12, %v7131_v59, %v7194_v3  ;;  %v7189_v57 = vsel %vm17575_vm8, %v7132_v1, %v7188_v43  ;;  %vm17576_vm1 = vmmov %vm17575_vm8  ;;  %v6836_v40 = vsel %vm2718_vm2, %v6347_v42, -inf  ;;  %vm17577_vm5 = vcmask 1047559  }
 0x757   :  { %v7196_v23 = vsel %vm17576_vm1, %v7133_v52, %v7195_v26  ;;  %v7190_v36 = vsel %vm17577_vm5, %v7134_v12, %v7189_v57  ;;  %vm17578_vm6 = vmmov %vm17577_vm5  ;;  %v6364_v31 = vcombine.high %v6363_v63, %v6363_v63  ;;  %v6824_v32 = vmax.f32 %v6822_v55, %v6823_v16 }
 0x758   :  { %v7197_v45 = vsel %vm17578_vm6, %v7135_v29, %v7196_v23  ;;  %v6830_v21 = vrot.slane %v6829_v49, 4  ;;  %v6837_v39 = vrot.slane %v6836_v40, 4  ;;  %v6843_v5 = vsel %vm6436_vm15, %v6348_v48, -inf  ;;  %vm17581_vm8 = vmmov %vm17574_vm12 }
 0x759   :  { %v7240_v59 = vpack.c.b16 %v7197_v45, %v7190_v36  ;;  %v6825_v37 = vrot.slane %v6824_v32, 2  ;;  %v6844_v15 = vrot.slane %v6843_v5, 4  ;;  %v6850_v1 = vsel %vm2718_vm2, %v6355_v22, -inf  ;;  %vm17582_vm5 = vmmov %vm17576_vm1 }
 0x75a   :  { %v6857_v52 = vsel %vm6436_vm15, %v6356_v58, -inf  ;;  %v6831_v53 = vmax.f32 %v6829_v49, %v6830_v21  ;;  %v6838_v12 = vmax.f32 %v6836_v40, %v6837_v39  ;;  %v6851_v61 = vrot.slane %v6850_v1, 4  ;;  %vm17583_vm13 = vmmov %vm17578_vm6 }
 0x75b   :  { %7250 = vst.msk [vmem:[#allocation4 + $0x8] sm:$0xff] %vm16409_vm4, %v7240_v59  ;;  %v6858_v25 = vrot.slane %v6857_v52, 4  ;;  %v6826_v7 = vmax.f32 %v6824_v32, %v6825_v37  ;;  %v6845_v10 = vmax.f32 %v6843_v5, %v6844_v15  ;;  %v6864_v27 = vsel %vm2718_vm2, %v6363_v63, -inf }
 0x75c   :  { %v6871_v35 = vsel %vm6436_vm15, %v6364_v31, -inf  ;;  %v6832_v18 = vrot.slane %v6831_v53, 2  ;;  %v6839_v54 = vrot.slane %v6838_v12, 2  ;;  %v6852_v51 = vmax.f32 %v6850_v1, %v6851_v61 }
 0x75d   :  { %v6859_v33 = vmax.f32 %v6857_v52, %v6858_v25  ;;  %v6827_v24 = vrot.slane %v6826_v7, 1  ;;  %v6846_v30 = vrot.slane %v6845_v10, 2  ;;  %v6865_v41 = vrot.slane %v6864_v27, 4 }
 0x75e   :  { %v6872_v8 = vrot.slane %v6871_v35, 4  ;;  %v6833_v14 = vmax.f32 %v6831_v53, %v6832_v18  ;;  %v6840_v38 = vmax.f32 %v6838_v12, %v6839_v54  ;;  %v6853_v13 = vrot.slane %v6852_v51, 2 }
 0x75f   :  { %v6860_v34 = vrot.slane %v6859_v33, 2  ;;  %v6847_v47 = vmax.f32 %v6845_v10, %v6846_v30  ;;  %v6866_v60 = vmax.f32 %v6864_v27, %v6865_v41  ;;  %v6828_v4 = vmax.f32 %v6826_v7, %v6827_v24 }
 0x760   :  { %v6873_v19 = vmax.f32 %v6871_v35, %v6872_v8  ;;  %v6834_v56 = vrot.slane %v6833_v14, 1  ;;  %v6841_v42 = vrot.slane %v6840_v38, 1  ;;  %v6854_v22 = vmax.f32 %v6852_v51, %v6853_v13 }
 0x761   :  { %v6861_v29 = vmax.f32 %v6859_v33, %v6860_v34  ;;  %v6848_v62 = vrot.slane %v6847_v47, 1  ;;  %v6867_v6 = vrot.slane %v6866_v60, 2  ;;  %vm17579_vm15 = vcmask 1044484  }
 0x762   :  { %v6874_v55 = vrot.slane %v6873_v19, 2  ;;  %v6835_v3 = vmax.f32 %v6833_v14, %v6834_v56  ;;  %v6855_v48 = vrot.slane %v6854_v22, 1  ;;  %v6842_v43 = vmax.f32 %v6840_v38, %v6841_v42  ;;  %vm17580_vm3 = vmmov %vm17579_vm15 }
 0x763   :  { %v6862_v58 = vrot.slane %v6861_v29, 1  ;;  %v6849_v26 = vmax.f32 %v6847_v47, %v6848_v62  ;;  %v6868_v63 = vmax.f32 %v6866_v60, %v6867_v6 }
 0x764   :  { %v6875_v16 = vmax.f32 %v6873_v19, %v6874_v55  ;;  %v6856_v57 = vmax.f32 %v6854_v22, %v6855_v48  ;;  %v13162_v49 = vpack.c.bf16 %v6835_v3, %v6828_v4 }
 0x765   :  { %v6863_v23 = vmax.f32 %v6861_v29, %v6862_v58  ;;  %v6869_v40 = vrot.slane %v6868_v63, 1  ;;  %v13163_v45 = vpack.c.bf16 %v6849_v26, %v6842_v43 }
 0x766   :  { %v6876_v36 = vrot.slane %v6875_v16, 1  ;;  %v7176_v32 = vunpack.c.l.b16 %v13162_v49  ;;  %v7177_v59 = vunpack.c.h.b16 %v13162_v49 }
 0x767   :  { %v13164_v31 = vpack.c.bf16 %v6863_v23, %v6856_v57  ;;  %v6870_v21 = vmax.f32 %v6868_v63, %v6869_v40  ;;  %v7178_v5 = vunpack.c.l.b16 %v13163_v45  ;;  %v7179_v37 = vunpack.c.h.b16 %v13163_v45 }
 0x768   :  { %v6877_v39 = vmax.f32 %v6875_v16, %v6876_v36  ;;  %v7229_v52 = vsel %vm17579_vm15, %v7176_v32, %v16319_v20  ;;  %v7236_v53 = vsel %vm17580_vm3, %v7177_v59, %v16322_v28 }
 0x769   :  { %v7180_v15 = vunpack.c.l.b16 %v13164_v31  ;;  %v7181_v1 = vunpack.c.h.b16 %v13164_v31  ;;  %v7230_v61 = vsel %vm17574_vm12, %v7178_v5, %v7229_v52  ;;  %v7237_v25 = vsel %vm17581_vm8, %v7179_v37, %v7236_v53 }
 0x76a   :  { %v13165_v12 = vpack.c.bf16 %v6877_v39, %v6870_v21 }
 0x76b   :  { %v7231_v7 = vsel %vm17576_vm1, %v7180_v15, %v7230_v61  ;;  %v7238_v10 = vsel %vm17582_vm5, %v7181_v1, %v7237_v25 }
 0x76c   :  { %v7182_v27 = vunpack.c.l.b16 %v13165_v12  ;;  %v7183_v35 = vunpack.c.h.b16 %v13165_v12 }
 0x76e   :  { %v7232_v18 = vsel %vm17578_vm6, %v7182_v27, %v7231_v7  ;;  %v7239_v54 = vsel %vm17583_vm13, %v7183_v35, %v7238_v10 }
 0x76f   :  { %v7243_v51 = vpack.c.b16 %v7239_v54, %v7232_v18 }
 0x771   :  { %7253 = vst.msk [vmem:[#allocation4 + $0x30] sm:$0xff] %vm16409_vm4, %v7243_v51 }
 0x772   :  { %14041 = dma.done.wait [#allocation16 + $0x1], 11520 }
 0x773   :  { %14042 = vsyncadd [#allocation16 + $0x1], 4294955776  ;;  %vm8672_vm15 = vcmask 785415   ;;  %vm8681_vm3 = vcmask 782340   ;;  %vm17584_vm12 = vsmask.f32 7966 }
 0x774   :  { %vm8673_vm8 = vmand %vm8672_vm15, %vm17584_vm12  ;;  %vm17585_vm10 = vsmask.f32 4352  ;;  %v8675_v20 = vld [vmem:[#allocation5] sm:$0x88]  ;;  %v8678_v28 = vld [vmem:[#allocation5 + $0x18] sm:$0x88] }
 0x775   :  { %vm8682_vm1 = vmand %vm8681_vm3, %vm17585_vm10  ;;  %v8684_v33 = vld [vmem:[#allocation5 + $0x10] sm:$0x11]  ;;  %v8687_v41 = vld [vmem:[#allocation5 + $0x28] sm:$0x11]  ;;  %vm8454_vm13 = vcmask 779264   ;;  %vm17590_vm15 = vcmask 1042434  }
 0x776   :  { %vm8674_vm5 = vmor %vm8673_vm8, %vm14584_vm7  ;;  %v13471_v14 = vld [vmem:[#allocation9 + $0x164] ss:$8 sps:$4 sm:$0xff]   ;;  %v13473_v38 = vld [vmem:[#allocation9 + $0x160] ss:$8 sps:$4 sm:$0xff]   ;;  %vm17592_vm12 = vcmask 1043459  }
 0x777   :  { %vm8683_vm6 = vmor %vm8682_vm1, %vm14594_vm14  ;;  %v8676_v24 = vsel %vm8674_vm5, 0, %v8675_v20  ;;  %v8679_v17 = vsel %vm8674_vm5, 0, %v8678_v28  ;;  %v13474_v13 = vld [vmem:[#allocation9 + $0x154] ss:$8 sps:$4 sm:$0xff]   ;;  %7543 = vmatprep.subr.bf16.mxu1 %v13471_v14  ;;  %v13476_v34 = vld [vmem:[#allocation9 + $0x150] ss:$8 sps:$4 sm:$0xff]  }
 0x778   :  { %v8685_v30 = vsel %vm8683_vm6, 0, %v8684_v33  ;;  %8677 = vst [vmem:[#allocation5] sm:$0x88] %v8676_v24  ;;  %8680 = vst [vmem:[#allocation5 + $0x18] sm:$0x88] %v8679_v17  ;;  %v8688_v8 = vsel %vm8683_vm6, 0, %v8687_v41  ;;  %7544 = vmatpush1.bf16.msra.mxu1 %v13473_v38 }
 0x779   :  { %8686 = vst [vmem:[#allocation5 + $0x10] sm:$0x11] %v8685_v30  ;;  %8689 = vst [vmem:[#allocation5 + $0x28] sm:$0x11] %v8688_v8  ;;  %7545 = vmatprep.subr.bf16.mxu1 %v13474_v13  ;;  %v13477_v2 = vld [vmem:[#allocation9 + $0x144] ss:$8 sps:$4 sm:$0xff]  }
 0x77a   :  { %v13479_v47 = vld [vmem:[#allocation9 + $0x140] ss:$8 sps:$4 sm:$0xff]   ;;  %v13480_v60 = vld [vmem:[#allocation9 + $0x134] ss:$8 sps:$4 sm:$0xff]   ;;  %v13482_v19 = vld [vmem:[#allocation9 + $0x130] ss:$8 sps:$4 sm:$0xff]  }
 0x77b   :  { %v13483_v56 = vld [vmem:[#allocation9 + $0x124] ss:$8 sps:$4 sm:$0xff]   ;;  %v13485_v42 = vld [vmem:[#allocation9 + $0x120] ss:$8 sps:$4 sm:$0xff]   ;;  %v13486_v22 = vld [vmem:[#allocation9 + $0x114] ss:$8 sps:$4 sm:$0xff]  }
 0x77c   :  { %7546 = vmatpush1.bf16.msra.mxu1 %v13476_v34  ;;  %v13488_v29 = vld [vmem:[#allocation9 + $0x110] ss:$8 sps:$4 sm:$0xff]   ;;  %v13489_v62 = vld [vmem:[#allocation9 + $0x104] ss:$8 sps:$4 sm:$0xff]   ;;  %v13515_v6 = vld [vmem:[#allocation9 + $0x254] ss:$8 sps:$4 sm:$0xff]  }
 0x77d   :  { %7547 = vmatprep.subr.bf16.mxu1 %v13477_v2  ;;  %v13518_v55 = vld [vmem:[#allocation9 + $0x250] ss:$8 sps:$4 sm:$0xff]   ;;  %v16524_v4 = vld [vmem:[#allocation4 + $0x8] sm:$0xff]  ;;  %8074 = vmatprep.subr.bf16.mxu0 %v13515_v6  ;;  %v13492_v43 = vld [vmem:[#allocation9 + $0xf4] ss:$8 sps:$4 sm:$0xff]   ;;  %vm17586_vm14 = vcmask 785408  }
 0x77e   :  { %v16526_v3 = vld [vmem:[#allocation4 + $0x10] sm:$0xff]  ;;  %v13491_v48 = vld [vmem:[#allocation9 + $0x100] ss:$8 sps:$4 sm:$0xff]   ;;  %8075 = vmatpush1.bf16.msra.mxu0 %v13518_v55  ;;  %v13524_v26 = vld [vmem:[#allocation9 + $0x244] ss:$8 sps:$4 sm:$0xff]   ;;  %v7270_v10 = vshrl.u32 %v16524_v4, 16 }
 0x77f   :  { %v12660_v58 = vcombine.high %v16524_v4, %v16526_v3  ;;  %v13526_v63 = vld [vmem:[#allocation9 + $0x240] ss:$8 sps:$4 sm:$0xff]   ;;  %v13494_v16 = vld [vmem:[#allocation9 + $0xf0] ss:$8 sps:$4 sm:$0xff]   ;;  %8076 = vmatprep.subr.bf16.mxu0 %v13524_v26  ;;  %v13530_v57 = vld [vmem:[#allocation9 + $0x234] ss:$8 sps:$4 sm:$0xff]  }
 0x780   :  { %7548 = vmatpush1.bf16.msra.mxu1 %v13479_v47  ;;  %v13532_v23 = vld [vmem:[#allocation9 + $0x230] ss:$8 sps:$4 sm:$0xff]   ;;  %v13495_v49 = vld [vmem:[#allocation9 + $0x1d4] ss:$8 sps:$4 sm:$0xff]   ;;  %v13536_v40 = vld [vmem:[#allocation9 + $0x224] ss:$8 sps:$4 sm:$0xff]  }
 0x781   :  { %7549 = vmatprep.subr.bf16.mxu1 %v13480_v60  ;;  %12693 = vmatprep.mubr.msk.bf16.mxu1 %vm5908_vm11, %v12660_v58  ;;  %v13497_v36 = vld [vmem:[#allocation9 + $0x1d0] ss:$8 sps:$4 sm:$0xff]   ;;  %v13538_v45 = vld [vmem:[#allocation9 + $0x220] ss:$8 sps:$4 sm:$0xff]   ;;  %v13498_v31 = vld [vmem:[#allocation9 + $0x1c4] ss:$8 sps:$4 sm:$0xff]  }
 0x782   :  { %8077 = vmatpush1.bf16.msra.mxu0 %v13526_v63  ;;  %v13542_v32 = vld [vmem:[#allocation9 + $0x214] ss:$8 sps:$4 sm:$0xff]   ;;  %v13500_v59 = vld [vmem:[#allocation9 + $0x1c0] ss:$8 sps:$4 sm:$0xff]   ;;  %v13544_v21 = vld [vmem:[#allocation9 + $0x210] ss:$8 sps:$4 sm:$0xff]  }
 0x783   :  { %8078 = vmatprep.subr.bf16.mxu0 %v13530_v57  ;;  %v13501_v39 = vld [vmem:[#allocation9 + $0x1b4] ss:$8 sps:$4 sm:$0xff]   ;;  %v13548_v5 = vld [vmem:[#allocation9 + $0x204] ss:$8 sps:$4 sm:$0xff]   ;;  %v13503_v37 = vld [vmem:[#allocation9 + $0x1b0] ss:$8 sps:$4 sm:$0xff]  }
 0x784   :  { %7550 = vmatpush1.bf16.msra.mxu1 %v13482_v19  ;;  %v13550_v15 = vld [vmem:[#allocation9 + $0x200] ss:$8 sps:$4 sm:$0xff]   ;;  %v13504_v1 = vld [vmem:[#allocation9 + $0x1a4] ss:$8 sps:$4 sm:$0xff]   ;;  %v13554_v52 = vld [vmem:[#allocation9 + $0x1f4] ss:$8 sps:$4 sm:$0xff]  }
 0x785   :  { %7551 = vmatprep.subr.bf16.mxu1 %v13483_v56  ;;  %v13506_v53 = vld [vmem:[#allocation9 + $0x1a0] ss:$8 sps:$4 sm:$0xff]   ;;  %v13556_v12 = vld [vmem:[#allocation9 + $0x1f0] ss:$8 sps:$4 sm:$0xff]   ;;  %v13507_v61 = vld [vmem:[#allocation9 + $0x194] ss:$8 sps:$4 sm:$0xff]  }
 0x786   :  { %8079 = vmatpush1.bf16.msra.mxu0 %v13532_v23  ;;  %v13560_v25 = vld [vmem:[#allocation9 + $0x1e4] ss:$8 sps:$4 sm:$0xff]   ;;  %v13509_v7 = vld [vmem:[#allocation9 + $0x190] ss:$8 sps:$4 sm:$0xff]   ;;  %v7273_v27 = vshll.u32 %v16524_v4, 16  ;;  %v7279_v51 = vshrl.u32 %v16526_v3, 16  ;;  %vm17587_vm10 = vmmov %vm17586_vm14 }
 0x787   :  { %8080 = vmatprep.subr.bf16.mxu0 %v13536_v40  ;;  %v13562_v35 = vld [vmem:[#allocation9 + $0x1e0] ss:$8 sps:$4 sm:$0xff]   ;;  %v13510_v18 = vld [vmem:[#allocation9 + $0x184] ss:$8 sps:$4 sm:$0xff]   ;;  %v7282_v20 = vshll.u32 %v16526_v3, 16  ;;  %v7828_v24 = vrot.slane %v7270_v10, 4  ;;  %vm17591_vm3 = vmmov %vm17590_vm15 }
 0x788   :  { %7552 = vmatpush1.bf16.msra.mxu1 %v13485_v42  ;;  %v13566_v54 = vld [vmem:[#allocation9 + $0x2c4] ss:$8 sps:$4 sm:$0xff]   ;;  %v13512_v28 = vld [vmem:[#allocation9 + $0x180] ss:$8 sps:$4 sm:$0xff]   ;;  %v7831_v17 = vrot.slane %v7273_v27, 5  ;;  %v7841_v14 = vrot.slane %v7279_v51, 4  ;;  %vm17593_vm8 = vmmov %vm17592_vm12 }
 0x789   :  { %7553 = vmatprep.subr.bf16.mxu1 %v13486_v22  ;;  %v13568_v33 = vld [vmem:[#allocation9 + $0x2c0] ss:$8 sps:$4 sm:$0xff]   ;;  %v13513_v30 = vld [vmem:[#allocation9 + $0x174] ss:$8 sps:$4 sm:$0xff]   ;;  %v7837_v8 = vrot.slane %v7282_v20, 5  ;;  %v7272_v42 = vrot.slane %v7270_v10, 7  ;;  %vm17594_vm5 = vmmov %vm17587_vm10 }
 0x78a   :  { %8081 = vmatpush1.bf16.msra.mxu0 %v13538_v45  ;;  %v13572_v41 = vld [vmem:[#allocation9 + $0x2b4] ss:$8 sps:$4 sm:$0xff]   ;;  %v13517_v38 = vld [vmem:[#allocation9 + $0x170] ss:$8 sps:$4 sm:$0xff]   ;;  %v7832_v2 = vor.u32 %v7831_v17, %v7828_v24  ;;  %v13578_v47 = vld [vmem:[#allocation9 + $0x2a4] ss:$8 sps:$4 sm:$0xff]  }
 0x78b   :  { %8082 = vmatprep.subr.bf16.mxu0 %v13542_v32  ;;  %v13523_v13 = vld [vmem:[#allocation9 + $0x74] ss:$8 sps:$4 sm:$0xff]   ;;  %v13574_v34 = vld [vmem:[#allocation9 + $0x2b0] ss:$8 sps:$4 sm:$0xff]   ;;  %v13580_v19 = vld [vmem:[#allocation9 + $0x2a0] ss:$8 sps:$4 sm:$0xff]   ;;  %v7842_v56 = vor.u32 %v7841_v14, %v7837_v8 }
 0x78c   :  { %7554 = vmatpush1.bf16.msra.mxu1 %v13488_v29  ;;  %v13521_v60 = vld [vmem:[#allocation9 + $0x70] ss:$8 sps:$4 sm:$0xff]   ;;  %v7281_v22 = vrot.slane %v7279_v51, 7  ;;  %v12659_v29 = vcombine.low %v16524_v4, %v16526_v3  ;;  %v16539_v6 = vld [vmem:[#allocation4 + $0x28] sm:$0xff]  ;;  %v7833_v58 = vrot.slane %v7832_v2, 4  ;;  %v7277_v45 = vrot.slane %v7272_v42, 4 }
 0x78d   :  { %7555 = vmatprep.subr.bf16.mxu1 %v13489_v62  ;;  %v13529_v62 = vld [vmem:[#allocation9 + $0x64] ss:$8 sps:$4 sm:$0xff]   ;;  %v16541_v55 = vld [vmem:[#allocation4 + $0x30] sm:$0xff]  ;;  %v7821_v26 = vld [vmem:[#allocation4 + $0x18] sm:$0x11]  ;;  %v7853_v63 = vshll.u32 %v16539_v6, 16 }
 0x78e   :  { %8083 = vmatpush1.bf16.msra.mxu0 %v13544_v21  ;;  %v7863_v3 = vshrl.u32 %v16541_v55, 16  ;;  %v12662_v57 = vcombine.high %v16539_v6, %v16541_v55  ;;  %v7843_v23 = vrot.slane %v7842_v56, 4  ;;  %v13527_v40 = vld [vmem:[#allocation9 + $0x60] ss:$8 sps:$4 sm:$0xff]   ;;  %v13535_v32 = vld [vmem:[#allocation9 + $0x54] ss:$8 sps:$4 sm:$0xff]   ;;  %v7838_v21 = vsel %vm14741_vm0, %v7833_v58, %v7837_v8 }
 0x78f   :  { %8084 = vmatprep.subr.bf16.mxu0 %v13548_v5  ;;  %v13541_v51 = vld [vmem:[#allocation9 + $0x44] ss:$8 sps:$4 sm:$0xff]   ;;  %v13600_v8 = vld [vmem:[#allocation9 + $0x270] ss:$8 sps:$4 sm:$0xff]   ;;  %vm8866_vm1 = vcmask 785412   ;;  %vm17595_vm6 = vcmask 1044484  }
 0x790   :  { %7556 = vmatpush1.bf16.msra.mxu1 %v13491_v48  ;;  %v13584_v48 = vld [vmem:[#allocation9 + $0x294] ss:$8 sps:$4 sm:$0xff]   ;;  %v13604_v14 = vld [vmem:[#allocation9 + $0x264] ss:$8 sps:$4 sm:$0xff]   ;;  %v13545_v2 = vld [vmem:[#allocation9 + $0x30] ss:$8 sps:$4 sm:$0xff]  }
 0x791   :  { %7557 = vmatprep.subr.bf16.mxu1 %v13492_v43  ;;  %v7850_v43 = vshrl.u32 %v16539_v6, 16  ;;  %v13565_v58 = vld [vmem:[#allocation9 + $0x4] ss:$8 sps:$4 sm:$0xff]  }
 0x792   :  { %8085 = vmatpush1.bf16.msra.mxu0 %v13550_v15  ;;  %v13590_v15 = vld [vmem:[#allocation9 + $0x284] ss:$8 sps:$4 sm:$0xff]  }
 0x793   :  { %8086 = vmatprep.subr.bf16.mxu0 %v13554_v52  ;;  %v7855_v52 = vrot.slane %v7853_v63, 5 }
 0x794   :  { %7558 = vmatpush1.bf16.msra.mxu1 %v13494_v16  ;;  %v7859_v16 = vshll.u32 %v16541_v55, 16 }
 0x795   :  { %7561 = vmatprep.subr.bf16.mxu1 %v13495_v49  ;;  %v7845_v49 = vshll.u32 %v7821_v26, 16 }
 0x796   :  { %8087 = vmatpush1.bf16.msra.mxu0 %v13556_v12  ;;  %v7865_v12 = vrot.slane %v7863_v3, 4 }
 0x797   :  { %8088 = vmatprep.subr.bf16.mxu0 %v13560_v25  ;;  %v7824_v25 = vld [vmem:[#allocation4 + $0x38] sm:$0x11] }
 0x798   :  { %7562 = vmatpush2.bf16.msra.mxu1 %v13497_v36  ;;  %v7258_v36 = vld [vmem:[#allocation4] sm:$0x88]  ;;  %v7869_v24 = vshll.u32 %v7824_v25, 16 }
 0x799   :  { %7563 = vmatprep.subr.bf16.mxu1 %v13498_v31  ;;  %v7284_v31 = vor.u32 %v7282_v20, %v7281_v22  ;;  %v7265_v5 = vshrl.u32 %v7258_v36, 16  ;;  %v13598_v20 = vld [vmem:[#allocation9 + $0x274] ss:$8 sps:$4 sm:$0xff]   ;;  %v13551_v22 = vld [vmem:[#allocation9 + $0x20] ss:$8 sps:$4 sm:$0xff]  }
 0x79a   :  { %8089 = vmatpush1.bf16.msra.mxu0 %v13562_v35  ;;  %v13533_v35 = vld [vmem:[#allocation9 + $0x50] ss:$8 sps:$4 sm:$0xff]  }
 0x79b   :  { %8092 = vmatprep.subr.bf16.mxu0 %v13566_v54  ;;  %v13575_v36 = vld [vmem:[#allocation9 + $0xd0] ss:$8 sps:$4 sm:$0xff]  }
 0x79c   :  { %7564 = vmatpush2.bf16.msra.mxu1 %v13500_v59  ;;  %v13586_v59 = vld [vmem:[#allocation9 + $0x290] ss:$8 sps:$4 sm:$0xff]  }
 0x79d   :  { %7565 = vmatprep.subr.bf16.mxu1 %v13501_v39  ;;  %v7847_v39 = vrot.slane %v7845_v49, 5  ;;  %v13569_v49 = vld [vmem:[#allocation9 + $0xe0] ss:$8 sps:$4 sm:$0xff]  }
 0x79e   :  { %8093 = vmatpush2.bf16.msra.mxu0 %v13568_v33 }
 0x79f   :  { %8094 = vmatprep.subr.bf16.mxu0 %v13572_v41  ;;  %v7848_v4 = vsel %vm14741_vm0, %v7843_v23, %v7847_v39  ;;  %v13547_v41 = vld [vmem:[#allocation9 + $0x34] ss:$8 sps:$4 sm:$0xff]   ;;  %v13571_v23 = vld [vmem:[#allocation9 + $0xe4] ss:$8 sps:$4 sm:$0xff]  }
 0x7a0   :  { %7566 = vmatpush2.bf16.msra.mxu1 %v13503_v37  ;;  %v7275_v37 = vor.u32 %v7273_v27, %v7272_v42  ;;  %v12732_v10 = vcombine.high %v7838_v21, %v7848_v4  ;;  %v16568_v27 = vsel %vm14612_vm9, %v7277_v45, %v7284_v31  ;;  %v12731_v42 = vcombine.low %v7838_v21, %v7848_v4  ;;  %v13583_v45 = vld [vmem:[#allocation9 + $0xc4] ss:$8 sps:$4 sm:$0xff]   ;;  %v13581_v31 = vld [vmem:[#allocation9 + $0xc0] ss:$8 sps:$4 sm:$0xff]  }
 0x7a1   :  { %7567 = vmatprep.subr.bf16.mxu1 %v13504_v1  ;;  %v7852_v1 = vrot.slane %v7850_v43, 4  ;;  %v13597_v21 = vld [vmem:[#allocation9 + $0xa4] ss:$8 sps:$4 sm:$0xff]  }
 0x7a2   :  { %8095 = vmatpush2.bf16.msra.mxu0 %v13574_v34  ;;  %12765 = vmatprep.mubr.msk.bf16.mxu0 %vm5908_vm11, %v12732_v10  ;;  %v7871_v34 = vrot.slane %v7869_v24, 5  ;;  %v7261_v39 = vld [vmem:[#allocation4 + $0x20] sm:$0x88] }
 0x7a3   :  { %8096 = vmatprep.subr.bf16.mxu0 %v13578_v47  ;;  %v13606_v47 = vld [vmem:[#allocation9 + $0x260] ss:$8 sps:$4 sm:$0xff]  }
 0x7a4   :  { %7568 = vmatpush2.bf16.msra.mxu1 %v13506_v53  ;;  %v7861_v53 = vrot.slane %v7859_v16, 5  ;;  %v13607_v10 = vld [vmem:[#allocation9 + $0x80] ss:$8 sps:$4 sm:$0xff]  }
 0x7a5   :  { %7569 = vmatprep.subr.bf16.mxu1 %v13507_v61  ;;  %v12657_v61 = vrot.slane %v7265_v5, 11  ;;  %v13595_v5 = vld [vmem:[#allocation9 + $0xa0] ss:$8 sps:$4 sm:$0xff]  }
 0x7a6   :  { %8097 = vmatpush2.bf16.msra.mxu0 %v13580_v19  ;;  %v7866_v33 = vor.u32 %v7865_v12, %v7861_v53  ;;  %v13609_v12 = vld [vmem:[#allocation9 + $0x84] ss:$8 sps:$4 sm:$0xff]  }
 0x7a7   :  { %8098 = vmatprep.subr.bf16.mxu0 %v13584_v48  ;;  %v16572_v54 = vsel %vm14612_vm9, %v12657_v61, %v7275_v37  ;;  %v13557_v48 = vld [vmem:[#allocation9 + $0x10] ss:$8 sps:$4 sm:$0xff]   ;;  %v13603_v37 = vld [vmem:[#allocation9 + $0x94] ss:$8 sps:$4 sm:$0xff]  }
 0x7a8   :  { %7570 = vmatpush2.bf16.msra.mxu1 %v13509_v7  ;;  %v12661_v7 = vcombine.low %v16539_v6, %v16541_v55  ;;  %v12696_v17 = vcombine.high %v16572_v54, %v16568_v27 }
 0x7a9   :  { %7571 = vmatprep.subr.bf16.mxu1 %v13510_v18  ;;  %v13593_v18 = vld [vmem:[#allocation9 + $0x280] ss:$8 sps:$4 sm:$0xff]  }
 0x7aa   :  { %8099 = vmatpush2.bf16.msra.mxu0 %v13586_v59  ;;  %v13587_v59 = vld [vmem:[#allocation9 + $0xb0] ss:$8 sps:$4 sm:$0xff]  }
 0x7ab   :  { %8100 = vmatprep.subr.bf16.mxu0 %v13590_v15  ;;  %v7287_v15 = vshrl.u32 %v7261_v39, 16 }
 0x7ac   :  { %7572 = vmatpush2.bf16.msra.mxu1 %v13512_v28  ;;  %v7856_v28 = vor.u32 %v7855_v52, %v7852_v1  ;;  %v7294_v1 = vrot.slane %v7850_v43, 7  ;;  %v7303_v52 = vrot.slane %v7863_v3, 7 }
 0x7ad   :  { %7573 = vmatprep.subr.bf16.mxu1 %v13513_v30  ;;  %v13539_v30 = vld [vmem:[#allocation9 + $0x40] ss:$8 sps:$4 sm:$0xff]   ;;  %v12658_v4 = vrot.slane %v7287_v15, 11 }
 0x7ae   :  { %8101 = vmatpush2.bf16.msra.mxu0 %v13593_v18  ;;  %v7297_v61 = vor.u32 %v7853_v63, %v7294_v1  ;;  %v7299_v25 = vrot.slane %v7294_v1, 4 }
 0x7af   :  { %8102 = vmatprep.subr.bf16.mxu0 %v13598_v20 }
 0x7b0   :  { %7574 = vmatpush2.bf16.msra.mxu1 %v13517_v38  ;;  %v7857_v38 = vrot.slane %v7856_v28, 4  ;;  %v7298_v43 = vsel %vm14612_vm9, %v12658_v4, %v7297_v61 }
 0x7b1   :  { %7766 = vmatprep.subr.bf16.mxu1 %v13523_v13  ;;  %v7867_v13 = vrot.slane %v7866_v33, 4 }
 0x7b2   :  { %8103 = vmatpush2.bf16.msra.mxu0 %v13600_v8  ;;  %v7862_v19 = vsel %vm14741_vm0, %v7857_v38, %v7861_v53  ;;  %v13601_v53 = vld [vmem:[#allocation9 + $0x90] ss:$8 sps:$4 sm:$0xff]  }
 0x7b3   :  { %7576 = vmatmul.mubr.bf16.vlgmr.msra.gmra.mxu1 %v12659_v29  ;;  %8104 = vmatprep.subr.bf16.mxu0 %v13604_v14  ;;  %v7872_v56 = vsel %vm14741_vm0, %v7867_v13, %v7871_v34 }
 0x7b4   :  { %7767 = vmatpush1.bf16.msra.mxu1 %v13521_v60  ;;  %12694 = vmatprep.mubr.msk.bf16.mxu1 %vm5908_vm11, %v12662_v57  ;;  %v13553_v60 = vld [vmem:[#allocation9 + $0x24] ss:$8 sps:$4 sm:$0xff]   ;;  %v12734_v29 = vcombine.high %v7862_v19, %v7872_v56  ;;  %v12733_v26 = vcombine.low %v7862_v19, %v7872_v56  ;;  %v13563_v57 = vld [vmem:[#allocation9] ss:$8 sps:$4 sm:$0xff]  }
 0x7b5   :  { %7768 = vmatprep.subr.bf16.mxu1 %v13529_v62  ;;  %v13559_v62 = vld [vmem:[#allocation9 + $0x14] ss:$8 sps:$4 sm:$0xff]  }
 0x7b6   :  { %8105 = vmatpush2.bf16.msra.mxu0 %v13606_v47 }
 0x7b8   :  { %7769 = vmatpush1.bf16.msra.mxu1 %v13527_v40  ;;  %v13577_v40 = vld [vmem:[#allocation9 + $0xd4] ss:$8 sps:$4 sm:$0xff]  }
 0x7b9   :  { %7770 = vmatprep.subr.bf16.mxu1 %v13535_v32  ;;  %8107 = vmatmul.mubr.bf16.vlgmr.msra.gmra.mxu0 %v12731_v42  ;;  %v13589_v32 = vld [vmem:[#allocation9 + $0xb4] ss:$8 sps:$4 sm:$0xff]  }
 0x7ba   :  { %12766 = vmatprep.mubr.msk.bf16.mxu0 %vm5908_vm11, %v12734_v29 }
 0x7bb   :  { %7586 = vmatmul.mubr.bf16.gmra.mxu1 %v12661_v7  ;;  %v7306_v7 = vor.u32 %v7859_v16, %v7303_v52 }
 0x7bc   :  { %7771 = vmatpush1.bf16.msra.mxu1 %v13533_v35  ;;  %12729 = vmatprep.mubr.msk.bf16.mxu1 %vm5908_vm11, %v12696_v17  ;;  %v12695_v35 = vcombine.low %v16572_v54, %v16568_v27  ;;  %v8135_v27 = vld [vmem:[%s17230_s9] sm:$0x3]  ;;  %s14069_s9 = smov 96  }
 0x7bd   :  { %7772 = vmatprep.subr.bf16.mxu1 %v13541_v51  ;;  %v7307_v3 = vsel %vm14612_vm9, %v7299_v25, %v7306_v7  ;;  %v8140_v14 = vrot.slane %v8135_v27, %v17536_v0  ;;  %v8144_v47 = vrot.slane %v8135_v27, %v17537_v44 }
 0x7be   :  { %v12698_v18 = vcombine.high %v7298_v43, %v7307_v3  ;;  %v12697_v6 = vcombine.low %v7298_v43, %v7307_v3 }
 0x7c0   :  { %7773 = vmatpush1.bf16.msra.mxu1 %v13539_v30 }
 0x7c1   :  { %7774 = vmatprep.subr.bf16.mxu1 %v13547_v41  ;;  %8117 = vmatmul.mubr.bf16.gmra.mxu0 %v12733_v26 }
 0x7c4   :  { %7775 = vmatpush1.bf16.msra.mxu1 %v13545_v2 }
 0x7c5   :  { %7776 = vmatprep.subr.bf16.mxu1 %v13553_v60 }
 0x7c8   :  { %7777 = vmatpush1.bf16.msra.mxu1 %v13551_v22 }
 0x7c9   :  { %7778 = vmatprep.subr.bf16.mxu1 %v13559_v62 }
 0x7cc   :  { %7779 = vmatpush1.bf16.msra.mxu1 %v13557_v48 }
 0x7cd   :  { %7780 = vmatprep.subr.bf16.mxu1 %v13565_v58 }
 0x7d0   :  { %7781 = vmatpush1.bf16.msra.mxu1 %v13563_v57 }
 0x7d1   :  { %7784 = vmatprep.subr.bf16.mxu1 %v13571_v23 }
 0x7d4   :  { %7785 = vmatpush2.bf16.msra.mxu1 %v13569_v49 }
 0x7d5   :  { %7786 = vmatprep.subr.bf16.mxu1 %v13577_v40 }
 0x7d8   :  { %7787 = vmatpush2.bf16.msra.mxu1 %v13575_v36 }
 0x7d9   :  { %7788 = vmatprep.subr.bf16.mxu1 %v13583_v45 }
 0x7dc   :  { %7789 = vmatpush2.bf16.msra.mxu1 %v13581_v31 }
 0x7dd   :  { %7790 = vmatprep.subr.bf16.mxu1 %v13589_v32 }
 0x7e0   :  { %7791 = vmatpush2.bf16.msra.mxu1 %v13587_v59 }
 0x7e1   :  { %7792 = vmatprep.subr.bf16.mxu1 %v13597_v21 }
 0x7e4   :  { %7793 = vmatpush2.bf16.msra.mxu1 %v13595_v5 }
 0x7e5   :  { %7794 = vmatprep.subr.bf16.mxu1 %v13603_v37 }
 0x7e8   :  { %7795 = vmatpush2.bf16.msra.mxu1 %v13601_v53 }
 0x7e9   :  { %7796 = vmatprep.subr.bf16.mxu1 %v13609_v12 }
 0x7ec   :  { %7797 = vmatpush2.bf16.msra.mxu1 %v13607_v10 }
 0x7ef   :  { %7799 = vmatmul.mubr.bf16.vlgmr.msra.gmra.mxu1 %v12695_v35 }
 0x7f0   :  { %12730 = vmatprep.mubr.msk.bf16.mxu1 %vm5908_vm11, %v12698_v18  ;;  %vm17588_vm11 = vcmask 1041409  }
 0x7f1   :  { %vm17589_vm4 = vmmov %vm17588_vm11 }
 0x7f7   :  { %7809 = vmatmul.mubr.bf16.gmra.mxu1 %v12697_v6 }
 0x873   :  { %v7577_v55 = vpop.f32.mrf.mxu1 }
 0x875   :  { %v7579_v63 = vpop.f32.mrf.mxu1 }
 0x877   :  { %v7581_v16 = vpop.f32.mrf.mxu1 }
 0x879   :  { %v7583_v51 = vpop.f32.mrf.mxu1  ;;  %v8108_v33 = vpop.f32.mrf.mxu0 }
 0x87b   :  { %v7587_v20 = vpop.f32.mrf.mxu1  ;;  %v8110_v17 = vpop.f32.mrf.mxu0 }
 0x87d   :  { %v7589_v28 = vpop.f32.mrf.mxu1  ;;  %v8112_v41 = vpop.f32.mrf.mxu0 }
 0x87f   :  { %v7591_v24 = vpop.f32.mrf.mxu1  ;;  %v8114_v13 = vpop.f32.mrf.mxu0 }
 0x881   :  { %v7593_v30 = vpop.f32.mrf.mxu1  ;;  %v8118_v19 = vpop.f32.mrf.mxu0 }
 0x883   :  { %v8120_v23 = vpop.f32.mrf.mxu0 }
 0x885   :  { %v8122_v39 = vpop.f32.mrf.mxu0 }
 0x887   :  { %v8124_v25 = vpop.f32.mrf.mxu0 }
 0x8af   :  { %v7800_v54 = vpop.f32.mrf.mxu1 }
 0x8b0   :  { %v7801_v8 = vadd.f32 %v7800_v54, %v7577_v55 }
 0x8b1   :  { %v7802_v38 = vpop.f32.mrf.mxu1 }
 0x8b2   :  { %v8127_v34 = vadd.f32 %v8108_v33, %v7801_v8  ;;  %v7803_v2 = vadd.f32 %v7802_v38, %v7579_v63 }
 0x8b3   :  { %v7804_v60 = vpop.f32.mrf.mxu1 }
 0x8b4   :  { %v8128_v56 = vadd.f32 %v8110_v17, %v7803_v2  ;;  %v7805_v42 = vadd.f32 %v7804_v60, %v7581_v16  ;;  %v8147_v22 = vadd.f32 %v8140_v14, %v8127_v34 }
 0x8b5   :  { %v7806_v29 = vpop.f32.mrf.mxu1 }
 0x8b6   :  { %v8129_v62 = vadd.f32 %v8112_v41, %v7805_v42  ;;  %v7807_v48 = vadd.f32 %v7806_v29, %v7583_v51  ;;  %v8155_v58 = vmax.f32 %v8147_v22, 0.0  ;;  %v8148_v26 = vadd.f32 %v8144_v47, %v8128_v56 }
 0x8b7   :  { %v7810_v57 = vpop.f32.mrf.mxu1 }
 0x8b8   :  { %v8130_v49 = vadd.f32 %v8114_v13, %v7807_v48  ;;  %v7811_v40 = vadd.f32 %v7810_v57, %v7587_v20  ;;  %8171 = vrot.lane.b32.xlu0 %v8155_v58, %s14069_s9  ;;  %v8156_v45 = vmax.f32 %v8148_v26, 0.0  ;;  %v8149_v21 = vadd.f32 %v8140_v14, %v8129_v62 }
 0x8b9   :  { %v7812_v36 = vpop.f32.mrf.mxu1 }
 0x8ba   :  { %v8131_v31 = vadd.f32 %v8118_v19, %v7811_v40  ;;  %v7813_v32 = vadd.f32 %v7812_v36, %v7589_v28  ;;  %v8150_v59 = vadd.f32 %v8144_v47, %v8130_v49  ;;  %v8157_v61 = vmax.f32 %v8149_v21, 0.0 }
 0x8bb   :  { %v7814_v5 = vpop.f32.mrf.mxu1 }
 0x8bc   :  { %v8132_v37 = vadd.f32 %v8120_v23, %v7813_v32  ;;  %v7815_v15 = vadd.f32 %v7814_v5, %v7591_v24  ;;  %8173 = vrot.lane.b32.xlu0 %v8156_v45, %s14069_s9  ;;  %v8158_v1 = vmax.f32 %v8150_v59, 0.0  ;;  %v16605_v52 = vadd.f32 %v8140_v14, %v8131_v31 }
 0x8bd   :  { %v7816_v53 = vpop.f32.mrf.mxu1 }
 0x8be   :  { %v8133_v12 = vadd.f32 %v8122_v39, %v7815_v15  ;;  %v7817_v4 = vadd.f32 %v7816_v53, %v7593_v30  ;;  %8177 = vrot.lane.b32.xlu1 %v8158_v1, %s14069_s9  ;;  %v8159_v10 = vmax.f32 %v16605_v52, 0.0  ;;  %v16612_v3 = vadd.f32 %v8144_v47, %v8132_v37 }
 0x8c0   :  { %v8134_v7 = vadd.f32 %v8124_v25, %v7817_v4  ;;  %8175 = vrot.lane.b32.xlu0 %v8157_v61, %s14069_s9  ;;  %v16610_v43 = vadd.f32 %v8140_v14, %v8133_v12  ;;  %v8160_v18 = vmax.f32 %v16612_v3, 0.0 }
 0x8c2   :  { %8179 = vrot.lane.b32.xlu1 %v8159_v10, %s14069_s9  ;;  %v8161_v35 = vmax.f32 %v16610_v43, 0.0  ;;  %v16622_v6 = vadd.f32 %v8144_v47, %v8134_v7 }
 0x8c4   :  { %8183 = vrot.lane.b32.xlu0 %v8161_v35, %s14069_s9  ;;  %v8162_v55 = vmax.f32 %v16622_v6, 0.0 }
 0x8c6   :  { %8181 = vrot.lane.b32.xlu1 %v8160_v18, %s14069_s9 }
 0x8ca   :  { %8185 = vrot.lane.b32.xlu1 %v8162_v55, %s14069_s9 }
 0x92a   :  { %v8172_v63 = vpop.permute.xlu0 %8171 }
 0x92e   :  { %v8174_v16 = vpop.permute.xlu0 %8173 }
 0x92f   :  { %v8187_v51 = vsel %vm17586_vm14, %v8172_v63, %v8174_v16  ;;  %v8200_v20 = vmax.f32 %v8156_v45, %v8174_v16  ;;  %vm17596_vm14 = vmmov %vm17595_vm6 }
 0x930   :  { %v8199_v28 = vmax.f32 %v8155_v58, %v8187_v51  ;;  %v8178_v17 = vpop.permute.xlu1 %8177 }
 0x931   :  { %v8202_v14 = vmax.f32 %v8158_v1, %v8178_v17 }
 0x932   :  { %v8215_v33 = vcombine.low %v8199_v28, %v8200_v20  ;;  %v8216_v24 = vcombine.high %v8199_v28, %v8200_v20  ;;  %v8176_v30 = vpop.permute.xlu0 %8175 }
 0x933   :  { %v8188_v41 = vsel %vm17587_vm10, %v8176_v30, %v8178_v17  ;;  %vm17597_vm10 = vmmov %vm17594_vm5 }
 0x934   :  { %v8223_v27 = vrot.slane %v8215_v33, %v15183_v11  ;;  %v8230_v54 = vrot.slane %v8216_v24, %v15183_v11  ;;  %v8201_v8 = vmax.f32 %v8157_v61, %v8188_v41 }
 0x936   :  { %v8231_v38 = vcombine.high %v8223_v27, %v8223_v27  ;;  %v8232_v13 = vcombine.high %v8230_v54, %v8230_v54  ;;  %v8293_v34 = vrot.slane %v8223_v27, %v15183_v11  ;;  %v8309_v2 = vrot.slane %v8230_v54, %v15183_v11 }
 0x937   :  { %v8233_v47 = vcombine.low %v8201_v8, %v8202_v14  ;;  %v8234_v60 = vcombine.high %v8201_v8, %v8202_v14 }
 0x938   :  { %v8294_v19 = vcombine.high %v8293_v34, %v8293_v34  ;;  %v8301_v56 = vrot.slane %v8231_v38, %v15183_v11  ;;  %v8310_v42 = vcombine.high %v8309_v2, %v8309_v2  ;;  %v8317_v22 = vrot.slane %v8232_v13, %v15183_v11 }
 0x939   :  { %v8447_v29 = vsel %vm2718_vm2, %v8293_v34, -inf  ;;  %v8476_v62 = vsel %vm2718_vm2, %v8309_v2, -inf  ;;  %v8241_v48 = vrot.slane %v8233_v47, %v15183_v11  ;;  %v16643_v58 = vrot.slane %v8234_v60, %v15183_v11 }
 0x93a   :  { %v8302_v26 = vcombine.high %v8301_v56, %v8301_v56  ;;  %v8318_v57 = vcombine.high %v8317_v22, %v8317_v22  ;;  %v8448_v23 = vrot.slane %v8447_v29, 4  ;;  %v8455_v49 = vsel %vm8454_vm13, %v8294_v19, -inf }
 0x93b   :  { %v8456_v40 = vrot.slane %v8455_v49, 4  ;;  %v8462_v36 = vsel %vm2718_vm2, %v8301_v56, -inf  ;;  %v8477_v45 = vrot.slane %v8476_v62, 4  ;;  %v8483_v31 = vsel %vm8454_vm13, %v8310_v42, -inf }
 0x93c   :  { %v8449_v32 = vmax.f32 %v8447_v29, %v8448_v23  ;;  %v8463_v59 = vrot.slane %v8462_v36, 4  ;;  %v8469_v21 = vsel %vm8454_vm13, %v8302_v26, -inf  ;;  %v8484_v39 = vrot.slane %v8483_v31, 4 }
 0x93d   :  { %v8457_v5 = vmax.f32 %v8455_v49, %v8456_v40  ;;  %v8470_v37 = vrot.slane %v8469_v21, 4  ;;  %v8478_v15 = vmax.f32 %v8476_v62, %v8477_v45  ;;  %v8490_v1 = vsel %vm2718_vm2, %v8317_v22, -inf }
 0x93e   :  { %v8450_v53 = vrot.slane %v8449_v32, 2  ;;  %v8464_v12 = vmax.f32 %v8462_v36, %v8463_v59  ;;  %v8485_v4 = vmax.f32 %v8483_v31, %v8484_v39  ;;  %v8491_v61 = vrot.slane %v8490_v1, 4 }
 0x93f   :  { %v8458_v25 = vrot.slane %v8457_v5, 2  ;;  %v8471_v7 = vmax.f32 %v8469_v21, %v8470_v37  ;;  %v8479_v63 = vrot.slane %v8478_v15, 2  ;;  %v8497_v16 = vsel %vm8454_vm13, %v8318_v57, -inf }
 0x940   :  { %v8451_v51 = vmax.f32 %v8449_v32, %v8450_v53  ;;  %v8465_v20 = vrot.slane %v8464_v12, 2  ;;  %v8486_v28 = vrot.slane %v8485_v4, 2  ;;  %v8492_v33 = vmax.f32 %v8490_v1, %v8491_v61 }
 0x941   :  { %v8459_v24 = vmax.f32 %v8457_v5, %v8458_v25  ;;  %v8472_v17 = vrot.slane %v8471_v7, 2  ;;  %v8480_v30 = vmax.f32 %v8478_v15, %v8479_v63  ;;  %v8498_v41 = vrot.slane %v8497_v16, 4 }
 0x942   :  { %v8452_v27 = vrot.slane %v8451_v51, 1  ;;  %v8466_v54 = vmax.f32 %v8464_v12, %v8465_v20  ;;  %v8487_v8 = vmax.f32 %v8485_v4, %v8486_v28  ;;  %v8493_v14 = vrot.slane %v8492_v33, 2 }
 0x943   :  { %v8460_v38 = vrot.slane %v8459_v24, 1  ;;  %v8473_v13 = vmax.f32 %v8471_v7, %v8472_v17  ;;  %v8481_v34 = vrot.slane %v8480_v30, 1  ;;  %v8499_v2 = vmax.f32 %v8497_v16, %v8498_v41 }
 0x944   :  { %v8453_v47 = vmax.f32 %v8451_v51, %v8452_v27  ;;  %v8467_v60 = vrot.slane %v8466_v54, 1  ;;  %v8488_v19 = vrot.slane %v8487_v8, 1  ;;  %v8494_v56 = vmax.f32 %v8492_v33, %v8493_v14 }
 0x945   :  { %v8461_v42 = vmax.f32 %v8459_v24, %v8460_v38  ;;  %v8474_v22 = vrot.slane %v8473_v13, 1  ;;  %v8482_v29 = vmax.f32 %v8480_v30, %v8481_v34  ;;  %v8500_v62 = vrot.slane %v8499_v2, 2 }
 0x946   :  { %v8468_v26 = vmax.f32 %v8466_v54, %v8467_v60  ;;  %v8489_v57 = vmax.f32 %v8487_v8, %v8488_v19  ;;  %v8495_v23 = vrot.slane %v8494_v56, 1  ;;  %v8249_v49 = vcombine.high %v8241_v48, %v8241_v48 }
 0x947   :  { %v8475_v40 = vmax.f32 %v8473_v13, %v8474_v22  ;;  %v8501_v36 = vmax.f32 %v8499_v2, %v8500_v62  ;;  %v13166_v45 = vpack.c.bf16 %v8461_v42, %v8453_v47  ;;  %v8250_v31 = vcombine.high %v16643_v58, %v16643_v58 }
 0x948   :  { %v8496_v32 = vmax.f32 %v8494_v56, %v8495_v23  ;;  %v13168_v59 = vpack.c.bf16 %v8489_v57, %v8482_v29  ;;  %v8325_v21 = vrot.slane %v8241_v48, %v15183_v11  ;;  %v8333_v39 = vrot.slane %v8249_v49, %v15183_v11  ;;  %v8180_v29 = vpop.permute.xlu1 %8179 }
 0x949   :  { %v8502_v5 = vrot.slane %v8501_v36, 1  ;;  %v13167_v37 = vpack.c.bf16 %v8475_v40, %v8468_v26  ;;  %v8802_v15 = vunpack.c.l.b16 %v13166_v45  ;;  %v8803_v1 = vunpack.c.h.b16 %v13166_v45 }
 0x94a   :  { %v8806_v53 = vunpack.c.l.b16 %v13168_v59  ;;  %v8807_v12 = vunpack.c.h.b16 %v13168_v59  ;;  %v8326_v4 = vcombine.high %v8325_v21, %v8325_v21  ;;  %v8334_v61 = vcombine.high %v8333_v39, %v8333_v39 }
 0x94b   :  { %v8503_v25 = vmax.f32 %v8501_v36, %v8502_v5  ;;  %v8804_v7 = vunpack.c.l.b16 %v13167_v37  ;;  %v8805_v63 = vunpack.c.h.b16 %v13167_v37  ;;  %v8341_v16 = vrot.slane %v16643_v58, %v15183_v11 }
 0x94c   :  { %v8349_v51 = vrot.slane %v8250_v31, %v15183_v11  ;;  %v8504_v48 = vsel %vm2718_vm2, %v8325_v21, -inf  ;;  %v8511_v20 = vsel %vm8454_vm13, %v8326_v4, -inf  ;;  %v8518_v28 = vsel %vm2718_vm2, %v8333_v39, -inf }
 0x94d   :  { %v13169_v33 = vpack.c.bf16 %v8503_v25, %v8496_v32  ;;  %v8834_v24 = vsel %vm17588_vm11, %v8804_v7, %v8802_v15  ;;  %v8841_v17 = vsel %vm17589_vm4, %v8805_v63, %v8803_v1  ;;  %v8342_v30 = vcombine.high %v8341_v16, %v8341_v16 }
 0x94e   :  { %v8835_v41 = vsel %vm17590_vm15, %v8806_v53, %v8834_v24  ;;  %v8842_v27 = vsel %vm17591_vm3, %v8807_v12, %v8841_v17  ;;  %v8350_v54 = vcombine.high %v8349_v51, %v8349_v51  ;;  %v8505_v58 = vrot.slane %v8504_v48, 4 }
 0x94f   :  { %v8808_v8 = vunpack.c.l.b16 %v13169_v33  ;;  %v8809_v14 = vunpack.c.h.b16 %v13169_v33  ;;  %v8512_v38 = vrot.slane %v8511_v20, 4  ;;  %v8519_v13 = vrot.slane %v8518_v28, 4 }
 0x950   :  { %v8506_v34 = vmax.f32 %v8504_v48, %v8505_v58  ;;  %v8525_v2 = vsel %vm8454_vm13, %v8334_v61, -inf  ;;  %v8532_v47 = vsel %vm2718_vm2, %v8341_v16, -inf  ;;  %v8539_v60 = vsel %vm8454_vm13, %v8342_v30, -inf  ;;  %v8182_v16 = vpop.permute.xlu1 %8181 }
 0x951   :  { %v16669_v19 = vsel %vm17592_vm12, %v8808_v8, %v8835_v41  ;;  %v16672_v56 = vsel %vm17593_vm8, %v8809_v14, %v8842_v27  ;;  %v8513_v42 = vmax.f32 %v8511_v20, %v8512_v38  ;;  %v8520_v22 = vmax.f32 %v8518_v28, %v8519_v13 }
 0x952   :  { %v8507_v62 = vrot.slane %v8506_v34, 2  ;;  %v8526_v26 = vrot.slane %v8525_v2, 4  ;;  %v8533_v57 = vrot.slane %v8532_v47, 4  ;;  %v8540_v23 = vrot.slane %v8539_v60, 4 }
 0x953   :  { %v8514_v49 = vrot.slane %v8513_v42, 2  ;;  %v8521_v40 = vrot.slane %v8520_v22, 2  ;;  %v8546_v36 = vsel %vm2718_vm2, %v8349_v51, -inf  ;;  %v8553_v45 = vsel %vm8454_vm13, %v8350_v54, -inf }
 0x954   :  { %v8508_v31 = vmax.f32 %v8506_v34, %v8507_v62  ;;  %v8527_v32 = vmax.f32 %v8525_v2, %v8526_v26  ;;  %v8534_v59 = vmax.f32 %v8532_v47, %v8533_v57  ;;  %v8541_v21 = vmax.f32 %v8539_v60, %v8540_v23 }
 0x955   :  { %v8515_v39 = vmax.f32 %v8513_v42, %v8514_v49  ;;  %v8522_v5 = vmax.f32 %v8520_v22, %v8521_v40  ;;  %v8547_v37 = vrot.slane %v8546_v36, 4  ;;  %v8554_v15 = vrot.slane %v8553_v45, 4  ;;  %v8186_v40 = vpop.permute.xlu1 %8185 }
 0x956   :  { %v8509_v1 = vrot.slane %v8508_v31, 1  ;;  %v8528_v53 = vrot.slane %v8527_v32, 2  ;;  %v8535_v12 = vrot.slane %v8534_v59, 2  ;;  %v8542_v4 = vrot.slane %v8541_v21, 2 }
 0x957   :  { %v8516_v61 = vrot.slane %v8515_v39, 1  ;;  %v8523_v25 = vrot.slane %v8522_v5, 1  ;;  %v8548_v7 = vmax.f32 %v8546_v36, %v8547_v37  ;;  %v8555_v63 = vmax.f32 %v8553_v45, %v8554_v15 }
 0x958   :  { %v8510_v51 = vmax.f32 %v8508_v31, %v8509_v1  ;;  %v8529_v48 = vmax.f32 %v8527_v32, %v8528_v53  ;;  %v8536_v20 = vmax.f32 %v8534_v59, %v8535_v12  ;;  %v8543_v28 = vmax.f32 %v8541_v21, %v8542_v4  ;;  %v8184_v59 = vpop.permute.xlu0 %8183 }
 0x959   :  { %v8517_v33 = vmax.f32 %v8515_v39, %v8516_v61  ;;  %v8524_v24 = vmax.f32 %v8522_v5, %v8523_v25  ;;  %v8549_v17 = vrot.slane %v8548_v7, 2  ;;  %v8556_v30 = vrot.slane %v8555_v63, 2 }
 0x95a   :  { %v8530_v41 = vrot.slane %v8529_v48, 1  ;;  %v8537_v27 = vrot.slane %v8536_v20, 1  ;;  %v8544_v54 = vrot.slane %v8543_v28, 1  ;;  %v8189_v58 = vsel %vm17594_vm5, %v8180_v29, %v8182_v16 }
 0x95b   :  { %v8550_v8 = vmax.f32 %v8548_v7, %v8549_v17  ;;  %v8557_v14 = vmax.f32 %v8555_v63, %v8556_v30  ;;  %v13170_v38 = vpack.c.bf16 %v8517_v33, %v8510_v51  ;;  %v8203_v13 = vmax.f32 %v8159_v10, %v8189_v58 }
 0x95c   :  { %v8531_v34 = vmax.f32 %v8529_v48, %v8530_v41  ;;  %v8538_v2 = vmax.f32 %v8536_v20, %v8537_v27  ;;  %v8545_v47 = vmax.f32 %v8543_v28, %v8544_v54  ;;  %v8204_v60 = vmax.f32 %v8160_v18, %v8182_v16 }
 0x95d   :  { %v8551_v42 = vrot.slane %v8550_v8, 1  ;;  %v8558_v22 = vrot.slane %v8557_v14, 1  ;;  %v8810_v62 = vunpack.c.l.b16 %v13170_v38  ;;  %v8811_v26 = vunpack.c.h.b16 %v13170_v38 }
 0x95e   :  { %v13171_v57 = vpack.c.bf16 %v8531_v34, %v8524_v24  ;;  %v13172_v23 = vpack.c.bf16 %v8545_v47, %v8538_v2  ;;  %v8251_v49 = vcombine.low %v8203_v13, %v8204_v60  ;;  %v8252_v29 = vcombine.high %v8203_v13, %v8204_v60 }
 0x95f   :  { %v8552_v36 = vmax.f32 %v8550_v8, %v8551_v42  ;;  %v8559_v45 = vmax.f32 %v8557_v14, %v8558_v22  ;;  %v8837_v52 = vsel %vm17595_vm6, %v8810_v62, %v16669_v19  ;;  %v8844_v10 = vsel %vm17596_vm14, %v8811_v26, %v16672_v56 }
 0x960   :  { %v8812_v31 = vunpack.c.l.b16 %v13171_v57  ;;  %v8813_v3 = vunpack.c.h.b16 %v13171_v57  ;;  %v8814_v18 = vunpack.c.l.b16 %v13172_v23  ;;  %v8815_v32 = vunpack.c.h.b16 %v13172_v23 }
 0x961   :  { %v13173_v21 = vpack.c.bf16 %v8559_v45, %v8552_v36  ;;  %v8259_v39 = vrot.slane %v8251_v49, %v15183_v11  ;;  %v8266_v5 = vrot.slane %v8252_v29, %v15183_v11  ;;  %v8190_v37 = vsel %vm17597_vm10, %v8184_v59, %v8186_v40 }
 0x962   :  { %vm17598_vm11 = vcmask 1045509   ;;  %v16692_v19 = vmax.f32 %v8161_v35, %v8190_v37  ;;  %v16696_v56 = vmax.f32 %v8162_v55, %v8186_v40  ;;  %vm17600_vm15 = vcmask 1046534  }
 0x963   :  { %v8838_v15 = vsel %vm17598_vm11, %v8812_v31, %v8837_v52  ;;  %vm17599_vm4 = vmmov %vm17598_vm11  ;;  %v8816_v53 = vunpack.c.l.b16 %v13173_v21  ;;  %v8817_v12 = vunpack.c.h.b16 %v13173_v21  ;;  %v8267_v25 = vcombine.high %v8259_v39, %v8259_v39 }
 0x964   :  { %v8845_v1 = vsel %vm17599_vm4, %v8813_v3, %v8844_v10  ;;  %v8839_v4 = vsel %vm17600_vm15, %v8814_v18, %v8838_v15  ;;  %vm17601_vm3 = vmmov %vm17600_vm15  ;;  %v8268_v7 = vcombine.high %v8266_v5, %v8266_v5  ;;  %v8357_v63 = vrot.slane %v8259_v39, %v15183_v11 }
 0x965   :  { %v8846_v61 = vsel %vm17601_vm3, %v8815_v32, %v8845_v1  ;;  %v8373_v16 = vrot.slane %v8266_v5, %v15183_v11  ;;  %vm17602_vm12 = vcmask 1043456   ;;  %vm17605_vm5 = vcmask 1047559  }
 0x966   :  { %vm16704_vm8 = vmor %vm8866_vm1, %vm17602_vm12  ;;  %v8840_v35 = vsel %vm17605_vm5, %v8816_v53, %v8839_v4  ;;  %v8269_v55 = vcombine.low %v16692_v19, %v16696_v56  ;;  %v8358_v48 = vcombine.high %v8357_v63, %v8357_v63  ;;  %v8365_v20 = vrot.slane %v8267_v25, %v15183_v11 }
 0x967   :  { %vm17606_vm6 = vmmov %vm17605_vm5  ;;  %v8374_v28 = vcombine.high %v8373_v16, %v8373_v16  ;;  %v8381_v33 = vrot.slane %v8268_v7, %v15183_v11  ;;  %v8560_v24 = vsel %vm2718_vm2, %v8357_v63, -inf  ;;  %v8588_v17 = vsel %vm2718_vm2, %v8373_v16, -inf }
 0x968   :  { %v8847_v6 = vsel %vm17606_vm6, %v8817_v12, %v8846_v61  ;;  %v8270_v30 = vcombine.high %v16692_v19, %v16696_v56  ;;  %v8366_v41 = vcombine.high %v8365_v20, %v8365_v20  ;;  %v8561_v27 = vrot.slane %v8560_v24, 4 }
 0x969   :  { %v8862_v51 = vpack.c.b16 %v8847_v6, %v8840_v35  ;;  %v8567_v54 = vsel %vm8454_vm13, %v8358_v48, -inf  ;;  %v8574_v58 = vsel %vm2718_vm2, %v8365_v20, -inf  ;;  %v8382_v8 = vcombine.high %v8381_v33, %v8381_v33 }
 0x96a   :  { %v8568_v14 = vrot.slane %v8567_v54, 4  ;;  %v8575_v38 = vrot.slane %v8574_v58, 4  ;;  %v8589_v13 = vrot.slane %v8588_v17, 4  ;;  %v8562_v34 = vmax.f32 %v8560_v24, %v8561_v27 }
 0x96b   :  { %8868 = vst.msk [vmem:[#allocation5 + $0x8] sm:$0xff] %vm16704_vm8, %v8862_v51  ;;  %v8581_v2 = vsel %vm8454_vm13, %v8366_v41, -inf  ;;  %v8595_v47 = vsel %vm8454_vm13, %v8374_v28, -inf  ;;  %v8602_v60 = vsel %vm2718_vm2, %v8381_v33, -inf  ;;  %v8609_v29 = vsel %vm8454_vm13, %v8382_v8, -inf }
 0x96c   :  { %v8569_v42 = vmax.f32 %v8567_v54, %v8568_v14  ;;  %v8576_v22 = vmax.f32 %v8574_v58, %v8575_v38  ;;  %v8582_v62 = vrot.slane %v8581_v2, 4  ;;  %v8590_v26 = vmax.f32 %v8588_v17, %v8589_v13 }
 0x96d   :  { %v8563_v57 = vrot.slane %v8562_v34, 2  ;;  %v8596_v23 = vrot.slane %v8595_v47, 4  ;;  %v8603_v49 = vrot.slane %v8602_v60, 4  ;;  %v8610_v18 = vrot.slane %v8609_v29, 4 }
 0x96e   :  { %v8570_v40 = vrot.slane %v8569_v42, 2  ;;  %v8577_v36 = vrot.slane %v8576_v22, 2  ;;  %v8583_v45 = vmax.f32 %v8581_v2, %v8582_v62  ;;  %v8591_v52 = vrot.slane %v8590_v26, 2 }
 0x96f   :  { %v8564_v10 = vmax.f32 %v8562_v34, %v8563_v57  ;;  %v8597_v31 = vmax.f32 %v8595_v47, %v8596_v23  ;;  %v8604_v3 = vmax.f32 %v8602_v60, %v8603_v49  ;;  %v8611_v1 = vmax.f32 %v8609_v29, %v8610_v18 }
 0x970   :  { %v8571_v32 = vmax.f32 %v8569_v42, %v8570_v40  ;;  %v8578_v59 = vmax.f32 %v8576_v22, %v8577_v36  ;;  %v8584_v21 = vrot.slane %v8583_v45, 2  ;;  %v8592_v39 = vmax.f32 %v8590_v26, %v8591_v52 }
 0x971   :  { %v8565_v5 = vrot.slane %v8564_v10, 1  ;;  %v8598_v37 = vrot.slane %v8597_v31, 2  ;;  %v8605_v15 = vrot.slane %v8604_v3, 2  ;;  %v8277_v12 = vrot.slane %v8269_v55, %v15183_v11 }
 0x972   :  { %v8572_v19 = vrot.slane %v8571_v32, 1  ;;  %v8579_v56 = vrot.slane %v8578_v59, 1  ;;  %v8585_v53 = vmax.f32 %v8583_v45, %v8584_v21  ;;  %v8593_v4 = vrot.slane %v8592_v39, 1 }
 0x973   :  { %v8599_v61 = vmax.f32 %v8597_v31, %v8598_v37  ;;  %v8606_v25 = vmax.f32 %v8604_v3, %v8605_v15  ;;  %v8612_v7 = vrot.slane %v8611_v1, 2  ;;  %v8566_v63 = vmax.f32 %v8564_v10, %v8565_v5 }
 0x974   :  { %v8573_v16 = vmax.f32 %v8571_v32, %v8572_v19  ;;  %v8580_v35 = vmax.f32 %v8578_v59, %v8579_v56  ;;  %v8586_v6 = vrot.slane %v8585_v53, 1  ;;  %v8284_v28 = vrot.slane %v8270_v30, %v15183_v11 }
 0x975   :  { %v8600_v51 = vrot.slane %v8599_v61, 1  ;;  %v8607_v48 = vrot.slane %v8606_v25, 1  ;;  %v8613_v20 = vmax.f32 %v8611_v1, %v8612_v7  ;;  %v8285_v17 = vcombine.high %v8277_v12, %v8277_v12 }
 0x976   :  { %v8587_v33 = vmax.f32 %v8585_v53, %v8586_v6  ;;  %v13174_v24 = vpack.c.bf16 %v8573_v16, %v8566_v63  ;;  %v8389_v41 = vrot.slane %v8277_v12, %v15183_v11  ;;  %v8594_v27 = vmax.f32 %v8592_v39, %v8593_v4 }
 0x977   :  { %v8601_v55 = vmax.f32 %v8599_v61, %v8600_v51  ;;  %v8614_v54 = vrot.slane %v8613_v20, 1  ;;  %v8286_v58 = vcombine.high %v8284_v28, %v8284_v28  ;;  %v8608_v8 = vmax.f32 %v8606_v25, %v8607_v48 }
 0x978   :  { %v13175_v14 = vpack.c.bf16 %v8587_v33, %v8580_v35  ;;  %v8818_v38 = vunpack.c.l.b16 %v13174_v24  ;;  %v8397_v2 = vrot.slane %v8285_v17, %v15183_v11  ;;  %v8405_v47 = vrot.slane %v8284_v28, %v15183_v11 }
 0x979   :  { %v8615_v13 = vmax.f32 %v8613_v20, %v8614_v54  ;;  %v13176_v34 = vpack.c.bf16 %v8601_v55, %v8594_v27  ;;  %v8390_v42 = vcombine.high %v8389_v41, %v8389_v41  ;;  %v8413_v22 = vrot.slane %v8286_v58, %v15183_v11 }
 0x97a   :  { %v8820_v60 = vunpack.c.l.b16 %v13175_v14  ;;  %v8821_v30 = vunpack.c.h.b16 %v13175_v14  ;;  %v8819_v26 = vunpack.c.h.b16 %v13174_v24  ;;  %v8398_v57 = vcombine.high %v8397_v2, %v8397_v2 }
 0x97b   :  { %v16732_v62 = vpack.c.bf16 %v8615_v13, %v8608_v8  ;;  %v8616_v23 = vsel %vm2718_vm2, %v8389_v41, -inf  ;;  %v8822_v49 = vunpack.c.l.b16 %v13176_v34  ;;  %vm17607_vm1 = vcmask 1041409  }
 0x97c   :  { %v8848_v29 = vsel %vm17607_vm1, %v8820_v60, %v8818_v38  ;;  %v8406_v40 = vcombine.high %v8405_v47, %v8405_v47  ;;  %v8823_v36 = vunpack.c.h.b16 %v13176_v34  ;;  %vm17608_vm14 = vmmov %vm17607_vm1  ;;  %v8414_v10 = vcombine.high %v8413_v22, %v8413_v22 }
 0x97d   :  { %v8824_v45 = vunpack.c.l.b16 %v16732_v62  ;;  %v8855_v52 = vsel %vm17608_vm14, %v8821_v30, %v8819_v26  ;;  %v8617_v31 = vrot.slane %v8616_v23, 4  ;;  %v8623_v3 = vsel %vm8454_vm13, %v8390_v42, -inf }
 0x97e   :  { %v8630_v18 = vsel %vm2718_vm2, %v8397_v2, -inf  ;;  %v8637_v32 = vsel %vm8454_vm13, %v8398_v57, -inf  ;;  %v8825_v59 = vunpack.c.h.b16 %v16732_v62  ;;  %vm17609_vm10 = vcmask 1042434  }
 0x97f   :  { %v8849_v21 = vsel %vm17609_vm10, %v8822_v49, %v8848_v29  ;;  %v8624_v39 = vrot.slane %v8623_v3, 4  ;;  %v8631_v5 = vrot.slane %v8630_v18, 4  ;;  %v8618_v37 = vmax.f32 %v8616_v23, %v8617_v31 }
 0x980   :  { %v8638_v15 = vrot.slane %v8637_v32, 4  ;;  %v8644_v1 = vsel %vm2718_vm2, %v8405_v47, -inf  ;;  %v8651_v19 = vsel %vm8454_vm13, %v8406_v40, -inf  ;;  %v8658_v7 = vsel %vm2718_vm2, %v8413_v22, -inf }
 0x981   :  { %v8625_v56 = vmax.f32 %v8623_v3, %v8624_v39  ;;  %v8632_v53 = vmax.f32 %v8630_v18, %v8631_v5  ;;  %v8645_v12 = vrot.slane %v8644_v1, 4  ;;  %v8652_v4 = vrot.slane %v8651_v19, 4 }
 0x982   :  { %v8619_v61 = vrot.slane %v8618_v37, 2  ;;  %v8639_v25 = vmax.f32 %v8637_v32, %v8638_v15  ;;  %v8665_v63 = vsel %vm8454_vm13, %v8414_v10, -inf  ;;  %v8659_v28 = vrot.slane %v8658_v7, 4  ;;  %vm17610_vm13 = vmmov %vm17609_vm10 }
 0x983   :  { %v8626_v16 = vrot.slane %v8625_v56, 2  ;;  %v8633_v35 = vrot.slane %v8632_v53, 2  ;;  %v8646_v6 = vmax.f32 %v8644_v1, %v8645_v12  ;;  %v8653_v51 = vmax.f32 %v8651_v19, %v8652_v4 }
 0x984   :  { %v8620_v48 = vmax.f32 %v8618_v37, %v8619_v61  ;;  %v8640_v20 = vrot.slane %v8639_v25, 2  ;;  %v8666_v33 = vrot.slane %v8665_v63, 4  ;;  %v8660_v58 = vmax.f32 %v8658_v7, %v8659_v28 }
 0x985   :  { %v8627_v24 = vmax.f32 %v8625_v56, %v8626_v16  ;;  %v8634_v17 = vmax.f32 %v8632_v53, %v8633_v35  ;;  %v8647_v41 = vrot.slane %v8646_v6, 2  ;;  %v8654_v27 = vrot.slane %v8653_v51, 2 }
 0x986   :  { %v8621_v55 = vrot.slane %v8620_v48, 1  ;;  %v8641_v54 = vmax.f32 %v8639_v25, %v8640_v20  ;;  %v8667_v8 = vmax.f32 %v8665_v63, %v8666_v33  ;;  %v8856_v2 = vsel %vm17610_vm13, %v8823_v36, %v8855_v52 }
 0x987   :  { %v8628_v14 = vrot.slane %v8627_v24, 1  ;;  %v8635_v38 = vrot.slane %v8634_v17, 1  ;;  %v8648_v13 = vmax.f32 %v8646_v6, %v8647_v41  ;;  %v8655_v34 = vmax.f32 %v8653_v51, %v8654_v27 }
 0x988   :  { %v8642_v47 = vrot.slane %v8641_v54, 1  ;;  %v8661_v60 = vrot.slane %v8660_v58, 2  ;;  %v8668_v30 = vrot.slane %v8667_v8, 2  ;;  %v8622_v42 = vmax.f32 %v8620_v48, %v8621_v55 }
 0x989   :  { %v8629_v22 = vmax.f32 %v8627_v24, %v8628_v14  ;;  %v8649_v62 = vrot.slane %v8648_v13, 1  ;;  %v8656_v26 = vrot.slane %v8655_v34, 1  ;;  %v8636_v57 = vmax.f32 %v8634_v17, %v8635_v38 }
 0x98a   :  { %v8643_v23 = vmax.f32 %v8641_v54, %v8642_v47  ;;  %v8662_v49 = vmax.f32 %v8660_v58, %v8661_v60  ;;  %v8669_v29 = vmax.f32 %v8667_v8, %v8668_v30  ;;  %vm17611_vm11 = vcmask 1043459  }
 0x98b   :  { %v8850_v40 = vsel %vm17611_vm11, %v8824_v45, %v8849_v21  ;;  %v8650_v10 = vmax.f32 %v8648_v13, %v8649_v62  ;;  %v8657_v31 = vmax.f32 %v8655_v34, %v8656_v26  ;;  %v13178_v3 = vpack.c.bf16 %v8629_v22, %v8622_v42  ;;  %vm17612_vm4 = vmmov %vm17611_vm11 }
 0x98c   :  { %v8857_v18 = vsel %vm17612_vm4, %v8825_v59, %v8856_v2  ;;  %v8663_v32 = vrot.slane %v8662_v49, 1  ;;  %v8670_v36 = vrot.slane %v8669_v29, 1  ;;  %v13179_v52 = vpack.c.bf16 %v8643_v23, %v8636_v57 }
 0x98d   :  { %v13180_v39 = vpack.c.bf16 %v8657_v31, %v8650_v10  ;;  %v8826_v5 = vunpack.c.l.b16 %v13178_v3  ;;  %v8827_v37 = vunpack.c.h.b16 %v13178_v3  ;;  %vm17613_vm15 = vcmask 1044484  }
 0x98e   :  { %v8664_v15 = vmax.f32 %v8662_v49, %v8663_v32  ;;  %v8671_v1 = vmax.f32 %v8669_v29, %v8670_v36  ;;  %v8828_v19 = vunpack.c.l.b16 %v13179_v52  ;;  %v8829_v56 = vunpack.c.h.b16 %v13179_v52  ;;  %vm17614_vm3 = vmmov %vm17613_vm15 }
 0x98f   :  { %v8830_v53 = vunpack.c.l.b16 %v13180_v39  ;;  %v8831_v12 = vunpack.c.h.b16 %v13180_v39  ;;  %v8851_v4 = vsel %vm17613_vm15, %v8826_v5, %v8850_v40  ;;  %v8858_v45 = vsel %vm17614_vm3, %v8827_v37, %v8857_v18 }
 0x990   :  { %v13181_v21 = vpack.c.bf16 %v8671_v1, %v8664_v15  ;;  %vm17615_vm12 = vcmask 1045509   ;;  %vm17617_vm6 = vcmask 1046534   ;;  %vm17619_vm14 = vcmask 1047559  }
 0x991   :  { %v8852_v61 = vsel %vm17615_vm12, %v8828_v19, %v8851_v4  ;;  %vm17616_vm5 = vmmov %vm17615_vm12 }
 0x992   :  { %v8859_v59 = vsel %vm17616_vm5, %v8829_v56, %v8858_v45  ;;  %v8853_v25 = vsel %vm17617_vm6, %v8830_v53, %v8852_v61  ;;  %vm17618_vm1 = vmmov %vm17617_vm6  ;;  %v8832_v63 = vunpack.c.l.b16 %v13181_v21  ;;  %v8833_v16 = vunpack.c.h.b16 %v13181_v21 }
 0x993   :  { %v8860_v7 = vsel %vm17618_vm1, %v8831_v12, %v8859_v59  ;;  %vm17620_vm10 = vmmov %vm17619_vm14 }
 0x994   :  { %v8854_v35 = vsel %vm17619_vm14, %v8832_v63, %v8853_v25  ;;  %v8861_v6 = vsel %vm17620_vm10, %v8833_v16, %v8860_v7 }
 0x995   :  { %v8863_v51 = vpack.c.b16 %v8861_v6, %v8854_v35 }
 0x997   :  { %8869 = vst.msk [vmem:[#allocation5 + $0x20] sm:$0xff] %vm16704_vm8, %v8863_v51 }
 0x998   :  { %14043 = dma.done.wait [#allocation16 + $0x2], 10752 }
 0x999   :  { %14044 = vsyncadd [#allocation16 + $0x2], 4294956544  ;;  %v13610_v48 = vld [vmem:[#allocation10 + $0x154] ss:$8 sps:$4 sm:$0xff]   ;;  %v13614_v28 = vld [vmem:[#allocation10 + $0x150] ss:$8 sps:$4 sm:$0xff]  }
 0x99a   :  { %v13612_v20 = vld [vmem:[#allocation10 + $0x74] ss:$8 sps:$4 sm:$0xff]   ;;  %9113 = vmatprep.subr.bf16.mxu1 %v13610_v48  ;;  %v13615_v33 = vld [vmem:[#allocation10 + $0x70] ss:$8 sps:$4 sm:$0xff]   ;;  %v13616_v24 = vld [vmem:[#allocation10 + $0x144] ss:$8 sps:$4 sm:$0xff]  }
 0x99b   :  { %9306 = vmatprep.subr.bf16.mxu0 %v13612_v20  ;;  %9114 = vmatpush1.bf16.msra.mxu1 %v13614_v28  ;;  %v13618_v17 = vld [vmem:[#allocation10 + $0x64] ss:$8 sps:$4 sm:$0xff]   ;;  %v13620_v41 = vld [vmem:[#allocation10 + $0x140] ss:$8 sps:$4 sm:$0xff]   ;;  %v13622_v55 = vld [vmem:[#allocation10 + $0x134] ss:$8 sps:$4 sm:$0xff]  }
 0x99c   :  { %9307 = vmatpush1.bf16.msra.mxu0 %v13615_v33  ;;  %9115 = vmatprep.subr.bf16.mxu1 %v13616_v24  ;;  %v13621_v27 = vld [vmem:[#allocation10 + $0x60] ss:$8 sps:$4 sm:$0xff]   ;;  %v13624_v54 = vld [vmem:[#allocation10 + $0x54] ss:$8 sps:$4 sm:$0xff]   ;;  %v13626_v43 = vld [vmem:[#allocation10 + $0x130] ss:$8 sps:$4 sm:$0xff]  }
 0x99d   :  { %9308 = vmatprep.subr.bf16.mxu0 %v13618_v17  ;;  %v13627_v58 = vld [vmem:[#allocation10 + $0x50] ss:$8 sps:$4 sm:$0xff]   ;;  %v13628_v8 = vld [vmem:[#allocation10 + $0x124] ss:$8 sps:$4 sm:$0xff]   ;;  %v13632_v38 = vld [vmem:[#allocation10 + $0x120] ss:$8 sps:$4 sm:$0xff]  }
 0x99e   :  { %v13630_v14 = vld [vmem:[#allocation10 + $0x44] ss:$8 sps:$4 sm:$0xff]   ;;  %v13633_v13 = vld [vmem:[#allocation10 + $0x40] ss:$8 sps:$4 sm:$0xff]   ;;  %v13634_v34 = vld [vmem:[#allocation10 + $0x114] ss:$8 sps:$4 sm:$0xff]  }
 0x99f   :  { %9116 = vmatpush1.bf16.msra.mxu1 %v13620_v41  ;;  %v13636_v2 = vld [vmem:[#allocation10 + $0x34] ss:$8 sps:$4 sm:$0xff]   ;;  %v13638_v47 = vld [vmem:[#allocation10 + $0x110] ss:$8 sps:$4 sm:$0xff]   ;;  %v13640_v30 = vld [vmem:[#allocation10 + $0x104] ss:$8 sps:$4 sm:$0xff]  }
 0x9a0   :  { %9309 = vmatpush1.bf16.msra.mxu0 %v13621_v27  ;;  %9117 = vmatprep.subr.bf16.mxu1 %v13622_v55  ;;  %v13639_v60 = vld [vmem:[#allocation10 + $0x30] ss:$8 sps:$4 sm:$0xff]   ;;  %v13642_v42 = vld [vmem:[#allocation10 + $0x24] ss:$8 sps:$4 sm:$0xff]   ;;  %v13644_v22 = vld [vmem:[#allocation10 + $0x100] ss:$8 sps:$4 sm:$0xff]  }
 0x9a1   :  { %9310 = vmatprep.subr.bf16.mxu0 %v13624_v54  ;;  %v13645_v62 = vld [vmem:[#allocation10 + $0x20] ss:$8 sps:$4 sm:$0xff]   ;;  %v13646_v26 = vld [vmem:[#allocation10 + $0xf4] ss:$8 sps:$4 sm:$0xff]   ;;  %v13650_v23 = vld [vmem:[#allocation10 + $0xf0] ss:$8 sps:$4 sm:$0xff]  }
 0x9a2   :  { %v13648_v57 = vld [vmem:[#allocation10 + $0x14] ss:$8 sps:$4 sm:$0xff]   ;;  %v13651_v49 = vld [vmem:[#allocation10 + $0x10] ss:$8 sps:$4 sm:$0xff]   ;;  %v13652_v29 = vld [vmem:[#allocation10 + $0xe4] ss:$8 sps:$4 sm:$0xff]  }
 0x9a3   :  { %9118 = vmatpush1.bf16.msra.mxu1 %v13626_v43  ;;  %v13654_v40 = vld [vmem:[#allocation10 + $0x4] ss:$8 sps:$4 sm:$0xff]   ;;  %v13656_v10 = vld [vmem:[#allocation10 + $0xe0] ss:$8 sps:$4 sm:$0xff]   ;;  %v13658_v3 = vld [vmem:[#allocation10 + $0x1b4] ss:$8 sps:$4 sm:$0xff]  }
 0x9a4   :  { %9311 = vmatpush1.bf16.msra.mxu0 %v13627_v58  ;;  %9119 = vmatprep.subr.bf16.mxu1 %v13628_v8  ;;  %v13657_v31 = vld [vmem:[#allocation10] ss:$8 sps:$4 sm:$0xff]   ;;  %v13660_v18 = vld [vmem:[#allocation10 + $0xd4] ss:$8 sps:$4 sm:$0xff]   ;;  %v13662_v32 = vld [vmem:[#allocation10 + $0x1b0] ss:$8 sps:$4 sm:$0xff]  }
 0x9a5   :  { %9312 = vmatprep.subr.bf16.mxu0 %v13630_v14  ;;  %v13663_v36 = vld [vmem:[#allocation10 + $0xd0] ss:$8 sps:$4 sm:$0xff]   ;;  %v13664_v52 = vld [vmem:[#allocation10 + $0x1a4] ss:$8 sps:$4 sm:$0xff]   ;;  %v13668_v5 = vld [vmem:[#allocation10 + $0x1a0] ss:$8 sps:$4 sm:$0xff]  }
 0x9a6   :  { %v13666_v39 = vld [vmem:[#allocation10 + $0xc4] ss:$8 sps:$4 sm:$0xff]   ;;  %v13669_v37 = vld [vmem:[#allocation10 + $0xc0] ss:$8 sps:$4 sm:$0xff]   ;;  %v13670_v15 = vld [vmem:[#allocation10 + $0x194] ss:$8 sps:$4 sm:$0xff]  }
 0x9a7   :  { %9120 = vmatpush1.bf16.msra.mxu1 %v13632_v38  ;;  %v13672_v1 = vld [vmem:[#allocation10 + $0xb4] ss:$8 sps:$4 sm:$0xff]   ;;  %v13674_v53 = vld [vmem:[#allocation10 + $0x190] ss:$8 sps:$4 sm:$0xff]   ;;  %v8876_v45 = vld [vmem:[#allocation5 + $0x18] sm:$0x88] }
 0x9a8   :  { %9313 = vmatpush1.bf16.msra.mxu0 %v13633_v13  ;;  %9121 = vmatprep.subr.bf16.mxu1 %v13634_v34  ;;  %v16760_v19 = vld [vmem:[#allocation5 + $0x8] sm:$0xff]  ;;  %v16762_v56 = vld [vmem:[#allocation5 + $0x20] sm:$0xff]  ;;  %v8892_v25 = vshrl.u32 %v8876_v45, 16  ;;  %v13676_v35 = vld [vmem:[#allocation10 + $0x184] ss:$8 sps:$4 sm:$0xff]   ;;  %vm17621_vm8 = vcmask 785408  }
 0x9a9   :  { %9314 = vmatprep.subr.bf16.mxu0 %v13636_v2  ;;  %v12786_v12 = vcombine.high %v16760_v19, %v16762_v56  ;;  %v8874_v4 = vld [vmem:[#allocation5] sm:$0x88]  ;;  %v8884_v21 = vshrl.u32 %v16760_v19, 16  ;;  %v8887_v61 = vshll.u32 %v16760_v19, 16  ;;  %v8897_v7 = vshrl.u32 %v16762_v56, 16  ;;  %vm17622_vm13 = vmmov %vm17621_vm8 }
 0x9aa   :  { %v8879_v59 = vshrl.u32 %v8874_v4, 16  ;;  %v8900_v63 = vshll.u32 %v16762_v56, 16  ;;  %v13675_v16 = vld [vmem:[#allocation10 + $0xb0] ss:$8 sps:$4 sm:$0xff]   ;;  %v13678_v51 = vld [vmem:[#allocation10 + $0xa4] ss:$8 sps:$4 sm:$0xff]  }
 0x9ab   :  { %9122 = vmatpush1.bf16.msra.mxu1 %v13638_v47  ;;  %v8886_v6 = vrot.slane %v8884_v21, 7  ;;  %v12784_v20 = vrot.slane %v8892_v25, 11  ;;  %v8899_v28 = vrot.slane %v8897_v7, 7  ;;  %12815 = vmatprep.mubr.msk.bf16.mxu1 %vm17621_vm8, %v12786_v12  ;;  %v13680_v24 = vld [vmem:[#allocation10 + $0x180] ss:$8 sps:$4 sm:$0xff]   ;;  %v9356_v34 = vrot.slane %v8884_v21, 4 }
 0x9ac   :  { %9315 = vmatpush1.bf16.msra.mxu0 %v13639_v60  ;;  %9123 = vmatprep.subr.bf16.mxu1 %v13640_v30  ;;  %v12783_v48 = vrot.slane %v8879_v59, 11  ;;  %v13681_v41 = vld [vmem:[#allocation10 + $0xa0] ss:$8 sps:$4 sm:$0xff]   ;;  %v13682_v27 = vld [vmem:[#allocation10 + $0x174] ss:$8 sps:$4 sm:$0xff]   ;;  %v9359_v2 = vrot.slane %v8887_v61, 5 }
 0x9ad   :  { %9316 = vmatprep.subr.bf16.mxu0 %v13642_v42  ;;  %v8889_v33 = vor.u32 %v8887_v61, %v8886_v6  ;;  %v8902_v17 = vor.u32 %v8900_v63, %v8899_v28  ;;  %v13684_v54 = vld [vmem:[#allocation10 + $0x94] ss:$8 sps:$4 sm:$0xff]   ;;  %v13686_v8 = vld [vmem:[#allocation10 + $0x170] ss:$8 sps:$4 sm:$0xff]   ;;  %v13688_v38 = vld [vmem:[#allocation10 + $0x164] ss:$8 sps:$4 sm:$0xff]  }
 0x9ae   :  { %v13687_v14 = vld [vmem:[#allocation10 + $0x90] ss:$8 sps:$4 sm:$0xff]   ;;  %v13690_v13 = vld [vmem:[#allocation10 + $0x84] ss:$8 sps:$4 sm:$0xff]   ;;  %v9370_v47 = vrot.slane %v8897_v7, 4  ;;  %v9373_v60 = vrot.slane %v8900_v63, 5 }
 0x9af   :  { %9124 = vmatpush1.bf16.msra.mxu1 %v13644_v22  ;;  %v8890_v55 = vsel %vm14612_vm9, %v12783_v48, %v8889_v33  ;;  %v8903_v43 = vsel %vm14612_vm9, %v12784_v20, %v8902_v17  ;;  %v13692_v30 = vld [vmem:[#allocation10 + $0x160] ss:$8 sps:$4 sm:$0xff]   ;;  %v13698_v42 = vld [vmem:[#allocation10 + $0x234] ss:$8 sps:$4 sm:$0xff]   ;;  %vm17623_vm9 = vmmov %vm17621_vm8 }
 0x9b0   :  { %9317 = vmatpush1.bf16.msra.mxu0 %v13645_v62  ;;  %9125 = vmatprep.subr.bf16.mxu1 %v13646_v26  ;;  %v12817_v58 = vcombine.high %v8890_v55, %v8903_v43  ;;  %v13693_v50 = vld [vmem:[#allocation10 + $0x80] ss:$8 sps:$4 sm:$0xff]   ;;  %v12816_v22 = vcombine.low %v8890_v55, %v8903_v43  ;;  %v12785_v62 = vcombine.low %v16760_v19, %v16762_v56  ;;  %v13707_v19 = vld [vmem:[#allocation10 + $0x204] ss:$8 sps:$4 sm:$0xff]   ;;  %v13708_v12 = vld [vmem:[#allocation10 + $0x1f0] ss:$8 sps:$4 sm:$0xff]  }
 0x9b1   :  { %9318 = vmatprep.subr.bf16.mxu0 %v13648_v57  ;;  %v9360_v26 = vor.u32 %v9359_v2, %v9356_v34  ;;  %v9374_v57 = vor.u32 %v9373_v60, %v9370_v47  ;;  %v13705_v56 = vld [vmem:[#allocation10 + $0x200] ss:$8 sps:$4 sm:$0xff]   ;;  %v13713_v4 = vld [vmem:[#allocation10 + $0x1e4] ss:$8 sps:$4 sm:$0xff]   ;;  %v13716_v46 = vld [vmem:[#allocation10 + $0x1d4] ss:$8 sps:$4 sm:$0xff]  }
 0x9b2   :  { %12846 = vmatprep.mubr.msk.bf16.mxu0 %vm17622_vm13, %v12817_v58  ;;  %v13711_v45 = vld [vmem:[#allocation10 + $0x1e0] ss:$8 sps:$4 sm:$0xff]   ;;  %v13714_v21 = vld [vmem:[#allocation10 + $0x1d0] ss:$8 sps:$4 sm:$0xff]   ;;  %v13719_v61 = vld [vmem:[#allocation10 + $0x1c4] ss:$8 sps:$4 sm:$0xff]  }
 0x9b3   :  { %9126 = vmatpush1.bf16.msra.mxu1 %v13650_v23  ;;  %v13696_v23 = vld [vmem:[#allocation10 + $0x230] ss:$8 sps:$4 sm:$0xff]   ;;  %v13717_v59 = vld [vmem:[#allocation10 + $0x1c0] ss:$8 sps:$4 sm:$0xff]   ;;  %v13722_v25 = vld [vmem:[#allocation10 + $0x294] ss:$8 sps:$4 sm:$0xff]  }
 0x9b4   :  { %9319 = vmatpush1.bf16.msra.mxu0 %v13651_v49  ;;  %9127 = vmatprep.subr.bf16.mxu1 %v13652_v29  ;;  %v13701_v49 = vld [vmem:[#allocation10 + $0x224] ss:$8 sps:$4 sm:$0xff]   ;;  %v13720_v7 = vld [vmem:[#allocation10 + $0x290] ss:$8 sps:$4 sm:$0xff]   ;;  %v13729_v48 = vld [vmem:[#allocation10 + $0x260] ss:$8 sps:$4 sm:$0xff]  }
 0x9b5   :  { %9320 = vmatprep.subr.bf16.mxu0 %v13654_v40  ;;  %v9350_v29 = vld [vmem:[#allocation5 + $0x10] sm:$0x11]  ;;  %v9352_v40 = vld [vmem:[#allocation5 + $0x28] sm:$0x11] }
 0x9b6   :  { %v13725_v63 = vld [vmem:[#allocation10 + $0x284] ss:$8 sps:$4 sm:$0xff]   ;;  %v13726_v6 = vld [vmem:[#allocation10 + $0x270] ss:$8 sps:$4 sm:$0xff]   ;;  %v13734_v20 = vld [vmem:[#allocation10 + $0x254] ss:$8 sps:$4 sm:$0xff]  }
 0x9b7   :  { %9128 = vmatpush1.bf16.msra.mxu1 %v13656_v10  ;;  %v9361_v10 = vrot.slane %v9360_v26, 4  ;;  %v13732_v28 = vld [vmem:[#allocation10 + $0x250] ss:$8 sps:$4 sm:$0xff]   ;;  %v13737_v33 = vld [vmem:[#allocation10 + $0x244] ss:$8 sps:$4 sm:$0xff]  }
 0x9b8   :  { %9321 = vmatpush1.bf16.msra.mxu0 %v13657_v31  ;;  %9133 = vmatprep.subr.bf16.mxu1 %v13658_v3  ;;  %v9363_v31 = vshll.u32 %v9350_v29, 16  ;;  %v9375_v3 = vrot.slane %v9374_v57, 4  ;;  %v9607_v58 = vld [vmem:[%s17231_s10] sm:$0x3] }
 0x9b9   :  { %9326 = vmatprep.subr.bf16.mxu0 %v13660_v18  ;;  %v9377_v18 = vshll.u32 %v9352_v40, 16  ;;  %v9616_v60 = vrot.slane %v9607_v58, %v17537_v44 }
 0x9bb   :  { %9134 = vmatpush2.bf16.msra.mxu1 %v13662_v32  ;;  %v13699_v32 = vld [vmem:[#allocation10 + $0x220] ss:$8 sps:$4 sm:$0xff]  }
 0x9bc   :  { %9327 = vmatpush2.bf16.msra.mxu0 %v13663_v36  ;;  %9135 = vmatprep.subr.bf16.mxu1 %v13664_v52  ;;  %v13704_v36 = vld [vmem:[#allocation10 + $0x214] ss:$8 sps:$4 sm:$0xff]   ;;  %v9365_v52 = vrot.slane %v9363_v31, 5 }
 0x9bd   :  { %9328 = vmatprep.subr.bf16.mxu0 %v13666_v39  ;;  %v9379_v39 = vrot.slane %v9377_v18, 5 }
 0x9bf   :  { %9136 = vmatpush2.bf16.msra.mxu1 %v13668_v5  ;;  %v9366_v5 = vsel %vm14741_vm0, %v9361_v10, %v9365_v52 }
 0x9c0   :  { %9329 = vmatpush2.bf16.msra.mxu0 %v13669_v37  ;;  %9137 = vmatprep.subr.bf16.mxu1 %v13670_v15  ;;  %v9380_v37 = vsel %vm14741_vm0, %v9375_v3, %v9379_v39  ;;  %v13702_v15 = vld [vmem:[#allocation10 + $0x210] ss:$8 sps:$4 sm:$0xff]  }
 0x9c1   :  { %9330 = vmatprep.subr.bf16.mxu0 %v13672_v1  ;;  %v12848_v1 = vcombine.high %v9366_v5, %v9380_v37  ;;  %v12847_v17 = vcombine.low %v9366_v5, %v9380_v37 }
 0x9c3   :  { %9138 = vmatpush2.bf16.msra.mxu1 %v13674_v53  ;;  %v13710_v53 = vld [vmem:[#allocation10 + $0x1f4] ss:$8 sps:$4 sm:$0xff]  }
 0x9c4   :  { %9331 = vmatpush2.bf16.msra.mxu0 %v13675_v16  ;;  %9139 = vmatprep.subr.bf16.mxu1 %v13676_v35  ;;  %v13723_v16 = vld [vmem:[#allocation10 + $0x280] ss:$8 sps:$4 sm:$0xff]   ;;  %v13728_v35 = vld [vmem:[#allocation10 + $0x274] ss:$8 sps:$4 sm:$0xff]  }
 0x9c5   :  { %9332 = vmatprep.subr.bf16.mxu0 %v13678_v51  ;;  %v13731_v51 = vld [vmem:[#allocation10 + $0x264] ss:$8 sps:$4 sm:$0xff]  }
 0x9c7   :  { %9140 = vmatpush2.bf16.msra.mxu1 %v13680_v24  ;;  %v13735_v24 = vld [vmem:[#allocation10 + $0x240] ss:$8 sps:$4 sm:$0xff]  }
 0x9c8   :  { %9333 = vmatpush2.bf16.msra.mxu0 %v13681_v41  ;;  %9141 = vmatprep.subr.bf16.mxu1 %v13682_v27 }
 0x9c9   :  { %9334 = vmatprep.subr.bf16.mxu0 %v13684_v54 }
 0x9cb   :  { %9142 = vmatpush2.bf16.msra.mxu1 %v13686_v8 }
 0x9cc   :  { %9335 = vmatpush2.bf16.msra.mxu0 %v13687_v14  ;;  %9143 = vmatprep.subr.bf16.mxu1 %v13688_v38 }
 0x9cd   :  { %9336 = vmatprep.subr.bf16.mxu0 %v13690_v13  ;;  %v9612_v13 = vrot.slane %v9607_v58, %v17536_v0 }
 0x9cf   :  { %9144 = vmatpush2.bf16.msra.mxu1 %v13692_v30 }
 0x9d0   :  { %9337 = vmatpush2.bf16.msra.mxu0 %v13693_v50  ;;  %9560 = vmatprep.subr.bf16.mxu1 %v13698_v42 }
 0x9d2   :  { %9146 = vmatmul.mubr.bf16.vlgmr.msra.gmra.mxu1 %v12785_v62 }
 0x9d3   :  { %9339 = vmatmul.mubr.bf16.vlgmr.msra.gmra.mxu0 %v12816_v22  ;;  %9561 = vmatpush1.bf16.msra.mxu1 %v13696_v23 }
 0x9d4   :  { %9562 = vmatprep.subr.bf16.mxu1 %v13701_v49  ;;  %12877 = vmatprep.mubr.msk.bf16.mxu1 %vm17623_vm9, %v12848_v1 }
 0x9d7   :  { %9563 = vmatpush1.bf16.msra.mxu1 %v13699_v32 }
 0x9d8   :  { %9564 = vmatprep.subr.bf16.mxu1 %v13704_v36 }
 0x9db   :  { %9565 = vmatpush1.bf16.msra.mxu1 %v13702_v15 }
 0x9dc   :  { %9566 = vmatprep.subr.bf16.mxu1 %v13707_v19 }
 0x9df   :  { %9567 = vmatpush1.bf16.msra.mxu1 %v13705_v56 }
 0x9e0   :  { %9568 = vmatprep.subr.bf16.mxu1 %v13710_v53 }
 0x9e3   :  { %9569 = vmatpush1.bf16.msra.mxu1 %v13708_v12 }
 0x9e4   :  { %9570 = vmatprep.subr.bf16.mxu1 %v13713_v4 }
 0x9e7   :  { %9571 = vmatpush1.bf16.msra.mxu1 %v13711_v45 }
 0x9e8   :  { %9572 = vmatprep.subr.bf16.mxu1 %v13716_v46 }
 0x9eb   :  { %9573 = vmatpush1.bf16.msra.mxu1 %v13714_v21 }
 0x9ec   :  { %9574 = vmatprep.subr.bf16.mxu1 %v13719_v61 }
 0x9ef   :  { %9575 = vmatpush1.bf16.msra.mxu1 %v13717_v59 }
 0x9f0   :  { %9580 = vmatprep.subr.bf16.mxu1 %v13722_v25 }
 0x9f3   :  { %9581 = vmatpush2.bf16.msra.mxu1 %v13720_v7 }
 0x9f4   :  { %9582 = vmatprep.subr.bf16.mxu1 %v13725_v63 }
 0x9f7   :  { %9583 = vmatpush2.bf16.msra.mxu1 %v13723_v16 }
 0x9f8   :  { %9584 = vmatprep.subr.bf16.mxu1 %v13728_v35 }
 0x9fb   :  { %9585 = vmatpush2.bf16.msra.mxu1 %v13726_v6 }
 0x9fc   :  { %9586 = vmatprep.subr.bf16.mxu1 %v13731_v51 }
 0x9ff   :  { %9587 = vmatpush2.bf16.msra.mxu1 %v13729_v48 }
 0xa00   :  { %9588 = vmatprep.subr.bf16.mxu1 %v13734_v20 }
 0xa03   :  { %9589 = vmatpush2.bf16.msra.mxu1 %v13732_v28 }
 0xa04   :  { %9590 = vmatprep.subr.bf16.mxu1 %v13737_v33 }
 0xa07   :  { %9591 = vmatpush2.bf16.msra.mxu1 %v13735_v24 }
 0xa0a   :  { %9593 = vmatmul.mubr.bf16.vlgmr.msra.gmra.mxu1 %v12847_v17 }
 0xa92   :  { %v9147_v41 = vpop.f32.mrf.mxu1 }
 0xa93   :  { %v9340_v27 = vpop.f32.mrf.mxu0 }
 0xa94   :  { %v9149_v55 = vpop.f32.mrf.mxu1  ;;  %v9341_v38 = vadd.f32 %v9340_v27, %v9147_v41 }
 0xa95   :  { %v9342_v54 = vpop.f32.mrf.mxu0 }
 0xa96   :  { %v9151_v43 = vpop.f32.mrf.mxu1  ;;  %v9343_v2 = vadd.f32 %v9342_v54, %v9149_v55 }
 0xa97   :  { %v9344_v8 = vpop.f32.mrf.mxu0 }
 0xa98   :  { %v9153_v14 = vpop.f32.mrf.mxu1  ;;  %v9345_v42 = vadd.f32 %v9344_v8, %v9151_v43 }
 0xa99   :  { %v9346_v30 = vpop.f32.mrf.mxu0 }
 0xa9a   :  { %v9347_v57 = vadd.f32 %v9346_v30, %v9153_v14 }
 0xaca   :  { %v9594_v34 = vpop.f32.mrf.mxu1 }
 0xacb   :  { %v9603_v47 = vadd.f32 %v9594_v34, %v9341_v38 }
 0xacc   :  { %v9596_v50 = vpop.f32.mrf.mxu1 }
 0xacd   :  { %v9619_v22 = vadd.f32 %v9612_v13, %v9603_v47  ;;  %v9604_v62 = vadd.f32 %v9596_v50, %v9343_v2 }
 0xace   :  { %v9598_v26 = vpop.f32.mrf.mxu1 }
 0xacf   :  { %v9620_v23 = vadd.f32 %v9616_v60, %v9604_v62  ;;  %v9605_v49 = vadd.f32 %v9598_v26, %v9345_v42  ;;  %v16788_v40 = vmax.f32 %v9619_v22, 0.0 }
 0xad0   :  { %v9600_v29 = vpop.f32.mrf.mxu1 }
 0xad1   :  { %v9621_v10 = vadd.f32 %v9612_v13, %v9605_v49  ;;  %v9606_v31 = vadd.f32 %v9600_v29, %v9347_v57  ;;  %v16790_v3 = vmax.f32 %v9620_v23, 0.0  ;;  %v9643_v36 = vmul.f32 %v16788_v40, %v16788_v40 }
 0xad3   :  { %v16792_v18 = vmax.f32 %v9621_v10, 0.0  ;;  %v9622_v32 = vadd.f32 %v9616_v60, %v9606_v31  ;;  %v9644_v37 = vmul.f32 %v16790_v3, %v16790_v3 }
 0xad5   :  { %v9627_v52 = vadd.f32 %v16792_v18, %v16788_v40  ;;  %v9645_v39 = vmul.f32 %v16792_v18, %v16792_v18  ;;  %v16800_v5 = vmax.f32 %v9622_v32, 0.0 }
 0xad7   :  { %v9628_v15 = vrot.slane %v9627_v52, 4  ;;  %v9647_v1 = vadd.f32 %v9645_v39, %v9643_v36  ;;  %v9634_v19 = vadd.f32 %v16800_v5, %v16790_v3  ;;  %v9646_v56 = vmul.f32 %v16800_v5, %v16800_v5 }
 0xad9   :  { %v9629_v53 = vadd.f32 %v9628_v15, %v9627_v52  ;;  %v9648_v12 = vrot.slane %v9647_v1, 4  ;;  %v9635_v4 = vrot.slane %v9634_v19, 4  ;;  %v9654_v45 = vadd.f32 %v9646_v56, %v9644_v37 }
 0xadb   :  { %v9630_v46 = vrot.slane %v9629_v53, 2  ;;  %v9649_v21 = vadd.f32 %v9648_v12, %v9647_v1  ;;  %v9636_v61 = vadd.f32 %v9635_v4, %v9634_v19  ;;  %v9655_v59 = vrot.slane %v9654_v45, 4 }
 0xadd   :  { %v9631_v25 = vadd.f32 %v9630_v46, %v9629_v53  ;;  %v9650_v7 = vrot.slane %v9649_v21, 2  ;;  %v9637_v63 = vrot.slane %v9636_v61, 2  ;;  %v9656_v16 = vadd.f32 %v9655_v59, %v9654_v45 }
 0xadf   :  { %v9632_v35 = vrot.slane %v9631_v25, 1  ;;  %v9651_v6 = vadd.f32 %v9650_v7, %v9649_v21  ;;  %v9638_v51 = vadd.f32 %v9637_v63, %v9636_v61  ;;  %v9657_v48 = vrot.slane %v9656_v16, 2 }
 0xae1   :  { %v9633_v20 = vadd.f32 %v9632_v35, %v9631_v25  ;;  %v9652_v28 = vrot.slane %v9651_v6, 1  ;;  %v9639_v33 = vrot.slane %v9638_v51, 1  ;;  %v9658_v24 = vadd.f32 %v9657_v48, %v9656_v16 }
 0xae3   :  { %v16808_v17 = vmul.f32 0.0625, %v9633_v20  ;;  %v9653_v41 = vadd.f32 %v9652_v28, %v9651_v6  ;;  %v9640_v27 = vadd.f32 %v9639_v33, %v9638_v51  ;;  %v9659_v55 = vrot.slane %v9658_v24, 1 }
 0xae5   :  { %v16810_v54 = vmul.f32 0.0625, %v9653_v41  ;;  %v9642_v43 = vmul.f32 0.0625, %v9640_v27  ;;  %v9660_v58 = vadd.f32 %v9659_v55, %v9658_v24 }
 0xae7   :  { %v9662_v8 = vmul.f32 0.0625, %v9660_v58 }
 0xae8   :  { %14045 = dma.done.wait [#allocation16 + $0x6], 8192 }
 0xae9   :  { %14046 = vsyncadd [#allocation16 + $0x6], 4294959104  ;;  %vm10128_vm0 = vcmask 523271   ;;  %vm10138_vm11 = vsmask.f32 2304  ;;  %vm17624_vm4 = vcmask 1040384  }
 0xaea   :  { %v9666_v14 = vsel %vm17624_vm4, %v9642_v43, %v9662_v8  ;;  %vm17625_vm15 = vsmask.f32 7966  ;;  %vm10140_vm12 = vcmask 522246   ;;  %vm10141_vm5 = vsmask.f32 6400  ;;  %v9698_v50 = vld [vmem:[#allocation14 + $0xf8] sm:$0xff]  ;;  %vm17627_vm13 = vmmov %vm17624_vm4 }
 0xaeb   :  { %vm10129_vm3 = vmand %vm10128_vm0, %vm17625_vm15  ;;  %9795 = vmatprep.mubr.f32.mxu0 %v9666_v14  ;;  %vm17626_vm1 = vcmask 1042434   ;;  %v10131_v38 = vld [vmem:[#allocation6] sm:$0x88]  ;;  %v10134_v13 = vld [vmem:[#allocation6 + $0x18] sm:$0x88]  ;;  %9731 = vmatprep.subr.mxu0 %v9698_v50  ;;  %vm9884_vm9 = vcmask 523264  }
 0xaec   :  { %vm10130_vm6 = vmor %vm10129_vm3, %vm14584_vm7  ;;  %v10144_v34 = vld [vmem:[#allocation6 + $0x8] sm:$0x44]  ;;  %v10147_v30 = vld [vmem:[#allocation6 + $0x20] sm:$0x44]  ;;  %vm10022_vm0 = vcmask 517120   ;;  %vm17628_vm4 = vcmask 1041409  }
 0xaed   :  { %vm10139_vm14 = vmand %vm17626_vm1, %vm10138_vm11  ;;  %v10132_v2 = vsel %vm10130_vm6, 0, %v10131_v38  ;;  %v10135_v47 = vsel %vm10130_vm6, 0, %v10134_v13  ;;  %v9697_v22 = vld [vmem:[#allocation14 + $0xf0] sm:$0xff]  ;;  %v9696_v62 = vld [vmem:[#allocation14 + $0xe8] sm:$0xff]  ;;  %vm10238_vm11 = vcmask 521220   ;;  %vm17634_vm6 = vcmask 1043459  }
 0xaee   :  { %vm10142_vm10 = vmand %vm10140_vm12, %vm10141_vm5  ;;  %10133 = vst [vmem:[#allocation6] sm:$0x88] %v10132_v2  ;;  %v9695_v26 = vld [vmem:[#allocation14 + $0xe0] sm:$0xff]  ;;  %9732 = vmatpush1.msra.mxu0 %v9697_v22  ;;  %v9694_v57 = vld [vmem:[#allocation14 + $0xd8] sm:$0xff] }
 0xaef   :  { %vm10143_vm8 = vmor %vm10142_vm10, %vm10139_vm14  ;;  %10136 = vst [vmem:[#allocation6 + $0x18] sm:$0x88] %v10135_v47  ;;  %9733 = vmatprep.subr.mxu0 %v9696_v62  ;;  %v9693_v23 = vld [vmem:[#allocation14 + $0xd0] sm:$0xff]  ;;  %v9692_v49 = vld [vmem:[#allocation14 + $0xc8] sm:$0xff] }
 0xaf0   :  { %v10145_v60 = vsel %vm10143_vm8, 0, %v10144_v34  ;;  %v10148_v42 = vsel %vm10143_vm8, 0, %v10147_v30  ;;  %9734 = vmatpush1.msra.mxu0 %v9695_v26  ;;  %v9691_v29 = vld [vmem:[#allocation14 + $0xc0] sm:$0xff]  ;;  %v9690_v10 = vld [vmem:[#allocation14 + $0xb8] sm:$0xff]  ;;  %v9689_v31 = vld [vmem:[#allocation14 + $0xb0] sm:$0xff] }
 0xaf1   :  { %10146 = vst [vmem:[#allocation6 + $0x8] sm:$0x44] %v10145_v60  ;;  %10149 = vst [vmem:[#allocation6 + $0x20] sm:$0x44] %v10148_v42  ;;  %9735 = vmatprep.subr.mxu0 %v9694_v57  ;;  %v9688_v32 = vld [vmem:[#allocation14 + $0xa8] sm:$0xff]  ;;  %v9687_v36 = vld [vmem:[#allocation14 + $0xa0] sm:$0xff] }
 0xaf2   :  { %9736 = vmatpush1.msra.mxu0 %v9693_v23  ;;  %v9686_v52 = vld [vmem:[#allocation14 + $0x98] sm:$0xff]  ;;  %v9685_v39 = vld [vmem:[#allocation14 + $0x90] sm:$0xff]  ;;  %v9684_v37 = vld [vmem:[#allocation14 + $0x88] sm:$0xff] }
 0xaf3   :  { %9737 = vmatprep.subr.mxu0 %v9692_v49  ;;  %v9683_v15 = vld [vmem:[#allocation14 + $0x80] sm:$0xff]  ;;  %v9682_v1 = vld [vmem:[#allocation14 + $0x78] sm:$0xff]  ;;  %v9681_v19 = vld [vmem:[#allocation14 + $0x70] sm:$0xff] }
 0xaf4   :  { %9738 = vmatpush1.msra.mxu0 %v9691_v29  ;;  %v9680_v56 = vld [vmem:[#allocation14 + $0x68] sm:$0xff]  ;;  %v9679_v53 = vld [vmem:[#allocation14 + $0x60] sm:$0xff]  ;;  %v9678_v12 = vld [vmem:[#allocation14 + $0x58] sm:$0xff] }
 0xaf5   :  { %9739 = vmatprep.subr.mxu0 %v9690_v10  ;;  %v9677_v4 = vld [vmem:[#allocation14 + $0x50] sm:$0xff]  ;;  %v9676_v45 = vld [vmem:[#allocation14 + $0x48] sm:$0xff]  ;;  %v9675_v46 = vld [vmem:[#allocation14 + $0x40] sm:$0xff] }
 0xaf6   :  { %9740 = vmatpush1.msra.mxu0 %v9689_v31  ;;  %v9674_v21 = vld [vmem:[#allocation14 + $0x38] sm:$0xff]  ;;  %v9673_v61 = vld [vmem:[#allocation14 + $0x30] sm:$0xff]  ;;  %v9672_v59 = vld [vmem:[#allocation14 + $0x28] sm:$0xff] }
 0xaf7   :  { %9741 = vmatprep.subr.mxu0 %v9688_v32  ;;  %v9671_v25 = vld [vmem:[#allocation14 + $0x20] sm:$0xff]  ;;  %v9670_v7 = vld [vmem:[#allocation14 + $0x18] sm:$0xff]  ;;  %v9669_v63 = vld [vmem:[#allocation14 + $0x10] sm:$0xff]  ;;  %v9665_v32 = vsel %vm17627_vm13, %v16808_v17, %v16810_v54 }
 0xaf8   :  { %9742 = vmatpush1.msra.mxu0 %v9687_v36  ;;  %v9668_v16 = vld [vmem:[#allocation14 + $0x8] sm:$0xff]  ;;  %v9667_v35 = vld [vmem:[#allocation14] sm:$0xff]  ;;  %v9730_v6 = vld [vmem:[#allocation14 + $0x1f8] sm:$0xff] }
 0xaf9   :  { %9743 = vmatprep.subr.mxu0 %v9686_v52  ;;  %v9729_v51 = vld [vmem:[#allocation14 + $0x1f0] sm:$0xff]  ;;  %v9728_v48 = vld [vmem:[#allocation14 + $0x1e8] sm:$0xff]  ;;  %v9727_v20 = vld [vmem:[#allocation14 + $0x1e0] sm:$0xff] }
 0xafa   :  { %9744 = vmatpush1.msra.mxu0 %v9685_v39  ;;  %v9726_v28 = vld [vmem:[#allocation14 + $0x1d8] sm:$0xff]  ;;  %v9725_v33 = vld [vmem:[#allocation14 + $0x1d0] sm:$0xff]  ;;  %v9724_v24 = vld [vmem:[#allocation14 + $0x1c8] sm:$0xff] }
 0xafb   :  { %9745 = vmatprep.subr.mxu0 %v9684_v37  ;;  %v9723_v41 = vld [vmem:[#allocation14 + $0x1c0] sm:$0xff]  ;;  %v9722_v27 = vld [vmem:[#allocation14 + $0x1b8] sm:$0xff]  ;;  %v9721_v55 = vld [vmem:[#allocation14 + $0x1b0] sm:$0xff] }
 0xafc   :  { %9746 = vmatpush1.msra.mxu0 %v9683_v15  ;;  %v9720_v43 = vld [vmem:[#allocation14 + $0x1a8] sm:$0xff]  ;;  %v9719_v58 = vld [vmem:[#allocation14 + $0x1a0] sm:$0xff]  ;;  %v9718_v8 = vld [vmem:[#allocation14 + $0x198] sm:$0xff] }
 0xafd   :  { %9747 = vmatprep.subr.mxu0 %v9682_v1  ;;  %v9717_v14 = vld [vmem:[#allocation14 + $0x190] sm:$0xff]  ;;  %v9716_v38 = vld [vmem:[#allocation14 + $0x188] sm:$0xff]  ;;  %v9715_v13 = vld [vmem:[#allocation14 + $0x180] sm:$0xff] }
 0xafe   :  { %9748 = vmatpush1.msra.mxu0 %v9681_v19  ;;  %v9714_v34 = vld [vmem:[#allocation14 + $0x178] sm:$0xff]  ;;  %v9713_v2 = vld [vmem:[#allocation14 + $0x170] sm:$0xff]  ;;  %v9712_v47 = vld [vmem:[#allocation14 + $0x168] sm:$0xff] }
 0xaff   :  { %9749 = vmatprep.subr.mxu0 %v9680_v56  ;;  %v9711_v60 = vld [vmem:[#allocation14 + $0x160] sm:$0xff]  ;;  %v9710_v30 = vld [vmem:[#allocation14 + $0x158] sm:$0xff]  ;;  %v9709_v50 = vld [vmem:[#allocation14 + $0x150] sm:$0xff] }
 0xb00   :  { %9750 = vmatpush1.msra.mxu0 %v9679_v53  ;;  %v9708_v42 = vld [vmem:[#allocation14 + $0x148] sm:$0xff]  ;;  %v9707_v22 = vld [vmem:[#allocation14 + $0x140] sm:$0xff]  ;;  %v9706_v62 = vld [vmem:[#allocation14 + $0x138] sm:$0xff] }
 0xb01   :  { %9751 = vmatprep.subr.mxu0 %v9678_v12  ;;  %v9705_v26 = vld [vmem:[#allocation14 + $0x130] sm:$0xff]  ;;  %v9704_v57 = vld [vmem:[#allocation14 + $0x128] sm:$0xff]  ;;  %v9703_v23 = vld [vmem:[#allocation14 + $0x120] sm:$0xff] }
 0xb02   :  { %9752 = vmatpush1.msra.mxu0 %v9677_v4  ;;  %v9702_v49 = vld [vmem:[#allocation14 + $0x118] sm:$0xff]  ;;  %v9701_v29 = vld [vmem:[#allocation14 + $0x110] sm:$0xff]  ;;  %v9700_v10 = vld [vmem:[#allocation14 + $0x108] sm:$0xff] }
 0xb03   :  { %9753 = vmatprep.subr.mxu0 %v9676_v45  ;;  %v9699_v31 = vld [vmem:[#allocation14 + $0x100] sm:$0xff]  ;;  %vm17629_vm15 = vmmov %vm17628_vm4 }
 0xb04   :  { %9754 = vmatpush1.msra.mxu0 %v9675_v46  ;;  %v9830_v17 = vld [vmem:[%s17236_s15] sm:$0x3]  ;;  %s14070_s15 = smov 64   ;;  %vm17630_vm3 = vmmov %vm17626_vm1 }
 0xb05   :  { %9755 = vmatprep.subr.mxu0 %v9674_v21  ;;  %v9835_v54 = vrot.slane %v9830_v17, %v17536_v0  ;;  %v9839_v21 = vrot.slane %v9830_v17, %v17537_v44  ;;  %vm17631_vm12 = vmmov %vm17626_vm1 }
 0xb06   :  { %9756 = vmatpush1.msra.mxu0 %v9673_v61  ;;  %v9856_v61 = vld [vmem:[%s17237_s16] sm:$0x3]  ;;  %vm16898_vm5 = vmor %vm10238_vm11, %vm2718_vm2 }
 0xb07   :  { %9757 = vmatprep.subr.mxu0 %v9672_v59  ;;  %vm17635_vm1 = vmmov %vm17634_vm6 }
 0xb08   :  { %9758 = vmatpush1.msra.mxu0 %v9671_v25  ;;  %vm17636_vm14 = vmmov %vm17628_vm4 }
 0xb09   :  { %9759 = vmatprep.subr.mxu0 %v9670_v7  ;;  %vm17637_vm10 = vmmov %vm17628_vm4 }
 0xb0a   :  { %9760 = vmatpush1.msra.mxu0 %v9669_v63  ;;  %vm17638_vm8 = vmmov %vm17630_vm3 }
 0xb0b   :  { %9761 = vmatprep.subr.mxu0 %v9668_v16  ;;  %v9861_v16 = vrot.slane %v9856_v61, %v17536_v0  ;;  %vm17639_vm13 = vmmov %vm17630_vm3 }
 0xb0c   :  { %9762 = vmatpush1.msra.mxu0 %v9667_v35 }
 0xb0d   :  { %9763 = vmatprep.subr.mxu0 %v9730_v6 }
 0xb0e   :  { %9764 = vmatpush2.msra.mxu0 %v9729_v51 }
 0xb0f   :  { %9765 = vmatprep.subr.mxu0 %v9728_v48 }
 0xb10   :  { %9766 = vmatpush2.msra.mxu0 %v9727_v20 }
 0xb11   :  { %9767 = vmatprep.subr.mxu0 %v9726_v28 }
 0xb12   :  { %9768 = vmatpush2.msra.mxu0 %v9725_v33 }
 0xb13   :  { %9769 = vmatprep.subr.mxu0 %v9724_v24 }
 0xb14   :  { %9770 = vmatpush2.msra.mxu0 %v9723_v41 }
 0xb15   :  { %9771 = vmatprep.subr.mxu0 %v9722_v27  ;;  %v9865_v27 = vrot.slane %v9856_v61, %v17537_v44 }
 0xb16   :  { %9772 = vmatpush2.msra.mxu0 %v9721_v55 }
 0xb17   :  { %9773 = vmatprep.subr.mxu0 %v9720_v43 }
 0xb18   :  { %9774 = vmatpush2.msra.mxu0 %v9719_v58 }
 0xb19   :  { %9775 = vmatprep.subr.mxu0 %v9718_v8 }
 0xb1a   :  { %9776 = vmatpush2.msra.mxu0 %v9717_v14 }
 0xb1b   :  { %9777 = vmatprep.subr.mxu0 %v9716_v38 }
 0xb1c   :  { %9778 = vmatpush2.msra.mxu0 %v9715_v13 }
 0xb1d   :  { %9779 = vmatprep.subr.mxu0 %v9714_v34 }
 0xb1e   :  { %9780 = vmatpush2.msra.mxu0 %v9713_v2 }
 0xb1f   :  { %9781 = vmatprep.subr.mxu0 %v9712_v47 }
 0xb20   :  { %9782 = vmatpush2.msra.mxu0 %v9711_v60 }
 0xb21   :  { %9783 = vmatprep.subr.mxu0 %v9710_v30 }
 0xb22   :  { %9784 = vmatpush2.msra.mxu0 %v9709_v50 }
 0xb23   :  { %9785 = vmatprep.subr.mxu0 %v9708_v42 }
 0xb24   :  { %9786 = vmatpush2.msra.mxu0 %v9707_v22 }
 0xb25   :  { %9787 = vmatprep.subr.mxu0 %v9706_v62 }
 0xb26   :  { %9788 = vmatpush2.msra.mxu0 %v9705_v26 }
 0xb27   :  { %9789 = vmatprep.subr.mxu0 %v9704_v57 }
 0xb28   :  { %9790 = vmatpush2.msra.mxu0 %v9703_v23 }
 0xb29   :  { %9791 = vmatprep.subr.mxu0 %v9702_v49 }
 0xb2a   :  { %9792 = vmatpush2.msra.mxu0 %v9701_v29 }
 0xb2b   :  { %9793 = vmatprep.subr.mxu0 %v9700_v10 }
 0xb2c   :  { %9794 = vmatpush2.msra.mxu0 %v9699_v31 }
 0xb2d   :  { %9796 = vmatmul.mubr.f32.vlgmr.msra.gmra.mxu0 %v9665_v32 }
 0xbed   :  { %v9797_v36 = vpop.f32.mrf.mxu0 }
 0xbee   :  { %v9802_v52 = vmul.f32 %v9797_v36, %v9797_v36  ;;  %v9821_v46 = vrot.slane %v9797_v36, %v17536_v0 }
 0xbef   :  { %v9799_v39 = vpop.f32.mrf.mxu0 }
 0xbf0   :  { %v9806_v37 = vrot.slane %v9802_v52, 7  ;;  %v9803_v15 = vmul.f32 %v9799_v39, %v9799_v39  ;;  %v9825_v25 = vrot.slane %v9799_v39, %v17536_v0  ;;  %v9828_v6 = vsub.f32 %v16792_v18, %v9821_v46 }
 0xbf1   :  { %v9826_v48 = vsub.f32 %v16788_v40, %v9821_v46 }
 0xbf2   :  { %v9810_v1 = vsub.f32 %v9797_v36, %v9806_v37  ;;  %v9807_v19 = vrot.slane %v9803_v15, 7  ;;  %v9827_v20 = vsub.f32 %v16790_v3, %v9825_v25  ;;  %v9829_v28 = vsub.f32 %v16800_v5, %v9825_v25 }
 0xbf4   :  { %v9812_v56 = vmax.f32 %v9810_v1, 0.0  ;;  %v9811_v53 = vsub.f32 %v9799_v39, %v9807_v19 }
 0xbf6   :  { %v9814_v12 = vadd.f32 0.001, %v9812_v56  ;;  %v9813_v4 = vmax.f32 %v9811_v53, 0.0 }
 0xbf8   :  { %13738 = vrsqrt.f32 %v9814_v12  ;;  %v9815_v45 = vadd.f32 0.001, %v9813_v4 }
 0xbfa   :  { %13740 = vrsqrt.f32 %v9815_v45 }
 0xc05   :  { %v13739_v59 = vpop.eup %13738 }
 0xc06   :  { %v9842_v7 = vmul.f32 %v13739_v59, %v9835_v54 }
 0xc07   :  { %v13741_v63 = vpop.eup %13740 }
 0xc08   :  { %v9843_v35 = vmul.f32 %v13741_v63, %v9839_v21  ;;  %v9847_v51 = vrot.slane %v9842_v7, %v17537_v44 }
 0xc0a   :  { %v9851_v33 = vrot.slane %v9843_v35, %v17537_v44  ;;  %v9854_v24 = vmul.f32 %v9847_v51, %v9828_v6  ;;  %v9852_v41 = vmul.f32 %v9847_v51, %v9826_v48 }
 0xc0c   :  { %v9853_v55 = vmul.f32 %v9851_v33, %v9827_v20  ;;  %v9855_v43 = vmul.f32 %v9851_v33, %v9829_v28  ;;  %v9870_v58 = vadd.f32 %v9861_v16, %v9854_v24  ;;  %v9868_v8 = vadd.f32 %v9861_v16, %v9852_v41 }
 0xc0e   :  { %9880 = vrot.lane.b32.xlu1 %v9870_v58, %s14070_s15  ;;  %9876 = vrot.lane.b32.xlu0 %v9868_v8, %s14070_s15  ;;  %v9871_v18 = vadd.f32 %v9865_v27, %v9855_v43  ;;  %v9869_v14 = vadd.f32 %v9865_v27, %v9853_v55 }
 0xc12   :  { %9882 = vrot.lane.b32.xlu1 %v9871_v18, %s14070_s15  ;;  %9878 = vrot.lane.b32.xlu0 %v9869_v14, %s14070_s15 }
 0xc80   :  { %v9881_v40 = vpop.permute.xlu1 %9880  ;;  %v9877_v3 = vpop.permute.xlu0 %9876 }
 0xc84   :  { %v9883_v5 = vpop.permute.xlu1 %9882  ;;  %v9879_v38 = vpop.permute.xlu0 %9878 }
 0xc85   :  { %v9886_v13 = vsel %vm9884_vm9, %v9881_v40, %v9883_v5  ;;  %v9894_v34 = vmax.f32 %v9871_v18, %v9883_v5  ;;  %v9885_v2 = vsel %vm9884_vm9, %v9877_v3, %v9879_v38  ;;  %v9892_v47 = vmax.f32 %v9869_v14, %v9879_v38 }
 0xc86   :  { %v9893_v60 = vmax.f32 %v9870_v58, %v9886_v13  ;;  %v9891_v30 = vmax.f32 %v9868_v8, %v9885_v2 }
 0xc88   :  { %v9917_v50 = vcombine.low %v9893_v60, %v9894_v34  ;;  %v9918_v42 = vcombine.high %v9893_v60, %v9894_v34  ;;  %v9899_v22 = vcombine.low %v9891_v30, %v9892_v47  ;;  %v9900_v62 = vcombine.high %v9891_v30, %v9892_v47 }
 0xc8a   :  { %v9925_v26 = vrot.slane %v9917_v50, %v15183_v11  ;;  %v9932_v57 = vrot.slane %v9918_v42, %v15183_v11  ;;  %v9907_v23 = vrot.slane %v9899_v22, %v15183_v11  ;;  %v16844_v49 = vrot.slane %v9900_v62, %v15183_v11 }
 0xc8c   :  { %v9933_v29 = vcombine.high %v9925_v26, %v9925_v26  ;;  %v9934_v10 = vcombine.high %v9932_v57, %v9932_v57  ;;  %v9973_v31 = vrot.slane %v9925_v26, %v15183_v11  ;;  %v9989_v32 = vrot.slane %v9932_v57, %v15183_v11 }
 0xc8d   :  { %v9915_v36 = vcombine.high %v9907_v23, %v9907_v23  ;;  %v9916_v52 = vcombine.high %v16844_v49, %v16844_v49  ;;  %v16851_v39 = vrot.slane %v9907_v23, %v15183_v11  ;;  %v16855_v37 = vrot.slane %v16844_v49, %v15183_v11 }
 0xc8e   :  { %v9974_v15 = vcombine.high %v9973_v31, %v9973_v31  ;;  %v9981_v1 = vrot.slane %v9933_v29, %v15183_v11  ;;  %v9990_v19 = vcombine.high %v9989_v32, %v9989_v32  ;;  %v9997_v56 = vrot.slane %v9934_v10, %v15183_v11 }
 0xc8f   :  { %v10072_v53 = vsel %vm2718_vm2, %v9973_v31, -inf  ;;  %v10100_v12 = vsel %vm2718_vm2, %v9989_v32, -inf  ;;  %v9942_v4 = vcombine.high %v16851_v39, %v16851_v39  ;;  %v16864_v45 = vrot.slane %v9915_v36, %v15183_v11 }
 0xc90   :  { %v9982_v17 = vcombine.high %v9981_v1, %v9981_v1  ;;  %v9998_v54 = vcombine.high %v9997_v56, %v9997_v56  ;;  %v10073_v46 = vrot.slane %v10072_v53, 4  ;;  %v10079_v21 = vsel %vm10022_vm0, %v9974_v15, -inf }
 0xc91   :  { %v10080_v61 = vrot.slane %v10079_v21, 4  ;;  %v10086_v59 = vsel %vm2718_vm2, %v9981_v1, -inf  ;;  %v10101_v25 = vrot.slane %v10100_v12, 4  ;;  %v10107_v7 = vsel %vm10022_vm0, %v9990_v19, -inf }
 0xc92   :  { %v10074_v63 = vmax.f32 %v10072_v53, %v10073_v46  ;;  %v10087_v16 = vrot.slane %v10086_v59, 4  ;;  %v10093_v35 = vsel %vm10022_vm0, %v9982_v17, -inf  ;;  %v10108_v6 = vrot.slane %v10107_v7, 4 }
 0xc93   :  { %v10081_v51 = vmax.f32 %v10079_v21, %v10080_v61  ;;  %v10094_v48 = vrot.slane %v10093_v35, 4  ;;  %v10102_v20 = vmax.f32 %v10100_v12, %v10101_v25  ;;  %v10114_v28 = vsel %vm2718_vm2, %v9997_v56, -inf }
 0xc94   :  { %v10075_v33 = vrot.slane %v10074_v63, 2  ;;  %v10088_v24 = vmax.f32 %v10086_v59, %v10087_v16  ;;  %v10109_v41 = vmax.f32 %v10107_v7, %v10108_v6  ;;  %v10115_v27 = vrot.slane %v10114_v28, 4 }
 0xc95   :  { %v10082_v55 = vrot.slane %v10081_v51, 2  ;;  %v10095_v43 = vmax.f32 %v10093_v35, %v10094_v48  ;;  %v10103_v58 = vrot.slane %v10102_v20, 2  ;;  %v10121_v8 = vsel %vm10022_vm0, %v9998_v54, -inf }
 0xc96   :  { %v10076_v18 = vmax.f32 %v10074_v63, %v10075_v33  ;;  %v10089_v14 = vrot.slane %v10088_v24, 2  ;;  %v10110_v40 = vrot.slane %v10109_v41, 2  ;;  %v10116_v3 = vmax.f32 %v10114_v28, %v10115_v27 }
 0xc97   :  { %v10083_v5 = vmax.f32 %v10081_v51, %v10082_v55  ;;  %v10096_v38 = vrot.slane %v10095_v43, 2  ;;  %v10104_v13 = vmax.f32 %v10102_v20, %v10103_v58  ;;  %v10122_v34 = vrot.slane %v10121_v8, 4 }
 0xc98   :  { %v10077_v2 = vrot.slane %v10076_v18, 1  ;;  %v10090_v47 = vmax.f32 %v10088_v24, %v10089_v14  ;;  %v10111_v60 = vmax.f32 %v10109_v41, %v10110_v40  ;;  %v10117_v30 = vrot.slane %v10116_v3, 2 }
 0xc99   :  { %v10084_v50 = vrot.slane %v10083_v5, 1  ;;  %v10097_v42 = vmax.f32 %v10095_v43, %v10096_v38  ;;  %v10105_v22 = vrot.slane %v10104_v13, 1  ;;  %v10123_v62 = vmax.f32 %v10121_v8, %v10122_v34 }
 0xc9a   :  { %v10078_v26 = vmax.f32 %v10076_v18, %v10077_v2  ;;  %v10091_v57 = vrot.slane %v10090_v47, 1  ;;  %v10112_v23 = vrot.slane %v10111_v60, 1  ;;  %v10118_v29 = vmax.f32 %v10116_v3, %v10117_v30 }
 0xc9b   :  { %v10085_v10 = vmax.f32 %v10083_v5, %v10084_v50  ;;  %v10098_v31 = vrot.slane %v10097_v42, 1  ;;  %v10106_v32 = vmax.f32 %v10104_v13, %v10105_v22  ;;  %v10124_v36 = vrot.slane %v10123_v62, 2 }
 0xc9c   :  { %v10092_v15 = vmax.f32 %v10090_v47, %v10091_v57  ;;  %v10113_v1 = vmax.f32 %v10111_v60, %v10112_v23  ;;  %v10119_v19 = vrot.slane %v10118_v29, 1  ;;  %v9950_v56 = vcombine.high %v16864_v45, %v16864_v45 }
 0xc9d   :  { %v10099_v53 = vmax.f32 %v10097_v42, %v10098_v31  ;;  %v10125_v12 = vmax.f32 %v10123_v62, %v10124_v36  ;;  %v13186_v17 = vpack.c.bf16 %v10085_v10, %v10078_v26  ;;  %v9958_v54 = vcombine.high %v16855_v37, %v16855_v37 }
 0xc9e   :  { %v10120_v46 = vmax.f32 %v10118_v29, %v10119_v19  ;;  %v13188_v21 = vpack.c.bf16 %v10113_v1, %v10106_v32  ;;  %v9965_v61 = vrot.slane %v9916_v52, %v15183_v11  ;;  %v10015_v59 = vsel %vm2718_vm2, %v16851_v39, -inf }
 0xc9f   :  { %v10126_v25 = vrot.slane %v10125_v12, 1  ;;  %v13187_v7 = vpack.c.bf16 %v10099_v53, %v10092_v15  ;;  %v10214_v63 = vunpack.c.l.b16 %v13186_v17  ;;  %v10215_v16 = vunpack.c.h.b16 %v13186_v17 }
 0xca0   :  { %v10218_v35 = vunpack.c.l.b16 %v13188_v21  ;;  %v10219_v6 = vunpack.c.h.b16 %v13188_v21  ;;  %v9966_v51 = vcombine.high %v9965_v61, %v9965_v61  ;;  %v10016_v48 = vrot.slane %v10015_v59, 4 }
 0xca1   :  { %v10127_v20 = vmax.f32 %v10125_v12, %v10126_v25  ;;  %v10216_v28 = vunpack.c.l.b16 %v13187_v7  ;;  %v10217_v33 = vunpack.c.h.b16 %v13187_v7  ;;  %v10023_v49 = vsel %vm10022_vm0, %v9942_v4, -inf }
 0xca2   :  { %v10017_v52 = vmax.f32 %v10015_v59, %v10016_v48  ;;  %v10024_v24 = vrot.slane %v10023_v49, 4  ;;  %v10030_v41 = vsel %vm2718_vm2, %v16864_v45, -inf  ;;  %v10037_v27 = vsel %vm10022_vm0, %v9950_v56, -inf }
 0xca3   :  { %v13189_v55 = vpack.c.bf16 %v10127_v20, %v10120_v46  ;;  %v10228_v43 = vsel %vm17628_vm4, %v10216_v28, %v10214_v63  ;;  %v10231_v58 = vsel %vm17629_vm15, %v10217_v33, %v10215_v16  ;;  %v10031_v8 = vrot.slane %v10030_v41, 4 }
 0xca4   :  { %v10229_v18 = vsel %vm17630_vm3, %v10218_v35, %v10228_v43  ;;  %v10232_v14 = vsel %vm17631_vm12, %v10219_v6, %v10231_v58  ;;  %v10018_v39 = vrot.slane %v10017_v52, 2  ;;  %v10025_v40 = vmax.f32 %v10023_v49, %v10024_v24 }
 0xca5   :  { %v10220_v4 = vunpack.c.l.b16 %v13189_v55  ;;  %v10221_v3 = vunpack.c.h.b16 %v13189_v55  ;;  %v10032_v5 = vmax.f32 %v10030_v41, %v10031_v8  ;;  %v10038_v38 = vrot.slane %v10037_v27, 4 }
 0xca6   :  { %v10019_v13 = vmax.f32 %v10017_v52, %v10018_v39  ;;  %v10026_v45 = vrot.slane %v10025_v40, 2  ;;  %v10044_v34 = vsel %vm2718_vm2, %v16855_v37, -inf  ;;  %v10051_v2 = vsel %vm10022_vm0, %v9958_v54, -inf }
 0xca7   :  { %v10230_v60 = vsel %vm17634_vm6, %v10220_v4, %v10229_v18  ;;  %v10233_v30 = vsel %vm17635_vm1, %v10221_v3, %v10232_v14  ;;  %v10033_v50 = vrot.slane %v10032_v5, 2  ;;  %v10039_v42 = vmax.f32 %v10037_v27, %v10038_v38 }
 0xca8   :  { %v10235_v22 = vpack.c.b16 %v10233_v30, %v10230_v60  ;;  %v10027_v62 = vmax.f32 %v10025_v40, %v10026_v45  ;;  %v10045_v26 = vrot.slane %v10044_v34, 4  ;;  %v10052_v37 = vrot.slane %v10051_v2, 4 }
 0xca9   :  { %v10034_v57 = vmax.f32 %v10032_v5, %v10033_v50  ;;  %v10040_v23 = vrot.slane %v10039_v42, 2  ;;  %v10058_v29 = vsel %vm2718_vm2, %v9965_v61, -inf  ;;  %v10020_v10 = vrot.slane %v10019_v13, 1 }
 0xcaa   :  { %10241 = vst.msk [vmem:[#allocation6 + $0x20] sm:$0x33] %vm16898_vm5, %v10235_v22  ;;  %v10028_v31 = vrot.slane %v10027_v62, 1  ;;  %v10046_v32 = vmax.f32 %v10044_v34, %v10045_v26  ;;  %v10059_v36 = vrot.slane %v10058_v29, 4  ;;  %v10053_v19 = vmax.f32 %v10051_v2, %v10052_v37  ;;  %v17643_v22 = vld [vmem:[#allocation86_spill] sm:$0xff]  ;;  %v17644_v26 = vld [vmem:[#allocation63_spill] sm:$0xff] }
 0xcab   :  { %v10035_v15 = vrot.slane %v10034_v57, 1  ;;  %v10041_v1 = vmax.f32 %v10039_v42, %v10040_v23  ;;  %v10065_v56 = vsel %vm10022_vm0, %v9966_v51, -inf  ;;  %v10021_v59 = vmax.f32 %v10019_v13, %v10020_v10  ;;  %vm17640_vm0 = vmmov %vm17635_vm1  ;;  %v17642_v42 = vld [vmem:[#allocation87_spill] sm:$0xff] }
 0xcac   :  { %v10029_v53 = vmax.f32 %v10027_v62, %v10028_v31  ;;  %v10047_v12 = vrot.slane %v10046_v32, 2  ;;  %v10060_v17 = vmax.f32 %v10058_v29, %v10059_v36  ;;  %v10066_v54 = vrot.slane %v10065_v56, 4  ;;  %vm17641_vm11 = vmmov %vm17640_vm0 }
 0xcad   :  { %v10042_v46 = vrot.slane %v10041_v1, 1  ;;  %v10054_v21 = vrot.slane %v10053_v19, 2  ;;  %v10036_v63 = vmax.f32 %v10034_v57, %v10035_v15  ;;  %v12907_v62 = vcombine.high %v17643_v22, %v17642_v42  ;;  %v17645_v57 = vld [vmem:[#allocation62_spill] sm:$0xff] }
 0xcae   :  { %v10048_v61 = vmax.f32 %v10046_v32, %v10047_v12  ;;  %v10061_v25 = vrot.slane %v10060_v17, 2  ;;  %v10067_v7 = vmax.f32 %v10065_v56, %v10066_v54  ;;  %v13182_v28 = vpack.c.bf16 %v10029_v53, %v10021_v59 }
 0xcaf   :  { %v10043_v16 = vmax.f32 %v10041_v1, %v10042_v46  ;;  %v10055_v35 = vmax.f32 %v10053_v19, %v10054_v21  ;;  %v12932_v23 = vcombine.high %v17645_v57, %v17644_v26  ;;  %v12906_v37 = vcombine.low %v17643_v22, %v17642_v42 }
 0xcb0   :  { %v10049_v6 = vrot.slane %v10048_v61, 1  ;;  %v10062_v48 = vmax.f32 %v10060_v17, %v10061_v25  ;;  %v10068_v20 = vrot.slane %v10067_v7, 2  ;;  %v10206_v58 = vunpack.c.l.b16 %v13182_v28 }
 0xcb1   :  { %v10056_v33 = vrot.slane %v10055_v35, 1  ;;  %v13183_v49 = vpack.c.bf16 %v10043_v16, %v10036_v63  ;;  %v10207_v8 = vunpack.c.h.b16 %v13182_v28  ;;  %v12931_v29 = vcombine.low %v17645_v57, %v17644_v26 }
 0xcb2   :  { %v10063_v51 = vrot.slane %v10062_v48, 1  ;;  %v10069_v52 = vmax.f32 %v10067_v7, %v10068_v20  ;;  %v10050_v24 = vmax.f32 %v10048_v61, %v10049_v6 }
 0xcb3   :  { %v10057_v41 = vmax.f32 %v10055_v35, %v10056_v33  ;;  %v10208_v27 = vunpack.c.l.b16 %v13183_v49  ;;  %v10209_v55 = vunpack.c.h.b16 %v13183_v49 }
 0xcb4   :  { %v10070_v43 = vrot.slane %v10069_v52, 1  ;;  %v10064_v14 = vmax.f32 %v10062_v48, %v10063_v51 }
 0xcb5   :  { %v13184_v18 = vpack.c.bf16 %v10057_v41, %v10050_v24  ;;  %v10222_v40 = vsel %vm17636_vm14, %v10208_v27, %v10206_v58  ;;  %v10225_v4 = vsel %vm17637_vm10, %v10209_v55, %v10207_v8 }
 0xcb6   :  { %v10071_v39 = vmax.f32 %v10069_v52, %v10070_v43 }
 0xcb7   :  { %v10210_v3 = vunpack.c.l.b16 %v13184_v18  ;;  %v10211_v5 = vunpack.c.h.b16 %v13184_v18 }
 0xcb8   :  { %v13185_v38 = vpack.c.bf16 %v10071_v39, %v10064_v14 }
 0xcb9   :  { %v10223_v13 = vsel %vm17638_vm8, %v10210_v3, %v10222_v40  ;;  %v10226_v45 = vsel %vm17639_vm13, %v10211_v5, %v10225_v4 }
 0xcba   :  { %v10212_v34 = vunpack.c.l.b16 %v13185_v38  ;;  %v10213_v2 = vunpack.c.h.b16 %v13185_v38 }
 0xcbc   :  { %v10224_v60 = vsel %vm17640_vm0, %v10212_v34, %v10223_v13  ;;  %v10227_v30 = vsel %vm17641_vm11, %v10213_v2, %v10226_v45 }
 0xcbd   :  { %v10234_v50 = vpack.c.b16 %v10227_v30, %v10224_v60 }
 0xcbf   :  { %10240 = vst.msk [vmem:[#allocation6 + $0x8] sm:$0x33] %vm16898_vm5, %v10234_v50 }
 0xcc0   :  { %14047 = dma.done.wait [#allocation16 + $0x3], 9216 }
 0xcc1   :  { %14048 = vsyncadd [#allocation16 + $0x3], 4294958080  ;;  %v17646_v10 = vld [vmem:[#allocation85_spill] sm:$0xff]  ;;  %v17647_v31 = vld [vmem:[#allocation84_spill] sm:$0xff]  ;;  %10497 = vmatprep.subr.bf16.mxu1 %v12907_v62  ;;  %10671 = vmatprep.subr.bf16.mxu0 %v12932_v23  ;;  %vm10284_vm4 = vsmask.f32 2312 }
 0xcc2   :  { %v12905_v32 = vcombine.high %v17647_v31, %v17646_v10  ;;  %v17648_v36 = vld [vmem:[#allocation61_spill] sm:$0xff]  ;;  %v17649_v47 = vld [vmem:[#allocation60_spill] sm:$0xff]  ;;  %10498 = vmatpush1.bf16.msra.mxu1 %v12906_v37  ;;  %10672 = vmatpush1.bf16.msra.mxu0 %v12931_v29  ;;  %v12904_v1 = vcombine.low %v17647_v31, %v17646_v10  ;;  %v17650_v56 = vld [vmem:[#allocation83_spill] sm:$0xff]  ;;  %vm17663_vm3 = vsmask.f32 4368 }
 0xcc3   :  { %v12930_v15 = vcombine.high %v17649_v47, %v17648_v36  ;;  %v12929_v19 = vcombine.low %v17649_v47, %v17648_v36  ;;  %v17651_v53 = vld [vmem:[#allocation82_spill] sm:$0xff]  ;;  %v17652_v17 = vld [vmem:[#allocation59_spill] sm:$0xff]  ;;  %v17654_v7 = vld [vmem:[#allocation81_spill] sm:$0xff]  ;;  %vm10287_vm5 = vsmask.f32 6424 }
 0xcc4   :  { %10499 = vmatprep.subr.bf16.mxu1 %v12905_v32  ;;  %v12903_v12 = vcombine.high %v17651_v53, %v17650_v56  ;;  %v17653_v54 = vld [vmem:[#allocation58_spill] sm:$0xff]  ;;  %v12902_v21 = vcombine.low %v17651_v53, %v17650_v56  ;;  %v11038_v25 = vld [vmem:[#allocation7 + $0xc] sm:$0x8]  ;;  %v17655_v63 = vld [vmem:[#allocation80_spill] sm:$0xff]  ;;  %vm10732_vm1 = vsmask.f32 1280 }
 0xcc5   :  { %10673 = vmatprep.subr.bf16.mxu0 %v12930_v15  ;;  %v12928_v46 = vcombine.high %v17653_v54, %v17652_v17  ;;  %v12927_v59 = vcombine.low %v17653_v54, %v17652_v17  ;;  %v11035_v61 = vld [vmem:[#allocation7] sm:$0x8]  ;;  %v12901_v16 = vcombine.high %v17655_v63, %v17654_v7  ;;  %v17656_v35 = vld [vmem:[#allocation57_spill] sm:$0xff]  ;;  %v17657_v6 = vld [vmem:[#allocation56_spill] sm:$0xff]  ;;  %v11039_v28 = vsel %vm14584_vm7, 0, %v11038_v25 }
 0xcc6   :  { %10500 = vmatpush1.bf16.msra.mxu1 %v12904_v1  ;;  %10674 = vmatpush1.bf16.msra.mxu0 %v12929_v19  ;;  %v12926_v48 = vcombine.high %v17657_v6, %v17656_v35  ;;  %v11036_v20 = vsel %vm14584_vm7, 0, %v11035_v61  ;;  %v12887_v33 = vld.sshfl [vmem:[#allocation6 + $0x8] sm:$0xf pattern:$0x76325410]  ;;  %v12900_v51 = vcombine.low %v17655_v63, %v17654_v7  ;;  %v12925_v52 = vcombine.low %v17657_v6, %v17656_v35  ;;  %v17658_v27 = vld [vmem:[#allocation79_spill] sm:$0xff]  ;;  %vm16997_vm8 = vmand %vm17637_vm10, %vm10732_vm1 }
 0xcc7   :  { %10501 = vmatprep.subr.bf16.mxu1 %v12903_v12  ;;  %10675 = vmatprep.subr.bf16.mxu0 %v12928_v46  ;;  %11037 = vst [vmem:[#allocation7] sm:$0x8] %v11036_v20  ;;  %11040 = vst [vmem:[#allocation7 + $0xc] sm:$0x8] %v11039_v28  ;;  %v10295_v24 = vshrl.u32 %v12887_v33, 16  ;;  %v17659_v9 = vld [vmem:[#allocation78_spill] sm:$0xff] }
 0xcc8   :  { %v12889_v49 = vld.sshfl [vmem:[#allocation6 + $0x20] sm:$0xf pattern:$0x76325410]  ;;  %v12899_v55 = vcombine.high %v17659_v9, %v17658_v27  ;;  %v17661_v58 = vld [vmem:[#allocation54_spill] sm:$0xff]  ;;  %v12898_v14 = vcombine.low %v17659_v9, %v17658_v27  ;;  %v10298_v39 = vshll.u32 %v12887_v33, 16 }
 0xcc9   :  { %v12886_v41 = vld.sshfl [vmem:[#allocation6] sm:$0xa0 pattern:$0x76325410]  ;;  %v17660_v43 = vld [vmem:[#allocation55_spill] sm:$0xff]  ;;  %v10297_v40 = vrot.slane %v10295_v24, 7  ;;  %v10364_v5 = vcombine.low %v12887_v33, %v12889_v49 }
 0xcca   :  { %10502 = vmatpush1.bf16.msra.mxu1 %v12902_v21  ;;  %10676 = vmatpush1.bf16.msra.mxu0 %v12927_v59  ;;  %v12924_v8 = vcombine.high %v17661_v58, %v17660_v43  ;;  %v12888_v18 = vld.sshfl [vmem:[#allocation6 + $0x18] sm:$0xa0 pattern:$0x76325410]  ;;  %vm17662_vm7 = vsmask.f32 256  ;;  %v12923_v38 = vcombine.low %v17661_v58, %v17660_v43  ;;  %v10261_v13 = vcombine.high %v12886_v41, %v12886_v41 }
 0xccb   :  { %10503 = vmatprep.subr.bf16.mxu1 %v12901_v16  ;;  %10677 = vmatprep.subr.bf16.mxu0 %v12926_v48  ;;  %vm10285_vm15 = vmor %vm17662_vm7, %vm10284_vm4  ;;  %v10308_v4 = vshrl.u32 %v12889_v49, 16  ;;  %v10311_v3 = vshll.u32 %v12889_v49, 16  ;;  %v10276_v45 = vcombine.high %v12888_v18, %v12888_v18  ;;  %v17664_v34 = vld [vmem:[#allocation77_spill] sm:$0xff]  ;;  %v17665_v2 = vld [vmem:[#allocation76_spill] sm:$0xff]  ;;  %v16968_v62 = vrot.slane %v10364_v5, %v15183_v11 }
 0xccc   :  { %vm10286_vm12 = vmor %vm10285_vm15, %vm17663_vm3  ;;  %v12897_v60 = vcombine.high %v17665_v2, %v17664_v34  ;;  %v17666_v30 = vld [vmem:[#allocation53_spill] sm:$0xff]  ;;  %v17667_v50 = vld [vmem:[#allocation52_spill] sm:$0xff]  ;;  %v10290_v26 = vshrl.u32 %v10261_v13, 16  ;;  %v10300_v57 = vor.u32 %v10298_v39, %v10297_v40  ;;  %v12896_v10 = vcombine.low %v17665_v2, %v17664_v34 }
 0xccd   :  { %v12922_v42 = vcombine.high %v17667_v50, %v17666_v30  ;;  %v10310_v22 = vrot.slane %v10308_v4, 7  ;;  %v10303_v23 = vshrl.u32 %v10276_v45, 16  ;;  %v10372_v37 = vcombine.high %v16968_v62, %v16968_v62  ;;  %vm10288_vm6 = vmor %vm10286_vm12, %vm10287_vm5  ;;  %v17668_v47 = vld [vmem:[#allocation75_spill] sm:$0xff]  ;;  %v17669_v15 = vld [vmem:[#allocation74_spill] sm:$0xff] }
 0xcce   :  { %10504 = vmatpush1.bf16.msra.mxu1 %v12900_v51  ;;  %10678 = vmatpush1.bf16.msra.mxu0 %v12925_v52  ;;  %v12921_v31 = vcombine.low %v17667_v50, %v17666_v30  ;;  %v12890_v32 = vrot.slane %v10290_v26, 9  ;;  %v12895_v1 = vcombine.high %v17669_v15, %v17668_v47  ;;  %v17670_v19 = vld [vmem:[#allocation51_spill] sm:$0xff]  ;;  %v17671_v56 = vld [vmem:[#allocation50_spill] sm:$0xff]  ;;  %v12894_v46 = vcombine.low %v17669_v15, %v17668_v47  ;;  %v17672_v61 = vld [vmem:[#allocation73_spill] sm:$0xff] }
 0xccf   :  { %10505 = vmatprep.subr.bf16.mxu1 %v12899_v55  ;;  %10679 = vmatprep.subr.bf16.mxu0 %v12924_v8  ;;  %v10313_v29 = vor.u32 %v10311_v3, %v10310_v22  ;;  %v12891_v36 = vrot.slane %v10303_v23, 9  ;;  %v12920_v53 = vcombine.high %v17671_v56, %v17670_v19  ;;  %v12942_v12 = vld.sshfl [vmem:[#allocation6 + $0x8] sm:$0x5f pattern:$0x76325410]  ;;  %v12919_v59 = vcombine.low %v17671_v56, %v17670_v19  ;;  %v17678_v24 = vld [vmem:[#allocation95_spill] sm:$0xff] }
 0xcd0   :  { %12916 = vmatprep.mubr.msk.bf16.mxu1 %vm9884_vm9, %v10372_v37  ;;  %v10301_v17 = vsel %vm10288_vm6, %v12890_v32, %v10300_v57  ;;  %v17673_v25 = vld [vmem:[#allocation72_spill] sm:$0xff]  ;;  %vm10733_vm14 = vsmask.f32 3336  ;;  %v10740_v63 = vshrl.u32 %v12942_v12, 16  ;;  %v11043_v16 = vld [vmem:[#allocation7 + $0x4] sm:$0x2]  ;;  %v10723_v58 = vcombine.high %v12942_v12, %v12942_v12 }
 0xcd1   :  { %v10314_v54 = vsel %vm10288_vm6, %v12891_v36, %v10313_v29  ;;  %v12893_v7 = vcombine.high %v17673_v25, %v17672_v61  ;;  %v17674_v35 = vld [vmem:[#allocation49_spill] sm:$0xff]  ;;  %v17675_v6 = vld [vmem:[#allocation48_spill] sm:$0xff]  ;;  %v12892_v20 = vcombine.low %v17673_v25, %v17672_v61  ;;  %v10743_v49 = vshll.u32 %v12942_v12, 16  ;;  %v17679_v41 = vld [vmem:[#allocation94_spill] sm:$0xff] }
 0xcd2   :  { %10506 = vmatpush1.bf16.msra.mxu1 %v12898_v14  ;;  %10680 = vmatpush1.bf16.msra.mxu0 %v12923_v38  ;;  %v10538_v21 = vcombine.low %v10301_v17, %v10314_v54  ;;  %v12918_v48 = vcombine.high %v17675_v6, %v17674_v35  ;;  %v12943_v33 = vld.sshfl [vmem:[#allocation6 + $0x20] sm:$0x5f pattern:$0x76325410]  ;;  %v12917_v52 = vcombine.low %v17675_v6, %v17674_v35  ;;  %v17681_v55 = vld [vmem:[#allocation70_spill] sm:$0xff]  ;;  %v10742_v39 = vrot.slane %v10740_v63, 6  ;;  %vm17011_vm13 = vmor %vm10732_vm1, %vm10733_vm14 }
 0xcd3   :  { %10507 = vmatprep.subr.bf16.mxu1 %v12897_v60  ;;  %10681 = vmatprep.subr.bf16.mxu0 %v12922_v42  ;;  %v12915_v27 = vcombine.high %v17679_v41, %v17678_v24  ;;  %v17680_v9 = vld [vmem:[#allocation71_spill] sm:$0xff]  ;;  %v10731_v14 = vcombine.high %v12943_v33, %v12943_v33  ;;  %v10745_v40 = vrot.slane %v10743_v49, 7  ;;  %vm10735_vm0 = vsmask.f32 5392  ;;  %v17684_v22 = vld [vmem:[#allocation93_spill] sm:$0xff]  ;;  %v17685_v26 = vld [vmem:[#allocation92_spill] sm:$0xff] }
 0xcd4   :  { %v16993_v28 = vrot.slane %v10538_v21, %v15183_v11  ;;  %v12940_v43 = vcombine.high %v17681_v55, %v17680_v9  ;;  %v11046_v8 = vld [vmem:[#allocation7 + $0x10] sm:$0x2]  ;;  %v10754_v3 = vshrl.u32 %v12943_v33, 16  ;;  %v10757_v5 = vshll.u32 %v12943_v33, 16  ;;  %vm10736_vm11 = vmor %vm17011_vm13, %vm10735_vm0  ;;  %v17686_v37 = vld [vmem:[#allocation69_spill] sm:$0xff] }
 0xcd5   :  { %v11044_v38 = vsel %vm16997_vm8, 0, %v11043_v16  ;;  %v10746_v13 = vor.u32 %v10745_v40, %v10742_v39  ;;  %v10749_v45 = vshll.u32 %v10723_v58, 16  ;;  %v10763_v34 = vshll.u32 %v10731_v14, 16  ;;  %v17687_v29 = vld [vmem:[#allocation68_spill] sm:$0xff]  ;;  %v17688_v19 = vld [vmem:[#allocation91_spill] sm:$0xff]  ;;  %v17689_v56 = vld [vmem:[#allocation90_spill] sm:$0xff] }
 0xcd6   :  { %10508 = vmatpush1.bf16.msra.mxu1 %v12896_v10  ;;  %10682 = vmatpush1.bf16.msra.mxu0 %v12921_v31  ;;  %v10546_v18 = vcombine.high %v16993_v28, %v16993_v28  ;;  %11045 = vst [vmem:[#allocation7 + $0x4] sm:$0x2] %v11044_v38  ;;  %v11047_v2 = vsel %vm16997_vm8, 0, %v11046_v8  ;;  %v10756_v60 = vrot.slane %v10754_v3, 6  ;;  %v10759_v30 = vrot.slane %v10757_v5, 7  ;;  %v17690_v12 = vld [vmem:[#allocation67_spill] sm:$0xff] }
 0xcd7   :  { %10509 = vmatprep.subr.bf16.mxu1 %v12895_v1  ;;  %10683 = vmatprep.subr.bf16.mxu0 %v12920_v53  ;;  %11048 = vst [vmem:[#allocation7 + $0x10] sm:$0x2] %v11047_v2  ;;  %v12914_v50 = vcombine.low %v17679_v41, %v17678_v24  ;;  %vm10737_vm7 = vsmask.f32 7448  ;;  %v12939_v42 = vcombine.low %v17681_v55, %v17680_v9  ;;  %v10747_v31 = vrot.slane %v10746_v13, 2  ;;  %v17691_v17 = vld [vmem:[#allocation66_spill] sm:$0xff] }
 0xcd8   :  { %12941 = vmatprep.mubr.msk.bf16.mxu0 %vm9884_vm9, %v10546_v18  ;;  %v12913_v57 = vcombine.high %v17685_v26, %v17684_v22  ;;  %v10760_v23 = vor.u32 %v10759_v30, %v10756_v60  ;;  %v12938_v10 = vcombine.high %v17687_v29, %v17686_v37  ;;  %v10751_v32 = vrot.slane %v10749_v45, 7  ;;  %vm10738_vm15 = vmor %vm10736_vm11, %vm10737_vm7  ;;  %v17693_v63 = vld [vmem:[#allocation88_spill] sm:$0xff]  ;;  %v17694_v35 = vld [vmem:[#allocation65_spill] sm:$0xff] }
 0xcd9   :  { %v10765_v36 = vrot.slane %v10763_v34, 7  ;;  %v12912_v15 = vcombine.low %v17685_v26, %v17684_v22  ;;  %v12937_v1 = vcombine.low %v17687_v29, %v17686_v37  ;;  %v12911_v53 = vcombine.high %v17689_v56, %v17688_v19  ;;  %v17695_v6 = vld [vmem:[#allocation64_spill] sm:$0xff]  ;;  %v17696_v51 = vld [vmem:[#allocation111_spill] sm:$0xff]  ;;  %v17698_v9 = vld [vmem:[#allocation109_spill] sm:$0xff] }
 0xcda   :  { %10510 = vmatpush1.bf16.msra.mxu1 %v12894_v46  ;;  %10684 = vmatpush1.bf16.msra.mxu0 %v12919_v59  ;;  %v10761_v47 = vrot.slane %v10760_v23, 2  ;;  %v12936_v54 = vcombine.high %v17691_v17, %v17690_v12  ;;  %v10752_v46 = vsel %vm10738_vm15, %v10747_v31, %v10751_v32  ;;  %v12910_v59 = vcombine.low %v17689_v56, %v17688_v19  ;;  %v17699_v55 = vld [vmem:[#allocation108_spill] sm:$0xff]  ;;  %v17700_v8 = vld [vmem:[#allocation107_spill] sm:$0xff]  ;;  %v17701_v18 = vld [vmem:[#allocation106_spill] sm:$0xff] }
 0xcdb   :  { %10511 = vmatprep.subr.bf16.mxu1 %v12893_v7  ;;  %10685 = vmatprep.subr.bf16.mxu0 %v12918_v48  ;;  %v12935_v61 = vcombine.low %v17691_v17, %v17690_v12  ;;  %v17692_v7 = vld [vmem:[#allocation89_spill] sm:$0xff]  ;;  %v12934_v48 = vcombine.high %v17695_v6, %v17694_v35  ;;  %v12933_v33 = vcombine.low %v17695_v6, %v17694_v35  ;;  %v17703_v4 = vld [vmem:[#allocation104_spill] sm:$0xff]  ;;  %v17704_v3 = vld [vmem:[#allocation103_spill] sm:$0xff] }
 0xcdc   :  { %v10766_v21 = vsel %vm10738_vm15, %v10761_v47, %v10765_v36  ;;  %v12909_v16 = vcombine.high %v17693_v63, %v17692_v7  ;;  %v12956_v58 = vcombine.low %v17699_v55, %v17698_v9  ;;  %v12955_v14 = vcombine.high %v17701_v18, %v17700_v8  ;;  %v17702_v40 = vld [vmem:[#allocation105_spill] sm:$0xff]  ;;  %v17705_v5 = vld [vmem:[#allocation102_spill] sm:$0xff]  ;;  %v17707_v34 = vld [vmem:[#allocation100_spill] sm:$0xff] }
 0xcdd   :  { %v10792_v25 = vcombine.low %v10752_v46, %v10766_v21  ;;  %v12954_v39 = vcombine.low %v17701_v18, %v17700_v8  ;;  %v12951_v38 = vcombine.high %v17705_v5, %v17704_v3  ;;  %v12950_v13 = vcombine.low %v17705_v5, %v17704_v3  ;;  %v17706_v45 = vld [vmem:[#allocation101_spill] sm:$0xff]  ;;  %v17708_v30 = vld [vmem:[#allocation99_spill] sm:$0xff]  ;;  %v17715_v47 = vld [vmem:[#allocation116_spill] sm:$0xff] }
 0xcde   :  { %10512 = vmatpush1.bf16.msra.mxu1 %v12892_v20  ;;  %10686 = vmatpush1.bf16.msra.mxu0 %v12917_v52  ;;  %v12908_v20 = vcombine.low %v17693_v63, %v17692_v7  ;;  %v17697_v52 = vld [vmem:[#allocation110_spill] sm:$0xff]  ;;  %v12949_v2 = vcombine.high %v17707_v34, %v17706_v45  ;;  %v12948_v60 = vcombine.low %v17707_v34, %v17706_v45  ;;  %v17710_v26 = vld [vmem:[#allocation97_spill] sm:$0xff]  ;;  %v17712_v29 = vld [vmem:[#allocation119_spill] sm:$0xff] }
 0xcdf   :  { %10521 = vmatprep.subr.bf16.mxu1 %v12915_v27  ;;  %10695 = vmatprep.subr.bf16.mxu0 %v12940_v43  ;;  %v10799_v49 = vrot.slane %v10792_v25, %v15183_v11  ;;  %v12959_v24 = vcombine.high %v17697_v52, %v17696_v51  ;;  %v12958_v41 = vcombine.low %v17697_v52, %v17696_v51  ;;  %v17714_v36 = vld [vmem:[#allocation117_spill] sm:$0xff]  ;;  %v17716_v19 = vld [vmem:[#allocation115_spill] sm:$0xff]  ;;  %v17717_v56 = vld [vmem:[#allocation114_spill] sm:$0xff] }
 0xce0   :  { %v12957_v43 = vcombine.high %v17699_v55, %v17698_v9  ;;  %v12962_v12 = vcombine.low %v17717_v56, %v17716_v19  ;;  %v17718_v17 = vld [vmem:[#allocation113_spill] sm:$0xff] }
 0xce1   :  { %v10800_v27 = vcombine.high %v10799_v49, %v10799_v49 }
 0xce2   :  { %10522 = vmatpush2.bf16.msra.mxu1 %v12914_v50  ;;  %10696 = vmatpush2.bf16.msra.mxu0 %v12939_v42  ;;  %v17709_v50 = vld [vmem:[#allocation98_spill] sm:$0xff] }
 0xce3   :  { %10523 = vmatprep.subr.bf16.mxu1 %v12913_v57  ;;  %10697 = vmatprep.subr.bf16.mxu0 %v12938_v10  ;;  %v12947_v42 = vcombine.high %v17709_v50, %v17708_v30  ;;  %v12946_v22 = vcombine.low %v17709_v50, %v17708_v30  ;;  %v17711_v57 = vld [vmem:[#allocation96_spill] sm:$0xff]  ;;  %v17713_v10 = vld [vmem:[#allocation118_spill] sm:$0xff] }
 0xce4   :  { %v12945_v23 = vcombine.high %v17711_v57, %v17710_v26  ;;  %v12944_v37 = vcombine.low %v17711_v57, %v17710_v26  ;;  %v12967_v31 = vcombine.high %v17713_v10, %v17712_v29  ;;  %v12966_v32 = vcombine.low %v17713_v10, %v17712_v29 }
 0xce6   :  { %10524 = vmatpush2.bf16.msra.mxu1 %v12912_v15  ;;  %10698 = vmatpush2.bf16.msra.mxu0 %v12937_v1  ;;  %v12965_v15 = vcombine.high %v17715_v47, %v17714_v36  ;;  %v12964_v1 = vcombine.low %v17715_v47, %v17714_v36 }
 0xce7   :  { %10525 = vmatprep.subr.bf16.mxu1 %v12911_v53  ;;  %10699 = vmatprep.subr.bf16.mxu0 %v12936_v54  ;;  %v12963_v53 = vcombine.high %v17717_v56, %v17716_v19  ;;  %v17719_v54 = vld [vmem:[#allocation112_spill] sm:$0xff] }
 0xce8   :  { %v12961_v46 = vcombine.high %v17719_v54, %v17718_v17  ;;  %v12960_v21 = vcombine.low %v17719_v54, %v17718_v17 }
 0xcea   :  { %10526 = vmatpush2.bf16.msra.mxu1 %v12910_v59  ;;  %10700 = vmatpush2.bf16.msra.mxu0 %v12935_v61 }
 0xceb   :  { %10527 = vmatprep.subr.bf16.mxu1 %v12909_v16  ;;  %10701 = vmatprep.subr.bf16.mxu0 %v12934_v48  ;;  %v10968_v48 = vld [vmem:[%s17232_s11] sm:$0x3] }
 0xcee   :  { %10528 = vmatpush2.bf16.msra.mxu1 %v12908_v20  ;;  %10702 = vmatpush2.bf16.msra.mxu0 %v12933_v33  ;;  %v10973_v33 = vrot.slane %v10968_v48, %v17536_v0 }
 0xcef   :  { %10925 = vmatprep.subr.bf16.mxu1 %v12959_v24 }
 0xcf1   :  { %10530 = vmatmul.mubr.bf16.vlgmr.msra.gmra.mxu1 %v16968_v62  ;;  %10704 = vmatmul.mubr.bf16.vlgmr.msra.gmra.mxu0 %v16993_v28  ;;  %v12953_v62 = vcombine.high %v17703_v4, %v17702_v40  ;;  %v12952_v28 = vcombine.low %v17703_v4, %v17702_v40 }
 0xcf2   :  { %10926 = vmatpush1.bf16.msra.mxu1 %v12958_v41  ;;  %12968 = vmatprep.mubr.msk.bf16.mxu1 %vm9884_vm9, %v10800_v27  ;;  %vm17720_vm9 = vmmov %vm17637_vm10 }
 0xcf3   :  { %10927 = vmatprep.subr.bf16.mxu1 %v12957_v43  ;;  %vm17721_vm3 = vmmov %vm17720_vm9 }
 0xcf6   :  { %10928 = vmatpush1.bf16.msra.mxu1 %v12956_v58 }
 0xcf7   :  { %10929 = vmatprep.subr.bf16.mxu1 %v12955_v14 }
 0xcfa   :  { %10930 = vmatpush1.bf16.msra.mxu1 %v12954_v39 }
 0xcfb   :  { %10931 = vmatprep.subr.bf16.mxu1 %v12953_v62 }
 0xcfe   :  { %10932 = vmatpush1.bf16.msra.mxu1 %v12952_v28 }
 0xcff   :  { %10933 = vmatprep.subr.bf16.mxu1 %v12951_v38 }
 0xd02   :  { %10934 = vmatpush1.bf16.msra.mxu1 %v12950_v13 }
 0xd03   :  { %10935 = vmatprep.subr.bf16.mxu1 %v12949_v2 }
 0xd06   :  { %10936 = vmatpush1.bf16.msra.mxu1 %v12948_v60 }
 0xd07   :  { %10937 = vmatprep.subr.bf16.mxu1 %v12947_v42 }
 0xd0a   :  { %10938 = vmatpush1.bf16.msra.mxu1 %v12946_v22 }
 0xd0b   :  { %10939 = vmatprep.subr.bf16.mxu1 %v12945_v23 }
 0xd0e   :  { %10940 = vmatpush1.bf16.msra.mxu1 %v12944_v37 }
 0xd0f   :  { %10949 = vmatprep.subr.bf16.mxu1 %v12967_v31 }
 0xd12   :  { %10950 = vmatpush2.bf16.msra.mxu1 %v12966_v32 }
 0xd13   :  { %10951 = vmatprep.subr.bf16.mxu1 %v12965_v15 }
 0xd16   :  { %10952 = vmatpush2.bf16.msra.mxu1 %v12964_v1 }
 0xd17   :  { %10953 = vmatprep.subr.bf16.mxu1 %v12963_v53 }
 0xd1a   :  { %10954 = vmatpush2.bf16.msra.mxu1 %v12962_v12 }
 0xd1b   :  { %10955 = vmatprep.subr.bf16.mxu1 %v12961_v46 }
 0xd1e   :  { %10956 = vmatpush2.bf16.msra.mxu1 %v12960_v21 }
 0xd21   :  { %10958 = vmatmul.mubr.bf16.vlgmr.msra.gmra.mxu1 %v10799_v49  ;;  %v10977_v49 = vrot.slane %v10968_v48, %v17537_v44 }
 0xdb1   :  { %v10531_v59 = vpop.f32.mrf.mxu1  ;;  %v10705_v61 = vpop.f32.mrf.mxu0 }
 0xdb2   :  { %v10706_v20 = vadd.f32 %v10705_v61, %v10531_v59 }
 0xdb3   :  { %v10533_v25 = vpop.f32.mrf.mxu1  ;;  %v10707_v7 = vpop.f32.mrf.mxu0 }
 0xdb4   :  { %v10708_v52 = vadd.f32 %v10707_v7, %v10533_v25 }
 0xdb5   :  { %v10535_v63 = vpop.f32.mrf.mxu1  ;;  %v10709_v16 = vpop.f32.mrf.mxu0 }
 0xdb7   :  { %v10536_v35 = vpop.f32.mrf.mxu1  ;;  %v10710_v6 = vpop.f32.mrf.mxu0 }
 0xde1   :  { %v10959_v51 = vpop.f32.mrf.mxu1 }
 0xde2   :  { %v10966_v24 = vadd.f32 %v10959_v51, %v10706_v20 }
 0xde3   :  { %v10961_v41 = vpop.f32.mrf.mxu1 }
 0xde4   :  { %v10980_v27 = vadd.f32 %v10973_v33, %v10966_v24  ;;  %v10967_v9 = vadd.f32 %v10961_v41, %v10708_v52 }
 0xde5   :  { %v10963_v55 = vpop.f32.mrf.mxu1 }
 0xde6   :  { %v10981_v43 = vadd.f32 %v10977_v49, %v10967_v9  ;;  %v10982_v8 = vmax.f32 %v10980_v27, 0.0 }
 0xde7   :  { %v10964_v58 = vpop.f32.mrf.mxu1 }
 0xde8   :  { %v10983_v18 = vmax.f32 %v10981_v43, 0.0 }
 0xdea   :  { %v10984_v14 = vmax.f32 %v10982_v8, %v10983_v18 }
 0xdec   :  { %v10986_v39 = vcombine.high %v10984_v14, %v10984_v14  ;;  %v10993_v40 = vrot.slane %v10984_v14, %v15183_v11 }
 0xdee   :  { %v11000_v4 = vrot.slane %v10986_v39, %v15183_v11  ;;  %v11001_v62 = vcombine.high %v10993_v40, %v10993_v40  ;;  %v11007_v28 = vsel %vm2718_vm2, %v10993_v40, -inf }
 0xdef   :  { %v11008_v3 = vrot.slane %v11007_v28, 4 }
 0xdf0   :  { %v11002_v5 = vcombine.high %v11000_v4, %v11000_v4  ;;  %v11014_v38 = vsel %vm2718_vm2, %v11001_v62, -inf  ;;  %v11021_v13 = vsel %vm2718_vm2, %v11000_v4, -inf }
 0xdf1   :  { %v11009_v45 = vmax.f32 %v11007_v28, %v11008_v3  ;;  %v11015_v34 = vrot.slane %v11014_v38, 4  ;;  %v11022_v2 = vrot.slane %v11021_v13, 4 }
 0xdf2   :  { %v11028_v60 = vsel %vm2718_vm2, %v11002_v5, -inf }
 0xdf3   :  { %v11010_v30 = vrot.slane %v11009_v45, 2  ;;  %v11016_v50 = vmax.f32 %v11014_v38, %v11015_v34  ;;  %v11023_v42 = vmax.f32 %v11021_v13, %v11022_v2  ;;  %v11029_v22 = vrot.slane %v11028_v60, 4 }
 0xdf5   :  { %v11011_v26 = vmax.f32 %v11009_v45, %v11010_v30  ;;  %v11017_v57 = vrot.slane %v11016_v50, 2  ;;  %v11024_v23 = vrot.slane %v11023_v42, 2  ;;  %v11030_v37 = vmax.f32 %v11028_v60, %v11029_v22 }
 0xdf7   :  { %v11012_v29 = vrot.slane %v11011_v26, 1  ;;  %v11018_v10 = vmax.f32 %v11016_v50, %v11017_v57  ;;  %v11025_v31 = vmax.f32 %v11023_v42, %v11024_v23  ;;  %v11031_v32 = vrot.slane %v11030_v37, 2 }
 0xdf9   :  { %v11013_v36 = vmax.f32 %v11011_v26, %v11012_v29  ;;  %v11019_v47 = vrot.slane %v11018_v10, 1  ;;  %v11026_v15 = vrot.slane %v11025_v31, 1  ;;  %v11032_v1 = vmax.f32 %v11030_v37, %v11031_v32 }
 0xdfb   :  { %v11020_v19 = vmax.f32 %v11018_v10, %v11019_v47  ;;  %v11027_v56 = vmax.f32 %v11025_v31, %v11026_v15  ;;  %v11033_v53 = vrot.slane %v11032_v1, 1  ;;  %v13190_v12 = vpack.c.bf16 %v11013_v36, %v11013_v36 }
 0xdfd   :  { %v11034_v17 = vmax.f32 %v11032_v1, %v11033_v53  ;;  %v13191_v54 = vpack.c.bf16 %v11020_v19, %v11020_v19  ;;  %v13192_v46 = vpack.c.bf16 %v11027_v56, %v11027_v56  ;;  %v11065_v59 = vunpack.c.l.b16 %v13190_v12 }
 0xdff   :  { %v13193_v21 = vpack.c.bf16 %v11034_v17, %v11034_v17  ;;  %v11066_v61 = vunpack.c.l.b16 %v13191_v54  ;;  %v11067_v25 = vunpack.c.l.b16 %v13192_v46 }
 0xe01   :  { %v11068_v7 = vunpack.c.l.b16 %v13193_v21  ;;  %v11069_v63 = vsel %vm17720_vm9, %v11066_v61, %v11065_v59 }
 0xe02   :  { %v11071_v16 = vpack.c.b16 %v11069_v63, %v11069_v63 }
 0xe03   :  { %v11070_v35 = vsel %vm17721_vm3, %v11068_v7, %v11067_v25 }
 0xe04   :  { %v11072_v6 = vpack.c.b16 %v11070_v35, %v11070_v35  ;;  %11075 = vst [vmem:[#allocation7 + $0x4] sm:$0x1] %v11071_v16 }
 0xe06   :  { %11076 = vst [vmem:[#allocation7 + $0x10] sm:$0x1] %v11072_v6 }
 0xe07   :  { %14049 = dma.done.wait [#allocation16 + $0x4], 6144 }
 0xe08   :  { %14050 = vsyncadd [#allocation16 + $0x4], 4294961152  ;;  %v17722_v48 = vmov 0   ;;  %v13742_v20 = vld [vmem:[#allocation12 + $0xf4] ss:$8 sps:$4 sm:$0xff]   ;;  %v17726_v60 = vld [vmem:[#allocation124_spill] sm:$0xff] }
 0xe09   :  { %11339 = vmatprep.mubr.bf16.mxu0 %v17722_v48  ;;  %11696 = vmatprep.mubr.bf16.mxu1 %v17722_v48  ;;  %v13744_v33 = vld [vmem:[#allocation12 + $0xf0] ss:$8 sps:$4 sm:$0xff]   ;;  %v13745_v51 = vld [vmem:[#allocation12 + $0xe4] ss:$8 sps:$4 sm:$0xff]   ;;  %v13747_v52 = vld [vmem:[#allocation12 + $0xe0] ss:$8 sps:$4 sm:$0xff]  }
 0xe0a   :  { %11307 = vmatprep.subr.bf16.mxu0 %v13742_v20  ;;  %v13748_v24 = vld [vmem:[#allocation12 + $0xd4] ss:$8 sps:$4 sm:$0xff]   ;;  %v13750_v49 = vld [vmem:[#allocation12 + $0xd0] ss:$8 sps:$4 sm:$0xff]   ;;  %v13751_v41 = vld [vmem:[#allocation12 + $0xc4] ss:$8 sps:$4 sm:$0xff]  }
 0xe0b   :  { %11308 = vmatpush1.bf16.msra.mxu0 %v13744_v33  ;;  %vm11149_vm12 = vsmask.f32 1284  ;;  %v13753_v27 = vld [vmem:[#allocation12 + $0xc0] ss:$8 sps:$4 sm:$0xff]   ;;  %v13765_v9 = vld [vmem:[#allocation12 + $0x174] ss:$8 sps:$4 sm:$0xff]  }
 0xe0c   :  { %11309 = vmatprep.subr.bf16.mxu0 %v13745_v51  ;;  %v13768_v55 = vld [vmem:[#allocation12 + $0x170] ss:$8 sps:$4 sm:$0xff]   ;;  %v13754_v43 = vld [vmem:[#allocation12 + $0xb4] ss:$8 sps:$4 sm:$0xff]   ;;  %11664 = vmatprep.subr.bf16.mxu1 %v13765_v9  ;;  %vm17723_vm6 = vsmask.f32 256 }
 0xe0d   :  { %v13756_v58 = vld [vmem:[#allocation12 + $0xb0] ss:$8 sps:$4 sm:$0xff]   ;;  %vm11150_vm1 = vmor %vm17723_vm6, %vm11149_vm12  ;;  %11665 = vmatpush1.bf16.msra.mxu1 %v13768_v55  ;;  %v14071_v8 = vmov 1966171168   ;;  %v13773_v14 = vld [vmem:[#allocation12 + $0x164] ss:$8 sps:$4 sm:$0xff]  }
 0xe0e   :  { %v11098_v18 = vunpack.c.l.s4 %v14071_v8  ;;  %v13775_v39 = vld [vmem:[#allocation12 + $0x160] ss:$8 sps:$4 sm:$0xff]   ;;  %v13757_v40 = vld [vmem:[#allocation12 + $0xa4] ss:$8 sps:$4 sm:$0xff]   ;;  %11666 = vmatprep.subr.bf16.mxu1 %v13773_v14  ;;  %vm17120_vm14 = vmor %vm11150_vm1, %vm10284_vm4  ;;  %vm11152_vm10 = vsmask.f32 3340 }
 0xe0f   :  { %11310 = vmatpush1.bf16.msra.mxu0 %v13747_v52  ;;  %v13759_v62 = vld [vmem:[#allocation12 + $0xa0] ss:$8 sps:$4 sm:$0xff]   ;;  %v13779_v28 = vld [vmem:[#allocation12 + $0x154] ss:$8 sps:$4 sm:$0xff]   ;;  %v13781_v38 = vld [vmem:[#allocation12 + $0x150] ss:$8 sps:$4 sm:$0xff]  }
 0xe10   :  { %11311 = vmatprep.subr.bf16.mxu0 %v13748_v24  ;;  %v17124_v3 = vld [vmem:[#allocation7 + $0x4] sm:$0x1]  ;;  %v11099_v5 = vunpack.c.0.s8 %v11098_v18  ;;  %v17126_v13 = vld [vmem:[#allocation7 + $0x10] sm:$0x1]  ;;  %v13785_v34 = vld [vmem:[#allocation12 + $0x144] ss:$8 sps:$4 sm:$0xff]  }
 0xe11   :  { %11667 = vmatpush1.bf16.msra.mxu1 %v13775_v39  ;;  %v13760_v45 = vld [vmem:[#allocation12 + $0x94] ss:$8 sps:$4 sm:$0xff]   ;;  %v13762_v2 = vld [vmem:[#allocation12 + $0x90] ss:$8 sps:$4 sm:$0xff]   ;;  %vm11153_vm4 = vmor %vm17120_vm14, %vm11152_vm10  ;;  %v11211_v50 = vcombine.low %v17124_v3, %v17126_v13  ;;  %vm17727_vm8 = vsmask.f32 4368 }
 0xe12   :  { %11668 = vmatprep.subr.bf16.mxu1 %v13779_v28  ;;  %v17131_v30 = vsub.s32 %v11099_v5, %v17726_v60  ;;  %v13787_v42 = vld [vmem:[#allocation12 + $0x140] ss:$8 sps:$4 sm:$0xff]   ;;  %v13791_v22 = vld [vmem:[#allocation12 + $0x134] ss:$8 sps:$4 sm:$0xff]   ;;  %v13763_v26 = vld [vmem:[#allocation12 + $0x84] ss:$8 sps:$4 sm:$0xff]  }
 0xe13   :  { %11312 = vmatpush1.bf16.msra.mxu0 %v13750_v49  ;;  %v13767_v57 = vld [vmem:[#allocation12 + $0x80] ss:$8 sps:$4 sm:$0xff]   ;;  %vm11154_vm13 = vmor %vm11153_vm4, %vm17727_vm8  ;;  %v13793_v37 = vld [vmem:[#allocation12 + $0x130] ss:$8 sps:$4 sm:$0xff]   ;;  %vm11155_vm0 = vsmask.f32 5396 }
 0xe14   :  { %11313 = vmatprep.subr.bf16.mxu0 %v13751_v41  ;;  %v11218_v23 = vrot.slane %v11211_v50, %v17131_v30  ;;  %v13797_v29 = vld [vmem:[#allocation12 + $0x124] ss:$8 sps:$4 sm:$0xff]   ;;  %v13772_v10 = vld [vmem:[#allocation12 + $0x74] ss:$8 sps:$4 sm:$0xff]   ;;  %v13770_v31 = vld [vmem:[#allocation12 + $0x70] ss:$8 sps:$4 sm:$0xff]   ;;  %v11111_v24 = vrot.slane %v17124_v3, %v17131_v30 }
 0xe15   :  { %11669 = vmatpush1.bf16.msra.mxu1 %v13781_v38  ;;  %vm17137_vm11 = vmor %vm11154_vm13, %vm11155_vm0  ;;  %v13799_v47 = vld [vmem:[#allocation12 + $0x120] ss:$8 sps:$4 sm:$0xff]   ;;  %v13803_v15 = vld [vmem:[#allocation12 + $0x114] ss:$8 sps:$4 sm:$0xff]   ;;  %vm11158_vm7 = vsmask.f32 7452 }
 0xe16   :  { %11670 = vmatprep.subr.bf16.mxu1 %v13785_v34  ;;  %v11225_v36 = vrot.slane %v11218_v23, %v17131_v30  ;;  %v13778_v1 = vld [vmem:[#allocation12 + $0x64] ss:$8 sps:$4 sm:$0xff]   ;;  %v13776_v19 = vld [vmem:[#allocation12 + $0x60] ss:$8 sps:$4 sm:$0xff]   ;;  %v13784_v53 = vld [vmem:[#allocation12 + $0x54] ss:$8 sps:$4 sm:$0xff]   ;;  %v11118_v39 = vrot.slane %v11111_v24, %v17131_v30 }
 0xe17   :  { %11314 = vmatpush1.bf16.msra.mxu0 %v13753_v27  ;;  %v13009_v56 = vld.sshfl [vmem:[#allocation7 + $0x4] sm:$0x11 pattern:$0x75316420]  ;;  %v13805_v12 = vld [vmem:[#allocation12 + $0x110] ss:$8 sps:$4 sm:$0xff]   ;;  %vm17145_vm15 = vmor %vm17137_vm11, %vm10287_vm5 }
 0xe18   :  { %11315 = vmatprep.subr.bf16.mxu0 %v13754_v43  ;;  %v13010_v54 = vld.sshfl [vmem:[#allocation7 + $0x10] sm:$0x11 pattern:$0x75316420]  ;;  %v11496_v46 = vcombine.high %v13009_v56, %v13009_v56  ;;  %v11503_v21 = vrot.slane %v13009_v56, %v17131_v30  ;;  %v13809_v59 = vld [vmem:[#allocation12 + $0x104] ss:$8 sps:$4 sm:$0xff]   ;;  %vm17156_vm5 = vmor %vm17145_vm15, %vm11158_vm7 }
 0xe19   :  { %11671 = vmatpush1.bf16.msra.mxu1 %v13787_v42  ;;  %v11518_v61 = vcombine.high %v13010_v54, %v13010_v54  ;;  %v11525_v25 = vrot.slane %v13010_v54, %v17131_v30  ;;  %v12973_v7 = vld.sshfl [vmem:[#allocation7] sm:$0x20 pattern:$0x75316420]  ;;  %v13811_v49 = vld [vmem:[#allocation12 + $0x100] ss:$8 sps:$4 sm:$0xff]  }
 0xe1a   :  { %11672 = vmatprep.subr.bf16.mxu1 %v13791_v22  ;;  %v11510_v63 = vrot.slane %v11496_v46, %v17131_v30  ;;  %v11534_v16 = vshrl.u32 %v11503_v21, 16  ;;  %v12974_v35 = vld.sshfl [vmem:[#allocation7 + $0xc] sm:$0x20 pattern:$0x75316420]  ;;  %v11096_v6 = vcombine.high %v12973_v7, %v12973_v7  ;;  %vm17734_vm9 = vcmask 1043456  }
 0xe1b   :  { %11316 = vmatpush1.bf16.msra.mxu0 %v13756_v58  ;;  %v11532_v33 = vrot.slane %v11518_v61, %v17131_v30  ;;  %v11543_v51 = vshrl.u32 %v11525_v25, 16  ;;  %v11126_v52 = vcombine.high %v12974_v35, %v12974_v35  ;;  %v13782_v27 = vld [vmem:[#allocation12 + $0x50] ss:$8 sps:$4 sm:$0xff]   ;;  %v13790_v58 = vld [vmem:[#allocation12 + $0x44] ss:$8 sps:$4 sm:$0xff]   ;;  %vm17735_vm3 = vmmov %vm17734_vm9 }
 0xe1c   :  { %11317 = vmatprep.subr.bf16.mxu0 %v13757_v40  ;;  %v11539_v41 = vshll.u32 %v11510_v63, 16  ;;  %v11103_v55 = vrot.slane %v11096_v6, %v17131_v30  ;;  %v13788_v4 = vld [vmem:[#allocation12 + $0x40] ss:$8 sps:$4 sm:$0xff]   ;;  %v13796_v3 = vld [vmem:[#allocation12 + $0x34] ss:$8 sps:$4 sm:$0xff]   ;;  %vm17736_vm12 = vmmov %vm17735_vm3 }
 0xe1d   :  { %11673 = vmatpush1.bf16.msra.mxu1 %v13793_v37  ;;  %v11548_v9 = vshll.u32 %v11532_v33, 16  ;;  %v11133_v43 = vrot.slane %v11126_v52, %v17131_v30  ;;  %v13794_v34 = vld [vmem:[#allocation12 + $0x30] ss:$8 sps:$4 sm:$0xff]   ;;  %v13802_v42 = vld [vmem:[#allocation12 + $0x24] ss:$8 sps:$4 sm:$0xff]   ;;  %vm17737_vm6 = vmmov %vm17735_vm3 }
 0xe1e   :  { %11674 = vmatprep.subr.bf16.mxu1 %v13797_v29  ;;  %v11541_v8 = vsel %vm17156_vm5, %v11534_v16, %v11539_v41  ;;  %v13800_v22 = vld [vmem:[#allocation12 + $0x20] ss:$8 sps:$4 sm:$0xff]   ;;  %v13808_v23 = vld [vmem:[#allocation12 + $0x14] ss:$8 sps:$4 sm:$0xff]   ;;  %v13806_v29 = vld [vmem:[#allocation12 + $0x10] ss:$8 sps:$4 sm:$0xff]  }
 0xe1f   :  { %11318 = vmatpush1.bf16.msra.mxu0 %v13759_v62  ;;  %v11550_v18 = vsel %vm17156_vm5, %v11543_v51, %v11548_v9  ;;  %v11104_v62 = vcombine.high %v11103_v55, %v11103_v55  ;;  %v11134_v28 = vcombine.high %v11133_v43, %v11133_v43  ;;  %v13812_v32 = vld [vmem:[#allocation12] ss:$8 sps:$4 sm:$0xff]  }
 0xe20   :  { %11319 = vmatprep.subr.bf16.mxu0 %v13760_v45  ;;  %v11568_v14 = vcombine.low %v11541_v8, %v11550_v18  ;;  %v11707_v54 = vld [vmem:[%s17233_s12] sm:$0x3] }
 0xe21   :  { %11675 = vmatpush1.bf16.msra.mxu1 %v13799_v47  ;;  %v11170_v50 = vshrl.u32 %v11134_v28, 16  ;;  %v11716_v7 = vrot.slane %v11707_v54, %v17537_v44 }
 0xe22   :  { %11676 = vmatprep.subr.bf16.mxu1 %v13803_v15  ;;  %v11575_v5 = vrot.slane %v11568_v14, %v17131_v30 }
 0xe23   :  { %11320 = vmatpush1.bf16.msra.mxu0 %v13762_v2  ;;  %v11161_v2 = vshrl.u32 %v11104_v62, 16 }
 0xe24   :  { %11321 = vmatprep.subr.bf16.mxu0 %v13763_v26  ;;  %v11582_v38 = vrot.slane %v11575_v5, %v17131_v30 }
 0xe25   :  { %11677 = vmatpush1.bf16.msra.mxu1 %v13805_v12 }
 0xe26   :  { %11678 = vmatprep.subr.bf16.mxu1 %v13809_v59  ;;  %v11712_v59 = vrot.slane %v11707_v54, %v17536_v0  ;;  %v11793_v54 = vld [vmem:[%s17239_s18] sm:$0x3] }
 0xe27   :  { %11322 = vmatpush1.bf16.msra.mxu0 %v13767_v57 }
 0xe28   :  { %11444 = vmatprep.subr.bf16.mxu0 %v13772_v10  ;;  %v13814_v10 = vld [vmem:[#allocation12 + $0x4] ss:$8 sps:$4 sm:$0xff]  }
 0xe29   :  { %11679 = vmatpush1.bf16.msra.mxu1 %v13811_v49 }
 0xe2a   :  { %11340 = vmatmul.mubr.bf16.vlgmr.msra.gmra.mxu0 %v11225_v36 }
 0xe2b   :  { %11445 = vmatpush1.bf16.msra.mxu0 %v13770_v31  ;;  %11476 = vmatprep.mubr.bf16.mxu0 %v17722_v48  ;;  %v11141_v48 = vrot.slane %v17126_v13, %v17131_v30  ;;  %v11166_v13 = vshll.u32 %v11118_v39, 16 }
 0xe2c   :  { %11446 = vmatprep.subr.bf16.mxu0 %v13778_v1  ;;  %11697 = vmatmul.mubr.bf16.vlgmr.msra.gmra.mxu1 %v11582_v38 }
 0xe2d   :  { %v11148_v40 = vrot.slane %v11141_v48, %v17131_v30  ;;  %v11168_v26 = vsel %vm17156_vm5, %v11161_v2, %v11166_v13 }
 0xe2f   :  { %11447 = vmatpush1.bf16.msra.mxu0 %v13776_v19  ;;  %v11175_v45 = vshll.u32 %v11148_v40, 16 }
 0xe30   :  { %11448 = vmatprep.subr.bf16.mxu0 %v13784_v53 }
 0xe31   :  { %v11177_v57 = vsel %vm17156_vm5, %v11170_v50, %v11175_v45 }
 0xe32   :  { %v11348_v37 = vcombine.low %v11168_v26, %v11177_v57 }
 0xe33   :  { %11449 = vmatpush1.bf16.msra.mxu0 %v13782_v27 }
 0xe34   :  { %11450 = vmatprep.subr.bf16.mxu0 %v13790_v58  ;;  %v11355_v31 = vrot.slane %v11348_v37, %v17131_v30 }
 0xe36   :  { %v11362_v36 = vrot.slane %v11355_v31, %v17131_v30 }
 0xe37   :  { %11451 = vmatpush1.bf16.msra.mxu0 %v13788_v4 }
 0xe38   :  { %11452 = vmatprep.subr.bf16.mxu0 %v13796_v3 }
 0xe3b   :  { %11453 = vmatpush1.bf16.msra.mxu0 %v13794_v34 }
 0xe3c   :  { %11454 = vmatprep.subr.bf16.mxu0 %v13802_v42 }
 0xe3f   :  { %11455 = vmatpush1.bf16.msra.mxu0 %v13800_v22 }
 0xe40   :  { %11456 = vmatprep.subr.bf16.mxu0 %v13808_v23 }
 0xe43   :  { %11457 = vmatpush1.bf16.msra.mxu0 %v13806_v29 }
 0xe44   :  { %11458 = vmatprep.subr.bf16.mxu0 %v13814_v10 }
 0xe47   :  { %11459 = vmatpush1.bf16.msra.mxu0 %v13812_v32 }
 0xe4a   :  { %11477 = vmatmul.mubr.bf16.vlgmr.msra.gmra.mxu0 %v11362_v36 }
 0xeea   :  { %v11341_v47 = vpop.f32.mrf.mxu0 }
 0xeec   :  { %v11343_v15 = vpop.f32.mrf.mxu0  ;;  %v11698_v56 = vpop.f32.mrf.mxu1 }
 0xeee   :  { %v11345_v1 = vpop.f32.mrf.mxu0  ;;  %v11700_v53 = vpop.f32.mrf.mxu1 }
 0xef0   :  { %v11346_v19 = vpop.f32.mrf.mxu0  ;;  %v11702_v12 = vpop.f32.mrf.mxu1 }
 0xef2   :  { %v11703_v17 = vpop.f32.mrf.mxu1 }
 0xf0a   :  { %v11478_v46 = vpop.f32.mrf.mxu0 }
 0xf0b   :  { %v11479_v21 = vadd.f32 %v11478_v46, %v11341_v47 }
 0xf0c   :  { %v11480_v61 = vpop.f32.mrf.mxu0 }
 0xf0d   :  { %v11705_v30 = vadd.f32 %v11698_v56, %v11479_v21  ;;  %v11481_v25 = vadd.f32 %v11480_v61, %v11343_v15 }
 0xf0e   :  { %v11482_v63 = vpop.f32.mrf.mxu0 }
 0xf0f   :  { %v11719_v16 = vadd.f32 %v11712_v59, %v11705_v30  ;;  %v11706_v35 = vadd.f32 %v11700_v53, %v11481_v25  ;;  %v11769_v53 = vld [vmem:[%s17238_s17] sm:$0x3]  ;;  %v11798_v25 = vrot.slane %v11793_v54, %v17536_v0 }
 0xf10   :  { %v11483_v6 = vpop.f32.mrf.mxu0  ;;  %v11774_v12 = vrot.slane %v11769_v53, %v17536_v0  ;;  %v11778_v46 = vrot.slane %v11769_v53, %v17537_v44 }
 0xf11   :  { %v11721_v20 = vmax.f32 %v11719_v16, 0.0  ;;  %v11720_v33 = vadd.f32 %v11716_v7, %v11706_v35  ;;  %v11802_v6 = vrot.slane %v11793_v54, %v17537_v44 }
 0xf13   :  { %v11723_v51 = vsel %vm17734_vm9, %v11721_v20, 0.0  ;;  %v11739_v52 = vmul.f32 %v11721_v20, %v11721_v20  ;;  %v11722_v24 = vmax.f32 %v11720_v33, 0.0 }
 0xf14   :  { %v11724_v49 = vrot.slane %v11723_v51, 4 }
 0xf15   :  { %v11741_v41 = vsel %vm17735_vm3, %v11739_v52, 0.0  ;;  %v11730_v48 = vsel %vm17736_vm12, %v11722_v24, 0.0  ;;  %v11740_v27 = vmul.f32 %v11722_v24, %v11722_v24 }
 0xf16   :  { %v11725_v9 = vadd.f32 %v11724_v49, %v11723_v51  ;;  %v11742_v55 = vrot.slane %v11741_v41, 4  ;;  %v11731_v43 = vrot.slane %v11730_v48, 4 }
 0xf17   :  { %v11748_v58 = vsel %vm17737_vm6, %v11740_v27, 0.0 }
 0xf18   :  { %v11726_v8 = vrot.slane %v11725_v9, 2  ;;  %v11743_v18 = vadd.f32 %v11742_v55, %v11741_v41  ;;  %v11732_v14 = vadd.f32 %v11731_v43, %v11730_v48  ;;  %v11749_v39 = vrot.slane %v11748_v58, 4 }
 0xf1a   :  { %v11727_v40 = vadd.f32 %v11726_v8, %v11725_v9  ;;  %v11744_v4 = vrot.slane %v11743_v18, 2  ;;  %v11733_v62 = vrot.slane %v11732_v14, 2  ;;  %v11750_v28 = vadd.f32 %v11749_v39, %v11748_v58 }
 0xf1c   :  { %v11728_v3 = vrot.slane %v11727_v40, 1  ;;  %v11745_v5 = vadd.f32 %v11744_v4, %v11743_v18  ;;  %v11734_v38 = vadd.f32 %v11733_v62, %v11732_v14  ;;  %v11751_v13 = vrot.slane %v11750_v28, 2 }
 0xf1e   :  { %v11729_v45 = vadd.f32 %v11728_v3, %v11727_v40  ;;  %v11746_v34 = vrot.slane %v11745_v5, 1  ;;  %v11735_v2 = vrot.slane %v11734_v38, 1  ;;  %v11752_v50 = vadd.f32 %v11751_v13, %v11750_v28 }
 0xf20   :  { %v11737_v42 = vmul.f32 0.25, %v11729_v45  ;;  %v11747_v22 = vadd.f32 %v11746_v34, %v11745_v5  ;;  %v11736_v26 = vadd.f32 %v11735_v2, %v11734_v38  ;;  %v11753_v57 = vrot.slane %v11752_v50, 1 }
 0xf22   :  { %v11755_v23 = vmul.f32 0.25, %v11747_v22  ;;  %v11757_v37 = vmul.f32 %v11737_v42, %v11737_v42  ;;  %v11738_v29 = vmul.f32 0.25, %v11736_v26  ;;  %v11754_v10 = vadd.f32 %v11753_v57, %v11752_v50 }
 0xf23   :  { %v11767_v61 = vsub.f32 %v11721_v20, %v11737_v42 }
 0xf24   :  { %v11759_v31 = vsub.f32 %v11755_v23, %v11757_v37  ;;  %v11758_v32 = vmul.f32 %v11738_v29, %v11738_v29  ;;  %v11756_v36 = vmul.f32 0.25, %v11754_v10  ;;  %v11768_v16 = vsub.f32 %v11722_v24, %v11738_v29 }
 0xf26   :  { %v11761_v47 = vmax.f32 %v11759_v31, 0.0  ;;  %v11760_v15 = vsub.f32 %v11756_v36, %v11758_v32 }
 0xf28   :  { %v11763_v1 = vadd.f32 0.001, %v11761_v47  ;;  %v11762_v19 = vmax.f32 %v11760_v15, 0.0 }
 0xf2a   :  { %13815 = vrsqrt.f32 %v11763_v1  ;;  %v11764_v56 = vadd.f32 0.001, %v11762_v19 }
 0xf2c   :  { %13817 = vrsqrt.f32 %v11764_v56 }
 0xf37   :  { %v13816_v17 = vpop.eup %13815 }
 0xf38   :  { %v11781_v21 = vmul.f32 %v13816_v17, %v11774_v12 }
 0xf39   :  { %v13818_v59 = vpop.eup %13817 }
 0xf3a   :  { %v11786_v30 = vrot.slane %v11781_v21, %v17536_v0  ;;  %v11782_v7 = vmul.f32 %v13818_v59, %v11778_v46 }
 0xf3c   :  { %v11791_v63 = vmul.f32 %v11786_v30, %v11767_v61  ;;  %v11790_v35 = vrot.slane %v11782_v7, %v17536_v0 }
 0xf3e   :  { %v11805_v33 = vadd.f32 %v11798_v25, %v11791_v63  ;;  %v11792_v51 = vmul.f32 %v11790_v35, %v11768_v16 }
 0xf40   :  { %v11806_v52 = vadd.f32 %v11802_v6, %v11792_v51 }
 0xf41   :  { %14051 = dma.done.wait [#allocation16 + $0x7], 4096 }
 0xf42   :  { %14052 = vsyncadd [#allocation16 + $0x7], 4294963200  ;;  %v11814_v49 = vcombine.low %v11805_v33, %v11806_v52  ;;  %v11885_v41 = vsub.s32 3, %v17726_v60  ;;  %v11829_v48 = vsub.s32 2, %v17726_v60  ;;  %v13819_v18 = vld [vmem:[#allocation15 + $0xf8] sm:$0xff]   ;;  %v13823_v38 = vld [vmem:[#allocation15 + $0xf0] sm:$0xff]  }
 0xf43   :  { %v13820_v14 = vld [vmem:[#allocation15 + $0x78] sm:$0xff]   ;;  %13194 = vmatprep.subr.bf16.mxu0 %v13819_v18  ;;  %v13824_v13 = vld [vmem:[#allocation15 + $0x70] sm:$0xff]   ;;  %vm17738_vm1 = vcmask 1041409   ;;  %v13827_v26 = vld [vmem:[#allocation15 + $0xe8] sm:$0xff]   ;;  %s14072_s0 = smov [#allocation20]  }
 0xf44   :  { %v11821_v20 = vrot.slane %v11814_v49, %v15183_v11  ;;  %v13821_v62 = vld [vmem:[#allocation15 + $0xb8] sm:$0xff]   ;;  %13216 = vmatprep.subr.bf16.mxu1 %v13820_v14  ;;  %v13825_v2 = vld [vmem:[#allocation15 + $0xb0] sm:$0xff]   ;;  %vm17739_vm14 = vmmov %vm17738_vm1  ;;  %s12266_s20 = sshll.u32 %s14072_s0, 4  ;;  %s12267_s20 = int_to_ptr.vmem [resolvable:$true] %s12266_s20 }
 0xf45   :  { %v13822_v28 = vld [vmem:[#allocation15 + $0x38] sm:$0xff]   ;;  %13195 = vmatpush3.bf16.msra.mxu0 %v13821_v62  ;;  %v13826_v42 = vld [vmem:[#allocation15 + $0x30] sm:$0xff]   ;;  %v13828_v23 = vld [vmem:[#allocation15 + $0x68] sm:$0xff]   ;;  %p14020_p13 = scmp.lt.s32.totalorder %s12267_s20, %s12267_s20 }
 0xf46   :  { %v11822_v27 = vcombine.high %v11821_v20, %v11821_v20  ;;  %v11886_v9 = vrot.slane %v11821_v20, %v11885_v41  ;;  %v11830_v55 = vrot.slane %v11821_v20, %v11829_v48  ;;  %13217 = vmatpush3.bf16.msra.mxu1 %v13822_v28  ;;  %13196 = vmatprep.subr.bf16.mxu0 %v13823_v38  ;;  %v13829_v37 = vld [vmem:[#allocation15 + $0xa8] sm:$0xff]   ;;  %v13831_v10 = vld [vmem:[#allocation15 + $0xe0] sm:$0xff]   ;;  %v13835_v1 = vld [vmem:[#allocation15 + $0xd8] sm:$0xff]  }
 0xf47   :  { %13218 = vmatprep.subr.bf16.mxu1 %v13824_v13  ;;  %v13830_v29 = vld [vmem:[#allocation15 + $0x28] sm:$0xff]   ;;  %v11882_v31 = vrot.slane %v11821_v20, %v17537_v44  ;;  %v13832_v32 = vld [vmem:[#allocation15 + $0x60] sm:$0xff]   ;;  %v13836_v53 = vld [vmem:[#allocation15 + $0x58] sm:$0xff]   ;;  %v11826_v12 = vrot.slane %v11821_v20, %v17536_v0 }
 0xf48   :  { %v11894_v24 = vrot.slane %v11822_v27, %v11885_v41  ;;  %v11900_v43 = vpack.c.bf16 %v11886_v9, %v11886_v9  ;;  %v11838_v58 = vrot.slane %v11822_v27, %v11829_v48  ;;  %v11844_v8 = vpack.c.bf16 %v11830_v55, %v11830_v55  ;;  %v13833_v47 = vld [vmem:[#allocation15 + $0xa0] sm:$0xff]   ;;  %v13837_v54 = vld [vmem:[#allocation15 + $0x98] sm:$0xff]   ;;  %v13839_v21 = vld [vmem:[#allocation15 + $0xd0] sm:$0xff]  }
 0xf49   :  { %13197 = vmatpush3.bf16.msra.mxu0 %v13825_v2  ;;  %v11834_v36 = vrot.slane %v11822_v27, %v17536_v0  ;;  %v13834_v15 = vld [vmem:[#allocation15 + $0x20] sm:$0xff]   ;;  %v11890_v19 = vrot.slane %v11822_v27, %v17537_v44  ;;  %v11899_v56 = vpack.c.bf16 %v11882_v31, %v11882_v31  ;;  %v13838_v46 = vld [vmem:[#allocation15 + $0x18] sm:$0xff]   ;;  %v13840_v30 = vld [vmem:[#allocation15 + $0x50] sm:$0xff]   ;;  %v11843_v25 = vpack.c.bf16 %v11826_v12, %v11826_v12 }
 0xf4a   :  { %v11902_v39 = vpack.c.bf16 %v11894_v24, %v11894_v24  ;;  %v11941_v40 = vunpack.c.l.b16 %v11900_v43  ;;  %v11846_v4 = vpack.c.bf16 %v11838_v58, %v11838_v58  ;;  %v12093_v5 = vunpack.c.l.b16 %v11844_v8  ;;  %13219 = vmatpush3.bf16.msra.mxu1 %v13826_v42  ;;  %13198 = vmatprep.subr.bf16.mxu0 %v13827_v26  ;;  %v13841_v44 = vld [vmem:[#allocation15 + $0x90] sm:$0xff]   ;;  %v13843_v16 = vld [vmem:[#allocation15 + $0xc8] sm:$0xff]   ;;  %v13847_v41 = vld [vmem:[#allocation15 + $0xc0] sm:$0xff]  }
 0xf4b   :  { %13220 = vmatprep.subr.bf16.mxu1 %v13828_v23  ;;  %v11845_v17 = vpack.c.bf16 %v11834_v36, %v11834_v36  ;;  %v11901_v59 = vpack.c.bf16 %v11890_v19, %v11890_v19  ;;  %v11940_v61 = vunpack.c.l.b16 %v11899_v56  ;;  %v13842_v63 = vld [vmem:[#allocation15 + $0x10] sm:$0xff]   ;;  %v13844_v6 = vld [vmem:[#allocation15 + $0x48] sm:$0xff]   ;;  %v12092_v33 = vunpack.c.l.b16 %v11843_v25  ;;  %vm17740_vm10 = vmmov %vm17738_vm1 }
 0xf4c   :  { %v11943_v3 = vunpack.c.l.b16 %v11902_v39  ;;  %v11946_v11 = vrot.slane %v11941_v40, 1  ;;  %v12095_v60 = vunpack.c.l.b16 %v11846_v4  ;;  %v13845_v52 = vld [vmem:[#allocation15 + $0x88] sm:$0xff]   ;;  %v13848_v48 = vld [vmem:[#allocation15 + $0x40] sm:$0xff]   ;;  %vm17741_vm4 = vmmov %vm17738_vm1 }
 0xf4d   :  { %13199 = vmatpush3.bf16.msra.mxu0 %v13829_v37  ;;  %v12094_v7 = vunpack.c.l.b16 %v11845_v17  ;;  %v11942_v0 = vunpack.c.l.b16 %v11901_v59  ;;  %v11944_v35 = vrot.slane %v11940_v61, 1  ;;  %v13846_v49 = vld [vmem:[#allocation15 + $0x8] sm:$0xff]   ;;  %v13849_v9 = vld [vmem:[#allocation15 + $0x80] sm:$0xff]  }
 0xf4e   :  { %v11947_v45 = vsel %vm17738_vm1, %v11943_v3, %v11946_v11  ;;  %v12098_v34 = vrot.slane %v12095_v60, 7  ;;  %13221 = vmatpush3.bf16.msra.mxu1 %v13830_v29  ;;  %13200 = vmatprep.subr.bf16.mxu0 %v13831_v10  ;;  %v13850_v55 = vld [vmem:[#allocation15] sm:$0xff]  }
 0xf4f   :  { %v11949_v50 = vpack.c.b16 %v11947_v45, %v11947_v45  ;;  %13222 = vmatprep.subr.bf16.mxu1 %v13832_v32  ;;  %v12096_v51 = vrot.slane %v12094_v7, 7  ;;  %v11945_v20 = vsel %vm17740_vm10, %v11942_v0, %v11944_v35  ;;  %v13061_v28 = vld [vmem:[%s17243_s22] ss:$0 sm:$0xff]  ;;  %s14015_s22 = scalar_lea.vmem %s12267_s20, 32 }
 0xf50   :  { %v12099_v22 = vsel %vm17739_vm14, %v12098_v34, %v12093_v5  ;;  %v11948_v24 = vpack.c.b16 %v11945_v20, %v11945_v20  ;;  %p14016_p12 = scmp.ne.s32.totalorder %s12267_s20, %s14015_s22  ;;  %p14021_p0 = scmp.lt.s32.totalorder %s14015_s22, %s14015_s22 }
 0xf51   :  { %12080 = vmatprep.mubr.bf16.mxu0 %v11949_v50  ;;  %v12101_v57 = vpack.c.b16 %v12099_v22, %v12099_v22  ;;  %13201 = vmatpush3.bf16.msra.mxu0 %v13833_v47  ;;  %v12097_v27 = vsel %vm17741_vm4, %v12096_v51, %v12092_v33 }
 0xf52   :  { %13223 = vmatpush3.bf16.msra.mxu1 %v13834_v15  ;;  %13202 = vmatprep.subr.bf16.mxu0 %v13835_v1  ;;  %v12100_v43 = vpack.c.b16 %v12097_v27, %v12097_v27  ;;  %p14022_p1 = por %p14021_p0, %p14020_p13 }
 0xf53   :  { %12232 = vmatprep.mubr.bf16.mxu1 %v12101_v57  ;;  %13224 = vmatprep.subr.bf16.mxu1 %v13836_v53 }
 0xf54   :  { %p14023_p2 = pnand %p14022_p1, %p14016_p12 }
 0xf55   :  { %13203 = vmatpush3.bf16.msra.mxu0 %v13837_v54 }
 0xf56   :  { %13225 = vmatpush3.bf16.msra.mxu1 %v13838_v46  ;;  %13204 = vmatprep.subr.bf16.mxu0 %v13839_v21 }
 0xf57   :  { %13226 = vmatprep.subr.bf16.mxu1 %v13840_v30 }
 0xf59   :  { %13205 = vmatpush3.bf16.msra.mxu0 %v13841_v44 }
 0xf5a   :  { %13227 = vmatpush3.bf16.msra.mxu1 %v13842_v63  ;;  %13206 = vmatprep.subr.bf16.mxu0 %v13843_v16 }
 0xf5b   :  { %13228 = vmatprep.subr.bf16.mxu1 %v13844_v6 }
 0xf5d   :  { %13207 = vmatpush3.bf16.msra.mxu0 %v13845_v52 }
 0xf5e   :  { %13229 = vmatpush3.bf16.msra.mxu1 %v13846_v49  ;;  %13208 = vmatprep.subr.bf16.mxu0 %v13847_v41 }
 0xf5f   :  { %13230 = vmatprep.subr.bf16.mxu1 %v13848_v48 }
 0xf61   :  { %13209 = vmatpush3.bf16.msra.mxu0 %v13849_v9 }
 0xf62   :  { %13231 = vmatpush3.bf16.msra.mxu1 %v13850_v55 }
 0xf64   :  { %12081 = vmatmul.mubr.bf16.vlgmr.msra.gmra.mxu0 %v11948_v24 }
 0xf65   :  { %12233 = vmatmul.mubr.bf16.vlgmr.msra.gmra.mxu1 %v12100_v43 }
0x1024   :  { %v13210_v58 = vpop.f32.mrf.mxu0 }
0x1025   :  { %v13232_v8 = vpop.f32.mrf.mxu1 }
0x1026   :  { %v13211_v18 = vpop.f32.mrf.mxu0 }
0x1027   :  { %v13212_v14 = vadd.f32 %v13211_v18, %v13210_v58  ;;  %v13233_v39 = vpop.f32.mrf.mxu1 }
0x1028   :  { %v13234_v40 = vadd.f32 %v13233_v39, %v13232_v8  ;;  %v13213_v4 = vpop.f32.mrf.mxu0 }
0x1029   :  { %v13235_v62 = vpop.f32.mrf.mxu1 }
0x102a   :  { %v12235_v3 = vadd.f32 %v13234_v40, %v13212_v14  ;;  %v13214_v11 = vpop.f32.mrf.mxu0 }
0x102b   :  { %v13236_v5 = vpop.f32.mrf.mxu1 }
0x102c   :  { %v12247_v60 = vadd.f32 %v13061_v28, %v12235_v3 }
0x102e   :  { %v12248_v38 = vsel %vm2718_vm2, %v12247_v60, -inf }
0x102f   :  { %12249 = vmax.xlane.f32.xlu0 %v12248_v38 }
0x10b8   :  { %v12250_v13 = vpop.xlane.xlu0 %12249 }
0x10b9   :  { %v12251_v45 = vsub.f32 %v12247_v60, %v12250_v13 }
0x10bb   :  { %v12252_v34 = vmul.f32 1.442695, %v12251_v45 }
0x10bd   :  { %13851 = vpow2.f32 %v12252_v34 }
0x10ca   :  { %v13852_v2 = vpop.eup %13851 }
0x10cb   :  { %v12254_v50 = vsel %vm2718_vm2, %v13852_v2, 0.0 }
0x10cc   :  { %12255 = vadd.xlane.f32.xlu0 %v12254_v50 }
0x1155   :  { %v12256_v42 = vpop.xlane.xlu0 %12255 }
0x1156   :  { %13853 = vrcp.f32 %v12256_v42 }
0x1163   :  { %v13854_v22 = vpop.eup %13853 }
0x1164   :  { %v12258_v26 = vmul.f32 %v13854_v22, %v13852_v2 }
0x1166   :  { %12259 = vst [vmem:[#allocation20] sm:$0x3] %v12258_v26 }
0x1167   :  { %14026 = shalt.err (!%p14023_p2)
}
0x1168   :  { %12269 = dma.vmem_to_hbm [thread:$0]  %s12267_s20, 32, %s17244_s23, [#allocation19]  }
0x1169   :  { %14053 = dma.done.wait [#allocation19], 32  }
0x116a   :  { %14054 = vsyncadd [#allocation19], 4294967264 }
0x116b   :  { %12273 = vsyncpa [#allocation18], 1 }
0x116c   :  { %12274 = vsyncpa [#allocation19], 1 }
0x116d   :  { %12275 = vsyncmov [#allocation16] }
0x1170   :  { %s12276_s8 = vpop.sfrf %12275 }
0x1171   :  { %p13062_p3 = scmp.ne.s32.totalorder %s12276_s8, 0 }
0x1173   :  { %12280 = shalt.err (%p13062_p3)  }
0x1174   :  { %12282 = vsyncmov [#allocation16 + $0x1] }
0x1177   :  { %s12283_s28 = vpop.sfrf %12282 }
0x1178   :  { %p13063_p4 = scmp.ne.s32.totalorder %s12283_s28, 0 }
0x117a   :  { %12287 = shalt.err (%p13063_p4)  }
0x117b   :  { %12289 = vsyncmov [#allocation16 + $0x2] }
0x117e   :  { %s12290_s30 = vpop.sfrf %12289 }
0x117f   :  { %p13064_p5 = scmp.ne.s32.totalorder %s12290_s30, 0 }
0x1181   :  { %12294 = shalt.err (%p13064_p5)  }
0x1182   :  { %12296 = vsyncmov [#allocation16 + $0x3] }
0x1185   :  { %s12297_s7 = vpop.sfrf %12296 }
0x1186   :  { %p13065_p6 = scmp.ne.s32.totalorder %s12297_s7, 0 }
0x1188   :  { %12301 = shalt.err (%p13065_p6)  }
0x1189   :  { %12303 = vsyncmov [#allocation16 + $0x4] }
0x118c   :  { %s12304_s23 = vpop.sfrf %12303 }
0x118d   :  { %p13066_p7 = scmp.ne.s32.totalorder %s12304_s23, 0 }
0x118f   :  { %12308 = shalt.err (%p13066_p7)  }
0x1190   :  { %12310 = vsyncmov [#allocation16 + $0x5] }
0x1193   :  { %s12311_s13 = vpop.sfrf %12310 }
0x1194   :  { %p13067_p8 = scmp.ne.s32.totalorder %s12311_s13, 0 }
0x1196   :  { %12315 = shalt.err (%p13067_p8)  }
0x1197   :  { %12317 = vsyncmov [#allocation16 + $0x6] }
0x119a   :  { %s12318_s14 = vpop.sfrf %12317 }
0x119b   :  { %p13068_p9 = scmp.ne.s32.totalorder %s12318_s14, 0 }
0x119d   :  { %12322 = shalt.err (%p13068_p9)  }
0x119e   :  { %12324 = vsyncmov [#allocation16 + $0x7] }
0x11a1   :  { %s12325_s24 = vpop.sfrf %12324 }
0x11a2   :  { %p13069_p10 = scmp.ne.s32.totalorder %s12325_s24, 0 }
0x11a4   :  { %12329 = shalt.err (%p13069_p10)  }

</bundles_post_ra>
